<compile_context>
chip_gen: v5e
topology: v5e:2x2
jax: 0.10.0
libtpu: 0.0.40
codegen_flags: <defaults>
</compile_context>

<pallas_src>
import math

import jax
import jax.numpy as jnp
from jax.experimental import pallas as pl
from jax.experimental.pallas import tpu as pltpu

BIGNET_DIM = 128      # small, TPU-friendly stand-in for the homework BIGNET_DIM
LORA_DIM = 32
GROUP_SIZE = 16
LN_EPS = 1e-5         # torch.nn.LayerNorm default

N_BLOCKS = 6
N_LAYERS = 3 * N_BLOCKS   # 18 QLoRALinear layers
N_LN = 5                  # LayerNorms between blocks


def _pick_dequant_dtype():
    """bf16 dequant on bf16-VALU chips (v6e/v7x); f32 elsewhere (v5e has no
    bf16 VPU).  Purely a perf choice — both are numerically fine here."""
    try:
        kind = jax.devices()[0].device_kind.lower()
    except Exception:
        return jnp.float32
    return jnp.bfloat16 if ("v6" in kind or "v7" in kind) else jnp.float32


DEQUANT_DTYPE = _pick_dequant_dtype()


# ---------------------------------------------------------------------------
# Fused Pallas kernel: whole QLoRABigNet forward for one batch tile
# ---------------------------------------------------------------------------
def qlora_bignet_kernel(
    x_ref,        # [tb, D]              f32   activations (per grid step)
    wq_ref,       # [18, D, D]           int8  4-bit codes, [in, out] layout
    alpha_ref,    # [18, D//G, 1, D]     f32   per-group  2*scale/15
    beta_ref,     # [18, D//G, 1, D]     f32   per-group  -scale
    bias_ref,     # [18, 1, D]           f32
    la_ref,       # [18, D, R]           bf16  lora_a.T
    lb_ref,       # [18, R, D]           bf16  lora_b.T
    lng_ref,      # [5, 1, D]            f32   LayerNorm gamma
    lnb_ref,      # [5, 1, D]            f32   LayerNorm beta
    out_ref,      # [tb, D]              f32
):
    D = x_ref.shape[-1]
    DG = D // GROUP_SIZE
    cd = DEQUANT_DTYPE

    def qlora_linear(h, layer):
        # Dequant with compact per-group scales, folded into one mul-add.
        q = wq_ref[layer].astype(cd)                                  # [D, D]
        w = (q.reshape(DG, GROUP_SIZE, D) * alpha_ref[layer].astype(cd)
             + beta_ref[layer].astype(cd)).reshape(D, D)
        # Fold LoRA into the base weight (mathematically identical to
        # base + lora_b(lora_a(x)); no extra scaling — QLoRALinear has none).
        # la@lb is activation-independent, so only ONE matmul per layer sits
        # on the activation critical path.
        lora_w = jnp.dot(la_ref[layer], lb_ref[layer],
                         preferred_element_type=jnp.float32)          # [D, D]
        w_eff = (w + lora_w.astype(cd)).astype(jnp.bfloat16)
        # bf16 MXU matmul, f32 accumulate, no in-kernel transpose.
        return (jnp.dot(h.astype(jnp.bfloat16), w_eff,
                        preferred_element_type=jnp.float32)
                + bias_ref[layer])

    def layer_norm(h, i):
        # One-pass LN: sums computed together, var = E[x^2] - E[x]^2.
        mean = jnp.sum(h, axis=-1, keepdims=True) * (1.0 / D)
        msq = jnp.sum(h * h, axis=-1, keepdims=True) * (1.0 / D)
        var = msq - mean * mean
        return (h - mean) * jax.lax.rsqrt(var + LN_EPS) * lng_ref[i] + lnb_ref[i]

    h = x_ref[...]
    for blk in range(N_BLOCKS):
        l0 = 3 * blk
        r = h
        h = jnp.maximum(qlora_linear(r, l0), 0.0)
        h = jnp.maximum(qlora_linear(h, l0 + 1), 0.0)
        h = qlora_linear(h, l0 + 2) + r
        if blk < N_LN:
            h = layer_norm(h, blk)
    out_ref[...] = h


# ---------------------------------------------------------------------------
# Wrapper (pallas_call plumbing)
# ---------------------------------------------------------------------------
def _resident_spec(arr):
    """Whole-array block, same block every grid step (stays VMEM-resident)."""
    zeros = (0,) * arr.ndim
    return pl.BlockSpec(arr.shape, lambda i, _z=zeros: _z)


def qlora_bignet_forward(x, wq, alpha, beta, bias, la, lb, ln_g, ln_b, *, tb=None):
    B, D = x.shape
    if tb is None:
        # grid=1 by default: best for single-TC v5e/v6e (each weight is
        # dequantized + LoRA-merged exactly once, full MXU M dimension).
        # On v7x pass tb=B//2 to let the megacore shard the batch.
        tb = B
    assert B % tb == 0, "batch must be divisible by the batch tile"
    assert D % GROUP_SIZE == 0
    params = (wq, alpha, beta, bias, la, lb, ln_g, ln_b)
    return pl.pallas_call(
        qlora_bignet_kernel,
        out_shape=jax.ShapeDtypeStruct((B, D), jnp.float32),
        grid=(B // tb,),
        in_specs=[pl.BlockSpec((tb, D), lambda i: (i, 0))]
                 + [_resident_spec(p) for p in params],
        out_specs=pl.BlockSpec((tb, D), lambda i: (i, 0)),
        compiler_params=pltpu.CompilerParams(
            dimension_semantics=("parallel",)),
    )(x, *params)


# ---------------------------------------------------------------------------
# Deterministic parameter construction (mirrors module __init__ shapes,
# pre-transposed to [in, out] and with compact per-group dequant coefficients)
# ---------------------------------------------------------------------------
def make_qlora_layer(key, d, r, g):
    kw, kb, ka, klb = jax.random.split(key, 4)
    bound = 1.0 / math.sqrt(d)
    w = jax.random.uniform(kw, (d, d), jnp.float32, -bound, bound)  # torch [out, in]

    # 4-bit group quantization along in_features:  q in {0..15}
    wg = w.reshape(d, d // g, g)
    absmax = jnp.maximum(jnp.max(jnp.abs(wg), axis=-1, keepdims=True), 1e-8)
    q = jnp.clip(jnp.round((wg / absmax + 1.0) * 0.5 * 15.0), 0, 15)   # [out, d//g, g]
    scale = absmax[..., 0]                                             # [out, d//g]

    # pre-transpose to [in, out] so the kernel never transposes
    wq = q.transpose(1, 2, 0).reshape(d, d).astype(jnp.int8)           # [in, out]
    alpha = (scale * (2.0 / 15.0)).T[:, None, :].astype(jnp.float32)   # [d//g, 1, out]
    beta = (-scale).T[:, None, :].astype(jnp.float32)                  # [d//g, 1, out]

    bias = jax.random.uniform(kb, (1, d), jnp.float32, -bound, bound)

    # LoRA weights, pre-transposed; rank kept at 32 (no padding — LoRA is
    # merged into the base weight inside the kernel).
    la = jax.random.uniform(ka, (r, d), jnp.float32, -bound, bound).T  # [in, r]
    la = la.astype(jnp.bfloat16)
    # NOTE: QLoRALinear zero-inits lora_b; use small random values here so the
    # LoRA path is actually exercised by the numeric check (as if fine-tuned).
    lb = (0.01 * jax.random.normal(klb, (d, r), jnp.float32)).T        # [r, out]
    lb = lb.astype(jnp.bfloat16)

    return dict(wq=wq, alpha=alpha, beta=beta, bias=bias, la=la, lb=lb)


def make_all_params(key, d, r, g):
    layer_keys = jax.random.split(key, N_LAYERS)
    layers = [make_qlora_layer(k, d, r, g) for k in layer_keys]
    wq = jnp.stack([p["wq"] for p in layers])        # [18, D, D] int8
    alpha = jnp.stack([p["alpha"] for p in layers])  # [18, D//G, 1, D]
    beta = jnp.stack([p["beta"] for p in layers])    # [18, D//G, 1, D]
    bias = jnp.stack([p["bias"] for p in layers])    # [18, 1, D]
    la = jnp.stack([p["la"] for p in layers])        # [18, D, R] bf16
    lb = jnp.stack([p["lb"] for p in layers])        # [18, R, D] bf16
    # torch LayerNorm default init: weight=1, bias=0
    ln_g = jnp.ones((N_LN, 1, d), jnp.float32)
    ln_b = jnp.zeros((N_LN, 1, d), jnp.float32)
    return wq, alpha, beta, bias, la, lb, ln_g, ln_b


# ---------------------------------------------------------------------------
# Pure-JAX reference (identical math / casting) for a sanity check
# ---------------------------------------------------------------------------
def qlora_bignet_reference(x, wq, alpha, beta, bias, la, lb, ln_g, ln_b):
    D = x.shape[-1]
    DG = D // GROUP_SIZE
    cd = DEQUANT_DTYPE

    def qlora(h, l):
        q = wq[l].astype(cd)
        w = (q.reshape(DG, GROUP_SIZE, D) * alpha[l].astype(cd)
             + beta[l].astype(cd)).reshape(D, D)
        lora_w = jnp.dot(la[l], lb[l], preferred_element_type=jnp.float32)
        w_eff = (w + lora_w.astype(cd)).astype(jnp.bfloat16)
        return (jnp.dot(h.astype(jnp.bfloat16), w_eff,
                        preferred_element_type=jnp.float32) + bias[l])

    def ln(h, i):
        mean = jnp.sum(h, axis=-1, keepdims=True) * (1.0 / D)
        msq = jnp.sum(h * h, axis=-1, keepdims=True) * (1.0 / D)
        var = msq - mean * mean
        return (h - mean) * jax.lax.rsqrt(var + LN_EPS) * ln_g[i] + ln_b[i]

    h = x
    for blk in range(N_BLOCKS):
        l0 = 3 * blk
        r = h
        h = jax.nn.relu(qlora(r, l0))
        h = jax.nn.relu(qlora(h, l0 + 1))
        h = qlora(h, l0 + 2) + r
        if blk < N_LN:
            h = ln(h, blk)
    return h


# ---------------------------------------------------------------------------
if __name__ == "__main__":
    key = jax.random.PRNGKey(0)
    B, D = 128, BIGNET_DIM

    k_x, k_p = jax.random.split(key)
    x = jax.random.normal(k_x, (B, D), jnp.float32)
    wq, alpha, beta, bias, la, lb, ln_g, ln_b = make_all_params(
        k_p, D, LORA_DIM, GROUP_SIZE)

    out = qlora_bignet_forward(x, wq, alpha, beta, bias, la, lb, ln_g, ln_b)
    out = jax.block_until_ready(out)

    ref = qlora_bignet_reference(x, wq, alpha, beta, bias, la, lb, ln_g, ln_b)
    assert out.shape == (B, D)
    assert jnp.allclose(out, ref, atol=1e-2, rtol=1e-2), "mismatch vs reference"

    print("KERNEL_OK")
</pallas_src>

<mosaic_0001>
module attributes {stable_mosaic.version = 11 : i64} {
  func.func @qlora_bignet_kernel(%arg0: i32, %arg1: memref<128x128xf32, #tpu.memory_space<vmem>>, %arg2: memref<18x128x128xi8, #tpu.memory_space<vmem>>, %arg3: memref<18x8x1x128xf32, #tpu.memory_space<vmem>>, %arg4: memref<18x8x1x128xf32, #tpu.memory_space<vmem>>, %arg5: memref<18x1x128xf32, #tpu.memory_space<vmem>>, %arg6: memref<18x128x32xbf16, #tpu.memory_space<vmem>>, %arg7: memref<18x32x128xbf16, #tpu.memory_space<vmem>>, %arg8: memref<5x1x128xf32, #tpu.memory_space<vmem>>, %arg9: memref<5x1x128xf32, #tpu.memory_space<vmem>>, %arg10: memref<128x128xf32, #tpu.memory_space<vmem>>) attributes {dimension_semantics = [#tpu.dimension_semantics<parallel>], iteration_bounds = array<i64: 1>, scalar_prefetch = 0 : i64, scratch_operands = 0 : i64, tpu.core_type = #tpu.core_type<tc>, window_params = [{transform_indices = @transform_0, window_bounds = array<i64: 128, 128>}, {pipeline_mode = #tpu.pipeline_mode<synchronous>, transform_indices = @transform_1, window_bounds = array<i64: 18, 128, 128>}, {pipeline_mode = #tpu.pipeline_mode<synchronous>, transform_indices = @transform_2, window_bounds = array<i64: 18, 8, 1, 128>}, {pipeline_mode = #tpu.pipeline_mode<synchronous>, transform_indices = @transform_3, window_bounds = array<i64: 18, 8, 1, 128>}, {pipeline_mode = #tpu.pipeline_mode<synchronous>, transform_indices = @transform_4, window_bounds = array<i64: 18, 1, 128>}, {pipeline_mode = #tpu.pipeline_mode<synchronous>, transform_indices = @transform_5, window_bounds = array<i64: 18, 128, 32>}, {pipeline_mode = #tpu.pipeline_mode<synchronous>, transform_indices = @transform_6, window_bounds = array<i64: 18, 32, 128>}, {pipeline_mode = #tpu.pipeline_mode<synchronous>, transform_indices = @transform_7, window_bounds = array<i64: 5, 1, 128>}, {pipeline_mode = #tpu.pipeline_mode<synchronous>, transform_indices = @transform_8, window_bounds = array<i64: 5, 1, 128>}, {transform_indices = @transform_9, window_bounds = array<i64: 128, 128>}]} {
    %c0 = arith.constant 0 : index
    %c0_0 = arith.constant 0 : index
    %0 = vector.load %arg1[%c0, %c0_0] : memref<128x128xf32, #tpu.memory_space<vmem>>, vector<128x128xf32>
    %c0_1 = arith.constant 0 : index
    %c0_2 = arith.constant 0 : index
    %c0_3 = arith.constant 0 : index
    %1 = vector.load %arg2[%c0_1, %c0_2, %c0_3] : memref<18x128x128xi8, #tpu.memory_space<vmem>>, vector<1x128x128xi8>
    %2 = vector.shape_cast %1 : vector<1x128x128xi8> to vector<128x128xi8>
    %3 = arith.sitofp %2 : vector<128x128xi8> to vector<128x128xf32>
    %4 = vector.shape_cast %3 : vector<128x128xf32> to vector<8x16x128xf32>
    %c0_4 = arith.constant 0 : index
    %c0_5 = arith.constant 0 : index
    %c0_6 = arith.constant 0 : index
    %c0_7 = arith.constant 0 : index
    %5 = vector.load %arg3[%c0_4, %c0_5, %c0_6, %c0_7] : memref<18x8x1x128xf32, #tpu.memory_space<vmem>>, vector<1x8x1x128xf32>
    %6 = vector.shape_cast %5 : vector<1x8x1x128xf32> to vector<8x1x128xf32>
    %7 = vector.broadcast %6 : vector<8x1x128xf32> to vector<8x16x128xf32>
    %8 = arith.mulf %4, %7 : vector<8x16x128xf32>
    %c0_8 = arith.constant 0 : index
    %c0_9 = arith.constant 0 : index
    %c0_10 = arith.constant 0 : index
    %c0_11 = arith.constant 0 : index
    %9 = vector.load %arg4[%c0_8, %c0_9, %c0_10, %c0_11] : memref<18x8x1x128xf32, #tpu.memory_space<vmem>>, vector<1x8x1x128xf32>
    %10 = vector.shape_cast %9 : vector<1x8x1x128xf32> to vector<8x1x128xf32>
    %11 = vector.broadcast %10 : vector<8x1x128xf32> to vector<8x16x128xf32>
    %12 = arith.addf %8, %11 : vector<8x16x128xf32>
    %13 = vector.shape_cast %12 : vector<8x16x128xf32> to vector<128x128xf32>
    %c0_12 = arith.constant 0 : index
    %c0_13 = arith.constant 0 : index
    %c0_14 = arith.constant 0 : index
    %14 = vector.load %arg6[%c0_12, %c0_13, %c0_14] : memref<18x128x32xbf16, #tpu.memory_space<vmem>>, vector<1x128x32xbf16>
    %15 = vector.shape_cast %14 : vector<1x128x32xbf16> to vector<128x32xbf16>
    %c0_15 = arith.constant 0 : index
    %c0_16 = arith.constant 0 : index
    %c0_17 = arith.constant 0 : index
    %16 = vector.load %arg7[%c0_15, %c0_16, %c0_17] : memref<18x32x128xbf16, #tpu.memory_space<vmem>>, vector<1x32x128xbf16>
    %17 = vector.shape_cast %16 : vector<1x32x128xbf16> to vector<32x128xbf16>
    %cst = arith.constant dense<0.000000e+00> : vector<128x128xf32>
    %18 = tpu.matmul %15, %17, %cst {dimension_numbers = #tpu.dot_dimension_numbers<[1], [0], [0], [1], [0, 0, 1, 1], [], []>} : vector<128x32xbf16>, vector<32x128xbf16>, vector<128x128xf32> -> vector<128x128xf32>
    %19 = arith.addf %13, %18 : vector<128x128xf32>
    %20 = arith.truncf %19 : vector<128x128xf32> to vector<128x128xbf16>
    %21 = arith.truncf %0 : vector<128x128xf32> to vector<128x128xbf16>
    %cst_18 = arith.constant dense<0.000000e+00> : vector<128x128xf32>
    %22 = tpu.matmul %21, %20, %cst_18 {dimension_numbers = #tpu.dot_dimension_numbers<[1], [0], [0], [1], [0, 0, 1, 1], [], []>} : vector<128x128xbf16>, vector<128x128xbf16>, vector<128x128xf32> -> vector<128x128xf32>
    %c0_19 = arith.constant 0 : index
    %c0_20 = arith.constant 0 : index
    %c0_21 = arith.constant 0 : index
    %23 = vector.load %arg5[%c0_19, %c0_20, %c0_21] : memref<18x1x128xf32, #tpu.memory_space<vmem>>, vector<1x1x128xf32>
    %24 = vector.shape_cast %23 : vector<1x1x128xf32> to vector<1x128xf32>
    %25 = vector.broadcast %24 : vector<1x128xf32> to vector<128x128xf32>
    %26 = arith.addf %22, %25 : vector<128x128xf32>
    %cst_22 = arith.constant 0.000000e+00 : f32
    %27 = vector.broadcast %cst_22 : f32 to vector<128x128xf32>
    %28 = arith.maximumf %26, %27 : vector<128x128xf32>
    %c1 = arith.constant 1 : index
    %c0_23 = arith.constant 0 : index
    %c0_24 = arith.constant 0 : index
    %29 = vector.load %arg2[%c1, %c0_23, %c0_24] : memref<18x128x128xi8, #tpu.memory_space<vmem>>, vector<1x128x128xi8>
    %30 = vector.shape_cast %29 : vector<1x128x128xi8> to vector<128x128xi8>
    %31 = arith.sitofp %30 : vector<128x128xi8> to vector<128x128xf32>
    %32 = vector.shape_cast %31 : vector<128x128xf32> to vector<8x16x128xf32>
    %c1_25 = arith.constant 1 : index
    %c0_26 = arith.constant 0 : index
    %c0_27 = arith.constant 0 : index
    %c0_28 = arith.constant 0 : index
    %33 = vector.load %arg3[%c1_25, %c0_26, %c0_27, %c0_28] : memref<18x8x1x128xf32, #tpu.memory_space<vmem>>, vector<1x8x1x128xf32>
    %34 = vector.shape_cast %33 : vector<1x8x1x128xf32> to vector<8x1x128xf32>
    %35 = vector.broadcast %34 : vector<8x1x128xf32> to vector<8x16x128xf32>
    %36 = arith.mulf %32, %35 : vector<8x16x128xf32>
    %c1_29 = arith.constant 1 : index
    %c0_30 = arith.constant 0 : index
    %c0_31 = arith.constant 0 : index
    %c0_32 = arith.constant 0 : index
    %37 = vector.load %arg4[%c1_29, %c0_30, %c0_31, %c0_32] : memref<18x8x1x128xf32, #tpu.memory_space<vmem>>, vector<1x8x1x128xf32>
    %38 = vector.shape_cast %37 : vector<1x8x1x128xf32> to vector<8x1x128xf32>
    %39 = vector.broadcast %38 : vector<8x1x128xf32> to vector<8x16x128xf32>
    %40 = arith.addf %36, %39 : vector<8x16x128xf32>
    %41 = vector.shape_cast %40 : vector<8x16x128xf32> to vector<128x128xf32>
    %c1_33 = arith.constant 1 : index
    %c0_34 = arith.constant 0 : index
    %c0_35 = arith.constant 0 : index
    %42 = vector.load %arg6[%c1_33, %c0_34, %c0_35] : memref<18x128x32xbf16, #tpu.memory_space<vmem>>, vector<1x128x32xbf16>
    %43 = vector.shape_cast %42 : vector<1x128x32xbf16> to vector<128x32xbf16>
    %c1_36 = arith.constant 1 : index
    %c0_37 = arith.constant 0 : index
    %c0_38 = arith.constant 0 : index
    %44 = vector.load %arg7[%c1_36, %c0_37, %c0_38] : memref<18x32x128xbf16, #tpu.memory_space<vmem>>, vector<1x32x128xbf16>
    %45 = vector.shape_cast %44 : vector<1x32x128xbf16> to vector<32x128xbf16>
    %cst_39 = arith.constant dense<0.000000e+00> : vector<128x128xf32>
    %46 = tpu.matmul %43, %45, %cst_39 {dimension_numbers = #tpu.dot_dimension_numbers<[1], [0], [0], [1], [0, 0, 1, 1], [], []>} : vector<128x32xbf16>, vector<32x128xbf16>, vector<128x128xf32> -> vector<128x128xf32>
    %47 = arith.addf %41, %46 : vector<128x128xf32>
    %48 = arith.truncf %47 : vector<128x128xf32> to vector<128x128xbf16>
    %49 = arith.truncf %28 : vector<128x128xf32> to vector<128x128xbf16>
    %cst_40 = arith.constant dense<0.000000e+00> : vector<128x128xf32>
    %50 = tpu.matmul %49, %48, %cst_40 {dimension_numbers = #tpu.dot_dimension_numbers<[1], [0], [0], [1], [0, 0, 1, 1], [], []>} : vector<128x128xbf16>, vector<128x128xbf16>, vector<128x128xf32> -> vector<128x128xf32>
    %c1_41 = arith.constant 1 : index
    %c0_42 = arith.constant 0 : index
    %c0_43 = arith.constant 0 : index
    %51 = vector.load %arg5[%c1_41, %c0_42, %c0_43] : memref<18x1x128xf32, #tpu.memory_space<vmem>>, vector<1x1x128xf32>
    %52 = vector.shape_cast %51 : vector<1x1x128xf32> to vector<1x128xf32>
    %53 = vector.broadcast %52 : vector<1x128xf32> to vector<128x128xf32>
    %54 = arith.addf %50, %53 : vector<128x128xf32>
    %cst_44 = arith.constant 0.000000e+00 : f32
    %55 = vector.broadcast %cst_44 : f32 to vector<128x128xf32>
    %56 = arith.maximumf %54, %55 : vector<128x128xf32>
    %c2 = arith.constant 2 : index
    %c0_45 = arith.constant 0 : index
    %c0_46 = arith.constant 0 : index
    %57 = vector.load %arg2[%c2, %c0_45, %c0_46] : memref<18x128x128xi8, #tpu.memory_space<vmem>>, vector<1x128x128xi8>
    %58 = vector.shape_cast %57 : vector<1x128x128xi8> to vector<128x128xi8>
    %59 = arith.sitofp %58 : vector<128x128xi8> to vector<128x128xf32>
    %60 = vector.shape_cast %59 : vector<128x128xf32> to vector<8x16x128xf32>
    %c2_47 = arith.constant 2 : index
    %c0_48 = arith.constant 0 : index
    %c0_49 = arith.constant 0 : index
    %c0_50 = arith.constant 0 : index
    %61 = vector.load %arg3[%c2_47, %c0_48, %c0_49, %c0_50] : memref<18x8x1x128xf32, #tpu.memory_space<vmem>>, vector<1x8x1x128xf32>
    %62 = vector.shape_cast %61 : vector<1x8x1x128xf32> to vector<8x1x128xf32>
    %63 = vector.broadcast %62 : vector<8x1x128xf32> to vector<8x16x128xf32>
    %64 = arith.mulf %60, %63 : vector<8x16x128xf32>
    %c2_51 = arith.constant 2 : index
    %c0_52 = arith.constant 0 : index
    %c0_53 = arith.constant 0 : index
    %c0_54 = arith.constant 0 : index
    %65 = vector.load %arg4[%c2_51, %c0_52, %c0_53, %c0_54] : memref<18x8x1x128xf32, #tpu.memory_space<vmem>>, vector<1x8x1x128xf32>
    %66 = vector.shape_cast %65 : vector<1x8x1x128xf32> to vector<8x1x128xf32>
    %67 = vector.broadcast %66 : vector<8x1x128xf32> to vector<8x16x128xf32>
    %68 = arith.addf %64, %67 : vector<8x16x128xf32>
    %69 = vector.shape_cast %68 : vector<8x16x128xf32> to vector<128x128xf32>
    %c2_55 = arith.constant 2 : index
    %c0_56 = arith.constant 0 : index
    %c0_57 = arith.constant 0 : index
    %70 = vector.load %arg6[%c2_55, %c0_56, %c0_57] : memref<18x128x32xbf16, #tpu.memory_space<vmem>>, vector<1x128x32xbf16>
    %71 = vector.shape_cast %70 : vector<1x128x32xbf16> to vector<128x32xbf16>
    %c2_58 = arith.constant 2 : index
    %c0_59 = arith.constant 0 : index
    %c0_60 = arith.constant 0 : index
    %72 = vector.load %arg7[%c2_58, %c0_59, %c0_60] : memref<18x32x128xbf16, #tpu.memory_space<vmem>>, vector<1x32x128xbf16>
    %73 = vector.shape_cast %72 : vector<1x32x128xbf16> to vector<32x128xbf16>
    %cst_61 = arith.constant dense<0.000000e+00> : vector<128x128xf32>
    %74 = tpu.matmul %71, %73, %cst_61 {dimension_numbers = #tpu.dot_dimension_numbers<[1], [0], [0], [1], [0, 0, 1, 1], [], []>} : vector<128x32xbf16>, vector<32x128xbf16>, vector<128x128xf32> -> vector<128x128xf32>
    %75 = arith.addf %69, %74 : vector<128x128xf32>
    %76 = arith.truncf %75 : vector<128x128xf32> to vector<128x128xbf16>
    %77 = arith.truncf %56 : vector<128x128xf32> to vector<128x128xbf16>
    %cst_62 = arith.constant dense<0.000000e+00> : vector<128x128xf32>
    %78 = tpu.matmul %77, %76, %cst_62 {dimension_numbers = #tpu.dot_dimension_numbers<[1], [0], [0], [1], [0, 0, 1, 1], [], []>} : vector<128x128xbf16>, vector<128x128xbf16>, vector<128x128xf32> -> vector<128x128xf32>
    %c2_63 = arith.constant 2 : index
    %c0_64 = arith.constant 0 : index
    %c0_65 = arith.constant 0 : index
    %79 = vector.load %arg5[%c2_63, %c0_64, %c0_65] : memref<18x1x128xf32, #tpu.memory_space<vmem>>, vector<1x1x128xf32>
    %80 = vector.shape_cast %79 : vector<1x1x128xf32> to vector<1x128xf32>
    %81 = vector.broadcast %80 : vector<1x128xf32> to vector<128x128xf32>
    %82 = arith.addf %78, %81 : vector<128x128xf32>
    %83 = arith.addf %82, %0 : vector<128x128xf32>
    %cst_66 = arith.constant dense<0.000000e+00> : vector<128xf32>
    %84 = vector.multi_reduction <add>, %83, %cst_66 [1] : vector<128x128xf32> to vector<128xf32>
    %85 = vector.shape_cast %84 : vector<128xf32> to vector<128x1xf32>
    %cst_67 = arith.constant 7.812500e-03 : f32
    %86 = vector.broadcast %cst_67 : f32 to vector<128x1xf32>
    %87 = arith.mulf %85, %86 : vector<128x1xf32>
    %88 = arith.mulf %83, %83 : vector<128x128xf32>
    %cst_68 = arith.constant dense<0.000000e+00> : vector<128xf32>
    %89 = vector.multi_reduction <add>, %88, %cst_68 [1] : vector<128x128xf32> to vector<128xf32>
    %90 = vector.shape_cast %89 : vector<128xf32> to vector<128x1xf32>
    %cst_69 = arith.constant 7.812500e-03 : f32
    %91 = vector.broadcast %cst_69 : f32 to vector<128x1xf32>
    %92 = arith.mulf %90, %91 : vector<128x1xf32>
    %93 = arith.mulf %87, %87 : vector<128x1xf32>
    %94 = arith.subf %92, %93 : vector<128x1xf32>
    %95 = vector.broadcast %87 : vector<128x1xf32> to vector<128x128xf32>
    %96 = arith.subf %83, %95 : vector<128x128xf32>
    %cst_70 = arith.constant 9.99999974E-6 : f32
    %97 = vector.broadcast %cst_70 : f32 to vector<128x1xf32>
    %98 = arith.addf %94, %97 : vector<128x1xf32>
    %99 = math.rsqrt %98 : vector<128x1xf32>
    %100 = vector.broadcast %99 : vector<128x1xf32> to vector<128x128xf32>
    %101 = arith.mulf %96, %100 : vector<128x128xf32>
    %c0_71 = arith.constant 0 : index
    %c0_72 = arith.constant 0 : index
    %c0_73 = arith.constant 0 : index
    %102 = vector.load %arg8[%c0_71, %c0_72, %c0_73] : memref<5x1x128xf32, #tpu.memory_space<vmem>>, vector<1x1x128xf32>
    %103 = vector.shape_cast %102 : vector<1x1x128xf32> to vector<1x128xf32>
    %104 = vector.broadcast %103 : vector<1x128xf32> to vector<128x128xf32>
    %105 = arith.mulf %101, %104 : vector<128x128xf32>
    %c0_74 = arith.constant 0 : index
    %c0_75 = arith.constant 0 : index
    %c0_76 = arith.constant 0 : index
    %106 = vector.load %arg9[%c0_74, %c0_75, %c0_76] : memref<5x1x128xf32, #tpu.memory_space<vmem>>, vector<1x1x128xf32>
    %107 = vector.shape_cast %106 : vector<1x1x128xf32> to vector<1x128xf32>
    %108 = vector.broadcast %107 : vector<1x128xf32> to vector<128x128xf32>
    %109 = arith.addf %105, %108 : vector<128x128xf32>
    %c3 = arith.constant 3 : index
    %c0_77 = arith.constant 0 : index
    %c0_78 = arith.constant 0 : index
    %110 = vector.load %arg2[%c3, %c0_77, %c0_78] : memref<18x128x128xi8, #tpu.memory_space<vmem>>, vector<1x128x128xi8>
    %111 = vector.shape_cast %110 : vector<1x128x128xi8> to vector<128x128xi8>
    %112 = arith.sitofp %111 : vector<128x128xi8> to vector<128x128xf32>
    %113 = vector.shape_cast %112 : vector<128x128xf32> to vector<8x16x128xf32>
    %c3_79 = arith.constant 3 : index
    %c0_80 = arith.constant 0 : index
    %c0_81 = arith.constant 0 : index
    %c0_82 = arith.constant 0 : index
    %114 = vector.load %arg3[%c3_79, %c0_80, %c0_81, %c0_82] : memref<18x8x1x128xf32, #tpu.memory_space<vmem>>, vector<1x8x1x128xf32>
    %115 = vector.shape_cast %114 : vector<1x8x1x128xf32> to vector<8x1x128xf32>
    %116 = vector.broadcast %115 : vector<8x1x128xf32> to vector<8x16x128xf32>
    %117 = arith.mulf %113, %116 : vector<8x16x128xf32>
    %c3_83 = arith.constant 3 : index
    %c0_84 = arith.constant 0 : index
    %c0_85 = arith.constant 0 : index
    %c0_86 = arith.constant 0 : index
    %118 = vector.load %arg4[%c3_83, %c0_84, %c0_85, %c0_86] : memref<18x8x1x128xf32, #tpu.memory_space<vmem>>, vector<1x8x1x128xf32>
    %119 = vector.shape_cast %118 : vector<1x8x1x128xf32> to vector<8x1x128xf32>
    %120 = vector.broadcast %119 : vector<8x1x128xf32> to vector<8x16x128xf32>
    %121 = arith.addf %117, %120 : vector<8x16x128xf32>
    %122 = vector.shape_cast %121 : vector<8x16x128xf32> to vector<128x128xf32>
    %c3_87 = arith.constant 3 : index
    %c0_88 = arith.constant 0 : index
    %c0_89 = arith.constant 0 : index
    %123 = vector.load %arg6[%c3_87, %c0_88, %c0_89] : memref<18x128x32xbf16, #tpu.memory_space<vmem>>, vector<1x128x32xbf16>
    %124 = vector.shape_cast %123 : vector<1x128x32xbf16> to vector<128x32xbf16>
    %c3_90 = arith.constant 3 : index
    %c0_91 = arith.constant 0 : index
    %c0_92 = arith.constant 0 : index
    %125 = vector.load %arg7[%c3_90, %c0_91, %c0_92] : memref<18x32x128xbf16, #tpu.memory_space<vmem>>, vector<1x32x128xbf16>
    %126 = vector.shape_cast %125 : vector<1x32x128xbf16> to vector<32x128xbf16>
    %cst_93 = arith.constant dense<0.000000e+00> : vector<128x128xf32>
    %127 = tpu.matmul %124, %126, %cst_93 {dimension_numbers = #tpu.dot_dimension_numbers<[1], [0], [0], [1], [0, 0, 1, 1], [], []>} : vector<128x32xbf16>, vector<32x128xbf16>, vector<128x128xf32> -> vector<128x128xf32>
    %128 = arith.addf %122, %127 : vector<128x128xf32>
    %129 = arith.truncf %128 : vector<128x128xf32> to vector<128x128xbf16>
    %130 = arith.truncf %109 : vector<128x128xf32> to vector<128x128xbf16>
    %cst_94 = arith.constant dense<0.000000e+00> : vector<128x128xf32>
    %131 = tpu.matmul %130, %129, %cst_94 {dimension_numbers = #tpu.dot_dimension_numbers<[1], [0], [0], [1], [0, 0, 1, 1], [], []>} : vector<128x128xbf16>, vector<128x128xbf16>, vector<128x128xf32> -> vector<128x128xf32>
    %c3_95 = arith.constant 3 : index
    %c0_96 = arith.constant 0 : index
    %c0_97 = arith.constant 0 : index
    %132 = vector.load %arg5[%c3_95, %c0_96, %c0_97] : memref<18x1x128xf32, #tpu.memory_space<vmem>>, vector<1x1x128xf32>
    %133 = vector.shape_cast %132 : vector<1x1x128xf32> to vector<1x128xf32>
    %134 = vector.broadcast %133 : vector<1x128xf32> to vector<128x128xf32>
    %135 = arith.addf %131, %134 : vector<128x128xf32>
    %cst_98 = arith.constant 0.000000e+00 : f32
    %136 = vector.broadcast %cst_98 : f32 to vector<128x128xf32>
    %137 = arith.maximumf %135, %136 : vector<128x128xf32>
    %c4 = arith.constant 4 : index
    %c0_99 = arith.constant 0 : index
    %c0_100 = arith.constant 0 : index
    %138 = vector.load %arg2[%c4, %c0_99, %c0_100] : memref<18x128x128xi8, #tpu.memory_space<vmem>>, vector<1x128x128xi8>
    %139 = vector.shape_cast %138 : vector<1x128x128xi8> to vector<128x128xi8>
    %140 = arith.sitofp %139 : vector<128x128xi8> to vector<128x128xf32>
    %141 = vector.shape_cast %140 : vector<128x128xf32> to vector<8x16x128xf32>
    %c4_101 = arith.constant 4 : index
    %c0_102 = arith.constant 0 : index
    %c0_103 = arith.constant 0 : index
    %c0_104 = arith.constant 0 : index
    %142 = vector.load %arg3[%c4_101, %c0_102, %c0_103, %c0_104] : memref<18x8x1x128xf32, #tpu.memory_space<vmem>>, vector<1x8x1x128xf32>
    %143 = vector.shape_cast %142 : vector<1x8x1x128xf32> to vector<8x1x128xf32>
    %144 = vector.broadcast %143 : vector<8x1x128xf32> to vector<8x16x128xf32>
    %145 = arith.mulf %141, %144 : vector<8x16x128xf32>
    %c4_105 = arith.constant 4 : index
    %c0_106 = arith.constant 0 : index
    %c0_107 = arith.constant 0 : index
    %c0_108 = arith.constant 0 : index
    %146 = vector.load %arg4[%c4_105, %c0_106, %c0_107, %c0_108] : memref<18x8x1x128xf32, #tpu.memory_space<vmem>>, vector<1x8x1x128xf32>
    %147 = vector.shape_cast %146 : vector<1x8x1x128xf32> to vector<8x1x128xf32>
    %148 = vector.broadcast %147 : vector<8x1x128xf32> to vector<8x16x128xf32>
    %149 = arith.addf %145, %148 : vector<8x16x128xf32>
    %150 = vector.shape_cast %149 : vector<8x16x128xf32> to vector<128x128xf32>
    %c4_109 = arith.constant 4 : index
    %c0_110 = arith.constant 0 : index
    %c0_111 = arith.constant 0 : index
    %151 = vector.load %arg6[%c4_109, %c0_110, %c0_111] : memref<18x128x32xbf16, #tpu.memory_space<vmem>>, vector<1x128x32xbf16>
    %152 = vector.shape_cast %151 : vector<1x128x32xbf16> to vector<128x32xbf16>
    %c4_112 = arith.constant 4 : index
    %c0_113 = arith.constant 0 : index
    %c0_114 = arith.constant 0 : index
    %153 = vector.load %arg7[%c4_112, %c0_113, %c0_114] : memref<18x32x128xbf16, #tpu.memory_space<vmem>>, vector<1x32x128xbf16>
    %154 = vector.shape_cast %153 : vector<1x32x128xbf16> to vector<32x128xbf16>
    %cst_115 = arith.constant dense<0.000000e+00> : vector<128x128xf32>
    %155 = tpu.matmul %152, %154, %cst_115 {dimension_numbers = #tpu.dot_dimension_numbers<[1], [0], [0], [1], [0, 0, 1, 1], [], []>} : vector<128x32xbf16>, vector<32x128xbf16>, vector<128x128xf32> -> vector<128x128xf32>
    %156 = arith.addf %150, %155 : vector<128x128xf32>
    %157 = arith.truncf %156 : vector<128x128xf32> to vector<128x128xbf16>
    %158 = arith.truncf %137 : vector<128x128xf32> to vector<128x128xbf16>
    %cst_116 = arith.constant dense<0.000000e+00> : vector<128x128xf32>
    %159 = tpu.matmul %158, %157, %cst_116 {dimension_numbers = #tpu.dot_dimension_numbers<[1], [0], [0], [1], [0, 0, 1, 1], [], []>} : vector<128x128xbf16>, vector<128x128xbf16>, vector<128x128xf32> -> vector<128x128xf32>
    %c4_117 = arith.constant 4 : index
    %c0_118 = arith.constant 0 : index
    %c0_119 = arith.constant 0 : index
    %160 = vector.load %arg5[%c4_117, %c0_118, %c0_119] : memref<18x1x128xf32, #tpu.memory_space<vmem>>, vector<1x1x128xf32>
    %161 = vector.shape_cast %160 : vector<1x1x128xf32> to vector<1x128xf32>
    %162 = vector.broadcast %161 : vector<1x128xf32> to vector<128x128xf32>
    %163 = arith.addf %159, %162 : vector<128x128xf32>
    %cst_120 = arith.constant 0.000000e+00 : f32
    %164 = vector.broadcast %cst_120 : f32 to vector<128x128xf32>
    %165 = arith.maximumf %163, %164 : vector<128x128xf32>
    %c5 = arith.constant 5 : index
    %c0_121 = arith.constant 0 : index
    %c0_122 = arith.constant 0 : index
    %166 = vector.load %arg2[%c5, %c0_121, %c0_122] : memref<18x128x128xi8, #tpu.memory_space<vmem>>, vector<1x128x128xi8>
    %167 = vector.shape_cast %166 : vector<1x128x128xi8> to vector<128x128xi8>
    %168 = arith.sitofp %167 : vector<128x128xi8> to vector<128x128xf32>
    %169 = vector.shape_cast %168 : vector<128x128xf32> to vector<8x16x128xf32>
    %c5_123 = arith.constant 5 : index
    %c0_124 = arith.constant 0 : index
    %c0_125 = arith.constant 0 : index
    %c0_126 = arith.constant 0 : index
    %170 = vector.load %arg3[%c5_123, %c0_124, %c0_125, %c0_126] : memref<18x8x1x128xf32, #tpu.memory_space<vmem>>, vector<1x8x1x128xf32>
    %171 = vector.shape_cast %170 : vector<1x8x1x128xf32> to vector<8x1x128xf32>
    %172 = vector.broadcast %171 : vector<8x1x128xf32> to vector<8x16x128xf32>
    %173 = arith.mulf %169, %172 : vector<8x16x128xf32>
    %c5_127 = arith.constant 5 : index
    %c0_128 = arith.constant 0 : index
    %c0_129 = arith.constant 0 : index
    %c0_130 = arith.constant 0 : index
    %174 = vector.load %arg4[%c5_127, %c0_128, %c0_129, %c0_130] : memref<18x8x1x128xf32, #tpu.memory_space<vmem>>, vector<1x8x1x128xf32>
    %175 = vector.shape_cast %174 : vector<1x8x1x128xf32> to vector<8x1x128xf32>
    %176 = vector.broadcast %175 : vector<8x1x128xf32> to vector<8x16x128xf32>
    %177 = arith.addf %173, %176 : vector<8x16x128xf32>
    %178 = vector.shape_cast %177 : vector<8x16x128xf32> to vector<128x128xf32>
    %c5_131 = arith.constant 5 : index
    %c0_132 = arith.constant 0 : index
    %c0_133 = arith.constant 0 : index
    %179 = vector.load %arg6[%c5_131, %c0_132, %c0_133] : memref<18x128x32xbf16, #tpu.memory_space<vmem>>, vector<1x128x32xbf16>
    %180 = vector.shape_cast %179 : vector<1x128x32xbf16> to vector<128x32xbf16>
    %c5_134 = arith.constant 5 : index
    %c0_135 = arith.constant 0 : index
    %c0_136 = arith.constant 0 : index
    %181 = vector.load %arg7[%c5_134, %c0_135, %c0_136] : memref<18x32x128xbf16, #tpu.memory_space<vmem>>, vector<1x32x128xbf16>
    %182 = vector.shape_cast %181 : vector<1x32x128xbf16> to vector<32x128xbf16>
    %cst_137 = arith.constant dense<0.000000e+00> : vector<128x128xf32>
    %183 = tpu.matmul %180, %182, %cst_137 {dimension_numbers = #tpu.dot_dimension_numbers<[1], [0], [0], [1], [0, 0, 1, 1], [], []>} : vector<128x32xbf16>, vector<32x128xbf16>, vector<128x128xf32> -> vector<128x128xf32>
    %184 = arith.addf %178, %183 : vector<128x128xf32>
    %185 = arith.truncf %184 : vector<128x128xf32> to vector<128x128xbf16>
    %186 = arith.truncf %165 : vector<128x128xf32> to vector<128x128xbf16>
    %cst_138 = arith.constant dense<0.000000e+00> : vector<128x128xf32>
    %187 = tpu.matmul %186, %185, %cst_138 {dimension_numbers = #tpu.dot_dimension_numbers<[1], [0], [0], [1], [0, 0, 1, 1], [], []>} : vector<128x128xbf16>, vector<128x128xbf16>, vector<128x128xf32> -> vector<128x128xf32>
    %c5_139 = arith.constant 5 : index
    %c0_140 = arith.constant 0 : index
    %c0_141 = arith.constant 0 : index
    %188 = vector.load %arg5[%c5_139, %c0_140, %c0_141] : memref<18x1x128xf32, #tpu.memory_space<vmem>>, vector<1x1x128xf32>
    %189 = vector.shape_cast %188 : vector<1x1x128xf32> to vector<1x128xf32>
    %190 = vector.broadcast %189 : vector<1x128xf32> to vector<128x128xf32>
    %191 = arith.addf %187, %190 : vector<128x128xf32>
    %192 = arith.addf %191, %109 : vector<128x128xf32>
    %cst_142 = arith.constant dense<0.000000e+00> : vector<128xf32>
    %193 = vector.multi_reduction <add>, %192, %cst_142 [1] : vector<128x128xf32> to vector<128xf32>
    %194 = vector.shape_cast %193 : vector<128xf32> to vector<128x1xf32>
    %cst_143 = arith.constant 7.812500e-03 : f32
    %195 = vector.broadcast %cst_143 : f32 to vector<128x1xf32>
    %196 = arith.mulf %194, %195 : vector<128x1xf32>
    %197 = arith.mulf %192, %192 : vector<128x128xf32>
    %cst_144 = arith.constant dense<0.000000e+00> : vector<128xf32>
    %198 = vector.multi_reduction <add>, %197, %cst_144 [1] : vector<128x128xf32> to vector<128xf32>
    %199 = vector.shape_cast %198 : vector<128xf32> to vector<128x1xf32>
    %cst_145 = arith.constant 7.812500e-03 : f32
    %200 = vector.broadcast %cst_145 : f32 to vector<128x1xf32>
    %201 = arith.mulf %199, %200 : vector<128x1xf32>
    %202 = arith.mulf %196, %196 : vector<128x1xf32>
    %203 = arith.subf %201, %202 : vector<128x1xf32>
    %204 = vector.broadcast %196 : vector<128x1xf32> to vector<128x128xf32>
    %205 = arith.subf %192, %204 : vector<128x128xf32>
    %cst_146 = arith.constant 9.99999974E-6 : f32
    %206 = vector.broadcast %cst_146 : f32 to vector<128x1xf32>
    %207 = arith.addf %203, %206 : vector<128x1xf32>
    %208 = math.rsqrt %207 : vector<128x1xf32>
    %209 = vector.broadcast %208 : vector<128x1xf32> to vector<128x128xf32>
    %210 = arith.mulf %205, %209 : vector<128x128xf32>
    %c1_147 = arith.constant 1 : index
    %c0_148 = arith.constant 0 : index
    %c0_149 = arith.constant 0 : index
    %211 = vector.load %arg8[%c1_147, %c0_148, %c0_149] : memref<5x1x128xf32, #tpu.memory_space<vmem>>, vector<1x1x128xf32>
    %212 = vector.shape_cast %211 : vector<1x1x128xf32> to vector<1x128xf32>
    %213 = vector.broadcast %212 : vector<1x128xf32> to vector<128x128xf32>
    %214 = arith.mulf %210, %213 : vector<128x128xf32>
    %c1_150 = arith.constant 1 : index
    %c0_151 = arith.constant 0 : index
    %c0_152 = arith.constant 0 : index
    %215 = vector.load %arg9[%c1_150, %c0_151, %c0_152] : memref<5x1x128xf32, #tpu.memory_space<vmem>>, vector<1x1x128xf32>
    %216 = vector.shape_cast %215 : vector<1x1x128xf32> to vector<1x128xf32>
    %217 = vector.broadcast %216 : vector<1x128xf32> to vector<128x128xf32>
    %218 = arith.addf %214, %217 : vector<128x128xf32>
    %c6 = arith.constant 6 : index
    %c0_153 = arith.constant 0 : index
    %c0_154 = arith.constant 0 : index
    %219 = vector.load %arg2[%c6, %c0_153, %c0_154] : memref<18x128x128xi8, #tpu.memory_space<vmem>>, vector<1x128x128xi8>
    %220 = vector.shape_cast %219 : vector<1x128x128xi8> to vector<128x128xi8>
    %221 = arith.sitofp %220 : vector<128x128xi8> to vector<128x128xf32>
    %222 = vector.shape_cast %221 : vector<128x128xf32> to vector<8x16x128xf32>
    %c6_155 = arith.constant 6 : index
    %c0_156 = arith.constant 0 : index
    %c0_157 = arith.constant 0 : index
    %c0_158 = arith.constant 0 : index
    %223 = vector.load %arg3[%c6_155, %c0_156, %c0_157, %c0_158] : memref<18x8x1x128xf32, #tpu.memory_space<vmem>>, vector<1x8x1x128xf32>
    %224 = vector.shape_cast %223 : vector<1x8x1x128xf32> to vector<8x1x128xf32>
    %225 = vector.broadcast %224 : vector<8x1x128xf32> to vector<8x16x128xf32>
    %226 = arith.mulf %222, %225 : vector<8x16x128xf32>
    %c6_159 = arith.constant 6 : index
    %c0_160 = arith.constant 0 : index
    %c0_161 = arith.constant 0 : index
    %c0_162 = arith.constant 0 : index
    %227 = vector.load %arg4[%c6_159, %c0_160, %c0_161, %c0_162] : memref<18x8x1x128xf32, #tpu.memory_space<vmem>>, vector<1x8x1x128xf32>
    %228 = vector.shape_cast %227 : vector<1x8x1x128xf32> to vector<8x1x128xf32>
    %229 = vector.broadcast %228 : vector<8x1x128xf32> to vector<8x16x128xf32>
    %230 = arith.addf %226, %229 : vector<8x16x128xf32>
    %231 = vector.shape_cast %230 : vector<8x16x128xf32> to vector<128x128xf32>
    %c6_163 = arith.constant 6 : index
    %c0_164 = arith.constant 0 : index
    %c0_165 = arith.constant 0 : index
    %232 = vector.load %arg6[%c6_163, %c0_164, %c0_165] : memref<18x128x32xbf16, #tpu.memory_space<vmem>>, vector<1x128x32xbf16>
    %233 = vector.shape_cast %232 : vector<1x128x32xbf16> to vector<128x32xbf16>
    %c6_166 = arith.constant 6 : index
    %c0_167 = arith.constant 0 : index
    %c0_168 = arith.constant 0 : index
    %234 = vector.load %arg7[%c6_166, %c0_167, %c0_168] : memref<18x32x128xbf16, #tpu.memory_space<vmem>>, vector<1x32x128xbf16>
    %235 = vector.shape_cast %234 : vector<1x32x128xbf16> to vector<32x128xbf16>
    %cst_169 = arith.constant dense<0.000000e+00> : vector<128x128xf32>
    %236 = tpu.matmul %233, %235, %cst_169 {dimension_numbers = #tpu.dot_dimension_numbers<[1], [0], [0], [1], [0, 0, 1, 1], [], []>} : vector<128x32xbf16>, vector<32x128xbf16>, vector<128x128xf32> -> vector<128x128xf32>
    %237 = arith.addf %231, %236 : vector<128x128xf32>
    %238 = arith.truncf %237 : vector<128x128xf32> to vector<128x128xbf16>
    %239 = arith.truncf %218 : vector<128x128xf32> to vector<128x128xbf16>
    %cst_170 = arith.constant dense<0.000000e+00> : vector<128x128xf32>
    %240 = tpu.matmul %239, %238, %cst_170 {dimension_numbers = #tpu.dot_dimension_numbers<[1], [0], [0], [1], [0, 0, 1, 1], [], []>} : vector<128x128xbf16>, vector<128x128xbf16>, vector<128x128xf32> -> vector<128x128xf32>
    %c6_171 = arith.constant 6 : index
    %c0_172 = arith.constant 0 : index
    %c0_173 = arith.constant 0 : index
    %241 = vector.load %arg5[%c6_171, %c0_172, %c0_173] : memref<18x1x128xf32, #tpu.memory_space<vmem>>, vector<1x1x128xf32>
    %242 = vector.shape_cast %241 : vector<1x1x128xf32> to vector<1x128xf32>
    %243 = vector.broadcast %242 : vector<1x128xf32> to vector<128x128xf32>
    %244 = arith.addf %240, %243 : vector<128x128xf32>
    %cst_174 = arith.constant 0.000000e+00 : f32
    %245 = vector.broadcast %cst_174 : f32 to vector<128x128xf32>
    %246 = arith.maximumf %244, %245 : vector<128x128xf32>
    %c7 = arith.constant 7 : index
    %c0_175 = arith.constant 0 : index
    %c0_176 = arith.constant 0 : index
    %247 = vector.load %arg2[%c7, %c0_175, %c0_176] : memref<18x128x128xi8, #tpu.memory_space<vmem>>, vector<1x128x128xi8>
    %248 = vector.shape_cast %247 : vector<1x128x128xi8> to vector<128x128xi8>
    %249 = arith.sitofp %248 : vector<128x128xi8> to vector<128x128xf32>
    %250 = vector.shape_cast %249 : vector<128x128xf32> to vector<8x16x128xf32>
    %c7_177 = arith.constant 7 : index
    %c0_178 = arith.constant 0 : index
    %c0_179 = arith.constant 0 : index
    %c0_180 = arith.constant 0 : index
    %251 = vector.load %arg3[%c7_177, %c0_178, %c0_179, %c0_180] : memref<18x8x1x128xf32, #tpu.memory_space<vmem>>, vector<1x8x1x128xf32>
    %252 = vector.shape_cast %251 : vector<1x8x1x128xf32> to vector<8x1x128xf32>
    %253 = vector.broadcast %252 : vector<8x1x128xf32> to vector<8x16x128xf32>
    %254 = arith.mulf %250, %253 : vector<8x16x128xf32>
    %c7_181 = arith.constant 7 : index
    %c0_182 = arith.constant 0 : index
    %c0_183 = arith.constant 0 : index
    %c0_184 = arith.constant 0 : index
    %255 = vector.load %arg4[%c7_181, %c0_182, %c0_183, %c0_184] : memref<18x8x1x128xf32, #tpu.memory_space<vmem>>, vector<1x8x1x128xf32>
    %256 = vector.shape_cast %255 : vector<1x8x1x128xf32> to vector<8x1x128xf32>
    %257 = vector.broadcast %256 : vector<8x1x128xf32> to vector<8x16x128xf32>
    %258 = arith.addf %254, %257 : vector<8x16x128xf32>
    %259 = vector.shape_cast %258 : vector<8x16x128xf32> to vector<128x128xf32>
    %c7_185 = arith.constant 7 : index
    %c0_186 = arith.constant 0 : index
    %c0_187 = arith.constant 0 : index
    %260 = vector.load %arg6[%c7_185, %c0_186, %c0_187] : memref<18x128x32xbf16, #tpu.memory_space<vmem>>, vector<1x128x32xbf16>
    %261 = vector.shape_cast %260 : vector<1x128x32xbf16> to vector<128x32xbf16>
    %c7_188 = arith.constant 7 : index
    %c0_189 = arith.constant 0 : index
    %c0_190 = arith.constant 0 : index
    %262 = vector.load %arg7[%c7_188, %c0_189, %c0_190] : memref<18x32x128xbf16, #tpu.memory_space<vmem>>, vector<1x32x128xbf16>
    %263 = vector.shape_cast %262 : vector<1x32x128xbf16> to vector<32x128xbf16>
    %cst_191 = arith.constant dense<0.000000e+00> : vector<128x128xf32>
    %264 = tpu.matmul %261, %263, %cst_191 {dimension_numbers = #tpu.dot_dimension_numbers<[1], [0], [0], [1], [0, 0, 1, 1], [], []>} : vector<128x32xbf16>, vector<32x128xbf16>, vector<128x128xf32> -> vector<128x128xf32>
    %265 = arith.addf %259, %264 : vector<128x128xf32>
    %266 = arith.truncf %265 : vector<128x128xf32> to vector<128x128xbf16>
    %267 = arith.truncf %246 : vector<128x128xf32> to vector<128x128xbf16>
    %cst_192 = arith.constant dense<0.000000e+00> : vector<128x128xf32>
    %268 = tpu.matmul %267, %266, %cst_192 {dimension_numbers = #tpu.dot_dimension_numbers<[1], [0], [0], [1], [0, 0, 1, 1], [], []>} : vector<128x128xbf16>, vector<128x128xbf16>, vector<128x128xf32> -> vector<128x128xf32>
    %c7_193 = arith.constant 7 : index
    %c0_194 = arith.constant 0 : index
    %c0_195 = arith.constant 0 : index
    %269 = vector.load %arg5[%c7_193, %c0_194, %c0_195] : memref<18x1x128xf32, #tpu.memory_space<vmem>>, vector<1x1x128xf32>
    %270 = vector.shape_cast %269 : vector<1x1x128xf32> to vector<1x128xf32>
    %271 = vector.broadcast %270 : vector<1x128xf32> to vector<128x128xf32>
    %272 = arith.addf %268, %271 : vector<128x128xf32>
    %cst_196 = arith.constant 0.000000e+00 : f32
    %273 = vector.broadcast %cst_196 : f32 to vector<128x128xf32>
    %274 = arith.maximumf %272, %273 : vector<128x128xf32>
    %c8 = arith.constant 8 : index
    %c0_197 = arith.constant 0 : index
    %c0_198 = arith.constant 0 : index
    %275 = vector.load %arg2[%c8, %c0_197, %c0_198] : memref<18x128x128xi8, #tpu.memory_space<vmem>>, vector<1x128x128xi8>
    %276 = vector.shape_cast %275 : vector<1x128x128xi8> to vector<128x128xi8>
    %277 = arith.sitofp %276 : vector<128x128xi8> to vector<128x128xf32>
    %278 = vector.shape_cast %277 : vector<128x128xf32> to vector<8x16x128xf32>
    %c8_199 = arith.constant 8 : index
    %c0_200 = arith.constant 0 : index
    %c0_201 = arith.constant 0 : index
    %c0_202 = arith.constant 0 : index
    %279 = vector.load %arg3[%c8_199, %c0_200, %c0_201, %c0_202] : memref<18x8x1x128xf32, #tpu.memory_space<vmem>>, vector<1x8x1x128xf32>
    %280 = vector.shape_cast %279 : vector<1x8x1x128xf32> to vector<8x1x128xf32>
    %281 = vector.broadcast %280 : vector<8x1x128xf32> to vector<8x16x128xf32>
    %282 = arith.mulf %278, %281 : vector<8x16x128xf32>
    %c8_203 = arith.constant 8 : index
    %c0_204 = arith.constant 0 : index
    %c0_205 = arith.constant 0 : index
    %c0_206 = arith.constant 0 : index
    %283 = vector.load %arg4[%c8_203, %c0_204, %c0_205, %c0_206] : memref<18x8x1x128xf32, #tpu.memory_space<vmem>>, vector<1x8x1x128xf32>
    %284 = vector.shape_cast %283 : vector<1x8x1x128xf32> to vector<8x1x128xf32>
    %285 = vector.broadcast %284 : vector<8x1x128xf32> to vector<8x16x128xf32>
    %286 = arith.addf %282, %285 : vector<8x16x128xf32>
    %287 = vector.shape_cast %286 : vector<8x16x128xf32> to vector<128x128xf32>
    %c8_207 = arith.constant 8 : index
    %c0_208 = arith.constant 0 : index
    %c0_209 = arith.constant 0 : index
    %288 = vector.load %arg6[%c8_207, %c0_208, %c0_209] : memref<18x128x32xbf16, #tpu.memory_space<vmem>>, vector<1x128x32xbf16>
    %289 = vector.shape_cast %288 : vector<1x128x32xbf16> to vector<128x32xbf16>
    %c8_210 = arith.constant 8 : index
    %c0_211 = arith.constant 0 : index
    %c0_212 = arith.constant 0 : index
    %290 = vector.load %arg7[%c8_210, %c0_211, %c0_212] : memref<18x32x128xbf16, #tpu.memory_space<vmem>>, vector<1x32x128xbf16>
    %291 = vector.shape_cast %290 : vector<1x32x128xbf16> to vector<32x128xbf16>
    %cst_213 = arith.constant dense<0.000000e+00> : vector<128x128xf32>
    %292 = tpu.matmul %289, %291, %cst_213 {dimension_numbers = #tpu.dot_dimension_numbers<[1], [0], [0], [1], [0, 0, 1, 1], [], []>} : vector<128x32xbf16>, vector<32x128xbf16>, vector<128x128xf32> -> vector<128x128xf32>
    %293 = arith.addf %287, %292 : vector<128x128xf32>
    %294 = arith.truncf %293 : vector<128x128xf32> to vector<128x128xbf16>
    %295 = arith.truncf %274 : vector<128x128xf32> to vector<128x128xbf16>
    %cst_214 = arith.constant dense<0.000000e+00> : vector<128x128xf32>
    %296 = tpu.matmul %295, %294, %cst_214 {dimension_numbers = #tpu.dot_dimension_numbers<[1], [0], [0], [1], [0, 0, 1, 1], [], []>} : vector<128x128xbf16>, vector<128x128xbf16>, vector<128x128xf32> -> vector<128x128xf32>
    %c8_215 = arith.constant 8 : index
    %c0_216 = arith.constant 0 : index
    %c0_217 = arith.constant 0 : index
    %297 = vector.load %arg5[%c8_215, %c0_216, %c0_217] : memref<18x1x128xf32, #tpu.memory_space<vmem>>, vector<1x1x128xf32>
    %298 = vector.shape_cast %297 : vector<1x1x128xf32> to vector<1x128xf32>
    %299 = vector.broadcast %298 : vector<1x128xf32> to vector<128x128xf32>
    %300 = arith.addf %296, %299 : vector<128x128xf32>
    %301 = arith.addf %300, %218 : vector<128x128xf32>
    %cst_218 = arith.constant dense<0.000000e+00> : vector<128xf32>
    %302 = vector.multi_reduction <add>, %301, %cst_218 [1] : vector<128x128xf32> to vector<128xf32>
    %303 = vector.shape_cast %302 : vector<128xf32> to vector<128x1xf32>
    %cst_219 = arith.constant 7.812500e-03 : f32
    %304 = vector.broadcast %cst_219 : f32 to vector<128x1xf32>
    %305 = arith.mulf %303, %304 : vector<128x1xf32>
    %306 = arith.mulf %301, %301 : vector<128x128xf32>
    %cst_220 = arith.constant dense<0.000000e+00> : vector<128xf32>
    %307 = vector.multi_reduction <add>, %306, %cst_220 [1] : vector<128x128xf32> to vector<128xf32>
    %308 = vector.shape_cast %307 : vector<128xf32> to vector<128x1xf32>
    %cst_221 = arith.constant 7.812500e-03 : f32
    %309 = vector.broadcast %cst_221 : f32 to vector<128x1xf32>
    %310 = arith.mulf %308, %309 : vector<128x1xf32>
    %311 = arith.mulf %305, %305 : vector<128x1xf32>
    %312 = arith.subf %310, %311 : vector<128x1xf32>
    %313 = vector.broadcast %305 : vector<128x1xf32> to vector<128x128xf32>
    %314 = arith.subf %301, %313 : vector<128x128xf32>
    %cst_222 = arith.constant 9.99999974E-6 : f32
    %315 = vector.broadcast %cst_222 : f32 to vector<128x1xf32>
    %316 = arith.addf %312, %315 : vector<128x1xf32>
    %317 = math.rsqrt %316 : vector<128x1xf32>
    %318 = vector.broadcast %317 : vector<128x1xf32> to vector<128x128xf32>
    %319 = arith.mulf %314, %318 : vector<128x128xf32>
    %c2_223 = arith.constant 2 : index
    %c0_224 = arith.constant 0 : index
    %c0_225 = arith.constant 0 : index
    %320 = vector.load %arg8[%c2_223, %c0_224, %c0_225] : memref<5x1x128xf32, #tpu.memory_space<vmem>>, vector<1x1x128xf32>
    %321 = vector.shape_cast %320 : vector<1x1x128xf32> to vector<1x128xf32>
    %322 = vector.broadcast %321 : vector<1x128xf32> to vector<128x128xf32>
    %323 = arith.mulf %319, %322 : vector<128x128xf32>
    %c2_226 = arith.constant 2 : index
    %c0_227 = arith.constant 0 : index
    %c0_228 = arith.constant 0 : index
    %324 = vector.load %arg9[%c2_226, %c0_227, %c0_228] : memref<5x1x128xf32, #tpu.memory_space<vmem>>, vector<1x1x128xf32>
    %325 = vector.shape_cast %324 : vector<1x1x128xf32> to vector<1x128xf32>
    %326 = vector.broadcast %325 : vector<1x128xf32> to vector<128x128xf32>
    %327 = arith.addf %323, %326 : vector<128x128xf32>
    %c9 = arith.constant 9 : index
    %c0_229 = arith.constant 0 : index
    %c0_230 = arith.constant 0 : index
    %328 = vector.load %arg2[%c9, %c0_229, %c0_230] : memref<18x128x128xi8, #tpu.memory_space<vmem>>, vector<1x128x128xi8>
    %329 = vector.shape_cast %328 : vector<1x128x128xi8> to vector<128x128xi8>
    %330 = arith.sitofp %329 : vector<128x128xi8> to vector<128x128xf32>
    %331 = vector.shape_cast %330 : vector<128x128xf32> to vector<8x16x128xf32>
    %c9_231 = arith.constant 9 : index
    %c0_232 = arith.constant 0 : index
    %c0_233 = arith.constant 0 : index
    %c0_234 = arith.constant 0 : index
    %332 = vector.load %arg3[%c9_231, %c0_232, %c0_233, %c0_234] : memref<18x8x1x128xf32, #tpu.memory_space<vmem>>, vector<1x8x1x128xf32>
    %333 = vector.shape_cast %332 : vector<1x8x1x128xf32> to vector<8x1x128xf32>
    %334 = vector.broadcast %333 : vector<8x1x128xf32> to vector<8x16x128xf32>
    %335 = arith.mulf %331, %334 : vector<8x16x128xf32>
    %c9_235 = arith.constant 9 : index
    %c0_236 = arith.constant 0 : index
    %c0_237 = arith.constant 0 : index
    %c0_238 = arith.constant 0 : index
    %336 = vector.load %arg4[%c9_235, %c0_236, %c0_237, %c0_238] : memref<18x8x1x128xf32, #tpu.memory_space<vmem>>, vector<1x8x1x128xf32>
    %337 = vector.shape_cast %336 : vector<1x8x1x128xf32> to vector<8x1x128xf32>
    %338 = vector.broadcast %337 : vector<8x1x128xf32> to vector<8x16x128xf32>
    %339 = arith.addf %335, %338 : vector<8x16x128xf32>
    %340 = vector.shape_cast %339 : vector<8x16x128xf32> to vector<128x128xf32>
    %c9_239 = arith.constant 9 : index
    %c0_240 = arith.constant 0 : index
    %c0_241 = arith.constant 0 : index
    %341 = vector.load %arg6[%c9_239, %c0_240, %c0_241] : memref<18x128x32xbf16, #tpu.memory_space<vmem>>, vector<1x128x32xbf16>
    %342 = vector.shape_cast %341 : vector<1x128x32xbf16> to vector<128x32xbf16>
    %c9_242 = arith.constant 9 : index
    %c0_243 = arith.constant 0 : index
    %c0_244 = arith.constant 0 : index
    %343 = vector.load %arg7[%c9_242, %c0_243, %c0_244] : memref<18x32x128xbf16, #tpu.memory_space<vmem>>, vector<1x32x128xbf16>
    %344 = vector.shape_cast %343 : vector<1x32x128xbf16> to vector<32x128xbf16>
    %cst_245 = arith.constant dense<0.000000e+00> : vector<128x128xf32>
    %345 = tpu.matmul %342, %344, %cst_245 {dimension_numbers = #tpu.dot_dimension_numbers<[1], [0], [0], [1], [0, 0, 1, 1], [], []>} : vector<128x32xbf16>, vector<32x128xbf16>, vector<128x128xf32> -> vector<128x128xf32>
    %346 = arith.addf %340, %345 : vector<128x128xf32>
    %347 = arith.truncf %346 : vector<128x128xf32> to vector<128x128xbf16>
    %348 = arith.truncf %327 : vector<128x128xf32> to vector<128x128xbf16>
    %cst_246 = arith.constant dense<0.000000e+00> : vector<128x128xf32>
    %349 = tpu.matmul %348, %347, %cst_246 {dimension_numbers = #tpu.dot_dimension_numbers<[1], [0], [0], [1], [0, 0, 1, 1], [], []>} : vector<128x128xbf16>, vector<128x128xbf16>, vector<128x128xf32> -> vector<128x128xf32>
    %c9_247 = arith.constant 9 : index
    %c0_248 = arith.constant 0 : index
    %c0_249 = arith.constant 0 : index
    %350 = vector.load %arg5[%c9_247, %c0_248, %c0_249] : memref<18x1x128xf32, #tpu.memory_space<vmem>>, vector<1x1x128xf32>
    %351 = vector.shape_cast %350 : vector<1x1x128xf32> to vector<1x128xf32>
    %352 = vector.broadcast %351 : vector<1x128xf32> to vector<128x128xf32>
    %353 = arith.addf %349, %352 : vector<128x128xf32>
    %cst_250 = arith.constant 0.000000e+00 : f32
    %354 = vector.broadcast %cst_250 : f32 to vector<128x128xf32>
    %355 = arith.maximumf %353, %354 : vector<128x128xf32>
    %c10 = arith.constant 10 : index
    %c0_251 = arith.constant 0 : index
    %c0_252 = arith.constant 0 : index
    %356 = vector.load %arg2[%c10, %c0_251, %c0_252] : memref<18x128x128xi8, #tpu.memory_space<vmem>>, vector<1x128x128xi8>
    %357 = vector.shape_cast %356 : vector<1x128x128xi8> to vector<128x128xi8>
    %358 = arith.sitofp %357 : vector<128x128xi8> to vector<128x128xf32>
    %359 = vector.shape_cast %358 : vector<128x128xf32> to vector<8x16x128xf32>
    %c10_253 = arith.constant 10 : index
    %c0_254 = arith.constant 0 : index
    %c0_255 = arith.constant 0 : index
    %c0_256 = arith.constant 0 : index
    %360 = vector.load %arg3[%c10_253, %c0_254, %c0_255, %c0_256] : memref<18x8x1x128xf32, #tpu.memory_space<vmem>>, vector<1x8x1x128xf32>
    %361 = vector.shape_cast %360 : vector<1x8x1x128xf32> to vector<8x1x128xf32>
    %362 = vector.broadcast %361 : vector<8x1x128xf32> to vector<8x16x128xf32>
    %363 = arith.mulf %359, %362 : vector<8x16x128xf32>
    %c10_257 = arith.constant 10 : index
    %c0_258 = arith.constant 0 : index
    %c0_259 = arith.constant 0 : index
    %c0_260 = arith.constant 0 : index
    %364 = vector.load %arg4[%c10_257, %c0_258, %c0_259, %c0_260] : memref<18x8x1x128xf32, #tpu.memory_space<vmem>>, vector<1x8x1x128xf32>
    %365 = vector.shape_cast %364 : vector<1x8x1x128xf32> to vector<8x1x128xf32>
    %366 = vector.broadcast %365 : vector<8x1x128xf32> to vector<8x16x128xf32>
    %367 = arith.addf %363, %366 : vector<8x16x128xf32>
    %368 = vector.shape_cast %367 : vector<8x16x128xf32> to vector<128x128xf32>
    %c10_261 = arith.constant 10 : index
    %c0_262 = arith.constant 0 : index
    %c0_263 = arith.constant 0 : index
    %369 = vector.load %arg6[%c10_261, %c0_262, %c0_263] : memref<18x128x32xbf16, #tpu.memory_space<vmem>>, vector<1x128x32xbf16>
    %370 = vector.shape_cast %369 : vector<1x128x32xbf16> to vector<128x32xbf16>
    %c10_264 = arith.constant 10 : index
    %c0_265 = arith.constant 0 : index
    %c0_266 = arith.constant 0 : index
    %371 = vector.load %arg7[%c10_264, %c0_265, %c0_266] : memref<18x32x128xbf16, #tpu.memory_space<vmem>>, vector<1x32x128xbf16>
    %372 = vector.shape_cast %371 : vector<1x32x128xbf16> to vector<32x128xbf16>
    %cst_267 = arith.constant dense<0.000000e+00> : vector<128x128xf32>
    %373 = tpu.matmul %370, %372, %cst_267 {dimension_numbers = #tpu.dot_dimension_numbers<[1], [0], [0], [1], [0, 0, 1, 1], [], []>} : vector<128x32xbf16>, vector<32x128xbf16>, vector<128x128xf32> -> vector<128x128xf32>
    %374 = arith.addf %368, %373 : vector<128x128xf32>
    %375 = arith.truncf %374 : vector<128x128xf32> to vector<128x128xbf16>
    %376 = arith.truncf %355 : vector<128x128xf32> to vector<128x128xbf16>
    %cst_268 = arith.constant dense<0.000000e+00> : vector<128x128xf32>
    %377 = tpu.matmul %376, %375, %cst_268 {dimension_numbers = #tpu.dot_dimension_numbers<[1], [0], [0], [1], [0, 0, 1, 1], [], []>} : vector<128x128xbf16>, vector<128x128xbf16>, vector<128x128xf32> -> vector<128x128xf32>
    %c10_269 = arith.constant 10 : index
    %c0_270 = arith.constant 0 : index
    %c0_271 = arith.constant 0 : index
    %378 = vector.load %arg5[%c10_269, %c0_270, %c0_271] : memref<18x1x128xf32, #tpu.memory_space<vmem>>, vector<1x1x128xf32>
    %379 = vector.shape_cast %378 : vector<1x1x128xf32> to vector<1x128xf32>
    %380 = vector.broadcast %379 : vector<1x128xf32> to vector<128x128xf32>
    %381 = arith.addf %377, %380 : vector<128x128xf32>
    %cst_272 = arith.constant 0.000000e+00 : f32
    %382 = vector.broadcast %cst_272 : f32 to vector<128x128xf32>
    %383 = arith.maximumf %381, %382 : vector<128x128xf32>
    %c11 = arith.constant 11 : index
    %c0_273 = arith.constant 0 : index
    %c0_274 = arith.constant 0 : index
    %384 = vector.load %arg2[%c11, %c0_273, %c0_274] : memref<18x128x128xi8, #tpu.memory_space<vmem>>, vector<1x128x128xi8>
    %385 = vector.shape_cast %384 : vector<1x128x128xi8> to vector<128x128xi8>
    %386 = arith.sitofp %385 : vector<128x128xi8> to vector<128x128xf32>
    %387 = vector.shape_cast %386 : vector<128x128xf32> to vector<8x16x128xf32>
    %c11_275 = arith.constant 11 : index
    %c0_276 = arith.constant 0 : index
    %c0_277 = arith.constant 0 : index
    %c0_278 = arith.constant 0 : index
    %388 = vector.load %arg3[%c11_275, %c0_276, %c0_277, %c0_278] : memref<18x8x1x128xf32, #tpu.memory_space<vmem>>, vector<1x8x1x128xf32>
    %389 = vector.shape_cast %388 : vector<1x8x1x128xf32> to vector<8x1x128xf32>
    %390 = vector.broadcast %389 : vector<8x1x128xf32> to vector<8x16x128xf32>
    %391 = arith.mulf %387, %390 : vector<8x16x128xf32>
    %c11_279 = arith.constant 11 : index
    %c0_280 = arith.constant 0 : index
    %c0_281 = arith.constant 0 : index
    %c0_282 = arith.constant 0 : index
    %392 = vector.load %arg4[%c11_279, %c0_280, %c0_281, %c0_282] : memref<18x8x1x128xf32, #tpu.memory_space<vmem>>, vector<1x8x1x128xf32>
    %393 = vector.shape_cast %392 : vector<1x8x1x128xf32> to vector<8x1x128xf32>
    %394 = vector.broadcast %393 : vector<8x1x128xf32> to vector<8x16x128xf32>
    %395 = arith.addf %391, %394 : vector<8x16x128xf32>
    %396 = vector.shape_cast %395 : vector<8x16x128xf32> to vector<128x128xf32>
    %c11_283 = arith.constant 11 : index
    %c0_284 = arith.constant 0 : index
    %c0_285 = arith.constant 0 : index
    %397 = vector.load %arg6[%c11_283, %c0_284, %c0_285] : memref<18x128x32xbf16, #tpu.memory_space<vmem>>, vector<1x128x32xbf16>
    %398 = vector.shape_cast %397 : vector<1x128x32xbf16> to vector<128x32xbf16>
    %c11_286 = arith.constant 11 : index
    %c0_287 = arith.constant 0 : index
    %c0_288 = arith.constant 0 : index
    %399 = vector.load %arg7[%c11_286, %c0_287, %c0_288] : memref<18x32x128xbf16, #tpu.memory_space<vmem>>, vector<1x32x128xbf16>
    %400 = vector.shape_cast %399 : vector<1x32x128xbf16> to vector<32x128xbf16>
    %cst_289 = arith.constant dense<0.000000e+00> : vector<128x128xf32>
    %401 = tpu.matmul %398, %400, %cst_289 {dimension_numbers = #tpu.dot_dimension_numbers<[1], [0], [0], [1], [0, 0, 1, 1], [], []>} : vector<128x32xbf16>, vector<32x128xbf16>, vector<128x128xf32> -> vector<128x128xf32>
    %402 = arith.addf %396, %401 : vector<128x128xf32>
    %403 = arith.truncf %402 : vector<128x128xf32> to vector<128x128xbf16>
    %404 = arith.truncf %383 : vector<128x128xf32> to vector<128x128xbf16>
    %cst_290 = arith.constant dense<0.000000e+00> : vector<128x128xf32>
    %405 = tpu.matmul %404, %403, %cst_290 {dimension_numbers = #tpu.dot_dimension_numbers<[1], [0], [0], [1], [0, 0, 1, 1], [], []>} : vector<128x128xbf16>, vector<128x128xbf16>, vector<128x128xf32> -> vector<128x128xf32>
    %c11_291 = arith.constant 11 : index
    %c0_292 = arith.constant 0 : index
    %c0_293 = arith.constant 0 : index
    %406 = vector.load %arg5[%c11_291, %c0_292, %c0_293] : memref<18x1x128xf32, #tpu.memory_space<vmem>>, vector<1x1x128xf32>
    %407 = vector.shape_cast %406 : vector<1x1x128xf32> to vector<1x128xf32>
    %408 = vector.broadcast %407 : vector<1x128xf32> to vector<128x128xf32>
    %409 = arith.addf %405, %408 : vector<128x128xf32>
    %410 = arith.addf %409, %327 : vector<128x128xf32>
    %cst_294 = arith.constant dense<0.000000e+00> : vector<128xf32>
    %411 = vector.multi_reduction <add>, %410, %cst_294 [1] : vector<128x128xf32> to vector<128xf32>
    %412 = vector.shape_cast %411 : vector<128xf32> to vector<128x1xf32>
    %cst_295 = arith.constant 7.812500e-03 : f32
    %413 = vector.broadcast %cst_295 : f32 to vector<128x1xf32>
    %414 = arith.mulf %412, %413 : vector<128x1xf32>
    %415 = arith.mulf %410, %410 : vector<128x128xf32>
    %cst_296 = arith.constant dense<0.000000e+00> : vector<128xf32>
    %416 = vector.multi_reduction <add>, %415, %cst_296 [1] : vector<128x128xf32> to vector<128xf32>
    %417 = vector.shape_cast %416 : vector<128xf32> to vector<128x1xf32>
    %cst_297 = arith.constant 7.812500e-03 : f32
    %418 = vector.broadcast %cst_297 : f32 to vector<128x1xf32>
    %419 = arith.mulf %417, %418 : vector<128x1xf32>
    %420 = arith.mulf %414, %414 : vector<128x1xf32>
    %421 = arith.subf %419, %420 : vector<128x1xf32>
    %422 = vector.broadcast %414 : vector<128x1xf32> to vector<128x128xf32>
    %423 = arith.subf %410, %422 : vector<128x128xf32>
    %cst_298 = arith.constant 9.99999974E-6 : f32
    %424 = vector.broadcast %cst_298 : f32 to vector<128x1xf32>
    %425 = arith.addf %421, %424 : vector<128x1xf32>
    %426 = math.rsqrt %425 : vector<128x1xf32>
    %427 = vector.broadcast %426 : vector<128x1xf32> to vector<128x128xf32>
    %428 = arith.mulf %423, %427 : vector<128x128xf32>
    %c3_299 = arith.constant 3 : index
    %c0_300 = arith.constant 0 : index
    %c0_301 = arith.constant 0 : index
    %429 = vector.load %arg8[%c3_299, %c0_300, %c0_301] : memref<5x1x128xf32, #tpu.memory_space<vmem>>, vector<1x1x128xf32>
    %430 = vector.shape_cast %429 : vector<1x1x128xf32> to vector<1x128xf32>
    %431 = vector.broadcast %430 : vector<1x128xf32> to vector<128x128xf32>
    %432 = arith.mulf %428, %431 : vector<128x128xf32>
    %c3_302 = arith.constant 3 : index
    %c0_303 = arith.constant 0 : index
    %c0_304 = arith.constant 0 : index
    %433 = vector.load %arg9[%c3_302, %c0_303, %c0_304] : memref<5x1x128xf32, #tpu.memory_space<vmem>>, vector<1x1x128xf32>
    %434 = vector.shape_cast %433 : vector<1x1x128xf32> to vector<1x128xf32>
    %435 = vector.broadcast %434 : vector<1x128xf32> to vector<128x128xf32>
    %436 = arith.addf %432, %435 : vector<128x128xf32>
    %c12 = arith.constant 12 : index
    %c0_305 = arith.constant 0 : index
    %c0_306 = arith.constant 0 : index
    %437 = vector.load %arg2[%c12, %c0_305, %c0_306] : memref<18x128x128xi8, #tpu.memory_space<vmem>>, vector<1x128x128xi8>
    %438 = vector.shape_cast %437 : vector<1x128x128xi8> to vector<128x128xi8>
    %439 = arith.sitofp %438 : vector<128x128xi8> to vector<128x128xf32>
    %440 = vector.shape_cast %439 : vector<128x128xf32> to vector<8x16x128xf32>
    %c12_307 = arith.constant 12 : index
    %c0_308 = arith.constant 0 : index
    %c0_309 = arith.constant 0 : index
    %c0_310 = arith.constant 0 : index
    %441 = vector.load %arg3[%c12_307, %c0_308, %c0_309, %c0_310] : memref<18x8x1x128xf32, #tpu.memory_space<vmem>>, vector<1x8x1x128xf32>
    %442 = vector.shape_cast %441 : vector<1x8x1x128xf32> to vector<8x1x128xf32>
    %443 = vector.broadcast %442 : vector<8x1x128xf32> to vector<8x16x128xf32>
    %444 = arith.mulf %440, %443 : vector<8x16x128xf32>
    %c12_311 = arith.constant 12 : index
    %c0_312 = arith.constant 0 : index
    %c0_313 = arith.constant 0 : index
    %c0_314 = arith.constant 0 : index
    %445 = vector.load %arg4[%c12_311, %c0_312, %c0_313, %c0_314] : memref<18x8x1x128xf32, #tpu.memory_space<vmem>>, vector<1x8x1x128xf32>
    %446 = vector.shape_cast %445 : vector<1x8x1x128xf32> to vector<8x1x128xf32>
    %447 = vector.broadcast %446 : vector<8x1x128xf32> to vector<8x16x128xf32>
    %448 = arith.addf %444, %447 : vector<8x16x128xf32>
    %449 = vector.shape_cast %448 : vector<8x16x128xf32> to vector<128x128xf32>
    %c12_315 = arith.constant 12 : index
    %c0_316 = arith.constant 0 : index
    %c0_317 = arith.constant 0 : index
    %450 = vector.load %arg6[%c12_315, %c0_316, %c0_317] : memref<18x128x32xbf16, #tpu.memory_space<vmem>>, vector<1x128x32xbf16>
    %451 = vector.shape_cast %450 : vector<1x128x32xbf16> to vector<128x32xbf16>
    %c12_318 = arith.constant 12 : index
    %c0_319 = arith.constant 0 : index
    %c0_320 = arith.constant 0 : index
    %452 = vector.load %arg7[%c12_318, %c0_319, %c0_320] : memref<18x32x128xbf16, #tpu.memory_space<vmem>>, vector<1x32x128xbf16>
    %453 = vector.shape_cast %452 : vector<1x32x128xbf16> to vector<32x128xbf16>
    %cst_321 = arith.constant dense<0.000000e+00> : vector<128x128xf32>
    %454 = tpu.matmul %451, %453, %cst_321 {dimension_numbers = #tpu.dot_dimension_numbers<[1], [0], [0], [1], [0, 0, 1, 1], [], []>} : vector<128x32xbf16>, vector<32x128xbf16>, vector<128x128xf32> -> vector<128x128xf32>
    %455 = arith.addf %449, %454 : vector<128x128xf32>
    %456 = arith.truncf %455 : vector<128x128xf32> to vector<128x128xbf16>
    %457 = arith.truncf %436 : vector<128x128xf32> to vector<128x128xbf16>
    %cst_322 = arith.constant dense<0.000000e+00> : vector<128x128xf32>
    %458 = tpu.matmul %457, %456, %cst_322 {dimension_numbers = #tpu.dot_dimension_numbers<[1], [0], [0], [1], [0, 0, 1, 1], [], []>} : vector<128x128xbf16>, vector<128x128xbf16>, vector<128x128xf32> -> vector<128x128xf32>
    %c12_323 = arith.constant 12 : index
    %c0_324 = arith.constant 0 : index
    %c0_325 = arith.constant 0 : index
    %459 = vector.load %arg5[%c12_323, %c0_324, %c0_325] : memref<18x1x128xf32, #tpu.memory_space<vmem>>, vector<1x1x128xf32>
    %460 = vector.shape_cast %459 : vector<1x1x128xf32> to vector<1x128xf32>
    %461 = vector.broadcast %460 : vector<1x128xf32> to vector<128x128xf32>
    %462 = arith.addf %458, %461 : vector<128x128xf32>
    %cst_326 = arith.constant 0.000000e+00 : f32
    %463 = vector.broadcast %cst_326 : f32 to vector<128x128xf32>
    %464 = arith.maximumf %462, %463 : vector<128x128xf32>
    %c13 = arith.constant 13 : index
    %c0_327 = arith.constant 0 : index
    %c0_328 = arith.constant 0 : index
    %465 = vector.load %arg2[%c13, %c0_327, %c0_328] : memref<18x128x128xi8, #tpu.memory_space<vmem>>, vector<1x128x128xi8>
    %466 = vector.shape_cast %465 : vector<1x128x128xi8> to vector<128x128xi8>
    %467 = arith.sitofp %466 : vector<128x128xi8> to vector<128x128xf32>
    %468 = vector.shape_cast %467 : vector<128x128xf32> to vector<8x16x128xf32>
    %c13_329 = arith.constant 13 : index
    %c0_330 = arith.constant 0 : index
    %c0_331 = arith.constant 0 : index
    %c0_332 = arith.constant 0 : index
    %469 = vector.load %arg3[%c13_329, %c0_330, %c0_331, %c0_332] : memref<18x8x1x128xf32, #tpu.memory_space<vmem>>, vector<1x8x1x128xf32>
    %470 = vector.shape_cast %469 : vector<1x8x1x128xf32> to vector<8x1x128xf32>
    %471 = vector.broadcast %470 : vector<8x1x128xf32> to vector<8x16x128xf32>
    %472 = arith.mulf %468, %471 : vector<8x16x128xf32>
    %c13_333 = arith.constant 13 : index
    %c0_334 = arith.constant 0 : index
    %c0_335 = arith.constant 0 : index
    %c0_336 = arith.constant 0 : index
    %473 = vector.load %arg4[%c13_333, %c0_334, %c0_335, %c0_336] : memref<18x8x1x128xf32, #tpu.memory_space<vmem>>, vector<1x8x1x128xf32>
    %474 = vector.shape_cast %473 : vector<1x8x1x128xf32> to vector<8x1x128xf32>
    %475 = vector.broadcast %474 : vector<8x1x128xf32> to vector<8x16x128xf32>
    %476 = arith.addf %472, %475 : vector<8x16x128xf32>
    %477 = vector.shape_cast %476 : vector<8x16x128xf32> to vector<128x128xf32>
    %c13_337 = arith.constant 13 : index
    %c0_338 = arith.constant 0 : index
    %c0_339 = arith.constant 0 : index
    %478 = vector.load %arg6[%c13_337, %c0_338, %c0_339] : memref<18x128x32xbf16, #tpu.memory_space<vmem>>, vector<1x128x32xbf16>
    %479 = vector.shape_cast %478 : vector<1x128x32xbf16> to vector<128x32xbf16>
    %c13_340 = arith.constant 13 : index
    %c0_341 = arith.constant 0 : index
    %c0_342 = arith.constant 0 : index
    %480 = vector.load %arg7[%c13_340, %c0_341, %c0_342] : memref<18x32x128xbf16, #tpu.memory_space<vmem>>, vector<1x32x128xbf16>
    %481 = vector.shape_cast %480 : vector<1x32x128xbf16> to vector<32x128xbf16>
    %cst_343 = arith.constant dense<0.000000e+00> : vector<128x128xf32>
    %482 = tpu.matmul %479, %481, %cst_343 {dimension_numbers = #tpu.dot_dimension_numbers<[1], [0], [0], [1], [0, 0, 1, 1], [], []>} : vector<128x32xbf16>, vector<32x128xbf16>, vector<128x128xf32> -> vector<128x128xf32>
    %483 = arith.addf %477, %482 : vector<128x128xf32>
    %484 = arith.truncf %483 : vector<128x128xf32> to vector<128x128xbf16>
    %485 = arith.truncf %464 : vector<128x128xf32> to vector<128x128xbf16>
    %cst_344 = arith.constant dense<0.000000e+00> : vector<128x128xf32>
    %486 = tpu.matmul %485, %484, %cst_344 {dimension_numbers = #tpu.dot_dimension_numbers<[1], [0], [0], [1], [0, 0, 1, 1], [], []>} : vector<128x128xbf16>, vector<128x128xbf16>, vector<128x128xf32> -> vector<128x128xf32>
    %c13_345 = arith.constant 13 : index
    %c0_346 = arith.constant 0 : index
    %c0_347 = arith.constant 0 : index
    %487 = vector.load %arg5[%c13_345, %c0_346, %c0_347] : memref<18x1x128xf32, #tpu.memory_space<vmem>>, vector<1x1x128xf32>
    %488 = vector.shape_cast %487 : vector<1x1x128xf32> to vector<1x128xf32>
    %489 = vector.broadcast %488 : vector<1x128xf32> to vector<128x128xf32>
    %490 = arith.addf %486, %489 : vector<128x128xf32>
    %cst_348 = arith.constant 0.000000e+00 : f32
    %491 = vector.broadcast %cst_348 : f32 to vector<128x128xf32>
    %492 = arith.maximumf %490, %491 : vector<128x128xf32>
    %c14 = arith.constant 14 : index
    %c0_349 = arith.constant 0 : index
    %c0_350 = arith.constant 0 : index
    %493 = vector.load %arg2[%c14, %c0_349, %c0_350] : memref<18x128x128xi8, #tpu.memory_space<vmem>>, vector<1x128x128xi8>
    %494 = vector.shape_cast %493 : vector<1x128x128xi8> to vector<128x128xi8>
    %495 = arith.sitofp %494 : vector<128x128xi8> to vector<128x128xf32>
    %496 = vector.shape_cast %495 : vector<128x128xf32> to vector<8x16x128xf32>
    %c14_351 = arith.constant 14 : index
    %c0_352 = arith.constant 0 : index
    %c0_353 = arith.constant 0 : index
    %c0_354 = arith.constant 0 : index
    %497 = vector.load %arg3[%c14_351, %c0_352, %c0_353, %c0_354] : memref<18x8x1x128xf32, #tpu.memory_space<vmem>>, vector<1x8x1x128xf32>
    %498 = vector.shape_cast %497 : vector<1x8x1x128xf32> to vector<8x1x128xf32>
    %499 = vector.broadcast %498 : vector<8x1x128xf32> to vector<8x16x128xf32>
    %500 = arith.mulf %496, %499 : vector<8x16x128xf32>
    %c14_355 = arith.constant 14 : index
    %c0_356 = arith.constant 0 : index
    %c0_357 = arith.constant 0 : index
    %c0_358 = arith.constant 0 : index
    %501 = vector.load %arg4[%c14_355, %c0_356, %c0_357, %c0_358] : memref<18x8x1x128xf32, #tpu.memory_space<vmem>>, vector<1x8x1x128xf32>
    %502 = vector.shape_cast %501 : vector<1x8x1x128xf32> to vector<8x1x128xf32>
    %503 = vector.broadcast %502 : vector<8x1x128xf32> to vector<8x16x128xf32>
    %504 = arith.addf %500, %503 : vector<8x16x128xf32>
    %505 = vector.shape_cast %504 : vector<8x16x128xf32> to vector<128x128xf32>
    %c14_359 = arith.constant 14 : index
    %c0_360 = arith.constant 0 : index
    %c0_361 = arith.constant 0 : index
    %506 = vector.load %arg6[%c14_359, %c0_360, %c0_361] : memref<18x128x32xbf16, #tpu.memory_space<vmem>>, vector<1x128x32xbf16>
    %507 = vector.shape_cast %506 : vector<1x128x32xbf16> to vector<128x32xbf16>
    %c14_362 = arith.constant 14 : index
    %c0_363 = arith.constant 0 : index
    %c0_364 = arith.constant 0 : index
    %508 = vector.load %arg7[%c14_362, %c0_363, %c0_364] : memref<18x32x128xbf16, #tpu.memory_space<vmem>>, vector<1x32x128xbf16>
    %509 = vector.shape_cast %508 : vector<1x32x128xbf16> to vector<32x128xbf16>
    %cst_365 = arith.constant dense<0.000000e+00> : vector<128x128xf32>
    %510 = tpu.matmul %507, %509, %cst_365 {dimension_numbers = #tpu.dot_dimension_numbers<[1], [0], [0], [1], [0, 0, 1, 1], [], []>} : vector<128x32xbf16>, vector<32x128xbf16>, vector<128x128xf32> -> vector<128x128xf32>
    %511 = arith.addf %505, %510 : vector<128x128xf32>
    %512 = arith.truncf %511 : vector<128x128xf32> to vector<128x128xbf16>
    %513 = arith.truncf %492 : vector<128x128xf32> to vector<128x128xbf16>
    %cst_366 = arith.constant dense<0.000000e+00> : vector<128x128xf32>
    %514 = tpu.matmul %513, %512, %cst_366 {dimension_numbers = #tpu.dot_dimension_numbers<[1], [0], [0], [1], [0, 0, 1, 1], [], []>} : vector<128x128xbf16>, vector<128x128xbf16>, vector<128x128xf32> -> vector<128x128xf32>
    %c14_367 = arith.constant 14 : index
    %c0_368 = arith.constant 0 : index
    %c0_369 = arith.constant 0 : index
    %515 = vector.load %arg5[%c14_367, %c0_368, %c0_369] : memref<18x1x128xf32, #tpu.memory_space<vmem>>, vector<1x1x128xf32>
    %516 = vector.shape_cast %515 : vector<1x1x128xf32> to vector<1x128xf32>
    %517 = vector.broadcast %516 : vector<1x128xf32> to vector<128x128xf32>
    %518 = arith.addf %514, %517 : vector<128x128xf32>
    %519 = arith.addf %518, %436 : vector<128x128xf32>
    %cst_370 = arith.constant dense<0.000000e+00> : vector<128xf32>
    %520 = vector.multi_reduction <add>, %519, %cst_370 [1] : vector<128x128xf32> to vector<128xf32>
    %521 = vector.shape_cast %520 : vector<128xf32> to vector<128x1xf32>
    %cst_371 = arith.constant 7.812500e-03 : f32
    %522 = vector.broadcast %cst_371 : f32 to vector<128x1xf32>
    %523 = arith.mulf %521, %522 : vector<128x1xf32>
    %524 = arith.mulf %519, %519 : vector<128x128xf32>
    %cst_372 = arith.constant dense<0.000000e+00> : vector<128xf32>
    %525 = vector.multi_reduction <add>, %524, %cst_372 [1] : vector<128x128xf32> to vector<128xf32>
    %526 = vector.shape_cast %525 : vector<128xf32> to vector<128x1xf32>
    %cst_373 = arith.constant 7.812500e-03 : f32
    %527 = vector.broadcast %cst_373 : f32 to vector<128x1xf32>
    %528 = arith.mulf %526, %527 : vector<128x1xf32>
    %529 = arith.mulf %523, %523 : vector<128x1xf32>
    %530 = arith.subf %528, %529 : vector<128x1xf32>
    %531 = vector.broadcast %523 : vector<128x1xf32> to vector<128x128xf32>
    %532 = arith.subf %519, %531 : vector<128x128xf32>
    %cst_374 = arith.constant 9.99999974E-6 : f32
    %533 = vector.broadcast %cst_374 : f32 to vector<128x1xf32>
    %534 = arith.addf %530, %533 : vector<128x1xf32>
    %535 = math.rsqrt %534 : vector<128x1xf32>
    %536 = vector.broadcast %535 : vector<128x1xf32> to vector<128x128xf32>
    %537 = arith.mulf %532, %536 : vector<128x128xf32>
    %c4_375 = arith.constant 4 : index
    %c0_376 = arith.constant 0 : index
    %c0_377 = arith.constant 0 : index
    %538 = vector.load %arg8[%c4_375, %c0_376, %c0_377] : memref<5x1x128xf32, #tpu.memory_space<vmem>>, vector<1x1x128xf32>
    %539 = vector.shape_cast %538 : vector<1x1x128xf32> to vector<1x128xf32>
    %540 = vector.broadcast %539 : vector<1x128xf32> to vector<128x128xf32>
    %541 = arith.mulf %537, %540 : vector<128x128xf32>
    %c4_378 = arith.constant 4 : index
    %c0_379 = arith.constant 0 : index
    %c0_380 = arith.constant 0 : index
    %542 = vector.load %arg9[%c4_378, %c0_379, %c0_380] : memref<5x1x128xf32, #tpu.memory_space<vmem>>, vector<1x1x128xf32>
    %543 = vector.shape_cast %542 : vector<1x1x128xf32> to vector<1x128xf32>
    %544 = vector.broadcast %543 : vector<1x128xf32> to vector<128x128xf32>
    %545 = arith.addf %541, %544 : vector<128x128xf32>
    %c15 = arith.constant 15 : index
    %c0_381 = arith.constant 0 : index
    %c0_382 = arith.constant 0 : index
    %546 = vector.load %arg2[%c15, %c0_381, %c0_382] : memref<18x128x128xi8, #tpu.memory_space<vmem>>, vector<1x128x128xi8>
    %547 = vector.shape_cast %546 : vector<1x128x128xi8> to vector<128x128xi8>
    %548 = arith.sitofp %547 : vector<128x128xi8> to vector<128x128xf32>
    %549 = vector.shape_cast %548 : vector<128x128xf32> to vector<8x16x128xf32>
    %c15_383 = arith.constant 15 : index
    %c0_384 = arith.constant 0 : index
    %c0_385 = arith.constant 0 : index
    %c0_386 = arith.constant 0 : index
    %550 = vector.load %arg3[%c15_383, %c0_384, %c0_385, %c0_386] : memref<18x8x1x128xf32, #tpu.memory_space<vmem>>, vector<1x8x1x128xf32>
    %551 = vector.shape_cast %550 : vector<1x8x1x128xf32> to vector<8x1x128xf32>
    %552 = vector.broadcast %551 : vector<8x1x128xf32> to vector<8x16x128xf32>
    %553 = arith.mulf %549, %552 : vector<8x16x128xf32>
    %c15_387 = arith.constant 15 : index
    %c0_388 = arith.constant 0 : index
    %c0_389 = arith.constant 0 : index
    %c0_390 = arith.constant 0 : index
    %554 = vector.load %arg4[%c15_387, %c0_388, %c0_389, %c0_390] : memref<18x8x1x128xf32, #tpu.memory_space<vmem>>, vector<1x8x1x128xf32>
    %555 = vector.shape_cast %554 : vector<1x8x1x128xf32> to vector<8x1x128xf32>
    %556 = vector.broadcast %555 : vector<8x1x128xf32> to vector<8x16x128xf32>
    %557 = arith.addf %553, %556 : vector<8x16x128xf32>
    %558 = vector.shape_cast %557 : vector<8x16x128xf32> to vector<128x128xf32>
    %c15_391 = arith.constant 15 : index
    %c0_392 = arith.constant 0 : index
    %c0_393 = arith.constant 0 : index
    %559 = vector.load %arg6[%c15_391, %c0_392, %c0_393] : memref<18x128x32xbf16, #tpu.memory_space<vmem>>, vector<1x128x32xbf16>
    %560 = vector.shape_cast %559 : vector<1x128x32xbf16> to vector<128x32xbf16>
    %c15_394 = arith.constant 15 : index
    %c0_395 = arith.constant 0 : index
    %c0_396 = arith.constant 0 : index
    %561 = vector.load %arg7[%c15_394, %c0_395, %c0_396] : memref<18x32x128xbf16, #tpu.memory_space<vmem>>, vector<1x32x128xbf16>
    %562 = vector.shape_cast %561 : vector<1x32x128xbf16> to vector<32x128xbf16>
    %cst_397 = arith.constant dense<0.000000e+00> : vector<128x128xf32>
    %563 = tpu.matmul %560, %562, %cst_397 {dimension_numbers = #tpu.dot_dimension_numbers<[1], [0], [0], [1], [0, 0, 1, 1], [], []>} : vector<128x32xbf16>, vector<32x128xbf16>, vector<128x128xf32> -> vector<128x128xf32>
    %564 = arith.addf %558, %563 : vector<128x128xf32>
    %565 = arith.truncf %564 : vector<128x128xf32> to vector<128x128xbf16>
    %566 = arith.truncf %545 : vector<128x128xf32> to vector<128x128xbf16>
    %cst_398 = arith.constant dense<0.000000e+00> : vector<128x128xf32>
    %567 = tpu.matmul %566, %565, %cst_398 {dimension_numbers = #tpu.dot_dimension_numbers<[1], [0], [0], [1], [0, 0, 1, 1], [], []>} : vector<128x128xbf16>, vector<128x128xbf16>, vector<128x128xf32> -> vector<128x128xf32>
    %c15_399 = arith.constant 15 : index
    %c0_400 = arith.constant 0 : index
    %c0_401 = arith.constant 0 : index
    %568 = vector.load %arg5[%c15_399, %c0_400, %c0_401] : memref<18x1x128xf32, #tpu.memory_space<vmem>>, vector<1x1x128xf32>
    %569 = vector.shape_cast %568 : vector<1x1x128xf32> to vector<1x128xf32>
    %570 = vector.broadcast %569 : vector<1x128xf32> to vector<128x128xf32>
    %571 = arith.addf %567, %570 : vector<128x128xf32>
    %cst_402 = arith.constant 0.000000e+00 : f32
    %572 = vector.broadcast %cst_402 : f32 to vector<128x128xf32>
    %573 = arith.maximumf %571, %572 : vector<128x128xf32>
    %c16 = arith.constant 16 : index
    %c0_403 = arith.constant 0 : index
    %c0_404 = arith.constant 0 : index
    %574 = vector.load %arg2[%c16, %c0_403, %c0_404] : memref<18x128x128xi8, #tpu.memory_space<vmem>>, vector<1x128x128xi8>
    %575 = vector.shape_cast %574 : vector<1x128x128xi8> to vector<128x128xi8>
    %576 = arith.sitofp %575 : vector<128x128xi8> to vector<128x128xf32>
    %577 = vector.shape_cast %576 : vector<128x128xf32> to vector<8x16x128xf32>
    %c16_405 = arith.constant 16 : index
    %c0_406 = arith.constant 0 : index
    %c0_407 = arith.constant 0 : index
    %c0_408 = arith.constant 0 : index
    %578 = vector.load %arg3[%c16_405, %c0_406, %c0_407, %c0_408] : memref<18x8x1x128xf32, #tpu.memory_space<vmem>>, vector<1x8x1x128xf32>
    %579 = vector.shape_cast %578 : vector<1x8x1x128xf32> to vector<8x1x128xf32>
    %580 = vector.broadcast %579 : vector<8x1x128xf32> to vector<8x16x128xf32>
    %581 = arith.mulf %577, %580 : vector<8x16x128xf32>
    %c16_409 = arith.constant 16 : index
    %c0_410 = arith.constant 0 : index
    %c0_411 = arith.constant 0 : index
    %c0_412 = arith.constant 0 : index
    %582 = vector.load %arg4[%c16_409, %c0_410, %c0_411, %c0_412] : memref<18x8x1x128xf32, #tpu.memory_space<vmem>>, vector<1x8x1x128xf32>
    %583 = vector.shape_cast %582 : vector<1x8x1x128xf32> to vector<8x1x128xf32>
    %584 = vector.broadcast %583 : vector<8x1x128xf32> to vector<8x16x128xf32>
    %585 = arith.addf %581, %584 : vector<8x16x128xf32>
    %586 = vector.shape_cast %585 : vector<8x16x128xf32> to vector<128x128xf32>
    %c16_413 = arith.constant 16 : index
    %c0_414 = arith.constant 0 : index
    %c0_415 = arith.constant 0 : index
    %587 = vector.load %arg6[%c16_413, %c0_414, %c0_415] : memref<18x128x32xbf16, #tpu.memory_space<vmem>>, vector<1x128x32xbf16>
    %588 = vector.shape_cast %587 : vector<1x128x32xbf16> to vector<128x32xbf16>
    %c16_416 = arith.constant 16 : index
    %c0_417 = arith.constant 0 : index
    %c0_418 = arith.constant 0 : index
    %589 = vector.load %arg7[%c16_416, %c0_417, %c0_418] : memref<18x32x128xbf16, #tpu.memory_space<vmem>>, vector<1x32x128xbf16>
    %590 = vector.shape_cast %589 : vector<1x32x128xbf16> to vector<32x128xbf16>
    %cst_419 = arith.constant dense<0.000000e+00> : vector<128x128xf32>
    %591 = tpu.matmul %588, %590, %cst_419 {dimension_numbers = #tpu.dot_dimension_numbers<[1], [0], [0], [1], [0, 0, 1, 1], [], []>} : vector<128x32xbf16>, vector<32x128xbf16>, vector<128x128xf32> -> vector<128x128xf32>
    %592 = arith.addf %586, %591 : vector<128x128xf32>
    %593 = arith.truncf %592 : vector<128x128xf32> to vector<128x128xbf16>
    %594 = arith.truncf %573 : vector<128x128xf32> to vector<128x128xbf16>
    %cst_420 = arith.constant dense<0.000000e+00> : vector<128x128xf32>
    %595 = tpu.matmul %594, %593, %cst_420 {dimension_numbers = #tpu.dot_dimension_numbers<[1], [0], [0], [1], [0, 0, 1, 1], [], []>} : vector<128x128xbf16>, vector<128x128xbf16>, vector<128x128xf32> -> vector<128x128xf32>
    %c16_421 = arith.constant 16 : index
    %c0_422 = arith.constant 0 : index
    %c0_423 = arith.constant 0 : index
    %596 = vector.load %arg5[%c16_421, %c0_422, %c0_423] : memref<18x1x128xf32, #tpu.memory_space<vmem>>, vector<1x1x128xf32>
    %597 = vector.shape_cast %596 : vector<1x1x128xf32> to vector<1x128xf32>
    %598 = vector.broadcast %597 : vector<1x128xf32> to vector<128x128xf32>
    %599 = arith.addf %595, %598 : vector<128x128xf32>
    %cst_424 = arith.constant 0.000000e+00 : f32
    %600 = vector.broadcast %cst_424 : f32 to vector<128x128xf32>
    %601 = arith.maximumf %599, %600 : vector<128x128xf32>
    %c17 = arith.constant 17 : index
    %c0_425 = arith.constant 0 : index
    %c0_426 = arith.constant 0 : index
    %602 = vector.load %arg2[%c17, %c0_425, %c0_426] : memref<18x128x128xi8, #tpu.memory_space<vmem>>, vector<1x128x128xi8>
    %603 = vector.shape_cast %602 : vector<1x128x128xi8> to vector<128x128xi8>
    %604 = arith.sitofp %603 : vector<128x128xi8> to vector<128x128xf32>
    %605 = vector.shape_cast %604 : vector<128x128xf32> to vector<8x16x128xf32>
    %c17_427 = arith.constant 17 : index
    %c0_428 = arith.constant 0 : index
    %c0_429 = arith.constant 0 : index
    %c0_430 = arith.constant 0 : index
    %606 = vector.load %arg3[%c17_427, %c0_428, %c0_429, %c0_430] : memref<18x8x1x128xf32, #tpu.memory_space<vmem>>, vector<1x8x1x128xf32>
    %607 = vector.shape_cast %606 : vector<1x8x1x128xf32> to vector<8x1x128xf32>
    %608 = vector.broadcast %607 : vector<8x1x128xf32> to vector<8x16x128xf32>
    %609 = arith.mulf %605, %608 : vector<8x16x128xf32>
    %c17_431 = arith.constant 17 : index
    %c0_432 = arith.constant 0 : index
    %c0_433 = arith.constant 0 : index
    %c0_434 = arith.constant 0 : index
    %610 = vector.load %arg4[%c17_431, %c0_432, %c0_433, %c0_434] : memref<18x8x1x128xf32, #tpu.memory_space<vmem>>, vector<1x8x1x128xf32>
    %611 = vector.shape_cast %610 : vector<1x8x1x128xf32> to vector<8x1x128xf32>
    %612 = vector.broadcast %611 : vector<8x1x128xf32> to vector<8x16x128xf32>
    %613 = arith.addf %609, %612 : vector<8x16x128xf32>
    %614 = vector.shape_cast %613 : vector<8x16x128xf32> to vector<128x128xf32>
    %c17_435 = arith.constant 17 : index
    %c0_436 = arith.constant 0 : index
    %c0_437 = arith.constant 0 : index
    %615 = vector.load %arg6[%c17_435, %c0_436, %c0_437] : memref<18x128x32xbf16, #tpu.memory_space<vmem>>, vector<1x128x32xbf16>
    %616 = vector.shape_cast %615 : vector<1x128x32xbf16> to vector<128x32xbf16>
    %c17_438 = arith.constant 17 : index
    %c0_439 = arith.constant 0 : index
    %c0_440 = arith.constant 0 : index
    %617 = vector.load %arg7[%c17_438, %c0_439, %c0_440] : memref<18x32x128xbf16, #tpu.memory_space<vmem>>, vector<1x32x128xbf16>
    %618 = vector.shape_cast %617 : vector<1x32x128xbf16> to vector<32x128xbf16>
    %cst_441 = arith.constant dense<0.000000e+00> : vector<128x128xf32>
    %619 = tpu.matmul %616, %618, %cst_441 {dimension_numbers = #tpu.dot_dimension_numbers<[1], [0], [0], [1], [0, 0, 1, 1], [], []>} : vector<128x32xbf16>, vector<32x128xbf16>, vector<128x128xf32> -> vector<128x128xf32>
    %620 = arith.addf %614, %619 : vector<128x128xf32>
    %621 = arith.truncf %620 : vector<128x128xf32> to vector<128x128xbf16>
    %622 = arith.truncf %601 : vector<128x128xf32> to vector<128x128xbf16>
    %cst_442 = arith.constant dense<0.000000e+00> : vector<128x128xf32>
    %623 = tpu.matmul %622, %621, %cst_442 {dimension_numbers = #tpu.dot_dimension_numbers<[1], [0], [0], [1], [0, 0, 1, 1], [], []>} : vector<128x128xbf16>, vector<128x128xbf16>, vector<128x128xf32> -> vector<128x128xf32>
    %c17_443 = arith.constant 17 : index
    %c0_444 = arith.constant 0 : index
    %c0_445 = arith.constant 0 : index
    %624 = vector.load %arg5[%c17_443, %c0_444, %c0_445] : memref<18x1x128xf32, #tpu.memory_space<vmem>>, vector<1x1x128xf32>
    %625 = vector.shape_cast %624 : vector<1x1x128xf32> to vector<1x128xf32>
    %626 = vector.broadcast %625 : vector<1x128xf32> to vector<128x128xf32>
    %627 = arith.addf %623, %626 : vector<128x128xf32>
    %628 = arith.addf %627, %545 : vector<128x128xf32>
    %c0_446 = arith.constant 0 : index
    %c0_447 = arith.constant 0 : index
    %629 = vector.load %arg10[%c0_446, %c0_447] : memref<128x128xf32, #tpu.memory_space<vmem>>, vector<128x128xf32>
    tpu.vector_store %arg10[%c0_446, %c0_447], %628 {strides = array<i32>} : memref<128x128xf32, #tpu.memory_space<vmem>>, vector<128x128xf32>,
    return
  }
  func.func @transform_0(%arg0: i32) -> (i32, i32) {
    %c0_i32 = arith.constant 0 : i32
    %c0_i32_0 = arith.constant 0 : i32
    return %arg0, %c0_i32 : i32, i32
  }
  func.func @transform_1(%arg0: i32) -> (i32, i32, i32) {
    %c0_i32 = arith.constant 0 : i32
    %c0_i32_0 = arith.constant 0 : i32
    %c0_i32_1 = arith.constant 0 : i32
    %c0_i32_2 = arith.constant 0 : i32
    return %c0_i32, %c0_i32_0, %c0_i32_1 : i32, i32, i32
  }
  func.func @transform_2(%arg0: i32) -> (i32, i32, i32, i32) {
    %c0_i32 = arith.constant 0 : i32
    %c0_i32_0 = arith.constant 0 : i32
    %c0_i32_1 = arith.constant 0 : i32
    %c0_i32_2 = arith.constant 0 : i32
    %c0_i32_3 = arith.constant 0 : i32
    return %c0_i32, %c0_i32_0, %c0_i32_1, %c0_i32_2 : i32, i32, i32, i32
  }
  func.func @transform_3(%arg0: i32) -> (i32, i32, i32, i32) {
    %c0_i32 = arith.constant 0 : i32
    %c0_i32_0 = arith.constant 0 : i32
    %c0_i32_1 = arith.constant 0 : i32
    %c0_i32_2 = arith.constant 0 : i32
    %c0_i32_3 = arith.constant 0 : i32
    return %c0_i32, %c0_i32_0, %c0_i32_1, %c0_i32_2 : i32, i32, i32, i32
  }
  func.func @transform_4(%arg0: i32) -> (i32, i32, i32) {
    %c0_i32 = arith.constant 0 : i32
    %c0_i32_0 = arith.constant 0 : i32
    %c0_i32_1 = arith.constant 0 : i32
    %c0_i32_2 = arith.constant 0 : i32
    return %c0_i32, %c0_i32_0, %c0_i32_1 : i32, i32, i32
  }
  func.func @transform_5(%arg0: i32) -> (i32, i32, i32) {
    %c0_i32 = arith.constant 0 : i32
    %c0_i32_0 = arith.constant 0 : i32
    %c0_i32_1 = arith.constant 0 : i32
    %c0_i32_2 = arith.constant 0 : i32
    return %c0_i32, %c0_i32_0, %c0_i32_1 : i32, i32, i32
  }
  func.func @transform_6(%arg0: i32) -> (i32, i32, i32) {
    %c0_i32 = arith.constant 0 : i32
    %c0_i32_0 = arith.constant 0 : i32
    %c0_i32_1 = arith.constant 0 : i32
    %c0_i32_2 = arith.constant 0 : i32
    return %c0_i32, %c0_i32_0, %c0_i32_1 : i32, i32, i32
  }
  func.func @transform_7(%arg0: i32) -> (i32, i32, i32) {
    %c0_i32 = arith.constant 0 : i32
    %c0_i32_0 = arith.constant 0 : i32
    %c0_i32_1 = arith.constant 0 : i32
    %c0_i32_2 = arith.constant 0 : i32
    return %c0_i32, %c0_i32_0, %c0_i32_1 : i32, i32, i32
  }
  func.func @transform_8(%arg0: i32) -> (i32, i32, i32) {
    %c0_i32 = arith.constant 0 : i32
    %c0_i32_0 = arith.constant 0 : i32
    %c0_i32_1 = arith.constant 0 : i32
    %c0_i32_2 = arith.constant 0 : i32
    return %c0_i32, %c0_i32_0, %c0_i32_1 : i32, i32, i32
  }
  func.func @transform_9(%arg0: i32) -> (i32, i32) {
    %c0_i32 = arith.constant 0 : i32
    %c0_i32_0 = arith.constant 0 : i32
    return %arg0, %c0_i32 : i32, i32
  }
}

</mosaic_0001>

<bundles_post_ra>
// kernel: tpu_custom_call.1
= control target key start
LH: loop header
LB: loop body
LE: loop exit
PB: predicated region body
PF: predicated region fallthrough
CT: control target
= control target key end

     0   :  { %vm254_vm0 = vcmask 261120   ;;  %s16408_s0 = inlined_call_operand.vmem [shape: f32[128,128], index: 0, kind: input, shape index: {}]   ;;  %s16409_s1 = inlined_call_operand.vmem [shape: s8[18,128,128], index: 1, kind: input, shape index: {}]   ;;  %s16410_s2 = inlined_call_operand.vmem [shape: f32[18,8,1,128], index: 2, kind: input, shape index: {}]   ;;  %s16411_s3 = inlined_call_operand.vmem [shape: f32[18,8,1,128], index: 3, kind: input, shape index: {}]   ;;  %s16412_s4 = inlined_call_operand.vmem [shape: f32[18,1,128], index: 4, kind: input, shape index: {}]   ;;  %s16413_s5 = inlined_call_operand.vmem [shape: bf16[18,128,32], index: 5, kind: input, shape index: {}]   ;;  %s16414_s6 = inlined_call_operand.vmem [shape: bf16[18,32,128], index: 6, kind: input, shape index: {}]   ;;  %s16415_s7 = inlined_call_operand.vmem [shape: f32[5,1,128], index: 7, kind: input, shape index: {}]   ;;  %s16416_s8 = inlined_call_operand.vmem [shape: f32[5,1,128], index: 8, kind: input, shape index: {}]   ;;  %s16417_s9 = inlined_call_operand.hbm [shape: f32[128,128], index: 9, kind: output, shape index: {}]  }
   0x1   :  { %v10537_v0 = vld [vmem:[%s16414_s6 + $0x8] sm:$0xff]  ;;  %v10547_v1 = vld [vmem:[%s16414_s6 + $0x18] sm:$0xff]  ;;  %v10536_v2 = vld [vmem:[%s16414_s6] sm:$0xff] }
   0x2   :  { %285 = vmatpush.bf16.msra.mxu0 %v10537_v0  ;;  %668 = vmatpush.bf16.msra.mxu2 %v10547_v1  ;;  %v10546_v3 = vld [vmem:[%s16414_s6 + $0x10] sm:$0xff]  ;;  %v10528_v4 = vld [vmem:[%s16413_s5] sm:$0xff]  ;;  %v10529_v6 = vld [vmem:[%s16413_s5 + $0x8] sm:$0xff] }
   0x3   :  { %v10538_v5 = vld [vmem:[%s16413_s5 + $0x40] sm:$0xff]  ;;  %v10539_v7 = vld [vmem:[%s16413_s5 + $0x48] sm:$0xff]  ;;  %v10530_v8 = vld [vmem:[%s16413_s5 + $0x10] sm:$0xff] }
   0x4   :  { %v10540_v9 = vld [vmem:[%s16413_s5 + $0x50] sm:$0xff]  ;;  %v10531_v10 = vld [vmem:[%s16413_s5 + $0x18] sm:$0xff]  ;;  %v10532_v12 = vld [vmem:[%s16413_s5 + $0x20] sm:$0xff] }
   0x5   :  { %v10541_v11 = vld [vmem:[%s16413_s5 + $0x58] sm:$0xff]  ;;  %v10542_v13 = vld [vmem:[%s16413_s5 + $0x60] sm:$0xff]  ;;  %v10533_v14 = vld [vmem:[%s16413_s5 + $0x28] sm:$0xff] }
   0x6   :  { %286 = vmatpush.bf16.msra.mxu0 %v10536_v2  ;;  %669 = vmatpush.bf16.msra.mxu2 %v10546_v3  ;;  %v10543_v15 = vld [vmem:[%s16413_s5 + $0x68] sm:$0xff]  ;;  %v10534_v17 = vld [vmem:[%s16413_s5 + $0x30] sm:$0xff]  ;;  %v10556_v19 = vld [vmem:[%s16414_s6 + $0x20] sm:$0xff] }
   0x7   :  { %v10557_v16 = vld [vmem:[%s16414_s6 + $0x28] sm:$0xff]  ;;  %v10544_v18 = vld [vmem:[%s16413_s5 + $0x70] sm:$0xff] }
   0x9   :  { %8999 = vmatmul.msk.bf16.vlgmr.msra.gmra.mxu0 %vm254_vm0, %v10528_v4  ;;  %9087 = vmatmul.msk.bf16.vlgmr.msra.gmra.mxu2 %vm254_vm0, %v10538_v5 }
   0xa   :  { %1052 = vmatpush.bf16.msrb.mxu0 %v10557_v16 }
   0xe   :  { %1053 = vmatpush.bf16.msrb.mxu0 %v10556_v19 }
  0x19   :  { %9000 = vmatmul.msk.bf16.gmra.mxu0 %vm254_vm0, %v10529_v6  ;;  %9088 = vmatmul.msk.bf16.gmra.mxu2 %vm254_vm0, %v10539_v7 }
  0x29   :  { %9001 = vmatmul.msk.bf16.gmra.mxu0 %vm254_vm0, %v10530_v8  ;;  %9089 = vmatmul.msk.bf16.gmra.mxu2 %vm254_vm0, %v10540_v9 }
  0x39   :  { %9002 = vmatmul.msk.bf16.gmra.mxu0 %vm254_vm0, %v10531_v10  ;;  %9090 = vmatmul.msk.bf16.gmra.mxu2 %vm254_vm0, %v10541_v11 }
  0x49   :  { %9003 = vmatmul.msk.bf16.gmra.mxu0 %vm254_vm0, %v10532_v12  ;;  %9091 = vmatmul.msk.bf16.gmra.mxu2 %vm254_vm0, %v10542_v13 }
  0x59   :  { %9004 = vmatmul.msk.bf16.gmra.mxu0 %vm254_vm0, %v10533_v14  ;;  %9092 = vmatmul.msk.bf16.gmra.mxu2 %vm254_vm0, %v10543_v15 }
  0x69   :  { %9005 = vmatmul.msk.bf16.gmra.mxu0 %vm254_vm0, %v10534_v17  ;;  %9093 = vmatmul.msk.bf16.gmra.mxu2 %vm254_vm0, %v10544_v18 }
  0x6a   :  { %14 = vsyncpa [#allocation3], 0  ;;  %v10535_v20 = vld [vmem:[%s16413_s5 + $0x38] sm:$0xff]  ;;  %v50_v22 = vld [vmem:[%s16409_s1] sm:$0xff] }
  0x6b   :  { %v10545_v21 = vld [vmem:[%s16413_s5 + $0x78] sm:$0xff]  ;;  %v54_v23 = vunpack.c.0.s8 %v50_v22  ;;  %v55_v24 = vunpack.c.1.s8 %v50_v22  ;;  %v10711_v26 = vld [vmem:[%s16410_s2] ss:$0 sm:$0xff]  ;;  %v56_v39 = vunpack.c.2.s8 %v50_v22  ;;  %v57_v40 = vunpack.c.3.s8 %v50_v22  ;;  %v10715_v43 = vld [vmem:[%s16410_s2 + $0x1] ss:$0 sm:$0xff] }
  0x6c   :  { %v10548_v28 = vld [vmem:[%s16413_s5 + $0x80] sm:$0xff]  ;;  %v10549_v46 = vld [vmem:[%s16413_s5 + $0x88] sm:$0xff]  ;;  %v10550_v1 = vld [vmem:[%s16413_s5 + $0x90] sm:$0xff] }
  0x6d   :  { %v70_v25 = vcvt.s32.f32 %v54_v23  ;;  %v71_v27 = vcvt.s32.f32 %v55_v24  ;;  %v10712_v31 = vld [vmem:[%s16411_s3] ss:$0 sm:$0xff]  ;;  %v72_v42 = vcvt.s32.f32 %v56_v39  ;;  %v73_v44 = vcvt.s32.f32 %v57_v40  ;;  %v10716_v49 = vld [vmem:[%s16411_s3 + $0x1] ss:$0 sm:$0xff]  ;;  %v51_v54 = vld [vmem:[%s16409_s1 + $0x8] sm:$0xff] }
  0x6e   :  { %v58_v58 = vunpack.c.0.s8 %v51_v54  ;;  %v59_v59 = vunpack.c.1.s8 %v51_v54  ;;  %v10719_v62 = vld [vmem:[%s16410_s2 + $0x2] ss:$0 sm:$0xff]  ;;  %v60_v12 = vunpack.c.2.s8 %v51_v54  ;;  %v61_v13 = vunpack.c.3.s8 %v51_v54  ;;  %v10723_v16 = vld [vmem:[%s16410_s2 + $0x3] ss:$0 sm:$0xff]  ;;  %v10551_v19 = vld [vmem:[%s16413_s5 + $0x98] sm:$0xff] }
  0x6f   :  { %v118_v30 = vmul.f32 %v10711_v26, %v70_v25  ;;  %v119_v32 = vmul.f32 %v10711_v26, %v71_v27  ;;  %v120_v48 = vmul.f32 %v10715_v43, %v72_v42  ;;  %v121_v50 = vmul.f32 %v10715_v43, %v73_v44  ;;  %v10720_v4 = vld [vmem:[%s16411_s3 + $0x2] ss:$0 sm:$0xff]  ;;  %v10724_v22 = vld [vmem:[%s16411_s3 + $0x3] ss:$0 sm:$0xff]  ;;  %v10553_v40 = vld [vmem:[%s16413_s5 + $0xa8] sm:$0xff] }
  0x70   :  { %v74_v61 = vcvt.s32.f32 %v58_v58  ;;  %v75_v63 = vcvt.s32.f32 %v59_v59  ;;  %v76_v15 = vcvt.s32.f32 %v60_v12  ;;  %v77_v17 = vcvt.s32.f32 %v61_v13  ;;  %v11493_v59 = vld [vmem:[%s16409_s1 + $0x28] sm:$0xff]  ;;  %v9009_v12 = vld [vmem:[%s16409_s1 + $0x30] sm:$0xff] }
  0x71   :  { %v166_v33 = vadd.f32 %v10712_v31, %v118_v30  ;;  %v167_v34 = vadd.f32 %v10712_v31, %v119_v32  ;;  %v168_v51 = vadd.f32 %v10716_v49, %v120_v48  ;;  %v169_v52 = vadd.f32 %v10716_v49, %v121_v50  ;;  %v10552_v32 = vld [vmem:[%s16413_s5 + $0xa0] sm:$0xff]  ;;  %v53_v50 = vld [vmem:[%s16409_s1 + $0x18] sm:$0xff] }
  0x72   :  { %v122_v3 = vmul.f32 %v10719_v62, %v74_v61  ;;  %v123_v5 = vmul.f32 %v10719_v62, %v75_v63  ;;  %v125_v23 = vmul.f32 %v10723_v16, %v77_v17  ;;  %v69_v54 = vunpack.c.3.s8 %v53_v50  ;;  %v52_v61 = vld [vmem:[%s16409_s1 + $0x10] sm:$0xff] }
  0x73   :  { %v67_v58 = vunpack.c.1.s8 %v53_v50  ;;  %v66_v62 = vunpack.c.0.s8 %v53_v50  ;;  %v62_v41 = vunpack.c.0.s8 %v52_v61 }
  0x74   :  { %v170_v6 = vadd.f32 %v10720_v4, %v122_v3  ;;  %v171_v7 = vadd.f32 %v10720_v4, %v123_v5  ;;  %v173_v25 = vadd.f32 %v10724_v22, %v125_v23  ;;  %v85_v3 = vcvt.s32.f32 %v69_v54 }
  0x75   :  { %v65_v5 = vunpack.c.3.s8 %v52_v61  ;;  %v83_v13 = vcvt.s32.f32 %v67_v58 }
  0x77   :  { %v81_v54 = vcvt.s32.f32 %v65_v5  ;;  %v10736_v5 = vld [vmem:[%s16411_s3 + $0x6] ss:$0 sm:$0xff] }
  0x79   :  { %9006 = vmatmul.msk.bf16.gmra.mxu0 %vm254_vm0, %v10535_v20  ;;  %9094 = vmatmul.msk.bf16.gmra.mxu2 %vm254_vm0, %v10545_v21  ;;  %v124_v21 = vmul.f32 %v10723_v16, %v76_v15  ;;  %v10555_v16 = vld [vmem:[%s16413_s5 + $0xb8] sm:$0xff] }
  0x7b   :  { %v172_v24 = vadd.f32 %v10724_v22, %v124_v21  ;;  %v63_v21 = vunpack.c.1.s8 %v52_v61  ;;  %v64_v22 = vunpack.c.2.s8 %v52_v61 }
  0x7d   :  { %v79_v30 = vcvt.s32.f32 %v63_v21  ;;  %v80_v4 = vcvt.s32.f32 %v64_v22 }
  0x86   :  { %v288_v29 = vpop.f32.mrf.mxu0 }
  0x87   :  { %v11379_v37 = vadd.f32 %v288_v29, %v166_v33 }
  0x89   :  { %9176 = vmatmul.msk.bf16.vlgmr.msrb.gmra.mxu0 %vm254_vm0, %v10548_v28  ;;  %16476 = vst [vmem:[#allocation6_spill] sm:$0xff] %v11379_v37 }
  0x8c   :  { %v11377_v35 = vpop.f32.mrf.mxu2 }
  0x8d   :  { %16475 = vst [vmem:[#allocation5_spill] sm:$0xff] %v11377_v35 }
  0x8e   :  { %v290_v36 = vpop.f32.mrf.mxu0 }
  0x8f   :  { %v11381_v38 = vadd.f32 %v290_v36, %v167_v34 }
  0x91   :  { %16477 = vst [vmem:[#allocation7_spill] sm:$0xff] %v11381_v38 }
  0x94   :  { %v11388_v45 = vpop.f32.mrf.mxu2 }
  0x95   :  { %16478 = vst [vmem:[#allocation8_spill] sm:$0xff] %v11388_v45  ;;  %v10732_v45 = vld [vmem:[%s16411_s3 + $0x5] ss:$0 sm:$0xff] }
  0x96   :  { %v293_v47 = vpop.f32.mrf.mxu0 }
  0x97   :  { %v11402_v56 = vadd.f32 %v293_v47, %v168_v51  ;;  %v10554_v47 = vld [vmem:[%s16413_s5 + $0xb0] sm:$0xff] }
  0x99   :  { %9177 = vmatmul.msk.bf16.gmra.mxu0 %vm254_vm0, %v10549_v46  ;;  %16479 = vst [vmem:[#allocation9_spill] sm:$0xff] %v11402_v56 }
  0x9c   :  { %v11397_v53 = vpop.f32.mrf.mxu2 }
  0x9e   :  { %v295_v55 = vpop.f32.mrf.mxu0 }
  0x9f   :  { %v11404_v57 = vadd.f32 %v295_v55, %v169_v52  ;;  %v68_v52 = vunpack.c.2.s8 %v53_v50  ;;  %v9010_v55 = vld [vmem:[%s16409_s1 + $0x38] sm:$0xff] }
  0xa0   :  { %v447_v15 = vunpack.c.1.s8 %v9010_v55  ;;  %v449_v17 = vunpack.c.3.s8 %v9010_v55 }
  0xa1   :  { %v84_v63 = vcvt.s32.f32 %v68_v52  ;;  %v444_v52 = vunpack.c.2.s8 %v9009_v12 }
  0xa2   :  { %v463_v60 = vcvt.s32.f32 %v447_v15  ;;  %v465_v14 = vcvt.s32.f32 %v449_v17  ;;  %v10733_v17 = vld [vmem:[%s16410_s2 + $0xd] ss:$0 sm:$0xff] }
  0xa4   :  { %v11411_v0 = vpop.f32.mrf.mxu2 }
  0xa6   :  { %v298_v2 = vpop.f32.mrf.mxu0 }
  0xa7   :  { %v11422_v10 = vadd.f32 %v298_v2, %v170_v6  ;;  %v448_v2 = vunpack.c.2.s8 %v9010_v55  ;;  %v446_v6 = vunpack.c.0.s8 %v9010_v55  ;;  %v445_v55 = vunpack.c.3.s8 %v9009_v12 }
  0xa9   :  { %9178 = vmatmul.msk.bf16.gmra.mxu0 %vm254_vm0, %v10550_v1  ;;  %v10739_v1 = vld [vmem:[%s16410_s2 + $0x7] ss:$0 sm:$0xff]  ;;  %v462_v58 = vcvt.s32.f32 %v446_v6  ;;  %v461_v22 = vcvt.s32.f32 %v445_v55  ;;  %v10729_v55 = vld [vmem:[%s16410_s2 + $0xc] ss:$0 sm:$0xff] }
  0xaa   :  { %v133_v50 = vmul.f32 %v10739_v1, %v85_v3 }
  0xac   :  { %v11420_v8 = vpop.f32.mrf.mxu2 }
  0xae   :  { %v300_v9 = vpop.f32.mrf.mxu0 }
  0xaf   :  { %v11424_v11 = vadd.f32 %v300_v9, %v171_v7  ;;  %v443_v9 = vunpack.c.1.s8 %v9009_v12 }
  0xb1   :  { %v459_v38 = vcvt.s32.f32 %v443_v9  ;;  %v510_v9 = vmul.f32 %v10733_v17, %v461_v22 }
  0xb4   :  { %v11431_v18 = vpop.f32.mrf.mxu2 }
  0xb6   :  { %v303_v20 = vpop.f32.mrf.mxu0 }
  0xb7   :  { %v11442_v28 = vadd.f32 %v303_v20, %v172_v24  ;;  %v82_v24 = vcvt.s32.f32 %v66_v62  ;;  %v10737_v62 = vld [vmem:[%s16410_s2 + $0xe] ss:$0 sm:$0xff] }
  0xb9   :  { %9179 = vmatmul.msk.bf16.gmra.mxu0 %vm254_vm0, %v10551_v19 }
  0xbc   :  { %v11440_v26 = vpop.f32.mrf.mxu2 }
  0xbe   :  { %v305_v27 = vpop.f32.mrf.mxu0 }
  0xbf   :  { %v11444_v29 = vadd.f32 %v305_v27, %v173_v25  ;;  %v10735_v25 = vld [vmem:[%s16410_s2 + $0x6] ss:$0 sm:$0xff]  ;;  %v132_v27 = vmul.f32 %v10739_v1, %v84_v63  ;;  %v10731_v1 = vld [vmem:[%s16410_s2 + $0x5] ss:$0 sm:$0xff] }
  0xc0   :  { %v131_v63 = vmul.f32 %v10735_v25, %v83_v13  ;;  %v130_v3 = vmul.f32 %v10735_v25, %v82_v24  ;;  %v10742_v13 = vld [vmem:[%s16411_s3 + $0xf] ss:$0 sm:$0xff]  ;;  %v129_v21 = vmul.f32 %v10731_v1, %v81_v54  ;;  %v511_v24 = vmul.f32 %v10737_v62, %v462_v58  ;;  %v10738_v25 = vld [vmem:[%s16411_s3 + $0xe] ss:$0 sm:$0xff] }
  0xc2   :  { %v179_v20 = vadd.f32 %v10736_v5, %v131_v63  ;;  %v178_v58 = vadd.f32 %v10736_v5, %v130_v3  ;;  %v16481_v5 = vunpack.c.3.s8 %v11493_v59 }
  0xc4   :  { %v11448_v31 = vpop.f32.mrf.mxu2 }
  0xc6   :  { %v11453_v33 = vpop.f32.mrf.mxu0 }
  0xc9   :  { %9180 = vmatmul.msk.bf16.gmra.mxu0 %vm254_vm0, %v10552_v32  ;;  %v10740_v32 = vld [vmem:[%s16411_s3 + $0x7] ss:$0 sm:$0xff] }
  0xca   :  { %v180_v6 = vadd.f32 %v10740_v32, %v132_v27  ;;  %v181_v15 = vadd.f32 %v10740_v32, %v133_v50  ;;  %v512_v32 = vmul.f32 %v10737_v62, %v463_v60  ;;  %v10728_v60 = vld [vmem:[%s16411_s3 + $0x4] ss:$0 sm:$0xff] }
  0xcc   :  { %v11456_v34 = vpop.f32.mrf.mxu2  ;;  %v561_v63 = vadd.f32 %v10738_v25, %v512_v32  ;;  %v16482_v32 = vunpack.c.0.s8 %v11493_v59 }
  0xce   :  { %v11458_v36 = vpop.f32.mrf.mxu0 }
  0xd4   :  { %v11460_v39 = vpop.f32.mrf.mxu2 }
  0xd6   :  { %v11465_v42 = vpop.f32.mrf.mxu0 }
  0xd9   :  { %9181 = vmatmul.msk.bf16.gmra.mxu0 %vm254_vm0, %v10553_v40  ;;  %v464_v40 = vcvt.s32.f32 %v448_v2  ;;  %v442_v2 = vunpack.c.0.s8 %v9009_v12  ;;  %v10727_v12 = vld [vmem:[%s16410_s2 + $0x4] ss:$0 sm:$0xff] }
  0xda   :  { %v127_v37 = vmul.f32 %v10727_v12, %v79_v30  ;;  %v10734_v30 = vld [vmem:[%s16411_s3 + $0xd] ss:$0 sm:$0xff] }
  0xdb   :  { %v458_v19 = vcvt.s32.f32 %v442_v2 }
  0xdc   :  { %v11468_v43 = vpop.f32.mrf.mxu2 }
  0xde   :  { %v11470_v44 = vpop.f32.mrf.mxu0 }
  0xe4   :  { %v11472_v46 = vpop.f32.mrf.mxu2 }
  0xe6   :  { %v11477_v48 = vpop.f32.mrf.mxu0 }
  0xe7   :  { %v340_v22 = vadd.f32 %v11477_v48, %v178_v58 }
  0xe9   :  { %9182 = vmatmul.msk.bf16.gmra.mxu0 %vm254_vm0, %v10554_v47  ;;  %v10741_v47 = vld [vmem:[%s16410_s2 + $0xf] ss:$0 sm:$0xff] }
  0xea   :  { %v513_v61 = vmul.f32 %v10741_v47, %v464_v40  ;;  %v78_v40 = vcvt.s32.f32 %v62_v41  ;;  %v514_v50 = vmul.f32 %v10741_v47, %v465_v14  ;;  %v560_v47 = vadd.f32 %v10738_v25, %v511_v24  ;;  %v9007_v25 = vld [vmem:[%s16409_s1 + $0x20] sm:$0xff] }
  0xec   :  { %v11480_v49 = vpop.f32.mrf.mxu2  ;;  %v562_v56 = vadd.f32 %v10742_v13, %v513_v61  ;;  %v126_v61 = vmul.f32 %v10727_v12, %v78_v40  ;;  %v559_v12 = vadd.f32 %v10734_v30, %v510_v9  ;;  %v437_v40 = vunpack.c.3.s8 %v9007_v25 }
  0xee   :  { %v11485_v51 = vpop.f32.mrf.mxu0 }
  0xef   :  { %v341_v62 = vadd.f32 %v11485_v51, %v179_v20  ;;  %v508_v20 = vmul.f32 %v10729_v55, %v459_v38  ;;  %v454_v38 = vcvt.s32.f32 %v16482_v32 }
  0xf4   :  { %v11502_v7 = vpop.f32.mrf.mxu2 }
  0xf5   :  { %v724_v48 = vadd.f32 %v11502_v7, %v561_v63  ;;  %v10721_v7 = vld [vmem:[%s16410_s2 + $0xa] ss:$0 sm:$0xff]  ;;  %v453_v63 = vcvt.s32.f32 %v437_v40  ;;  %v10714_v40 = vld [vmem:[%s16411_s3 + $0x8] ss:$0 sm:$0xff] }
  0xf6   :  { %v323_v23 = vpop.f32.mrf.mxu0 }
  0xf7   :  { %v342_v35 = vadd.f32 %v323_v23, %v180_v6  ;;  %v16480_v23 = vunpack.c.2.s8 %v11493_v59  ;;  %v457_v6 = vcvt.s32.f32 %v16481_v5 }
  0xf9   :  { %9183 = vmatmul.msk.bf16.gmra.mxu0 %vm254_vm0, %v10555_v16  ;;  %v460_v16 = vcvt.s32.f32 %v444_v52  ;;  %v128_v52 = vmul.f32 %v10731_v1, %v80_v4  ;;  %v177_v4 = vadd.f32 %v10732_v45, %v129_v21  ;;  %v563_v1 = vadd.f32 %v10742_v13, %v514_v50 }
  0xfa   :  { %v456_v3 = vcvt.s32.f32 %v16480_v23  ;;  %v507_v21 = vmul.f32 %v10729_v55, %v458_v19  ;;  %v350_v19 = vpack.c.bf16 %v341_v62, %v340_v22  ;;  %v16483_v50 = vunpack.c.1.s8 %v11493_v59  ;;  %v10718_v22 = vld [vmem:[%s16411_s3 + $0x9] ss:$0 sm:$0xff] }
  0xfb   :  { %v509_v14 = vmul.f32 %v10733_v17, %v460_v16  ;;  %v10725_v16 = vld [vmem:[%s16410_s2 + $0xb] ss:$0 sm:$0xff]  ;;  %v176_v17 = vadd.f32 %v10732_v45, %v128_v52  ;;  %v339_v24 = vadd.f32 %v11470_v44, %v177_v4  ;;  %v723_v45 = vadd.f32 %v11480_v49, %v560_v47 }
  0xfc   :  { %v706_v27 = vpop.f32.mrf.mxu2  ;;  %v455_v44 = vcvt.s32.f32 %v16483_v50  ;;  %v174_v55 = vadd.f32 %v10728_v60, %v126_v61  ;;  %v503_v23 = vmul.f32 %v10721_v7, %v454_v38 }
  0xfd   :  { %v725_v51 = vadd.f32 %v706_v27, %v562_v56  ;;  %v558_v13 = vadd.f32 %v10734_v30, %v509_v14  ;;  %v436_v27 = vunpack.c.2.s8 %v9007_v25  ;;  %v338_v58 = vadd.f32 %v11465_v42, %v176_v17 }
  0xfe   :  { %v325_v54 = vpop.f32.mrf.mxu0  ;;  %v506_v14 = vmul.f32 %v10725_v16, %v457_v6  ;;  %v733_v47 = vpack.c.bf16 %v724_v48, %v723_v45 }
  0xff   :  { %v343_v41 = vadd.f32 %v325_v54, %v181_v15  ;;  %v175_v15 = vadd.f32 %v10728_v60, %v127_v37  ;;  %v505_v54 = vmul.f32 %v10725_v16, %v456_v3  ;;  %v721_v9 = vadd.f32 %v11468_v43, %v558_v13 }
 0x100   :  { %v722_v60 = vadd.f32 %v11472_v46, %v559_v12  ;;  %v349_v42 = vpack.c.bf16 %v339_v24, %v338_v58  ;;  %v452_v62 = vcvt.s32.f32 %v436_v27  ;;  %v504_v43 = vmul.f32 %v10721_v7, %v455_v44  ;;  %v10713_v12 = vld [vmem:[%s16410_s2 + $0x8] ss:$0 sm:$0xff]  ;;  %v16486_v44 = vld [vmem:[#allocation9_spill] sm:$0xff]  ;;  %v16489_v7 = vld [vmem:[#allocation8_spill] sm:$0xff] }
 0x101   :  { %v351_v2 = vpack.c.bf16 %v343_v41, %v342_v35  ;;  %v10730_v35 = vld [vmem:[%s16411_s3 + $0xc] ss:$0 sm:$0xff]  ;;  %v10726_v41 = vld [vmem:[%s16411_s3 + $0xb] ss:$0 sm:$0xff]  ;;  %v337_v59 = vadd.f32 %v11458_v36, %v175_v15  ;;  %v10722_v36 = vld [vmem:[%s16411_s3 + $0xa] ss:$0 sm:$0xff]  ;;  %v434_v16 = vunpack.c.0.s8 %v9007_v25 }
 0x102   :  { %v556_v30 = vadd.f32 %v10730_v35, %v507_v21  ;;  %v557_v4 = vadd.f32 %v10730_v35, %v508_v20  ;;  %v554_v3 = vadd.f32 %v10726_v41, %v505_v54  ;;  %v555_v46 = vadd.f32 %v10726_v41, %v506_v14  ;;  %v16488_v58 = vld [vmem:[#allocation5_spill] sm:$0xff]  ;;  %v16490_v14 = vld [vmem:[#allocation7_spill] sm:$0xff] }
 0x103   :  { %364 = vmatpush.bf16.msra.mxu1 %v351_v2  ;;  %v336_v2 = vadd.f32 %v11453_v33, %v174_v55  ;;  %v732_v33 = vpack.c.bf16 %v722_v60, %v721_v9  ;;  %v435_v21 = vunpack.c.1.s8 %v9007_v25  ;;  %v552_v35 = vadd.f32 %v10722_v36, %v503_v23  ;;  %v34_v55 = vld [vmem:[%s16408_s0] sm:$0xff]  ;;  %v36_v9 = vld [vmem:[%s16408_s0 + $0x10] sm:$0xff]  ;;  %v37_v60 = vld [vmem:[%s16408_s0 + $0x18] sm:$0xff] }
 0x104   :  { %v708_v37 = vpop.f32.mrf.mxu2  ;;  %v719_v5 = vadd.f32 %v11456_v34, %v556_v30  ;;  %v720_v6 = vadd.f32 %v11460_v39, %v557_v4  ;;  %v553_v20 = vadd.f32 %v10722_v36, %v504_v43  ;;  %v717_v34 = vadd.f32 %v11440_v26, %v554_v3  ;;  %v40_v43 = vld [vmem:[%s16408_s0 + $0x30] sm:$0xff]  ;;  %v41_v3 = vld [vmem:[%s16408_s0 + $0x38] sm:$0xff] }
 0x105   :  { %v726_v56 = vadd.f32 %v708_v37, %v563_v1  ;;  %v10717_v1 = vld [vmem:[%s16410_s2 + $0x9] ss:$0 sm:$0xff]  ;;  %v348_v61 = vpack.c.bf16 %v337_v59, %v336_v2  ;;  %v718_v39 = vadd.f32 %v11448_v31, %v555_v46  ;;  %v450_v24 = vcvt.s32.f32 %v434_v16 }
 0x106   :  { %v11578_v52 = vpop.f32.mrf.mxu0  ;;  %v501_v17 = vmul.f32 %v10717_v1, %v452_v62  ;;  %v731_v13 = vpack.c.bf16 %v720_v6, %v719_v5  ;;  %v451_v37 = vcvt.s32.f32 %v435_v21  ;;  %v16484_v25 = vpack.c.bf16 %v11444_v29, %v11442_v28  ;;  %v39_v2 = vld [vmem:[%s16408_s0 + $0x28] sm:$0xff] }
 0x107   :  { %365 = vmatpush.bf16.msra.mxu1 %v350_v19  ;;  %v734_v49 = vpack.c.bf16 %v726_v56, %v725_v51  ;;  %v502_v51 = vmul.f32 %v10717_v1, %v453_v63  ;;  %v715_v56 = vadd.f32 %v11420_v8, %v552_v35  ;;  %v716_v26 = vadd.f32 %v11431_v18, %v553_v20  ;;  %v38_v63 = vld [vmem:[%s16408_s0 + $0x20] sm:$0xff]  ;;  %v45_v35 = vld [vmem:[%s16408_s0 + $0x58] sm:$0xff] }
 0x108   :  { %v550_v45 = vadd.f32 %v10718_v22, %v501_v17  ;;  %v730_v31 = vpack.c.bf16 %v718_v39, %v717_v34  ;;  %v499_v27 = vmul.f32 %v10713_v12, %v450_v24  ;;  %v500_v32 = vmul.f32 %v10713_v12, %v451_v37 }
 0x109   :  { %748 = vmatpush.bf16.msra.mxu3 %v734_v49  ;;  %v551_v48 = vadd.f32 %v10718_v22, %v502_v51  ;;  %v16485_v28 = vpack.c.bf16 %v11424_v11, %v11422_v10  ;;  %v729_v18 = vpack.c.bf16 %v716_v26, %v715_v56  ;;  %v16487_v54 = vpack.c.bf16 %v11404_v57, %v16486_v44  ;;  %v35_v10 = vld [vmem:[%s16408_s0 + $0x8] sm:$0xff]  ;;  %v9099_v22 = vld [vmem:[%s16409_s1 + $0x58] sm:$0xff]  ;;  %v44_v51 = vld [vmem:[%s16408_s0 + $0x50] sm:$0xff] }
 0x10a   :  { %v713_v29 = vadd.f32 %v11397_v53, %v550_v45  ;;  %v548_v38 = vadd.f32 %v10714_v40, %v499_v27  ;;  %v549_v50 = vadd.f32 %v10714_v40, %v500_v32  ;;  %v16491_v57 = vld [vmem:[#allocation6_spill] sm:$0xff]  ;;  %v354_v23 = vpack.c.bf16 %v39_v2, %v38_v63  ;;  %v10757_v45 = vld [vmem:[%s16410_s2 + $0x17] ss:$0 sm:$0xff]  ;;  %v46_v2 = vld [vmem:[%s16408_s0 + $0x60] sm:$0xff] }
 0x10b   :  { %366 = vmatpush.bf16.msra.mxu1 %v349_v42  ;;  %v714_v8 = vadd.f32 %v11411_v0, %v551_v48  ;;  %v352_v0 = vpack.c.bf16 %v35_v10, %v34_v55  ;;  %v16492_v30 = vpack.c.bf16 %v16490_v14, %v16491_v57  ;;  %v355_v5 = vpack.c.bf16 %v41_v3, %v40_v43  ;;  %v10756_v10 = vld [vmem:[%s16411_s3 + $0x16] ss:$0 sm:$0xff]  ;;  %v10751_v14 = vld [vmem:[%s16410_s2 + $0x14] ss:$0 sm:$0xff]  ;;  %v10567_v43 = vld [vmem:[%s16414_s6 + $0x38] sm:$0xff] }
 0x10c   :  { %v711_v49 = vadd.f32 %v16488_v58, %v548_v38  ;;  %v712_v41 = vadd.f32 %v16489_v7, %v549_v50  ;;  %v832_v20 = vunpack.c.2.s8 %v9099_v22  ;;  %v357_v39 = vpack.c.bf16 %v45_v35, %v44_v51  ;;  %v10753_v50 = vld [vmem:[%s16410_s2 + $0x15] ss:$0 sm:$0xff]  ;;  %v10749_v51 = vld [vmem:[%s16410_s2 + $0x13] ss:$0 sm:$0xff] }
 0x10d   :  { %749 = vmatpush.bf16.msra.mxu3 %v733_v47  ;;  %v728_v53 = vpack.c.bf16 %v714_v8, %v713_v29  ;;  %v353_v47 = vpack.c.bf16 %v37_v60, %v36_v9  ;;  %v830_v24 = vunpack.c.0.s8 %v9099_v22  ;;  %v831_v12 = vunpack.c.1.s8 %v9099_v22  ;;  %v9097_v29 = vld [vmem:[%s16409_s1 + $0x48] sm:$0xff] }
 0x10e   :  { %v11599_v15 = vpop.f32.mrf.mxu0  ;;  %v727_v59 = vpack.c.bf16 %v712_v41, %v711_v49  ;;  %v833_v37 = vunpack.c.3.s8 %v9099_v22  ;;  %v824_v58 = vunpack.c.2.s8 %v9097_v29  ;;  %v825_v49 = vunpack.c.3.s8 %v9097_v29  ;;  %v9096_v22 = vld [vmem:[%s16409_s1 + $0x40] sm:$0xff] }
 0x10f   :  { %367 = vmatpush.bf16.msra.mxu1 %v348_v61  ;;  %v42_v61 = vld [vmem:[%s16408_s0 + $0x40] sm:$0xff]  ;;  %v846_v26 = vcvt.s32.f32 %v830_v24  ;;  %v847_v27 = vcvt.s32.f32 %v831_v12  ;;  %v822_v3 = vunpack.c.0.s8 %v9097_v29 }
 0x110   :  { %v849_v40 = vcvt.s32.f32 %v833_v37 }
 0x111   :  { %750 = vmatpush.bf16.msra.mxu3 %v732_v33  ;;  %v43_v33 = vld [vmem:[%s16408_s0 + $0x48] sm:$0xff] }
 0x112   :  { %v356_v21 = vpack.c.bf16 %v43_v33, %v42_v61  ;;  %v840_v61 = vcvt.s32.f32 %v824_v58  ;;  %v841_v33 = vcvt.s32.f32 %v825_v49  ;;  %v10748_v49 = vld [vmem:[%s16411_s3 + $0x12] ss:$0 sm:$0xff] }
 0x113   :  { %368 = vmatpush.bf16.msra.mxu1 %v16484_v25  ;;  %v848_v25 = vcvt.s32.f32 %v832_v20  ;;  %v10752_v20 = vld [vmem:[%s16411_s3 + $0x14] ss:$0 sm:$0xff] }
 0x115   :  { %751 = vmatpush.bf16.msra.mxu3 %v731_v13  ;;  %v9098_v13 = vld [vmem:[%s16409_s1 + $0x50] sm:$0xff]  ;;  %v897_v32 = vmul.f32 %v10757_v45, %v848_v25 }
 0x116   :  { %v11614_v19 = vpop.f32.mrf.mxu0  ;;  %v828_v48 = vunpack.c.2.s8 %v9098_v13  ;;  %v829_v56 = vunpack.c.3.s8 %v9098_v13  ;;  %v826_v8 = vunpack.c.0.s8 %v9098_v13 }
 0x117   :  { %369 = vmatpush.bf16.msra.mxu1 %v16485_v28  ;;  %v10758_v28 = vld [vmem:[%s16411_s3 + $0x17] ss:$0 sm:$0xff] }
 0x118   :  { %v844_v38 = vcvt.s32.f32 %v828_v48  ;;  %v946_v7 = vadd.f32 %v10758_v28, %v897_v32  ;;  %v842_v41 = vcvt.s32.f32 %v826_v8  ;;  %v890_v8 = vmul.f32 %v10749_v51, %v841_v33  ;;  %v10744_v33 = vld [vmem:[%s16411_s3 + $0x10] ss:$0 sm:$0xff] }
 0x119   :  { %752 = vmatpush.bf16.msra.mxu3 %v730_v31  ;;  %v10755_v31 = vld [vmem:[%s16410_s2 + $0x16] ss:$0 sm:$0xff] }
 0x11a   :  { %v895_v55 = vmul.f32 %v10755_v31, %v846_v26  ;;  %v891_v35 = vmul.f32 %v10751_v14, %v842_v41  ;;  %v821_v26 = vunpack.c.3.s8 %v9096_v22 }
 0x11b   :  { %370 = vmatpush.bf16.msra.mxu1 %v16487_v54  ;;  %v845_v54 = vcvt.s32.f32 %v829_v56  ;;  %v820_v56 = vunpack.c.2.s8 %v9096_v22 }
 0x11c   :  { %v944_v60 = vadd.f32 %v10756_v10, %v895_v55  ;;  %v819_v55 = vunpack.c.1.s8 %v9096_v22 }
 0x11d   :  { %753 = vmatpush.bf16.msra.mxu3 %v729_v18  ;;  %v827_v18 = vunpack.c.1.s8 %v9098_v13  ;;  %v894_v9 = vmul.f32 %v10753_v50, %v845_v54  ;;  %v818_v54 = vunpack.c.0.s8 %v9096_v22 }
 0x11e   :  { %v11633_v11 = vpop.f32.mrf.mxu0 }
 0x11f   :  { %371 = vmatpush.bf16.msra.mxu1 %v16492_v30  ;;  %v843_v57 = vcvt.s32.f32 %v827_v18  ;;  %v893_v30 = vmul.f32 %v10753_v50, %v844_v38  ;;  %v940_v18 = vadd.f32 %v10752_v20, %v891_v35 }
 0x121   :  { %754 = vmatpush.bf16.msra.mxu3 %v728_v53  ;;  %v896_v53 = vmul.f32 %v10755_v31, %v847_v27  ;;  %v838_v31 = vcvt.s32.f32 %v822_v3  ;;  %v48_v3 = vld [vmem:[%s16408_s0 + $0x70] sm:$0xff] }
 0x122   :  { %372 = vmatmul.bf16.vlgmr.msra.gmra.mxu1 %v352_v0  ;;  %v898_v0 = vmul.f32 %v10757_v45, %v849_v40  ;;  %v10747_v40 = vld [vmem:[%s16410_s2 + $0x12] ss:$0 sm:$0xff] }
 0x123   :  { %1828 = vmatpush.bf16.msrb.mxu1 %v10567_v43  ;;  %v887_v58 = vmul.f32 %v10747_v40, %v838_v31 }
 0x124   :  { %v947_v63 = vadd.f32 %v10758_v28, %v898_v0  ;;  %v889_v28 = vmul.f32 %v10749_v51, %v840_v61  ;;  %v837_v0 = vcvt.s32.f32 %v821_v26 }
 0x125   :  { %755 = vmatpush.bf16.msra.mxu3 %v727_v59  ;;  %v10754_v59 = vld [vmem:[%s16411_s3 + $0x15] ss:$0 sm:$0xff] }
 0x126   :  { %v11640_v4 = vpop.f32.mrf.mxu0  ;;  %v942_v13 = vadd.f32 %v10754_v59, %v893_v30  ;;  %v943_v37 = vadd.f32 %v10754_v59, %v894_v9  ;;  %v834_v30 = vcvt.s32.f32 %v818_v54  ;;  %v10743_v59 = vld [vmem:[%s16410_s2 + $0x10] ss:$0 sm:$0xff]  ;;  %v835_v9 = vcvt.s32.f32 %v819_v55 }
 0x128   :  { %v883_v61 = vmul.f32 %v10743_v59, %v834_v30 }
 0x12e   :  { %v11648_v42 = vpop.f32.mrf.mxu0 }
 0x132   :  { %377 = vmatmul.bf16.gmra.mxu1 %v353_v47  ;;  %v945_v47 = vadd.f32 %v10756_v10, %v896_v53  ;;  %v836_v10 = vcvt.s32.f32 %v820_v56  ;;  %v10745_v53 = vld [vmem:[%s16410_s2 + $0x11] ss:$0 sm:$0xff] }
 0x136   :  { %v11650_v62 = vpop.f32.mrf.mxu0 }
 0x13e   :  { %v11658_v1 = vpop.f32.mrf.mxu0 }
 0x142   :  { %382 = vmatmul.bf16.gmra.mxu1 %v354_v23  ;;  %v47_v23 = vld [vmem:[%s16408_s0 + $0x68] sm:$0xff] }
 0x143   :  { %v358_v12 = vpack.c.bf16 %v47_v23, %v46_v2  ;;  %v936_v2 = vadd.f32 %v10748_v49, %v887_v58  ;;  %v10576_v58 = vld [vmem:[%s16414_s6 + $0x40] sm:$0xff] }
 0x146   :  { %v11660_v36 = vpop.f32.mrf.mxu0 }
 0x14e   :  { %v11668_v46 = vpop.f32.mrf.mxu0 }
 0x152   :  { %387 = vmatmul.bf16.gmra.mxu1 %v355_v5  ;;  %v823_v5 = vunpack.c.1.s8 %v9097_v29  ;;  %v10750_v29 = vld [vmem:[%s16411_s3 + $0x13] ss:$0 sm:$0xff] }
 0x153   :  { %v939_v41 = vadd.f32 %v10750_v29, %v890_v8 }
 0x154   :  { %v839_v32 = vcvt.s32.f32 %v823_v5  ;;  %v49_v5 = vld [vmem:[%s16408_s0 + $0x78] sm:$0xff] }
 0x156   :  { %v11670_v6 = vpop.f32.mrf.mxu0 }
 0x157   :  { %v1105_v38 = vadd.f32 %v11670_v6, %v942_v13  ;;  %v938_v6 = vadd.f32 %v10750_v29, %v889_v28 }
 0x15e   :  { %v11678_v16 = vpop.f32.mrf.mxu0 }
 0x15f   :  { %v1106_v50 = vadd.f32 %v11678_v16, %v943_v37  ;;  %v1103_v16 = vadd.f32 %v11660_v36, %v940_v18  ;;  %v1101_v36 = vadd.f32 %v11650_v62, %v938_v6  ;;  %v359_v62 = vpack.c.bf16 %v49_v5, %v48_v3  ;;  %v10561_v6 = vld [vmem:[%s16413_s5 + $0xd8] sm:$0xff]  ;;  %v10570_v3 = vld [vmem:[%s16413_s5 + $0x110] sm:$0xff] }
 0x162   :  { %392 = vmatmul.bf16.gmra.mxu1 %v356_v21 }
 0x166   :  { %v11680_v17 = vpop.f32.mrf.mxu0 }
 0x167   :  { %v1107_v25 = vadd.f32 %v11680_v17, %v944_v60  ;;  %v10566_v17 = vld [vmem:[%s16414_s6 + $0x30] sm:$0xff]  ;;  %v885_v60 = vmul.f32 %v10745_v53, %v836_v10 }
 0x168   :  { %1829 = vmatpush.bf16.msrb.mxu1 %v10566_v17 }
 0x16e   :  { %v1087_v34 = vpop.f32.mrf.mxu0 }
 0x16f   :  { %v1108_v45 = vadd.f32 %v1087_v34, %v945_v47  ;;  %v10746_v47 = vld [vmem:[%s16411_s3 + $0x11] ss:$0 sm:$0xff] }
 0x170   :  { %v934_v22 = vadd.f32 %v10746_v47, %v885_v60 }
 0x172   :  { %397 = vmatmul.bf16.gmra.mxu1 %v357_v39  ;;  %v892_v39 = vmul.f32 %v10751_v14, %v843_v57  ;;  %v1116_v57 = vpack.c.bf16 %v1106_v50, %v1105_v38  ;;  %v10560_v38 = vld [vmem:[%s16413_s5 + $0xd0] sm:$0xff] }
 0x174   :  { %v941_v34 = vadd.f32 %v10752_v20, %v892_v39  ;;  %v932_v39 = vadd.f32 %v10744_v33, %v883_v61  ;;  %v10563_v61 = vld [vmem:[%s16413_s5 + $0xe8] sm:$0xff] }
 0x176   :  { %v1090_v44 = vpop.f32.mrf.mxu0  ;;  %v1104_v14 = vadd.f32 %v11668_v46, %v941_v34  ;;  %v1102_v46 = vadd.f32 %v11658_v1, %v939_v41  ;;  %v1099_v1 = vadd.f32 %v11640_v4, %v936_v2 }
 0x177   :  { %v1109_v21 = vadd.f32 %v1090_v44, %v946_v7  ;;  %v1117_v44 = vpack.c.bf16 %v1108_v45, %v1107_v25  ;;  %v888_v7 = vmul.f32 %v10747_v40, %v839_v32  ;;  %v1095_v25 = vadd.f32 %v11578_v52, %v932_v39  ;;  %v10559_v40 = vld [vmem:[%s16413_s5 + $0xc8] sm:$0xff]  ;;  %v10564_v39 = vld [vmem:[%s16413_s5 + $0xf0] sm:$0xff] }
 0x178   :  { %v1115_v43 = vpack.c.bf16 %v1104_v14, %v1103_v16  ;;  %v1114_v20 = vpack.c.bf16 %v1102_v46, %v1101_v36 }
 0x179   :  { %v937_v23 = vadd.f32 %v10748_v49, %v888_v7  ;;  %v10568_v49 = vld [vmem:[%s16413_s5 + $0x100] sm:$0xff] }
 0x17b   :  { %v1100_v35 = vadd.f32 %v11648_v42, %v937_v23  ;;  %v10558_v42 = vld [vmem:[%s16413_s5 + $0xc0] sm:$0xff] }
 0x17d   :  { %v1113_v37 = vpack.c.bf16 %v1100_v35, %v1099_v1  ;;  %v10571_v35 = vld [vmem:[%s16413_s5 + $0x118] sm:$0xff] }
 0x17e   :  { %v1092_v24 = vpop.f32.mrf.mxu0 }
 0x17f   :  { %v1110_v48 = vadd.f32 %v1092_v24, %v947_v63  ;;  %v886_v63 = vmul.f32 %v10745_v53, %v837_v0  ;;  %v1097_v24 = vadd.f32 %v11614_v19, %v934_v22  ;;  %v11785_v19 = vld [vmem:[%s16412_s4] ss:$0 sm:$0xff] }
 0x181   :  { %v1118_v27 = vpack.c.bf16 %v1110_v48, %v1109_v21  ;;  %v884_v21 = vmul.f32 %v10743_v59, %v835_v9  ;;  %v935_v51 = vadd.f32 %v10746_v47, %v886_v63  ;;  %v10569_v9 = vld [vmem:[%s16413_s5 + $0x108] sm:$0xff]  ;;  %v10562_v47 = vld [vmem:[%s16413_s5 + $0xe0] sm:$0xff] }
 0x182   :  { %402 = vmatmul.bf16.gmra.mxu1 %v358_v12 }
 0x183   :  { %1132 = vmatpush.bf16.msrb.mxu2 %v1118_v27  ;;  %v933_v13 = vadd.f32 %v10744_v33, %v884_v21  ;;  %v1098_v12 = vadd.f32 %v11633_v11, %v935_v51 }
 0x185   :  { %v1096_v45 = vadd.f32 %v11599_v15, %v933_v13  ;;  %v1112_v48 = vpack.c.bf16 %v1098_v12, %v1097_v24 }
 0x187   :  { %1133 = vmatpush.bf16.msrb.mxu2 %v1117_v44  ;;  %v1111_v4 = vpack.c.bf16 %v1096_v45, %v1095_v25  ;;  %v10577_v44 = vld [vmem:[%s16414_s6 + $0x48] sm:$0xff] }
 0x188   :  { %2212 = vmatpush.bf16.msra.mxu0 %v10577_v44 }
 0x18b   :  { %1134 = vmatpush.bf16.msrb.mxu2 %v1116_v57 }
 0x18c   :  { %2213 = vmatpush.bf16.msra.mxu0 %v10576_v58 }
 0x18f   :  { %1135 = vmatpush.bf16.msrb.mxu2 %v1115_v43  ;;  %9354 = vmatmul.msk.bf16.vlgmr.msra.gmra.mxu0 %vm254_vm0, %v10568_v49 }
 0x192   :  { %407 = vmatmul.bf16.gmra.mxu1 %v359_v62 }
 0x193   :  { %1136 = vmatpush.bf16.msrb.mxu2 %v1114_v20 }
 0x197   :  { %1137 = vmatpush.bf16.msrb.mxu2 %v1113_v37 }
 0x19b   :  { %1138 = vmatpush.bf16.msrb.mxu2 %v1112_v48  ;;  %v10572_v48 = vld [vmem:[%s16413_s5 + $0x120] sm:$0xff] }
 0x19f   :  { %v373_v56 = vpop.f32.mrf.mxu1  ;;  %1139 = vmatpush.bf16.msrb.mxu2 %v1111_v4  ;;  %9355 = vmatmul.msk.bf16.gmra.mxu0 %vm254_vm0, %v10569_v9 }
 0x1a0   :  { %v374_v52 = vadd.f32 %v11785_v19, %v373_v56 }
 0x1a2   :  { %9265 = vmatmul.msk.bf16.vlgmr.msrb.gmra.mxu1 %vm254_vm0, %v10558_v42  ;;  %v413_v26 = vmax.f32 %v374_v52, 0.0  ;;  %v10565_v42 = vld [vmem:[%s16413_s5 + $0xf8] sm:$0xff] }
 0x1a7   :  { %v375_v15 = vpop.f32.mrf.mxu1 }
 0x1a8   :  { %v376_v11 = vadd.f32 %v11785_v19, %v375_v15 }
 0x1aa   :  { %v414_v31 = vmax.f32 %v376_v11, 0.0 }
 0x1ac   :  { %v735_v27 = vpack.c.bf16 %v414_v31, %v413_v26 }
 0x1ae   :  { %756 = vmatmul.bf16.vlgmr.msra.gmra.mxu3 %v735_v27 }
 0x1af   :  { %v378_v32 = vpop.f32.mrf.mxu1  ;;  %9356 = vmatmul.msk.bf16.gmra.mxu0 %vm254_vm0, %v10570_v3  ;;  %v10586_v3 = vld [vmem:[%s16414_s6 + $0x50] sm:$0xff] }
 0x1b0   :  { %v379_v28 = vadd.f32 %v11785_v19, %v378_v32 }
 0x1b2   :  { %9266 = vmatmul.msk.bf16.gmra.mxu1 %vm254_vm0, %v10559_v40  ;;  %v415_v18 = vmax.f32 %v379_v28, 0.0  ;;  %v10573_v40 = vld [vmem:[%s16413_s5 + $0x128] sm:$0xff] }
 0x1b7   :  { %v380_v29 = vpop.f32.mrf.mxu1 }
 0x1b8   :  { %v381_v8 = vadd.f32 %v11785_v19, %v380_v29  ;;  %v10574_v29 = vld [vmem:[%s16413_s5 + $0x130] sm:$0xff] }
 0x1ba   :  { %v416_v17 = vmax.f32 %v381_v8, 0.0 }
 0x1bc   :  { %v736_v34 = vpack.c.bf16 %v416_v17, %v415_v18  ;;  %v11875_v18 = vld [vmem:[%s16412_s4 + $0x1] ss:$0 sm:$0xff] }
 0x1be   :  { %761 = vmatmul.bf16.gmra.mxu3 %v736_v34 }
 0x1bf   :  { %v383_v50 = vpop.f32.mrf.mxu1  ;;  %9357 = vmatmul.msk.bf16.gmra.mxu0 %vm254_vm0, %v10571_v35 }
 0x1c0   :  { %v384_v54 = vadd.f32 %v11785_v19, %v383_v50 }
 0x1c2   :  { %9267 = vmatmul.msk.bf16.gmra.mxu1 %vm254_vm0, %v10560_v38  ;;  %v417_v53 = vmax.f32 %v384_v54, 0.0 }
 0x1c7   :  { %v385_v55 = vpop.f32.mrf.mxu1 }
 0x1c8   :  { %v386_v10 = vadd.f32 %v11785_v19, %v385_v55  ;;  %v10575_v55 = vld [vmem:[%s16413_s5 + $0x138] sm:$0xff] }
 0x1ca   :  { %v418_v0 = vmax.f32 %v386_v10, 0.0 }
 0x1cc   :  { %v737_v7 = vpack.c.bf16 %v418_v0, %v417_v53 }
 0x1ce   :  { %766 = vmatmul.bf16.gmra.mxu3 %v737_v7 }
 0x1cf   :  { %v388_v41 = vpop.f32.mrf.mxu1  ;;  %9358 = vmatmul.msk.bf16.gmra.mxu0 %vm254_vm0, %v10572_v48 }
 0x1d0   :  { %v389_v16 = vadd.f32 %v11785_v19, %v388_v41 }
 0x1d2   :  { %9268 = vmatmul.msk.bf16.gmra.mxu1 %vm254_vm0, %v10561_v6  ;;  %v419_v30 = vmax.f32 %v389_v16, 0.0 }
 0x1d7   :  { %v390_v14 = vpop.f32.mrf.mxu1 }
 0x1d8   :  { %v391_v57 = vadd.f32 %v11785_v19, %v390_v14 }
 0x1da   :  { %v420_v59 = vmax.f32 %v391_v57, 0.0 }
 0x1dc   :  { %v738_v60 = vpack.c.bf16 %v420_v59, %v419_v30 }
 0x1de   :  { %771 = vmatmul.bf16.gmra.mxu3 %v738_v60  ;;  %v10587_v60 = vld [vmem:[%s16414_s6 + $0x58] sm:$0xff] }
 0x1df   :  { %v393_v63 = vpop.f32.mrf.mxu1  ;;  %9359 = vmatmul.msk.bf16.gmra.mxu0 %vm254_vm0, %v10573_v40  ;;  %2596 = vmatpush.bf16.msra.mxu1 %v10587_v60 }
 0x1e0   :  { %v394_v2 = vadd.f32 %v11785_v19, %v393_v63 }
 0x1e2   :  { %9269 = vmatmul.msk.bf16.gmra.mxu1 %vm254_vm0, %v10562_v47  ;;  %v421_v46 = vmax.f32 %v394_v2, 0.0 }
 0x1e3   :  { %2597 = vmatpush.bf16.msra.mxu1 %v10586_v3 }
 0x1e7   :  { %v395_v23 = vpop.f32.mrf.mxu1 }
 0x1e8   :  { %v396_v36 = vadd.f32 %v11785_v19, %v395_v23 }
 0x1ea   :  { %v422_v43 = vmax.f32 %v396_v36, 0.0 }
 0x1ec   :  { %v739_v5 = vpack.c.bf16 %v422_v43, %v421_v46 }
 0x1ee   :  { %776 = vmatmul.bf16.gmra.mxu3 %v739_v5  ;;  %v10578_v5 = vld [vmem:[%s16413_s5 + $0x140] sm:$0xff] }
 0x1ef   :  { %v398_v33 = vpop.f32.mrf.mxu1  ;;  %9360 = vmatmul.msk.bf16.gmra.mxu0 %vm254_vm0, %v10574_v29  ;;  %v9188_v29 = vld [vmem:[%s16409_s1 + $0x78] sm:$0xff] }
 0x1f0   :  { %v399_v21 = vadd.f32 %v11785_v19, %v398_v33 }
 0x1f2   :  { %9270 = vmatmul.msk.bf16.gmra.mxu1 %vm254_vm0, %v10563_v61  ;;  %v423_v51 = vmax.f32 %v399_v21, 0.0 }
 0x1f7   :  { %v400_v22 = vpop.f32.mrf.mxu1 }
 0x1f8   :  { %v401_v62 = vadd.f32 %v11785_v19, %v400_v22 }
 0x1fa   :  { %v424_v1 = vmax.f32 %v401_v62, 0.0 }
 0x1fc   :  { %v740_v20 = vpack.c.bf16 %v424_v1, %v423_v51 }
 0x1fe   :  { %781 = vmatmul.bf16.gmra.mxu3 %v740_v20 }
 0x1ff   :  { %v403_v13 = vpop.f32.mrf.mxu1  ;;  %9361 = vmatmul.msk.bf16.gmra.mxu0 %vm254_vm0, %v10575_v55  ;;  %v1607_v55 = vunpack.c.1.s8 %v9188_v29 }
 0x200   :  { %v404_v24 = vadd.f32 %v11785_v19, %v403_v13 }
 0x202   :  { %9271 = vmatmul.msk.bf16.gmra.mxu1 %vm254_vm0, %v10564_v39  ;;  %v425_v25 = vmax.f32 %v404_v24, 0.0  ;;  %v10579_v24 = vld [vmem:[%s16413_s5 + $0x148] sm:$0xff] }
 0x207   :  { %v405_v12 = vpop.f32.mrf.mxu1 }
 0x208   :  { %v406_v37 = vadd.f32 %v11785_v19, %v405_v12 }
 0x20a   :  { %v426_v45 = vmax.f32 %v406_v37, 0.0 }
 0x20c   :  { %v741_v4 = vpack.c.bf16 %v426_v45, %v425_v25  ;;  %v11891_v14 = vpop.f32.mrf.mxu0 }
 0x20e   :  { %786 = vmatmul.bf16.gmra.mxu3 %v741_v4 }
 0x20f   :  { %v408_v56 = vpop.f32.mrf.mxu1 }
 0x210   :  { %v409_v52 = vadd.f32 %v11785_v19, %v408_v56 }
 0x212   :  { %9272 = vmatmul.msk.bf16.gmra.mxu1 %vm254_vm0, %v10565_v42  ;;  %v427_v26 = vmax.f32 %v409_v52, 0.0 }
 0x214   :  { %v11895_v9 = vpop.f32.mrf.mxu0 }
 0x217   :  { %v410_v15 = vpop.f32.mrf.mxu1 }
 0x218   :  { %v411_v11 = vadd.f32 %v11785_v19, %v410_v15 }
 0x21a   :  { %v428_v31 = vmax.f32 %v411_v11, 0.0 }
 0x21c   :  { %v742_v27 = vpack.c.bf16 %v428_v31, %v427_v26  ;;  %v11904_v43 = vpop.f32.mrf.mxu0  ;;  %v10580_v26 = vld [vmem:[%s16413_s5 + $0x150] sm:$0xff] }
 0x21e   :  { %791 = vmatmul.bf16.gmra.mxu3 %v742_v27 }
 0x21f   :  { %v11861_v32 = vpop.f32.mrf.mxu1 }
 0x222   :  { %9443 = vmatmul.msk.bf16.vlgmr.msra.gmra.mxu1 %vm254_vm0, %v10578_v5  ;;  %v10782_v5 = vld [vmem:[%s16411_s3 + $0x1f] ss:$0 sm:$0xff] }
 0x224   :  { %v11915_v22 = vpop.f32.mrf.mxu0 }
 0x227   :  { %v11864_v28 = vpop.f32.mrf.mxu1 }
 0x22c   :  { %v11921_v13 = vpop.f32.mrf.mxu0 }
 0x22f   :  { %v11869_v8 = vpop.f32.mrf.mxu1 }
 0x231   :  { %v757_v19 = vpop.f32.mrf.mxu3 }
 0x232   :  { %v758_v34 = vadd.f32 %v11875_v18, %v757_v19  ;;  %9444 = vmatmul.msk.bf16.gmra.mxu1 %vm254_vm0, %v10579_v24 }
 0x234   :  { %v797_v44 = vmax.f32 %v758_v34, 0.0  ;;  %v11929_v45 = vpop.f32.mrf.mxu0  ;;  %v1608_v34 = vunpack.c.2.s8 %v9188_v29 }
 0x237   :  { %v11877_v17 = vpop.f32.mrf.mxu1 }
 0x239   :  { %v759_v38 = vpop.f32.mrf.mxu3 }
 0x23a   :  { %v760_v50 = vadd.f32 %v11875_v18, %v759_v38  ;;  %v1606_v38 = vunpack.c.0.s8 %v9188_v29 }
 0x23c   :  { %v798_v54 = vmax.f32 %v760_v50, 0.0  ;;  %v11935_v11 = vpop.f32.mrf.mxu0 }
 0x23e   :  { %v1119_v10 = vpack.c.bf16 %v798_v54, %v797_v44  ;;  %v9187_v44 = vld [vmem:[%s16409_s1 + $0x70] sm:$0xff] }
 0x23f   :  { %v11884_v53 = vpop.f32.mrf.mxu1 }
 0x240   :  { %1140 = vmatmul.bf16.vlgmr.msrb.gmra.mxu2 %v1119_v10  ;;  %v1609_v10 = vunpack.c.3.s8 %v9188_v29 }
 0x241   :  { %v762_v0 = vpop.f32.mrf.mxu3 }
 0x242   :  { %v763_v49 = vadd.f32 %v11875_v18, %v762_v0  ;;  %9445 = vmatmul.msk.bf16.gmra.mxu1 %vm254_vm0, %v10580_v26 }
 0x244   :  { %v799_v41 = vmax.f32 %v763_v49, 0.0  ;;  %v11946_v19 = vpop.f32.mrf.mxu0 }
 0x247   :  { %v11887_v58 = vpop.f32.mrf.mxu1 }
 0x249   :  { %v764_v7 = vpop.f32.mrf.mxu3 }
 0x24a   :  { %v765_v6 = vadd.f32 %v11875_v18, %v764_v7  ;;  %v1624_v7 = vcvt.s32.f32 %v1608_v34 }
 0x24c   :  { %v800_v16 = vmax.f32 %v765_v6, 0.0  ;;  %v10781_v6 = vld [vmem:[%s16410_s2 + $0x1f] ss:$0 sm:$0xff] }
 0x24d   :  { %v1673_v3 = vmul.f32 %v10781_v6, %v1624_v7  ;;  %v9185_v7 = vld [vmem:[%s16409_s1 + $0x60] sm:$0xff] }
 0x24e   :  { %v1120_v57 = vpack.c.bf16 %v800_v16, %v799_v41  ;;  %v1604_v41 = vunpack.c.2.s8 %v9187_v44  ;;  %v1605_v16 = vunpack.c.3.s8 %v9187_v44 }
 0x24f   :  { %v11893_v30 = vpop.f32.mrf.mxu1  ;;  %v1722_v26 = vadd.f32 %v10782_v5, %v1673_v3 }
 0x250   :  { %1145 = vmatmul.bf16.gmra.mxu2 %v1120_v57  ;;  %v1622_v57 = vcvt.s32.f32 %v1606_v38  ;;  %v10774_v38 = vld [vmem:[%s16411_s3 + $0x1d] ss:$0 sm:$0xff] }
 0x251   :  { %v767_v59 = vpop.f32.mrf.mxu3 }
 0x252   :  { %v768_v63 = vadd.f32 %v11875_v18, %v767_v59  ;;  %v10777_v59 = vld [vmem:[%s16410_s2 + $0x1e] ss:$0 sm:$0xff] }
 0x254   :  { %v801_v36 = vmax.f32 %v768_v63, 0.0  ;;  %v1623_v63 = vcvt.s32.f32 %v1607_v55 }
 0x257   :  { %v11900_v47 = vpop.f32.mrf.mxu1 }
 0x259   :  { %v769_v2 = vpop.f32.mrf.mxu3 }
 0x25a   :  { %v770_v23 = vadd.f32 %v11875_v18, %v769_v2 }
 0x25c   :  { %v802_v46 = vmax.f32 %v770_v23, 0.0  ;;  %v1625_v23 = vcvt.s32.f32 %v1609_v10 }
 0x25e   :  { %v1121_v61 = vpack.c.bf16 %v802_v46, %v801_v36  ;;  %v11961_v36 = vpop.f32.mrf.mxu0  ;;  %v10581_v46 = vld [vmem:[%s16413_s5 + $0x158] sm:$0xff] }
 0x25f   :  { %v11912_v33 = vpop.f32.mrf.mxu1  ;;  %9446 = vmatmul.msk.bf16.gmra.mxu1 %vm254_vm0, %v10581_v46 }
 0x260   :  { %1150 = vmatmul.bf16.gmra.mxu2 %v1121_v61 }
 0x261   :  { %v772_v21 = vpop.f32.mrf.mxu3 }
 0x262   :  { %v773_v51 = vadd.f32 %v11875_v18, %v772_v21  ;;  %v9186_v21 = vld [vmem:[%s16409_s1 + $0x68] sm:$0xff] }
 0x264   :  { %v803_v20 = vmax.f32 %v773_v51, 0.0  ;;  %v1602_v51 = vunpack.c.0.s8 %v9187_v44 }
 0x267   :  { %v11917_v62 = vpop.f32.mrf.mxu1 }
 0x269   :  { %v774_v1 = vpop.f32.mrf.mxu3 }
 0x26a   :  { %v775_v35 = vadd.f32 %v11875_v18, %v774_v1  ;;  %v1603_v1 = vunpack.c.1.s8 %v9187_v44 }
 0x26c   :  { %v804_v39 = vmax.f32 %v775_v35, 0.0  ;;  %v1620_v35 = vcvt.s32.f32 %v1604_v41  ;;  %v1619_v29 = vcvt.s32.f32 %v1603_v1  ;;  %v1596_v1 = vunpack.c.2.s8 %v9185_v7 }
 0x26e   :  { %v1122_v12 = vpack.c.bf16 %v804_v39, %v803_v20  ;;  %v10773_v20 = vld [vmem:[%s16410_s2 + $0x1d] ss:$0 sm:$0xff]  ;;  %v1621_v39 = vcvt.s32.f32 %v1605_v16  ;;  %v10767_v16 = vld [vmem:[%s16410_s2 + $0x1b] ss:$0 sm:$0xff] }
 0x26f   :  { %v11926_v37 = vpop.f32.mrf.mxu1  ;;  %v1669_v34 = vmul.f32 %v10773_v20, %v1620_v35  ;;  %v1597_v35 = vunpack.c.3.s8 %v9185_v7 }
 0x270   :  { %1155 = vmatmul.bf16.gmra.mxu2 %v1122_v12  ;;  %v1671_v12 = vmul.f32 %v10777_v59, %v1622_v57  ;;  %v1670_v44 = vmul.f32 %v10773_v20, %v1621_v39 }
 0x271   :  { %v777_v25 = vpop.f32.mrf.mxu3 }
 0x272   :  { %v778_v4 = vadd.f32 %v11875_v18, %v777_v25  ;;  %v10778_v25 = vld [vmem:[%s16411_s3 + $0x1e] ss:$0 sm:$0xff]  ;;  %v1719_v46 = vadd.f32 %v10774_v38, %v1670_v44  ;;  %v10582_v44 = vld [vmem:[%s16413_s5 + $0x160] sm:$0xff] }
 0x273   :  { %9447 = vmatmul.msk.bf16.gmra.mxu1 %vm254_vm0, %v10582_v44 }
 0x274   :  { %v805_v52 = vmax.f32 %v778_v4, 0.0  ;;  %v1672_v4 = vmul.f32 %v10777_v59, %v1623_v63  ;;  %v10770_v63 = vld [vmem:[%s16411_s3 + $0x1c] ss:$0 sm:$0xff] }
 0x276   :  { %v1721_v55 = vadd.f32 %v10778_v25, %v1672_v4 }
 0x277   :  { %v11931_v48 = vpop.f32.mrf.mxu1 }
 0x279   :  { %v779_v42 = vpop.f32.mrf.mxu3 }
 0x27a   :  { %v780_v56 = vadd.f32 %v11875_v18, %v779_v42  ;;  %v1674_v42 = vmul.f32 %v10781_v6, %v1625_v23  ;;  %v1599_v6 = vunpack.c.1.s8 %v9186_v21  ;;  %v1718_v23 = vadd.f32 %v10774_v38, %v1669_v34 }
 0x27b   :  { %v1594_v38 = vunpack.c.0.s8 %v9185_v7 }
 0x27c   :  { %v806_v15 = vmax.f32 %v780_v56, 0.0  ;;  %v1723_v10 = vadd.f32 %v10782_v5, %v1674_v42  ;;  %v10765_v42 = vld [vmem:[%s16410_s2 + $0x1a] ss:$0 sm:$0xff] }
 0x27e   :  { %v1123_v31 = vpack.c.bf16 %v806_v15, %v805_v52  ;;  %v1600_v52 = vunpack.c.2.s8 %v9186_v21  ;;  %v1601_v15 = vunpack.c.3.s8 %v9186_v21 }
 0x27f   :  { %v11940_v27 = vpop.f32.mrf.mxu1 }
 0x280   :  { %1160 = vmatmul.bf16.gmra.mxu2 %v1123_v31  ;;  %v1618_v31 = vcvt.s32.f32 %v1602_v51  ;;  %v1616_v41 = vcvt.s32.f32 %v1600_v52  ;;  %v1617_v57 = vcvt.s32.f32 %v1601_v15  ;;  %v1881_v15 = vadd.f32 %v11926_v37, %v1718_v23  ;;  %v10762_v37 = vld [vmem:[%s16410_s2 + $0x19] ss:$0 sm:$0xff]  ;;  %v10760_v23 = vld [vmem:[%s16410_s2 + $0x18] ss:$0 sm:$0xff] }
 0x281   :  { %v782_v40 = vpop.f32.mrf.mxu3 }
 0x282   :  { %v783_v54 = vadd.f32 %v11875_v18, %v782_v40  ;;  %v10769_v40 = vld [vmem:[%s16410_s2 + $0x1c] ss:$0 sm:$0xff] }
 0x284   :  { %v807_v60 = vmax.f32 %v783_v54, 0.0  ;;  %v1720_v54 = vadd.f32 %v10778_v25, %v1671_v12  ;;  %v1665_v12 = vmul.f32 %v10767_v16, %v1616_v41 }
 0x286   :  { %v1883_v5 = vadd.f32 %v11940_v27, %v1720_v54  ;;  %v10768_v27 = vld [vmem:[%s16411_s3 + $0x1b] ss:$0 sm:$0xff]  ;;  %v1595_v54 = vunpack.c.1.s8 %v9185_v7 }
 0x287   :  { %v11948_v50 = vpop.f32.mrf.mxu1 }
 0x289   :  { %v784_v0 = vpop.f32.mrf.mxu3 }
 0x28a   :  { %v785_v49 = vadd.f32 %v11875_v18, %v784_v0  ;;  %v11985_v0 = vpop.f32.mrf.mxu0 }
 0x28c   :  { %v808_v2 = vmax.f32 %v785_v49, 0.0  ;;  %v1598_v49 = vunpack.c.0.s8 %v9186_v21 }
 0x28e   :  { %v1124_v61 = vpack.c.bf16 %v808_v2, %v807_v60  ;;  %v1667_v60 = vmul.f32 %v10769_v40, %v1618_v31  ;;  %v1668_v2 = vmul.f32 %v10769_v40, %v1619_v29  ;;  %v1614_v20 = vcvt.s32.f32 %v1598_v49 }
 0x28f   :  { %v1866_v24 = vpop.f32.mrf.mxu1 }
 0x290   :  { %1165 = vmatmul.bf16.gmra.mxu2 %v1124_v61  ;;  %v1885_v59 = vadd.f32 %v1866_v24, %v1722_v26  ;;  %v1884_v61 = vadd.f32 %v11948_v50, %v1721_v55  ;;  %v1615_v24 = vcvt.s32.f32 %v1599_v6  ;;  %v1666_v50 = vmul.f32 %v10767_v16, %v1617_v57  ;;  %v10766_v6 = vld [vmem:[%s16411_s3 + $0x1a] ss:$0 sm:$0xff] }
 0x291   :  { %v787_v56 = vpop.f32.mrf.mxu3  ;;  %v1717_v52 = vadd.f32 %v10770_v63, %v1668_v2  ;;  %v1882_v26 = vadd.f32 %v11931_v48, %v1719_v46  ;;  %v1612_v55 = vcvt.s32.f32 %v1596_v1  ;;  %v1663_v48 = vmul.f32 %v10765_v42, %v1614_v20 }
 0x292   :  { %v788_v21 = vadd.f32 %v11875_v18, %v787_v56  ;;  %v1716_v56 = vadd.f32 %v10770_v63, %v1667_v60  ;;  %v1893_v29 = vpack.c.bf16 %v1884_v61, %v1883_v5  ;;  %v12008_v34 = vpop.f32.mrf.mxu0  ;;  %v1664_v41 = vmul.f32 %v10765_v42, %v1615_v24  ;;  %v10763_v5 = vld [vmem:[%s16411_s3 + $0x19] ss:$0 sm:$0xff] }
 0x293   :  { %v1714_v16 = vadd.f32 %v10768_v27, %v1665_v12  ;;  %v1715_v57 = vadd.f32 %v10768_v27, %v1666_v50  ;;  %v1880_v60 = vadd.f32 %v11917_v62, %v1717_v52  ;;  %v1892_v7 = vpack.c.bf16 %v1882_v26, %v1881_v15 }
 0x294   :  { %v809_v31 = vmax.f32 %v788_v21, 0.0  ;;  %v1610_v2 = vcvt.s32.f32 %v1594_v38  ;;  %v1611_v46 = vcvt.s32.f32 %v1595_v54  ;;  %v1712_v61 = vadd.f32 %v10766_v6, %v1663_v48  ;;  %v10583_v38 = vld [vmem:[%s16413_s5 + $0x168] sm:$0xff]  ;;  %v10792_v48 = vld [vmem:[%s16410_s2 + $0x27] ss:$0 sm:$0xff] }
 0x295   :  { %v1713_v62 = vadd.f32 %v10766_v6, %v1664_v41  ;;  %v1877_v21 = vadd.f32 %v11893_v30, %v1714_v16  ;;  %9448 = vmatmul.msk.bf16.gmra.mxu1 %vm254_vm0, %v10583_v38 }
 0x296   :  { %v1659_v20 = vmul.f32 %v10760_v23, %v1610_v2  ;;  %v1660_v24 = vmul.f32 %v10760_v23, %v1611_v46 }
 0x297   :  { %v1868_v3 = vpop.f32.mrf.mxu1  ;;  %v1876_v42 = vadd.f32 %v11887_v58, %v1713_v62  ;;  %v10791_v62 = vld [vmem:[%s16411_s3 + $0x26] ss:$0 sm:$0xff] }
 0x298   :  { %v1886_v51 = vadd.f32 %v1868_v3, %v1723_v10  ;;  %v1613_v10 = vcvt.s32.f32 %v1597_v35  ;;  %v1661_v3 = vmul.f32 %v10762_v37, %v1612_v55 }
 0x299   :  { %v789_v39 = vpop.f32.mrf.mxu3 }
 0x29a   :  { %v790_v25 = vadd.f32 %v11875_v18, %v789_v39  ;;  %v1894_v4 = vpack.c.bf16 %v1886_v51, %v1885_v59  ;;  %v1879_v59 = vadd.f32 %v11912_v33, %v1716_v56  ;;  %v1662_v33 = vmul.f32 %v10762_v37, %v1613_v10  ;;  %v12030_v35 = vpop.f32.mrf.mxu0  ;;  %v10761_v39 = vld [vmem:[%s16411_s3 + $0x18] ss:$0 sm:$0xff]  ;;  %v9276_v10 = vld [vmem:[%s16409_s1 + $0x90] sm:$0xff] }
 0x29b   :  { %v1878_v51 = vadd.f32 %v11900_v47, %v1715_v57  ;;  %v1710_v12 = vadd.f32 %v10763_v5, %v1661_v3  ;;  %v1708_v56 = vadd.f32 %v10761_v39, %v1659_v20  ;;  %v1709_v52 = vadd.f32 %v10761_v39, %v1660_v24  ;;  %v10790_v57 = vld [vmem:[%s16410_s2 + $0x26] ss:$0 sm:$0xff]  ;;  %v12079_v24 = vld [vmem:[%s16412_s4 + $0x2] ss:$0 sm:$0xff] }
 0x29c   :  { %v810_v40 = vmax.f32 %v790_v25, 0.0  ;;  %1908 = vmatpush.bf16.msrb.mxu3 %v1894_v4  ;;  %v1891_v1 = vpack.c.bf16 %v1880_v60, %v1879_v59  ;;  %v1711_v25 = vadd.f32 %v10763_v5, %v1662_v33  ;;  %v1875_v4 = vadd.f32 %v11884_v53, %v1712_v61  ;;  %v9275_v60 = vld [vmem:[%s16409_s1 + $0x88] sm:$0xff]  ;;  %v10787_v5 = vld [vmem:[%s16410_s2 + $0x25] ss:$0 sm:$0xff] }
 0x29d   :  { %v1890_v47 = vpack.c.bf16 %v1878_v51, %v1877_v21  ;;  %v1873_v15 = vadd.f32 %v11869_v8, %v1710_v12  ;;  %v1871_v44 = vadd.f32 %v11861_v32, %v1708_v56  ;;  %v1988_v6 = vunpack.c.2.s8 %v9276_v10  ;;  %v10584_v51 = vld [vmem:[%s16413_s5 + $0x170] sm:$0xff] }
 0x29e   :  { %v1125_v49 = vpack.c.bf16 %v810_v40, %v809_v31  ;;  %v1874_v26 = vadd.f32 %v11877_v17, %v1711_v25  ;;  %v9277_v17 = vld [vmem:[%s16409_s1 + $0x98] sm:$0xff]  ;;  %v1989_v41 = vunpack.c.3.s8 %v9276_v10  ;;  %v1986_v23 = vunpack.c.0.s8 %v9276_v10 }
 0x29f   :  { %v1991_v32 = vunpack.c.1.s8 %v9277_v17  ;;  %v1992_v37 = vunpack.c.2.s8 %v9277_v17  ;;  %v1987_v46 = vunpack.c.1.s8 %v9276_v10  ;;  %v2004_v3 = vcvt.s32.f32 %v1988_v6 }
 0x2a0   :  { %1170 = vmatmul.bf16.gmra.mxu2 %v1125_v49  ;;  %1909 = vmatpush.bf16.msrb.mxu3 %v1893_v29  ;;  %v1889_v29 = vpack.c.bf16 %v1876_v42, %v1875_v4  ;;  %v1888_v8 = vpack.c.bf16 %v1874_v26, %v1873_v15  ;;  %v1990_v49 = vunpack.c.0.s8 %v9277_v17  ;;  %v2005_v33 = vcvt.s32.f32 %v1989_v41  ;;  %v10785_v42 = vld [vmem:[%s16410_s2 + $0x24] ss:$0 sm:$0xff] }
 0x2a1   :  { %v792_v63 = vpop.f32.mrf.mxu3  ;;  %v2007_v59 = vcvt.s32.f32 %v1991_v32  ;;  %v1984_v20 = vunpack.c.2.s8 %v9275_v60  ;;  %v1985_v39 = vunpack.c.3.s8 %v9275_v60  ;;  %v2002_v4 = vcvt.s32.f32 %v1986_v23 }
 0x2a2   :  { %v793_v30 = vadd.f32 %v11875_v18, %v792_v63  ;;  %v12041_v53 = vpop.f32.mrf.mxu0  ;;  %v2006_v16 = vcvt.s32.f32 %v1990_v49  ;;  %v10793_v63 = vld [vmem:[%s16411_s3 + $0x27] ss:$0 sm:$0xff]  ;;  %v1982_v26 = vunpack.c.0.s8 %v9275_v60  ;;  %v10786_v49 = vld [vmem:[%s16411_s3 + $0x24] ss:$0 sm:$0xff] }
 0x2a3   :  { %v2056_v21 = vmul.f32 %v10790_v57, %v2007_v59  ;;  %v2001_v38 = vcvt.s32.f32 %v1985_v39  ;;  %v2051_v10 = vmul.f32 %v10785_v42, %v2002_v4  ;;  %v10775_v4 = vld [vmem:[%s16410_s2 + $0x21] ss:$0 sm:$0xff] }
 0x2a4   :  { %1910 = vmatpush.bf16.msrb.mxu3 %v1892_v7  ;;  %v811_v31 = vmax.f32 %v793_v30, 0.0  ;;  %v2055_v61 = vmul.f32 %v10790_v57, %v2006_v16  ;;  %v2003_v30 = vcvt.s32.f32 %v1987_v46  ;;  %v10779_v46 = vld [vmem:[%s16410_s2 + $0x22] ss:$0 sm:$0xff] }
 0x2a5   :  { %9449 = vmatmul.msk.bf16.gmra.mxu1 %vm254_vm0, %v10584_v51 }
 0x2a6   :  { %v2104_v56 = vadd.f32 %v10791_v62, %v2055_v61  ;;  %v2052_v32 = vmul.f32 %v10785_v42, %v2003_v30 }
 0x2a8   :  { %1911 = vmatpush.bf16.msrb.mxu3 %v1891_v1  ;;  %v1993_v1 = vunpack.c.3.s8 %v9277_v17  ;;  %v2267_v41 = vadd.f32 %v12041_v53, %v2104_v56  ;;  %v10784_v53 = vld [vmem:[%s16411_s3 + $0x23] ss:$0 sm:$0xff] }
 0x2a9   :  { %v794_v27 = vpop.f32.mrf.mxu3 }
 0x2aa   :  { %v795_v50 = vadd.f32 %v11875_v18, %v794_v27  ;;  %v1872_v18 = vadd.f32 %v11864_v28, %v1709_v52  ;;  %v2247_v55 = vpop.f32.mrf.mxu0  ;;  %v2008_v28 = vcvt.s32.f32 %v1992_v37  ;;  %v2009_v25 = vcvt.s32.f32 %v1993_v1  ;;  %v10788_v27 = vld [vmem:[%s16411_s3 + $0x25] ss:$0 sm:$0xff] }
 0x2ab   :  { %v2105_v52 = vadd.f32 %v10791_v62, %v2056_v21 }
 0x2ac   :  { %v812_v40 = vmax.f32 %v795_v50, 0.0  ;;  %1912 = vmatpush.bf16.msrb.mxu3 %v1890_v47  ;;  %v1887_v54 = vpack.c.bf16 %v1872_v18, %v1871_v44  ;;  %v2057_v7 = vmul.f32 %v10792_v48, %v2008_v28  ;;  %v2053_v47 = vmul.f32 %v10787_v5, %v2004_v3 }
 0x2ad   :  { %v2054_v50 = vmul.f32 %v10787_v5, %v2005_v33  ;;  %v2058_v15 = vmul.f32 %v10792_v48, %v2009_v25  ;;  %v11187_v48 = vld [vmem:[%s16408_s0] sm:$0xff]  ;;  %v2268_v16 = vadd.f32 %v2247_v55, %v2105_v52  ;;  %v2100_v5 = vadd.f32 %v10786_v49, %v2051_v10  ;;  %v11188_v52 = vld [vmem:[%s16408_s0 + $0x8] sm:$0xff] }
 0x2ae   :  { %v1126_v58 = vpack.c.bf16 %v812_v40, %v811_v31  ;;  %v2106_v12 = vadd.f32 %v10793_v63, %v2057_v7  ;;  %v1983_v31 = vunpack.c.1.s8 %v9275_v60  ;;  %v2000_v40 = vcvt.s32.f32 %v1984_v20 }
 0x2af   :  { %v2102_v37 = vadd.f32 %v10788_v27, %v2053_v47  ;;  %v2103_v28 = vadd.f32 %v10788_v27, %v2054_v50  ;;  %v1998_v7 = vcvt.s32.f32 %v1982_v26  ;;  %v2101_v33 = vadd.f32 %v10786_v49, %v2052_v32  ;;  %v10585_v26 = vld [vmem:[%s16413_s5 + $0x178] sm:$0xff] }
 0x2b0   :  { %1175 = vmatmul.bf16.gmra.mxu2 %v1126_v58  ;;  %1913 = vmatpush.bf16.msrb.mxu3 %v1889_v29  ;;  %v9274_v58 = vld [vmem:[%s16409_s1 + $0x80] sm:$0xff]  ;;  %v2277_v21 = vpack.c.bf16 %v2268_v16, %v2267_v41  ;;  %v2263_v27 = vadd.f32 %v11961_v36, %v2100_v5  ;;  %v11190_v5 = vld [vmem:[%s16408_s0 + $0x18] sm:$0xff] }
 0x2b1   :  { %v1980_v59 = vunpack.c.2.s8 %v9274_v58  ;;  %v1981_v60 = vunpack.c.3.s8 %v9274_v58  ;;  %v2265_v61 = vadd.f32 %v12008_v34, %v2102_v37  ;;  %v2266_v62 = vadd.f32 %v12030_v35, %v2103_v28  ;;  %v10780_v34 = vld [vmem:[%s16411_s3 + $0x22] ss:$0 sm:$0xff]  ;;  %v10772_v37 = vld [vmem:[%s16411_s3 + $0x20] ss:$0 sm:$0xff] }
 0x2b2   :  { %v2250_v2 = vpop.f32.mrf.mxu0  ;;  %v1978_v51 = vunpack.c.0.s8 %v9274_v58  ;;  %v1979_v20 = vunpack.c.1.s8 %v9274_v58  ;;  %v2047_v42 = vmul.f32 %v10779_v46, %v1998_v7  ;;  %v2264_v50 = vadd.f32 %v11985_v0, %v2101_v33  ;;  %v10771_v0 = vld [vmem:[%s16410_s2 + $0x20] ss:$0 sm:$0xff]  ;;  %v10776_v58 = vld [vmem:[%s16411_s3 + $0x21] ss:$0 sm:$0xff] }
 0x2b3   :  { %v2269_v18 = vadd.f32 %v2250_v2, %v2106_v12  ;;  %v1996_v39 = vcvt.s32.f32 %v1980_v59  ;;  %v1997_v12 = vcvt.s32.f32 %v1981_v60  ;;  %v2276_v56 = vpack.c.bf16 %v2266_v62, %v2265_v61  ;;  %v11191_v62 = vld [vmem:[%s16408_s0 + $0x20] sm:$0xff] }
 0x2b4   :  { %1914 = vmatpush.bf16.msrb.mxu3 %v1888_v8  ;;  %v2107_v8 = vadd.f32 %v10793_v63, %v2058_v15  ;;  %v1999_v63 = vcvt.s32.f32 %v1983_v31  ;;  %v1994_v31 = vcvt.s32.f32 %v1978_v51 }
 0x2b5   :  { %9450 = vmatmul.msk.bf16.gmra.mxu1 %vm254_vm0, %v10585_v26  ;;  %v11194_v26 = vld [vmem:[%s16408_s0 + $0x38] sm:$0xff] }
 0x2b6   :  { %v2048_v35 = vmul.f32 %v10779_v46, %v1999_v63  ;;  %v2043_v32 = vmul.f32 %v10771_v0, %v1994_v31 }
 0x2b8   :  { %1915 = vmatpush.bf16.msrb.mxu3 %v1887_v54  ;;  %v10783_v54 = vld [vmem:[%s16410_s2 + $0x23] ss:$0 sm:$0xff]  ;;  %v2092_v7 = vadd.f32 %v10772_v37, %v2043_v32 }
 0x2b9   :  { %v2049_v3 = vmul.f32 %v10783_v54, %v2000_v40  ;;  %v2050_v55 = vmul.f32 %v10783_v54, %v2001_v38  ;;  %v1995_v40 = vcvt.s32.f32 %v1979_v20  ;;  %v2046_v38 = vmul.f32 %v10775_v4, %v1997_v12  ;;  %v11192_v12 = vld [vmem:[%s16408_s0 + $0x28] sm:$0xff] }
 0x2ba   :  { %v2252_v17 = vpop.f32.mrf.mxu0  ;;  %v2275_v54 = vpack.c.bf16 %v2264_v50, %v2263_v27 }
 0x2bb   :  { %v2270_v57 = vadd.f32 %v2252_v17, %v2107_v8  ;;  %v2098_v30 = vadd.f32 %v10784_v53, %v2049_v3  ;;  %v2099_v47 = vadd.f32 %v10784_v53, %v2050_v55  ;;  %v2044_v28 = vmul.f32 %v10771_v0, %v1995_v40 }
 0x2bc   :  { %v2095_v41 = vadd.f32 %v10776_v58, %v2046_v38  ;;  %v2255_v3 = vadd.f32 %v11891_v14, %v2092_v7 }
 0x2bd   :  { %v2278_v23 = vpack.c.bf16 %v2270_v57, %v2269_v18  ;;  %v2097_v18 = vadd.f32 %v10780_v34, %v2048_v35  ;;  %v2261_v8 = vadd.f32 %v11935_v11, %v2098_v30  ;;  %v2262_v17 = vadd.f32 %v11946_v19, %v2099_v47  ;;  %v11189_v19 = vld [vmem:[%s16408_s0 + $0x10] sm:$0xff] }
 0x2be   :  { %v2093_v63 = vadd.f32 %v10772_v37, %v2044_v28  ;;  %v11193_v30 = vld [vmem:[%s16408_s0 + $0x30] sm:$0xff] }
 0x2bf   :  { %2292 = vmatpush.bf16.msra.mxu2 %v2278_v23  ;;  %v2260_v11 = vadd.f32 %v11929_v45, %v2097_v18  ;;  %v2274_v57 = vpack.c.bf16 %v2262_v17, %v2261_v8 }
 0x2c0   :  { %v2256_v53 = vadd.f32 %v11895_v9, %v2093_v63 }
 0x2c2   :  { %v2271_v61 = vpack.c.bf16 %v2256_v53, %v2255_v3 }
 0x2c3   :  { %v1141_v29 = vpop.f32.mrf.mxu2  ;;  %2293 = vmatpush.bf16.msra.mxu2 %v2277_v21 }
 0x2c4   :  { %v1142_v44 = vadd.f32 %v12079_v24, %v1141_v29  ;;  %v2045_v29 = vmul.f32 %v10775_v4, %v1996_v39 }
 0x2c6   :  { %v12101_v6 = vadd.f32 %v11187_v48, %v1142_v44  ;;  %v2096_v44 = vadd.f32 %v10780_v34, %v2047_v42  ;;  %v2094_v48 = vadd.f32 %v10776_v58, %v2045_v29  ;;  %v11195_v58 = vld [vmem:[%s16408_s0 + $0x40] sm:$0xff] }
 0x2c7   :  { %2294 = vmatpush.bf16.msra.mxu2 %v2276_v56 }
 0x2c8   :  { %1197 = vadd.xlane.f32.xlu0 %v12101_v6  ;;  %v1245_v2 = vmul.f32 %v12101_v6, %v12101_v6  ;;  %v2259_v16 = vadd.f32 %v11921_v13, %v2096_v44  ;;  %v2258_v13 = vadd.f32 %v11915_v22, %v2095_v41 }
 0x2ca   :  { %1261 = vadd.xlane.f32.xlu1 %v1245_v2  ;;  %v2257_v2 = vadd.f32 %v11904_v43, %v2094_v48  ;;  %v2273_v45 = vpack.c.bf16 %v2260_v11, %v2259_v16  ;;  %v12168_v43 = vpop.f32.mrf.mxu1  ;;  %v11197_v48 = vld [vmem:[%s16408_s0 + $0x50] sm:$0xff] }
 0x2cb   :  { %v1143_v1 = vpop.f32.mrf.mxu2  ;;  %2295 = vmatpush.bf16.msra.mxu2 %v2275_v54  ;;  %16493 = vst [vmem:[#allocation9_spill] sm:$0xff] %v12168_v43  ;;  %v11196_v54 = vld [vmem:[%s16408_s0 + $0x48] sm:$0xff] }
 0x2cc   :  { %v1144_v25 = vadd.f32 %v12079_v24, %v1143_v1  ;;  %v2272_v55 = vpack.c.bf16 %v2258_v13, %v2257_v2  ;;  %v10811_v43 = vld [vmem:[%s16411_s3 + $0x2f] ss:$0 sm:$0xff] }
 0x2ce   :  { %v12127_v15 = vadd.f32 %v11188_v52, %v1144_v25 }
 0x2cf   :  { %2296 = vmatpush.bf16.msra.mxu2 %v2274_v57 }
 0x2d0   :  { %1199 = vadd.xlane.f32.xlu0 %v12127_v15  ;;  %v1246_v36 = vmul.f32 %v12127_v15, %v12127_v15 }
 0x2d2   :  { %1263 = vadd.xlane.f32.xlu1 %v1246_v36  ;;  %v12179_v51 = vpop.f32.mrf.mxu1 }
 0x2d3   :  { %v1146_v10 = vpop.f32.mrf.mxu2  ;;  %2297 = vmatpush.bf16.msra.mxu2 %v2273_v45  ;;  %16494 = vst [vmem:[#allocation5_spill] sm:$0xff] %v12179_v51  ;;  %v11199_v45 = vld [vmem:[%s16408_s0 + $0x60] sm:$0xff] }
 0x2d4   :  { %v1147_v49 = vadd.f32 %v12079_v24, %v1146_v10 }
 0x2d6   :  { %v12153_v59 = vadd.f32 %v11189_v19, %v1147_v49  ;;  %v11198_v19 = vld [vmem:[%s16408_s0 + $0x58] sm:$0xff] }
 0x2d7   :  { %2298 = vmatpush.bf16.msra.mxu2 %v2272_v55 }
 0x2d8   :  { %1201 = vadd.xlane.f32.xlu2 %v12153_v59  ;;  %v1247_v60 = vmul.f32 %v12153_v59, %v12153_v59 }
 0x2da   :  { %1265 = vadd.xlane.f32.xlu0 %v1247_v60  ;;  %v12190_v4 = vpop.f32.mrf.mxu1 }
 0x2db   :  { %v1148_v23 = vpop.f32.mrf.mxu2  ;;  %2299 = vmatpush.bf16.msra.mxu2 %v2271_v61 }
 0x2dc   :  { %v1149_v46 = vadd.f32 %v12079_v24, %v1148_v23 }
 0x2de   :  { %v12166_v33 = vadd.f32 %v11190_v5, %v1149_v46  ;;  %v11200_v5 = vld [vmem:[%s16408_s0 + $0x68] sm:$0xff] }
 0x2e0   :  { %1203 = vadd.xlane.f32.xlu2 %v12166_v33  ;;  %v1248_v22 = vmul.f32 %v12166_v33, %v12166_v33 }
 0x2e2   :  { %1267 = vadd.xlane.f32.xlu1 %v1248_v22  ;;  %v12201_v27 = vpop.f32.mrf.mxu1 }
 0x2e3   :  { %v1151_v14 = vpop.f32.mrf.mxu2  ;;  %16496 = vst [vmem:[#allocation7_spill] sm:$0xff] %v12201_v27 }
 0x2e4   :  { %v1152_v9 = vadd.f32 %v12079_v24, %v1151_v14 }
 0x2e6   :  { %v12177_v21 = vadd.f32 %v11191_v62, %v1152_v9 }
 0x2e8   :  { %1205 = vadd.xlane.f32.xlu2 %v12177_v21  ;;  %v1249_v1 = vmul.f32 %v12177_v21, %v12177_v21 }
 0x2ea   :  { %1269 = vadd.xlane.f32.xlu1 %v1249_v1  ;;  %v12215_v36 = vpop.f32.mrf.mxu1  ;;  %v11201_v1 = vld [vmem:[%s16408_s0 + $0x70] sm:$0xff] }
 0x2eb   :  { %v1153_v20 = vpop.f32.mrf.mxu2 }
 0x2ec   :  { %v1154_v39 = vadd.f32 %v12079_v24, %v1153_v20 }
 0x2ee   :  { %v12188_v25 = vadd.f32 %v11192_v12, %v1154_v39 }
 0x2f0   :  { %1207 = vadd.xlane.f32.xlu0 %v12188_v25  ;;  %v1250_v42 = vmul.f32 %v12188_v25, %v12188_v25 }
 0x2f2   :  { %1271 = vadd.xlane.f32.xlu2 %v1250_v42  ;;  %v12226_v8 = vpop.f32.mrf.mxu1 }
 0x2f3   :  { %v1156_v34 = vpop.f32.mrf.mxu2 }
 0x2f4   :  { %v1157_v35 = vadd.f32 %v12079_v24, %v1156_v34 }
 0x2f6   :  { %v12199_v47 = vadd.f32 %v11193_v30, %v1157_v35 }
 0x2f8   :  { %16495 = vst [vmem:[#allocation8_spill] sm:$0xff] %v12199_v47  ;;  %1209 = vadd.xlane.f32.xlu0 %v12199_v47  ;;  %v1251_v50 = vmul.f32 %v12199_v47, %v12199_v47 }
 0x2fa   :  { %1273 = vadd.xlane.f32.xlu2 %v1251_v50  ;;  %v12238_v28 = vpop.f32.mrf.mxu1 }
 0x2fb   :  { %v1158_v56 = vpop.f32.mrf.mxu2 }
 0x2fc   :  { %v1159_v52 = vadd.f32 %v12079_v24, %v1158_v56  ;;  %v11202_v56 = vld [vmem:[%s16408_s0 + $0x78] sm:$0xff] }
 0x2fe   :  { %v12210_v31 = vadd.f32 %v11194_v26, %v1159_v52 }
 0x300   :  { %16497 = vst [vmem:[#allocation6_spill] sm:$0xff] %v12210_v31  ;;  %1211 = vadd.xlane.f32.xlu1 %v12210_v31  ;;  %v1252_v40 = vmul.f32 %v12210_v31, %v12210_v31 }
 0x302   :  { %1275 = vadd.xlane.f32.xlu0 %v1252_v40  ;;  %v12254_v7 = vpop.f32.mrf.mxu1 }
 0x303   :  { %v1161_v0 = vpop.f32.mrf.mxu2 }
 0x304   :  { %v1162_v29 = vadd.f32 %v12079_v24, %v1161_v0 }
 0x306   :  { %v12221_v38 = vadd.f32 %v11195_v58, %v1162_v29 }
 0x308   :  { %16498 = vst [vmem:[#allocation10_spill] sm:$0xff] %v12221_v38  ;;  %1213 = vadd.xlane.f32.xlu1 %v12221_v38  ;;  %v1253_v44 = vmul.f32 %v12221_v38, %v12221_v38 }
 0x30a   :  { %1277 = vadd.xlane.f32.xlu0 %v1253_v44  ;;  %v12268_v3 = vpop.f32.mrf.mxu1 }
 0x30b   :  { %v1163_v18 = vpop.f32.mrf.mxu2 }
 0x30c   :  { %v1164_v17 = vadd.f32 %v12079_v24, %v1163_v18 }
 0x30e   :  { %v12232_v10 = vadd.f32 %v11196_v54, %v1164_v17 }
 0x310   :  { %16499 = vst [vmem:[#allocation11_spill] sm:$0xff] %v12232_v10  ;;  %1215 = vadd.xlane.f32.xlu2 %v12232_v10  ;;  %v1254_v49 = vmul.f32 %v12232_v10, %v12232_v10 }
 0x312   :  { %1279 = vadd.xlane.f32.xlu1 %v1254_v49  ;;  %v12279_v9 = vpop.f32.mrf.mxu1 }
 0x313   :  { %v1166_v32 = vpop.f32.mrf.mxu2 }
 0x314   :  { %v1167_v37 = vadd.f32 %v12079_v24, %v1166_v32 }
 0x316   :  { %v12243_v41 = vadd.f32 %v11197_v48, %v1167_v37 }
 0x318   :  { %16500 = vst [vmem:[#allocation12_spill] sm:$0xff] %v12243_v41  ;;  %1217 = vadd.xlane.f32.xlu2 %v12243_v41  ;;  %v1255_v16 = vmul.f32 %v12243_v41, %v12243_v41  ;;  %v12428_v41 = vld [vmem:[%s16416_s8] ss:$0 sm:$0xff] }
 0x31a   :  { %1281 = vadd.xlane.f32.xlu1 %v1255_v16  ;;  %v12293_v30 = vpop.f32.mrf.mxu1 }
 0x31b   :  { %v1168_v11 = vpop.f32.mrf.mxu2 }
 0x31c   :  { %v1169_v57 = vadd.f32 %v12079_v24, %v1168_v11 }
 0x31e   :  { %v12252_v60 = vadd.f32 %v11198_v19, %v1169_v57  ;;  %v9363_v57 = vld [vmem:[%s16409_s1 + $0xa0] sm:$0xff] }
 0x320   :  { %16501 = vst [vmem:[#allocation13_spill] sm:$0xff] %v12252_v60  ;;  %1219 = vadd.xlane.f32.xlu0 %v12252_v60  ;;  %v1256_v63 = vmul.f32 %v12252_v60, %v12252_v60 }
 0x322   :  { %1283 = vadd.xlane.f32.xlu2 %v1256_v63  ;;  %v12307_v18 = vpop.f32.mrf.mxu1 }
 0x323   :  { %v1171_v2 = vpop.f32.mrf.mxu2 }
 0x324   :  { %v1172_v13 = vadd.f32 %v12079_v24, %v1171_v2  ;;  %v2362_v2 = vunpack.c.0.s8 %v9363_v57 }
 0x326   :  { %v12263_v23 = vadd.f32 %v11199_v45, %v1172_v13 }
 0x328   :  { %16502 = vst [vmem:[#allocation14_spill] sm:$0xff] %v12263_v23  ;;  %1221 = vadd.xlane.f32.xlu0 %v12263_v23  ;;  %v1257_v46 = vmul.f32 %v12263_v23, %v12263_v23 }
 0x32a   :  { %1285 = vadd.xlane.f32.xlu2 %v1257_v46  ;;  %v12322_v63 = vpop.f32.mrf.mxu1  ;;  %v2363_v46 = vunpack.c.1.s8 %v9363_v57 }
 0x32b   :  { %v1173_v53 = vpop.f32.mrf.mxu2 }
 0x32c   :  { %v1174_v55 = vadd.f32 %v12079_v24, %v1173_v53 }
 0x32e   :  { %v12274_v22 = vadd.f32 %v11200_v5, %v1174_v55  ;;  %v9364_v5 = vld [vmem:[%s16409_s1 + $0xa8] sm:$0xff] }
 0x330   :  { %16503 = vst [vmem:[#allocation15_spill] sm:$0xff] %v12274_v22  ;;  %1223 = vadd.xlane.f32.xlu1 %v12274_v22  ;;  %v1258_v61 = vmul.f32 %v12274_v22, %v12274_v22 }
 0x332   :  { %1287 = vadd.xlane.f32.xlu0 %v1258_v61 }
 0x333   :  { %v1176_v14 = vpop.f32.mrf.mxu2 }
 0x334   :  { %v1177_v62 = vadd.f32 %v12079_v24, %v1176_v14  ;;  %v2364_v14 = vunpack.c.2.s8 %v9363_v57 }
 0x336   :  { %v12285_v20 = vadd.f32 %v11201_v1, %v1177_v62  ;;  %v12330_v1 = vcvt.s32.f32 %v2362_v2 }
 0x338   :  { %16504 = vst [vmem:[#allocation16_spill] sm:$0xff] %v12285_v20  ;;  %1225 = vadd.xlane.f32.xlu1 %v12285_v20  ;;  %v1259_v39 = vmul.f32 %v12285_v20, %v12285_v20 }
 0x33a   :  { %1289 = vadd.xlane.f32.xlu0 %v1259_v39  ;;  %v2365_v39 = vunpack.c.3.s8 %v9363_v57 }
 0x33b   :  { %v1178_v12 = vpop.f32.mrf.mxu2  ;;  %v1198_v42 = vpop.xlane.xlu0 %1197 }
 0x33c   :  { %v1179_v34 = vadd.f32 %v12079_v24, %v1178_v12  ;;  %v12291_v35 = vmul.f32 0.0078125, %v1198_v42  ;;  %v2366_v12 = vunpack.c.0.s8 %v9364_v5  ;;  %v12355_v57 = vcvt.s32.f32 %v2365_v39 }
 0x33d   :  { %v1262_v50 = vpop.xlane.xlu1 %1261 }
 0x33e   :  { %v12298_v52 = vadd.f32 %v11202_v56, %v1179_v34  ;;  %v1309_v26 = vmul.f32 %v12291_v35, %v12291_v35  ;;  %v1293_v40 = vmul.f32 0.0078125, %v1262_v50  ;;  %v12334_v50 = vcvt.s32.f32 %v2363_v46 }
 0x33f   :  { %v2367_v56 = vunpack.c.1.s8 %v9364_v5  ;;  %v12357_v2 = vcvt.s32.f32 %v2366_v12 }
 0x340   :  { %16505 = vst [vmem:[#allocation17_spill] sm:$0xff] %v12298_v52  ;;  %v1325_v0 = vsub.f32 %v1293_v40, %v1309_v26  ;;  %1227 = vadd.xlane.f32.xlu2 %v12298_v52  ;;  %v1260_v24 = vmul.f32 %v12298_v52, %v12298_v52  ;;  %v2368_v26 = vunpack.c.2.s8 %v9364_v5 }
 0x341   :  { %v12360_v46 = vcvt.s32.f32 %v2367_v56  ;;  %v1341_v56 = vsub.f32 %v12101_v6, %v12291_v35  ;;  %v12391_v6 = vld [vmem:[%s16415_s7] ss:$0 sm:$0xff]  ;;  %v10800_v35 = vld [vmem:[%s16410_s2 + $0x2b] ss:$0 sm:$0xff] }
 0x342   :  { %v1357_v29 = vadd.f32 1e-05, %v1325_v0  ;;  %1291 = vadd.xlane.f32.xlu1 %v1260_v24  ;;  %v2369_v0 = vunpack.c.3.s8 %v9364_v5  ;;  %v12341_v24 = vld [vmem:[%s16409_s1 + $0xb0] sm:$0xff] }
 0x343   :  { %v1200_v58 = vpop.xlane.xlu0 %1199 }
 0x344   :  { %11027 = vrsqrt.f32 %v1357_v29  ;;  %v12305_v44 = vmul.f32 0.0078125, %v1200_v58  ;;  %vm1379_vm2 = vweird.f32 %v1357_v29 }
 0x345   :  { %v1264_v17 = vpop.xlane.xlu1 %1263 }
 0x346   :  { %v1310_v54 = vmul.f32 %v12305_v44, %v12305_v44  ;;  %v1294_v49 = vmul.f32 0.0078125, %v1264_v17 }
 0x348   :  { %v1326_v32 = vsub.f32 %v1294_v49, %v1310_v54  ;;  %v12347_v49 = vcvt.s32.f32 %v2364_v14  ;;  %v12372_v14 = vld [vmem:[%s16409_s1 + $0xb8] sm:$0xff] }
 0x349   :  { %v2375_v52 = vunpack.c.1.s8 %v12372_v14 }
 0x34a   :  { %v12311_v37 = vpop.eup %11027  ;;  %v12313_v48 = vadd.f32 1e-05, %v1326_v32  ;;  %v2370_v32 = vunpack.c.0.s8 %v12341_v24 }
 0x34b   :  { %v1374_v16 = vmul.f32 %v12311_v37, %v1357_v29  ;;  %v1202_v11 = vpop.xlane.xlu2 %1201  ;;  %vm1380_vm1 = vweird.f32 %v12311_v37  ;;  %v2384_v29 = vcvt.s32.f32 %v2368_v26  ;;  %v2376_v26 = vunpack.c.2.s8 %v12372_v14 }
 0x34c   :  { %11029 = vrsqrt.f32 %v12313_v48  ;;  %v12320_v19 = vmul.f32 0.0078125, %v1202_v11  ;;  %v12353_v11 = vpop.f32.mrf.mxu1  ;;  %vm12362_vm3 = vmor %vm1379_vm2, %vm1380_vm1  ;;  %vm1389_vm5 = vweird.f32 %v12313_v48 }
 0x34d   :  { %v1375_v13 = vmul.f32 %v12311_v37, %v1374_v16  ;;  %v1266_v45 = vpop.xlane.xlu0 %1265  ;;  %v2392_v22 = vcvt.s32.f32 %v2376_v26  ;;  %v12430_v10 = vmul.f32 %v10800_v35, %v2384_v29  ;;  %v10807_v29 = vld [vmem:[%s16411_s3 + $0x2e] ss:$0 sm:$0xff] }
 0x34e   :  { %v1311_v53 = vmul.f32 %v12320_v19, %v12320_v19  ;;  %v1295_v55 = vmul.f32 0.0078125, %v1266_v45 }
 0x34f   :  { %v1376_v61 = vmul.f32 0.5, %v1375_v13 }
 0x350   :  { %v1327_v62 = vsub.f32 %v1295_v55, %v1311_v53  ;;  %v2372_v55 = vunpack.c.2.s8 %v12341_v24 }
 0x351   :  { %v1377_v42 = vsub.f32 1.5, %v1376_v61 }
 0x352   :  { %v12332_v34 = vpop.eup %11029  ;;  %v12336_v40 = vadd.f32 1e-05, %v1327_v62  ;;  %v2385_v62 = vcvt.s32.f32 %v2369_v0  ;;  %v2388_v53 = vcvt.s32.f32 %v2372_v55  ;;  %v2373_v55 = vunpack.c.3.s8 %v12341_v24 }
 0x353   :  { %v1378_v58 = vmul.f32 %v12311_v37, %v1377_v42  ;;  %v1384_v17 = vmul.f32 %v12332_v34, %v12313_v48  ;;  %v1204_v54 = vpop.xlane.xlu2 %1203  ;;  %v2386_v42 = vcvt.s32.f32 %v2370_v32  ;;  %vm1390_vm4 = vweird.f32 %v12332_v34 }
 0x354   :  { %11031 = vrsqrt.f32 %v12336_v40  ;;  %v12351_v16 = vmul.f32 0.0078125, %v1204_v54  ;;  %v2374_v54 = vunpack.c.0.s8 %v12372_v14  ;;  %vm1391_vm6 = vmor %vm1389_vm5, %vm1390_vm4  ;;  %vm1399_vm8 = vweird.f32 %v12336_v40 }
 0x355   :  { %v1385_v13 = vmul.f32 %v12332_v34, %v1384_v17  ;;  %v1268_v45 = vpop.xlane.xlu1 %1267  ;;  %v1382_v12 = vsel %vm12362_vm3, %v12311_v37, %v1378_v58 }
 0x356   :  { %v1312_v5 = vmul.f32 %v12351_v16, %v12351_v16  ;;  %v1296_v61 = vmul.f32 0.0078125, %v1268_v45  ;;  %v1533_v58 = vmul.f32 %v1382_v12, %v1341_v56  ;;  %v1342_v12 = vsub.f32 %v12127_v15, %v12305_v44 }
 0x357   :  { %v1386_v39 = vmul.f32 0.5, %v1385_v13  ;;  %v2371_v13 = vunpack.c.1.s8 %v12341_v24  ;;  %v2390_v56 = vcvt.s32.f32 %v2374_v54  ;;  %v10804_v24 = vld [vmem:[%s16410_s2 + $0x2d] ss:$0 sm:$0xff]  ;;  %v2391_v15 = vcvt.s32.f32 %v2375_v52  ;;  %v10810_v54 = vld [vmem:[%s16410_s2 + $0x2f] ss:$0 sm:$0xff]  ;;  %v2634_v52 = vpop.f32.mrf.mxu1 }
 0x358   :  { %v1328_v17 = vsub.f32 %v1296_v61, %v1312_v5  ;;  %v2441_v51 = vmul.f32 %v10810_v54, %v2392_v22 }
 0x359   :  { %v1387_v45 = vsub.f32 1.5, %v1386_v39  ;;  %v10802_v39 = vld [vmem:[%s16410_s2 + $0x2c] ss:$0 sm:$0xff]  ;;  %v2387_v31 = vcvt.s32.f32 %v2371_v13 }
 0x35a   :  { %v12383_v0 = vpop.eup %11031  ;;  %v12386_v37 = vadd.f32 1e-05, %v1328_v17  ;;  %v2435_v38 = vmul.f32 %v10802_v39, %v2386_v42 }
 0x35b   :  { %v1388_v32 = vmul.f32 %v12332_v34, %v1387_v45  ;;  %v1394_v5 = vmul.f32 %v12383_v0, %v12336_v40  ;;  %v1206_v61 = vpop.xlane.xlu2 %1205  ;;  %v10806_v45 = vld [vmem:[%s16410_s2 + $0x2e] ss:$0 sm:$0xff]  ;;  %vm1400_vm7 = vweird.f32 %v12383_v0 }
 0x35c   :  { %11033 = vrsqrt.f32 %v12386_v37  ;;  %v12409_v48 = vmul.f32 0.0078125, %v1206_v61  ;;  %v2440_v42 = vmul.f32 %v10806_v45, %v2391_v15  ;;  %vm12468_vm9 = vmor %vm1399_vm8, %vm1400_vm7  ;;  %vm1409_vm11 = vweird.f32 %v12386_v37 }
 0x35d   :  { %v1395_v17 = vmul.f32 %v12383_v0, %v1394_v5  ;;  %v1270_v20 = vpop.xlane.xlu1 %1269  ;;  %v1392_v44 = vsel %vm1391_vm6, %v12332_v34, %v1388_v32  ;;  %v1553_v5 = vmul.f32 %v12391_v6, %v1533_v58  ;;  %v12432_v34 = vmul.f32 %v10800_v35, %v2385_v62 }
 0x35e   :  { %v1313_v61 = vmul.f32 %v12409_v48, %v12409_v48  ;;  %v1297_v23 = vmul.f32 0.0078125, %v1270_v20  ;;  %v1534_v60 = vmul.f32 %v1392_v44, %v1342_v12  ;;  %v2389_v32 = vcvt.s32.f32 %v2373_v55 }
 0x35f   :  { %v1396_v26 = vmul.f32 0.5, %v1395_v17  ;;  %v2437_v12 = vmul.f32 %v10804_v24, %v2388_v53  ;;  %v2439_v58 = vmul.f32 %v10806_v45, %v2390_v56  ;;  %v2377_v35 = vunpack.c.3.s8 %v12372_v14 }
 0x360   :  { %v1329_v47 = vsub.f32 %v1297_v23, %v1313_v61  ;;  %v1554_v20 = vmul.f32 %v12391_v6, %v1534_v60  ;;  %v12446_v23 = vadd.f32 %v12428_v41, %v1553_v5  ;;  %v2438_v22 = vmul.f32 %v10804_v24, %v2389_v32 }
 0x361   :  { %v1397_v44 = vsub.f32 1.5, %v1396_v26  ;;  %v2490_v45 = vadd.f32 %v10811_v43, %v2441_v51  ;;  %v2393_v15 = vcvt.s32.f32 %v2377_v35  ;;  %v2488_v40 = vadd.f32 %v10807_v29, %v2439_v58 }
 0x362   :  { %v12438_v27 = vpop.eup %11033  ;;  %v12443_v62 = vadd.f32 1e-05, %v1329_v47  ;;  %v12449_v60 = vadd.f32 %v12428_v41, %v1554_v20  ;;  %v10805_v47 = vld [vmem:[%s16411_s3 + $0x2d] ss:$0 sm:$0xff]  ;;  %v2489_v5 = vadd.f32 %v10807_v29, %v2440_v42  ;;  %v2436_v20 = vmul.f32 %v10802_v39, %v2387_v31 }
 0x363   :  { %v1404_v13 = vmul.f32 %v12438_v27, %v12386_v37  ;;  %v1208_v53 = vpop.xlane.xlu0 %1207  ;;  %v1398_v14 = vmul.f32 %v12383_v0, %v1397_v44  ;;  %v10803_v44 = vld [vmem:[%s16411_s3 + $0x2c] ss:$0 sm:$0xff]  ;;  %v2486_v35 = vadd.f32 %v10805_v47, %v2437_v12  ;;  %v1343_v58 = vsub.f32 %v12153_v59, %v12320_v19  ;;  %v10801_v37 = vld [vmem:[%s16411_s3 + $0x2b] ss:$0 sm:$0xff] }
 0x364   :  { %16508 = vst [vmem:[#allocation18_spill] sm:$0xff] %v12449_v60  ;;  %11035 = vrsqrt.f32 %v12443_v62  ;;  %v12460_v55 = vmul.f32 0.0078125, %v1208_v53  ;;  %v1895_v56 = vpack.c.bf16 %v12449_v60, %v12446_v23  ;;  %v2442_v53 = vmul.f32 %v10810_v54, %v2393_v15  ;;  %v2636_v60 = vpop.f32.mrf.mxu1 }
 0x365   :  { %v1405_v24 = vmul.f32 %v12438_v27, %v1404_v13  ;;  %v1272_v17 = vpop.xlane.xlu2 %1271  ;;  %v1402_v51 = vsel %vm12468_vm9, %v12383_v0, %v1398_v14  ;;  %v2487_v29 = vadd.f32 %v10805_v47, %v2438_v22  ;;  %vm1410_vm10 = vweird.f32 %v12438_v27 }
 0x366   :  { %v1314_v26 = vmul.f32 %v12460_v55, %v12460_v55  ;;  %v1298_v32 = vmul.f32 0.0078125, %v1272_v17  ;;  %1916 = vmatmul.bf16.vlgmr.msrb.gmra.mxu3 %v1895_v56  ;;  %v2653_v31 = vadd.f32 %v2634_v52, %v2490_v45  ;;  %v2491_v39 = vadd.f32 %v10811_v43, %v2442_v53  ;;  %v10798_v43 = vld [vmem:[%s16410_s2 + $0x2a] ss:$0 sm:$0xff]  ;;  %vm1411_vm12 = vmor %vm1409_vm11, %vm1410_vm10 }
 0x367   :  { %v1406_v13 = vmul.f32 0.5, %v1405_v24  ;;  %v2651_v0 = vadd.f32 %v12322_v63, %v2488_v40  ;;  %v2652_v56 = vadd.f32 %v12353_v11, %v2489_v5  ;;  %v1535_v12 = vmul.f32 %v1402_v51, %v1343_v58 }
 0x368   :  { %v1330_v42 = vsub.f32 %v1298_v32, %v1314_v26  ;;  %v2654_v22 = vadd.f32 %v2636_v60, %v2491_v39  ;;  %v2484_v52 = vadd.f32 %v10803_v44, %v2435_v38  ;;  %v1344_v63 = vsub.f32 %v12166_v33, %v12351_v16 }
 0x369   :  { %v1407_v17 = vsub.f32 1.5, %v1406_v13  ;;  %v2485_v60 = vadd.f32 %v10803_v44, %v2436_v20  ;;  %v1555_v40 = vmul.f32 %v12391_v6, %v1535_v12  ;;  %v2649_v5 = vadd.f32 %v12293_v30, %v2486_v35  ;;  %v10796_v20 = vld [vmem:[%s16410_s2 + $0x29] ss:$0 sm:$0xff]  ;;  %v10799_v30 = vld [vmem:[%s16411_s3 + $0x2a] ss:$0 sm:$0xff] }
 0x36a   :  { %v12483_v54 = vpop.eup %11035  ;;  %v12487_v24 = vadd.f32 1e-05, %v1330_v42  ;;  %v2662_v14 = vpack.c.bf16 %v2654_v22, %v2653_v31  ;;  %v2650_v26 = vadd.f32 %v12307_v18, %v2487_v29  ;;  %v2661_v13 = vpack.c.bf16 %v2652_v56, %v2651_v0 }
 0x36b   :  { %v1414_v59 = vmul.f32 %v12483_v54, %v12443_v62  ;;  %v1210_v19 = vpop.xlane.xlu0 %1209  ;;  %v1408_v47 = vmul.f32 %v12438_v27, %v1407_v17  ;;  %v2432_v53 = vmul.f32 %v10798_v43, %v12360_v46  ;;  %v2482_v18 = vadd.f32 %v10801_v37, %v12430_v10 }
 0x36c   :  { %11037 = vrsqrt.f32 %v12487_v24  ;;  %v12501_v11 = vmul.f32 0.0078125, %v1210_v19  ;;  %2676 = vmatpush.bf16.msra.mxu3 %v2662_v14  ;;  %v2483_v35 = vadd.f32 %v10801_v37, %v12432_v34  ;;  %v2647_v58 = vadd.f32 %v12268_v3, %v2484_v52 }
 0x36d   :  { %v1415_v45 = vmul.f32 %v12483_v54, %v1414_v59  ;;  %v1274_v15 = vpop.xlane.xlu2 %1273  ;;  %v1412_v38 = vsel %vm1411_vm12, %v12438_v27, %v1408_v47  ;;  %v2431_v27 = vmul.f32 %v10798_v43, %v12357_v2  ;;  %v2648_v2 = vadd.f32 %v12279_v9, %v2485_v60  ;;  %v10794_v9 = vld [vmem:[%s16410_s2 + $0x28] ss:$0 sm:$0xff]  ;;  %v10797_v59 = vld [vmem:[%s16411_s3 + $0x29] ss:$0 sm:$0xff] }
 0x36e   :  { %v1315_v33 = vmul.f32 %v12501_v11, %v12501_v11  ;;  %v1299_v16 = vmul.f32 0.0078125, %v1274_v15  ;;  %v1536_v61 = vmul.f32 %v1412_v38, %v1344_v63  ;;  %v12531_v46 = vadd.f32 %v12428_v41, %v1555_v40 }
 0x36f   :  { %v1416_v32 = vmul.f32 0.5, %v1415_v45  ;;  %v2660_v39 = vpack.c.bf16 %v2650_v26, %v2649_v5  ;;  %vm1420_vm13 = vweird.f32 %v12483_v54  ;;  %v2429_v0 = vmul.f32 %v10796_v20, %v12347_v49 }
 0x370   :  { %v1331_v51 = vsub.f32 %v1299_v16, %v1315_v33  ;;  %v1556_v44 = vmul.f32 %v12391_v6, %v1536_v61  ;;  %2677 = vmatpush.bf16.msra.mxu3 %v2661_v13  ;;  %v2430_v19 = vmul.f32 %v10796_v20, %v12355_v57  ;;  %v2480_v22 = vadd.f32 %v10799_v30, %v2431_v27  ;;  %v10795_v16 = vld [vmem:[%s16411_s3 + $0x28] ss:$0 sm:$0xff] }
 0x371   :  { %v1417_v29 = vsub.f32 1.5, %v1416_v32  ;;  %vm1419_vm14 = vweird.f32 %v12443_v62  ;;  %v2481_v49 = vadd.f32 %v10799_v30, %v2432_v53  ;;  %v2645_v52 = vadd.f32 %v12238_v28, %v2482_v18 }
 0x372   :  { %v12525_v42 = vpop.eup %11037  ;;  %v12528_v17 = vadd.f32 1e-05, %v1331_v51  ;;  %v12534_v31 = vadd.f32 %v12428_v41, %v1556_v44  ;;  %vm12558_vm15 = vmor %vm1419_vm14, %vm1420_vm13  ;;  %v2646_v57 = vadd.f32 %v12254_v7, %v2483_v35  ;;  %v2659_v62 = vpack.c.bf16 %v2648_v2, %v2647_v58 }
 0x373   :  { %v1424_v10 = vmul.f32 %v12525_v42, %v12487_v24  ;;  %v1212_v3 = vpop.xlane.xlu1 %1211  ;;  %v1418_v34 = vmul.f32 %v12483_v54, %v1417_v29  ;;  %v2427_v15 = vmul.f32 %v10794_v9, %v12330_v1  ;;  %v2428_v14 = vmul.f32 %v10794_v9, %v12334_v50 }
 0x374   :  { %11039 = vrsqrt.f32 %v12528_v17  ;;  %v12545_v56 = vmul.f32 0.0078125, %v1212_v3  ;;  %v1896_v12 = vpack.c.bf16 %v12534_v31, %v12531_v46  ;;  %2678 = vmatpush.bf16.msra.mxu3 %v2660_v39  ;;  %v1345_v38 = vsub.f32 %v12177_v21, %v12409_v48  ;;  %v16514_v3 = vld [vmem:[#allocation9_spill] sm:$0xff] }
 0x375   :  { %v1425_v47 = vmul.f32 %v12525_v42, %v1424_v10  ;;  %v1276_v43 = vpop.xlane.xlu0 %1275  ;;  %v1422_v28 = vsel %vm12558_vm15, %v12483_v54, %v1418_v34  ;;  %v2478_v7 = vadd.f32 %v10797_v59, %v2429_v0  ;;  %v2479_v61 = vadd.f32 %v10797_v59, %v2430_v19  ;;  %v16515_v0 = vld [vmem:[#allocation5_spill] sm:$0xff] }
 0x376   :  { %v1316_v37 = vmul.f32 %v12545_v56, %v12545_v56  ;;  %v1300_v60 = vmul.f32 0.0078125, %v1276_v43  ;;  %1921 = vmatmul.bf16.gmra.mxu3 %v1896_v12  ;;  %vm1430_vm1 = vweird.f32 %v12525_v42  ;;  %v2643_v54 = vadd.f32 %v12215_v36, %v2480_v22 }
 0x377   :  { %v1426_v45 = vmul.f32 0.5, %v1425_v47  ;;  %v2644_v1 = vadd.f32 %v12226_v8, %v2481_v49  ;;  %v1537_v26 = vmul.f32 %v1422_v28, %v1345_v38  ;;  %v2658_v21 = vpack.c.bf16 %v2646_v57, %v2645_v52 }
 0x378   :  { %v1332_v33 = vsub.f32 %v1300_v60, %v1316_v37  ;;  %vm1429_vm2 = vweird.f32 %v12487_v24  ;;  %2679 = vmatpush.bf16.msra.mxu3 %v2659_v62  ;;  %v1346_v20 = vsub.f32 %v12188_v25, %v12460_v55  ;;  %v2476_v8 = vadd.f32 %v10795_v16, %v2427_v15  ;;  %v16513_v55 = vld [vmem:[#allocation7_spill] sm:$0xff] }
 0x379   :  { %v1427_v40 = vsub.f32 1.5, %v1426_v45  ;;  %vm1431_vm3 = vmor %vm1429_vm2, %vm1430_vm1  ;;  %v2477_v27 = vadd.f32 %v10795_v16, %v2428_v14  ;;  %v1557_v35 = vmul.f32 %v12391_v6, %v1537_v26  ;;  %v2641_v25 = vadd.f32 %v12190_v4, %v2478_v7  ;;  %v16516_v14 = vld [vmem:[#allocation8_spill] sm:$0xff]  ;;  %v16517_v26 = vld [vmem:[#allocation6_spill] sm:$0xff] }
 0x37a   :  { %v12576_v5 = vpop.eup %11039  ;;  %v12580_v50 = vadd.f32 1e-05, %v1332_v33  ;;  %v2642_v58 = vadd.f32 %v16513_v55, %v2479_v61  ;;  %v2657_v29 = vpack.c.bf16 %v2644_v1, %v2643_v54  ;;  %v2639_v34 = vadd.f32 %v16514_v3, %v2476_v8  ;;  %v10596_v3 = vld [vmem:[%s16414_s6 + $0x60] sm:$0xff] }
 0x37b   :  { %v1434_v48 = vmul.f32 %v12576_v5, %v12528_v17  ;;  %v1214_v32 = vpop.xlane.xlu1 %1213  ;;  %v1428_v13 = vmul.f32 %v12525_v42, %v1427_v40  ;;  %v2640_v12 = vadd.f32 %v16515_v0, %v2477_v27  ;;  %v12604_v19 = vadd.f32 %v12428_v41, %v1557_v35 }
 0x37c   :  { %11041 = vrsqrt.f32 %v12580_v50  ;;  %v12589_v36 = vmul.f32 0.0078125, %v1214_v32  ;;  %2680 = vmatpush.bf16.msra.mxu3 %v2658_v21  ;;  %v2656_v22 = vpack.c.bf16 %v2642_v58, %v2641_v25  ;;  %vm1440_vm4 = vweird.f32 %v12576_v5 }
 0x37d   :  { %v1435_v53 = vmul.f32 %v12576_v5, %v1434_v48  ;;  %v1278_v24 = vpop.xlane.xlu0 %1277  ;;  %v1432_v51 = vsel %vm1431_vm3, %v12525_v42, %v1428_v13  ;;  %vm1439_vm5 = vweird.f32 %v12528_v17  ;;  %v2655_v45 = vpack.c.bf16 %v2640_v12, %v2639_v34  ;;  %v10597_v13 = vld [vmem:[%s16414_s6 + $0x68] sm:$0xff] }
 0x37e   :  { %v1317_v44 = vmul.f32 %v12589_v36, %v12589_v36  ;;  %v1301_v30 = vmul.f32 0.0078125, %v1278_v24  ;;  %v1538_v18 = vmul.f32 %v1432_v51, %v1346_v20  ;;  %vm1441_vm6 = vmor %vm1439_vm5, %vm1440_vm4  ;;  %v1347_v38 = vsub.f32 %v16516_v14, %v12501_v11  ;;  %3374 = vmatpush.bf16.msrb.mxu0 %v10597_v13 }
 0x37f   :  { %v1436_v2 = vmul.f32 0.5, %v1435_v53  ;;  %vm1449_vm8 = vweird.f32 %v12580_v50  ;;  %v1348_v21 = vsub.f32 %v16517_v26, %v12545_v56 }
 0x380   :  { %v1333_v39 = vsub.f32 %v1301_v30, %v1317_v44  ;;  %v1558_v10 = vmul.f32 %v12391_v6, %v1538_v18  ;;  %2681 = vmatpush.bf16.msra.mxu3 %v2657_v29 }
 0x381   :  { %v1437_v42 = vsub.f32 1.5, %v1436_v2 }
 0x382   :  { %v11042_v9 = vpop.eup %11041  ;;  %v12601_v59 = vadd.f32 1e-05, %v1333_v39  ;;  %v12607_v4 = vadd.f32 %v12428_v41, %v1558_v10  ;;  %3375 = vmatpush.bf16.msrb.mxu0 %v10596_v3 }
 0x383   :  { %v1438_v47 = vmul.f32 %v12576_v5, %v1437_v42  ;;  %v1444_v43 = vmul.f32 %v11042_v9, %v12580_v50  ;;  %v1216_v49 = vpop.xlane.xlu2 %1215  ;;  %vm1450_vm7 = vweird.f32 %v11042_v9 }
 0x384   :  { %11043 = vrsqrt.f32 %v12601_v59  ;;  %v12613_v52 = vmul.f32 0.0078125, %v1216_v49  ;;  %v1897_v63 = vpack.c.bf16 %v12607_v4, %v12604_v19  ;;  %2682 = vmatpush.bf16.msra.mxu3 %v2656_v22  ;;  %vm1451_vm9 = vmor %vm1449_vm8, %vm1450_vm7  ;;  %vm1459_vm11 = vweird.f32 %v12601_v59 }
 0x385   :  { %v1445_v37 = vmul.f32 %v11042_v9, %v1444_v43  ;;  %v1280_v60 = vpop.xlane.xlu1 %1279  ;;  %v1442_v15 = vsel %vm1441_vm6, %v12576_v5, %v1438_v47 }
 0x386   :  { %v1318_v57 = vmul.f32 %v12613_v52, %v12613_v52  ;;  %v1302_v62 = vmul.f32 0.0078125, %v1280_v60  ;;  %1926 = vmatmul.bf16.gmra.mxu3 %v1897_v63  ;;  %v1539_v61 = vmul.f32 %v1442_v15, %v1347_v38 }
 0x387   :  { %v1446_v28 = vmul.f32 0.5, %v1445_v37 }
 0x388   :  { %v1334_v33 = vsub.f32 %v1302_v62, %v1318_v57  ;;  %2683 = vmatpush.bf16.msra.mxu3 %v2655_v45  ;;  %v1559_v27 = vmul.f32 %v12391_v6, %v1539_v61  ;;  %v16519_v45 = vld [vmem:[#allocation11_spill] sm:$0xff] }
 0x389   :  { %v1447_v16 = vsub.f32 1.5, %v1446_v28  ;;  %v1350_v28 = vsub.f32 %v16519_v45, %v12613_v52 }
 0x38a   :  { %v11044_v17 = vpop.eup %11043  ;;  %v1366_v7 = vadd.f32 1e-05, %v1334_v33  ;;  %v12639_v18 = vadd.f32 %v12428_v41, %v1559_v27 }
 0x38b   :  { %v1448_v40 = vmul.f32 %v11042_v9, %v1447_v16  ;;  %v1454_v54 = vmul.f32 %v11044_v17, %v12601_v59  ;;  %v1218_v1 = vpop.xlane.xlu2 %1217  ;;  %vm1460_vm10 = vweird.f32 %v11044_v17  ;;  %v16518_v59 = vld [vmem:[#allocation10_spill] sm:$0xff] }
 0x38c   :  { %11045 = vrsqrt.f32 %v1366_v7  ;;  %v12627_v5 = vmul.f32 0.0078125, %v1218_v1  ;;  %vm1461_vm12 = vmor %vm1459_vm11, %vm1460_vm10  ;;  %v1349_v22 = vsub.f32 %v16518_v59, %v12589_v36  ;;  %vm1469_vm14 = vweird.f32 %v1366_v7 }
 0x38d   :  { %v1455_v11 = vmul.f32 %v11044_v17, %v1454_v54  ;;  %v1282_v48 = vpop.xlane.xlu1 %1281  ;;  %v1452_v32 = vsel %vm1451_vm9, %v11042_v9, %v1448_v40  ;;  %v10588_v9 = vld [vmem:[%s16413_s5 + $0x180] sm:$0xff] }
 0x38e   :  { %v1319_v50 = vmul.f32 %v12627_v5, %v12627_v5  ;;  %v1303_v20 = vmul.f32 0.0078125, %v1282_v48  ;;  %v1540_v8 = vmul.f32 %v1452_v32, %v1348_v21  ;;  %9534 = vmatmul.msk.bf16.vlgmr.msrb.gmra.mxu0 %vm254_vm0, %v10588_v9  ;;  %v16521_v9 = vld [vmem:[#allocation13_spill] sm:$0xff] }
 0x38f   :  { %v1456_v53 = vmul.f32 0.5, %v1455_v11 }
 0x390   :  { %v1335_v56 = vsub.f32 %v1303_v20, %v1319_v50  ;;  %v1560_v24 = vmul.f32 %v12391_v6, %v1540_v8 }
 0x391   :  { %v1457_v51 = vsub.f32 1.5, %v1456_v53 }
 0x392   :  { %v11046_v44 = vpop.eup %11045  ;;  %v12636_v30 = vadd.f32 1e-05, %v1335_v56  ;;  %v12642_v35 = vadd.f32 %v12428_v41, %v1560_v24  ;;  %v10589_v24 = vld [vmem:[%s16413_s5 + $0x188] sm:$0xff] }
 0x393   :  { %v1458_v25 = vmul.f32 %v11044_v17, %v1457_v51  ;;  %v1464_v55 = vmul.f32 %v11046_v44, %v1366_v7  ;;  %v1220_v58 = vpop.xlane.xlu0 %1219  ;;  %vm1470_vm13 = vweird.f32 %v11046_v44 }
 0x394   :  { %11047 = vrsqrt.f32 %v12636_v30  ;;  %v12645_v29 = vmul.f32 0.0078125, %v1220_v58  ;;  %v1898_v2 = vpack.c.bf16 %v12642_v35, %v12639_v18  ;;  %vm1471_vm15 = vmor %vm1469_vm14, %vm1470_vm13  ;;  %vm1479_vm2 = vweird.f32 %v12636_v30 }
 0x395   :  { %v1465_v39 = vmul.f32 %v11046_v44, %v1464_v55  ;;  %v1284_v10 = vpop.xlane.xlu2 %1283  ;;  %v1462_v0 = vsel %vm1461_vm12, %v11044_v17, %v1458_v25  ;;  %v16520_v25 = vld [vmem:[#allocation12_spill] sm:$0xff] }
 0x396   :  { %v1320_v34 = vmul.f32 %v12645_v29, %v12645_v29  ;;  %v1304_v42 = vmul.f32 0.0078125, %v1284_v10  ;;  %1931 = vmatmul.bf16.gmra.mxu3 %v1898_v2  ;;  %v1541_v37 = vmul.f32 %v1462_v0, %v1349_v22  ;;  %v1351_v55 = vsub.f32 %v16520_v25, %v12627_v5 }
 0x397   :  { %v1466_v12 = vmul.f32 0.5, %v1465_v39  ;;  %v1352_v0 = vsub.f32 %v16521_v9, %v12645_v29 }
 0x398   :  { %v1336_v47 = vsub.f32 %v1304_v42, %v1320_v34  ;;  %v1561_v7 = vmul.f32 %v12391_v6, %v1541_v37 }
 0x399   :  { %v1467_v43 = vsub.f32 1.5, %v1466_v12 }
 0x39a   :  { %v11048_v49 = vpop.eup %11047  ;;  %v1368_v63 = vadd.f32 1e-05, %v1336_v47  ;;  %v12671_v21 = vadd.f32 %v12428_v41, %v1561_v7 }
 0x39b   :  { %v1468_v60 = vmul.f32 %v11046_v44, %v1467_v43  ;;  %v1474_v57 = vmul.f32 %v11048_v49, %v12636_v30  ;;  %v1222_v62 = vpop.xlane.xlu0 %1221  ;;  %vm1480_vm1 = vweird.f32 %v11048_v49 }
 0x39c   :  { %11049 = vrsqrt.f32 %v1368_v63  ;;  %v12664_v15 = vmul.f32 0.0078125, %v1222_v62  ;;  %vm1481_vm3 = vmor %vm1479_vm2, %vm1480_vm1  ;;  %vm1489_vm5 = vweird.f32 %v1368_v63 }
 0x39d   :  { %v1472_v36 = vsel %vm1471_vm15, %v11046_v44, %v1468_v60  ;;  %v1475_v14 = vmul.f32 %v11048_v49, %v1474_v57  ;;  %v1286_v38 = vpop.xlane.xlu2 %1285 }
 0x39e   :  { %v1321_v33 = vmul.f32 %v12664_v15, %v12664_v15  ;;  %v1305_v16 = vmul.f32 0.0078125, %v1286_v38  ;;  %v1542_v17 = vmul.f32 %v1472_v36, %v1350_v28  ;;  %9535 = vmatmul.msk.bf16.gmra.mxu0 %vm254_vm0, %v10589_v24 }
 0x39f   :  { %v1476_v61 = vmul.f32 0.5, %v1475_v14 }
 0x3a0   :  { %v1337_v40 = vsub.f32 %v1305_v16, %v1321_v33  ;;  %v1562_v54 = vmul.f32 %v12391_v6, %v1542_v17 }
 0x3a1   :  { %v1477_v1 = vsub.f32 1.5, %v1476_v61 }
 0x3a2   :  { %v11050_v52 = vpop.eup %11049  ;;  %v1369_v26 = vadd.f32 1e-05, %v1337_v40  ;;  %v12674_v11 = vadd.f32 %v12428_v41, %v1562_v54 }
 0x3a3   :  { %v1478_v48 = vmul.f32 %v11048_v49, %v1477_v1  ;;  %v1484_v32 = vmul.f32 %v11050_v52, %v1368_v63  ;;  %v1224_v13 = vpop.xlane.xlu1 %1223  ;;  %vm1490_vm4 = vweird.f32 %v11050_v52  ;;  %v10590_v1 = vld [vmem:[%s16413_s5 + $0x190] sm:$0xff] }
 0x3a4   :  { %11051 = vrsqrt.f32 %v1369_v26  ;;  %v12676_v50 = vmul.f32 0.0078125, %v1224_v13  ;;  %v1899_v20 = vpack.c.bf16 %v12674_v11, %v12671_v21  ;;  %vm1491_vm6 = vmor %vm1489_vm5, %vm1490_vm4  ;;  %vm1499_vm8 = vweird.f32 %v1369_v26 }
 0x3a5   :  { %v1485_v8 = vmul.f32 %v11050_v52, %v1484_v32  ;;  %v1288_v27 = vpop.xlane.xlu0 %1287  ;;  %v1482_v51 = vsel %vm1481_vm3, %v11048_v49, %v1478_v48  ;;  %v16522_v32 = vld [vmem:[#allocation14_spill] sm:$0xff] }
 0x3a6   :  { %v1322_v53 = vmul.f32 %v12676_v50, %v12676_v50  ;;  %v1306_v56 = vmul.f32 0.0078125, %v1288_v27  ;;  %1936 = vmatmul.bf16.gmra.mxu3 %v1899_v20  ;;  %v1543_v10 = vmul.f32 %v1482_v51, %v1351_v55  ;;  %v1353_v13 = vsub.f32 %v16522_v32, %v12664_v15  ;;  %v16523_v51 = vld [vmem:[#allocation15_spill] sm:$0xff] }
 0x3a7   :  { %v1486_v44 = vmul.f32 0.5, %v1485_v8 }
 0x3a8   :  { %v1338_v58 = vsub.f32 %v1306_v56, %v1322_v53  ;;  %v1563_v37 = vmul.f32 %v12391_v6, %v1543_v10 }
 0x3a9   :  { %v1487_v2 = vsub.f32 1.5, %v1486_v44  ;;  %v1354_v44 = vsub.f32 %v16523_v51, %v12676_v50  ;;  %v10607_v51 = vld [vmem:[%s16414_s6 + $0x78] sm:$0xff] }
 0x3aa   :  { %v11052_v30 = vpop.eup %11051  ;;  %v1370_v39 = vadd.f32 1e-05, %v1338_v58  ;;  %v12698_v28 = vadd.f32 %v12428_v41, %v1563_v37  ;;  %3758 = vmatpush.bf16.msrb.mxu1 %v10607_v51 }
 0x3ab   :  { %v1488_v3 = vmul.f32 %v11050_v52, %v1487_v2  ;;  %v1494_v34 = vmul.f32 %v11052_v30, %v1369_v26  ;;  %v1226_v42 = vpop.xlane.xlu1 %1225  ;;  %vm1500_vm7 = vweird.f32 %v11052_v30 }
 0x3ac   :  { %11053 = vrsqrt.f32 %v1370_v39  ;;  %v12691_v12 = vmul.f32 0.0078125, %v1226_v42  ;;  %vm1501_vm9 = vmor %vm1499_vm8, %vm1500_vm7  ;;  %vm1509_vm11 = vweird.f32 %v1370_v39 }
 0x3ad   :  { %v1492_v5 = vsel %vm1491_vm6, %v11050_v52, %v1488_v3  ;;  %v1495_v59 = vmul.f32 %v11052_v30, %v1494_v34  ;;  %v1290_v22 = vpop.xlane.xlu0 %1289 }
 0x3ae   :  { %v1323_v47 = vmul.f32 %v12691_v12, %v12691_v12  ;;  %v1307_v43 = vmul.f32 0.0078125, %v1290_v22  ;;  %v1544_v49 = vmul.f32 %v1492_v5, %v1352_v0  ;;  %9536 = vmatmul.msk.bf16.gmra.mxu0 %vm254_vm0, %v10590_v1  ;;  %v10591_v5 = vld [vmem:[%s16413_s5 + $0x198] sm:$0xff] }
 0x3af   :  { %v1496_v63 = vmul.f32 0.5, %v1495_v59 }
 0x3b0   :  { %v1339_v60 = vsub.f32 %v1307_v43, %v1323_v47  ;;  %v1564_v57 = vmul.f32 %v12391_v6, %v1544_v49  ;;  %v16524_v47 = vld [vmem:[#allocation16_spill] sm:$0xff] }
 0x3b1   :  { %v1497_v62 = vsub.f32 1.5, %v1496_v63  ;;  %v1355_v43 = vsub.f32 %v16524_v47, %v12691_v12  ;;  %v10599_v47 = vld [vmem:[%s16413_s5 + $0x1c8] sm:$0xff] }
 0x3b2   :  { %v11054_v29 = vpop.eup %11053  ;;  %v1371_v45 = vadd.f32 1e-05, %v1339_v60  ;;  %v12701_v36 = vadd.f32 %v12428_v41, %v1564_v57  ;;  %v16525_v60 = vld [vmem:[#allocation17_spill] sm:$0xff] }
 0x3b3   :  { %v1498_v14 = vmul.f32 %v11052_v30, %v1497_v62  ;;  %v1504_v38 = vmul.f32 %v11054_v29, %v1370_v39  ;;  %v1228_v33 = vpop.xlane.xlu2 %1227  ;;  %vm1510_vm10 = vweird.f32 %v11054_v29 }
 0x3b4   :  { %11055 = vrsqrt.f32 %v1371_v45  ;;  %v1244_v16 = vmul.f32 0.0078125, %v1228_v33  ;;  %v1900_v17 = vpack.c.bf16 %v12701_v36, %v12698_v28  ;;  %vm1511_vm12 = vmor %vm1509_vm11, %vm1510_vm10  ;;  %vm1519_vm14 = vweird.f32 %v1371_v45 }
 0x3b5   :  { %v1505_v7 = vmul.f32 %v11054_v29, %v1504_v38  ;;  %v1292_v61 = vpop.xlane.xlu1 %1291  ;;  %v1502_v52 = vsel %vm1501_vm9, %v11052_v30, %v1498_v14 }
 0x3b6   :  { %v1324_v40 = vmul.f32 %v1244_v16, %v1244_v16  ;;  %v1308_v54 = vmul.f32 0.0078125, %v1292_v61  ;;  %1941 = vmatmul.bf16.gmra.mxu3 %v1900_v17  ;;  %v1545_v53 = vmul.f32 %v1502_v52, %v1353_v13  ;;  %v1356_v57 = vsub.f32 %v16525_v60, %v1244_v16  ;;  %v10592_v16 = vld [vmem:[%s16413_s5 + $0x1a0] sm:$0xff] }
 0x3b7   :  { %v1506_v48 = vmul.f32 0.5, %v1505_v7 }
 0x3b8   :  { %v1340_v20 = vsub.f32 %v1308_v54, %v1324_v40  ;;  %v1565_v15 = vmul.f32 %v12391_v6, %v1545_v53 }
 0x3b9   :  { %v1507_v8 = vsub.f32 1.5, %v1506_v48  ;;  %v10594_v48 = vld [vmem:[%s16413_s5 + $0x1b0] sm:$0xff] }
 0x3ba   :  { %v11056_v27 = vpop.eup %11055  ;;  %v1372_v26 = vadd.f32 1e-05, %v1340_v20  ;;  %v12716_v34 = vadd.f32 %v12428_v41, %v1565_v15 }
 0x3bb   :  { %v1508_v56 = vmul.f32 %v11054_v29, %v1507_v8  ;;  %v1514_v24 = vmul.f32 %v11056_v27, %v1371_v45  ;;  %vm1520_vm13 = vweird.f32 %v11056_v27 }
 0x3bc   :  { %11057 = vrsqrt.f32 %v1372_v26  ;;  %vm1521_vm15 = vmor %vm1519_vm14, %vm1520_vm13  ;;  %vm1529_vm2 = vweird.f32 %v1372_v26 }
 0x3bd   :  { %v1512_v25 = vsel %vm1511_vm12, %v11054_v29, %v1508_v56  ;;  %v1515_v55 = vmul.f32 %v11056_v27, %v1514_v24  ;;  %v10595_v56 = vld [vmem:[%s16413_s5 + $0x1b8] sm:$0xff] }
 0x3be   :  { %v1546_v58 = vmul.f32 %v1512_v25, %v1354_v44  ;;  %9537 = vmatmul.msk.bf16.gmra.mxu0 %vm254_vm0, %v10591_v5 }
 0x3bf   :  { %v1516_v2 = vmul.f32 0.5, %v1515_v55 }
 0x3c0   :  { %v1566_v30 = vmul.f32 %v12391_v6, %v1546_v58 }
 0x3c1   :  { %v1517_v10 = vsub.f32 1.5, %v1516_v2  ;;  %v10606_v2 = vld [vmem:[%s16414_s6 + $0x70] sm:$0xff] }
 0x3c2   :  { %v11058_v3 = vpop.eup %11057  ;;  %v12719_v39 = vadd.f32 %v12428_v41, %v1566_v30  ;;  %v10598_v30 = vld [vmem:[%s16413_s5 + $0x1c0] sm:$0xff]  ;;  %3759 = vmatpush.bf16.msrb.mxu1 %v10606_v2 }
 0x3c3   :  { %v1518_v42 = vmul.f32 %v11056_v27, %v1517_v10  ;;  %v1524_v50 = vmul.f32 %v11058_v3, %v1372_v26  ;;  %vm1530_vm1 = vweird.f32 %v11058_v3 }
 0x3c4   :  { %v1901_v9 = vpack.c.bf16 %v12719_v39, %v12716_v34  ;;  %vm1531_vm3 = vmor %vm1529_vm2, %vm1530_vm1 }
 0x3c5   :  { %v1525_v0 = vmul.f32 %v11058_v3, %v1524_v50  ;;  %v1522_v59 = vsel %vm1521_vm15, %v11056_v27, %v1518_v42  ;;  %9623 = vmatmul.msk.bf16.vlgmr.msrb.gmra.mxu1 %vm254_vm0, %v10598_v30 }
 0x3c6   :  { %1946 = vmatmul.bf16.gmra.mxu3 %v1901_v9  ;;  %v1547_v37 = vmul.f32 %v1522_v59, %v1355_v43 }
 0x3c7   :  { %v1526_v22 = vmul.f32 0.5, %v1525_v0 }
 0x3c8   :  { %v1567_v45 = vmul.f32 %v12391_v6, %v1547_v37 }
 0x3c9   :  { %v1527_v49 = vsub.f32 1.5, %v1526_v22 }
 0x3ca   :  { %v12733_v38 = vadd.f32 %v12428_v41, %v1567_v45 }
 0x3cb   :  { %v1528_v63 = vmul.f32 %v11058_v3, %v1527_v49 }
 0x3cd   :  { %v1532_v62 = vsel %vm1531_vm3, %v11058_v3, %v1528_v63 }
 0x3ce   :  { %v1548_v29 = vmul.f32 %v1532_v62, %v1356_v57  ;;  %9538 = vmatmul.msk.bf16.gmra.mxu0 %vm254_vm0, %v10592_v16 }
 0x3d0   :  { %v1568_v14 = vmul.f32 %v12391_v6, %v1548_v29  ;;  %v10593_v6 = vld [vmem:[%s16413_s5 + $0x1a8] sm:$0xff] }
 0x3d2   :  { %v12736_v12 = vadd.f32 %v12428_v41, %v1568_v14  ;;  %v12751_v41 = vld [vmem:[%s16412_s4 + $0x3] ss:$0 sm:$0xff]  ;;  %v10600_v14 = vld [vmem:[%s16413_s5 + $0x1d0] sm:$0xff] }
 0x3d4   :  { %v1902_v33 = vpack.c.bf16 %v12736_v12, %v12733_v38 }
 0x3d5   :  { %9624 = vmatmul.msk.bf16.gmra.mxu1 %vm254_vm0, %v10599_v47  ;;  %v9457_v47 = vld [vmem:[%s16409_s1 + $0xd8] sm:$0xff] }
 0x3d6   :  { %1951 = vmatmul.bf16.gmra.mxu3 %v1902_v33 }
 0x3de   :  { %9539 = vmatmul.msk.bf16.gmra.mxu0 %vm254_vm0, %v10593_v6 }
 0x3e5   :  { %9625 = vmatmul.msk.bf16.gmra.mxu1 %vm254_vm0, %v10600_v14 }
 0x3e9   :  { %v1917_v17 = vpop.f32.mrf.mxu3 }
 0x3ea   :  { %v1918_v7 = vadd.f32 %v12751_v41, %v1917_v17 }
 0x3ec   :  { %v1957_v54 = vmax.f32 %v1918_v7, 0.0 }
 0x3ee   :  { %9540 = vmatmul.msk.bf16.gmra.mxu0 %vm254_vm0, %v10594_v48 }
 0x3f1   :  { %v1919_v61 = vpop.f32.mrf.mxu3 }
 0x3f2   :  { %v1920_v40 = vadd.f32 %v12751_v41, %v1919_v61 }
 0x3f4   :  { %v1958_v1 = vmax.f32 %v1920_v40, 0.0 }
 0x3f6   :  { %v2279_v52 = vpack.c.bf16 %v1958_v1, %v1957_v54 }
 0x3f8   :  { %2300 = vmatmul.bf16.vlgmr.msra.gmra.mxu2 %v2279_v52  ;;  %v10601_v52 = vld [vmem:[%s16413_s5 + $0x1d8] sm:$0xff] }
 0x3f9   :  { %v1922_v32 = vpop.f32.mrf.mxu3  ;;  %9626 = vmatmul.msk.bf16.gmra.mxu1 %vm254_vm0, %v10601_v52 }
 0x3fa   :  { %v1923_v13 = vadd.f32 %v12751_v41, %v1922_v32 }
 0x3fc   :  { %v1959_v27 = vmax.f32 %v1923_v13, 0.0 }
 0x3fe   :  { %9541 = vmatmul.msk.bf16.gmra.mxu0 %vm254_vm0, %v10595_v56 }
 0x401   :  { %v1924_v20 = vpop.f32.mrf.mxu3 }
 0x402   :  { %v1925_v8 = vadd.f32 %v12751_v41, %v1924_v20 }
 0x404   :  { %v1960_v26 = vmax.f32 %v1925_v8, 0.0 }
 0x406   :  { %v2280_v53 = vpack.c.bf16 %v1960_v26, %v1959_v27 }
 0x408   :  { %2305 = vmatmul.bf16.gmra.mxu2 %v2280_v53 }
 0x409   :  { %v1927_v24 = vpop.f32.mrf.mxu3 }
 0x40a   :  { %v1928_v44 = vadd.f32 %v12751_v41, %v1927_v24  ;;  %v10602_v24 = vld [vmem:[%s16413_s5 + $0x1e0] sm:$0xff] }
 0x40b   :  { %v12776_v3 = vpop.f32.mrf.mxu0  ;;  %9627 = vmatmul.msk.bf16.gmra.mxu1 %vm254_vm0, %v10602_v24  ;;  %v9455_v24 = vld [vmem:[%s16409_s1 + $0xc8] sm:$0xff] }
 0x40c   :  { %v1961_v58 = vmax.f32 %v1928_v44, 0.0 }
 0x411   :  { %v1929_v25 = vpop.f32.mrf.mxu3 }
 0x412   :  { %v1930_v55 = vadd.f32 %v12751_v41, %v1929_v25 }
 0x413   :  { %v12779_v50 = vpop.f32.mrf.mxu0 }
 0x414   :  { %v1962_v15 = vmax.f32 %v1930_v55, 0.0 }
 0x416   :  { %v2281_v10 = vpack.c.bf16 %v1962_v15, %v1961_v58 }
 0x418   :  { %2310 = vmatmul.bf16.gmra.mxu2 %v2281_v10 }
 0x419   :  { %v1932_v42 = vpop.f32.mrf.mxu3 }
 0x41a   :  { %v1933_v9 = vadd.f32 %v12751_v41, %v1932_v42 }
 0x41b   :  { %v12786_v49 = vpop.f32.mrf.mxu0 }
 0x41c   :  { %v1963_v59 = vmax.f32 %v1933_v9, 0.0 }
 0x421   :  { %v1934_v0 = vpop.f32.mrf.mxu3 }
 0x422   :  { %v1935_v5 = vadd.f32 %v12751_v41, %v1934_v0  ;;  %v10603_v0 = vld [vmem:[%s16413_s5 + $0x1e8] sm:$0xff] }
 0x423   :  { %v12789_v63 = vpop.f32.mrf.mxu0  ;;  %9628 = vmatmul.msk.bf16.gmra.mxu1 %vm254_vm0, %v10603_v0 }
 0x424   :  { %v1964_v22 = vmax.f32 %v1935_v5, 0.0 }
 0x426   :  { %v2282_v43 = vpack.c.bf16 %v1964_v22, %v1963_v59  ;;  %v10604_v59 = vld [vmem:[%s16413_s5 + $0x1f0] sm:$0xff] }
 0x428   :  { %2315 = vmatmul.bf16.gmra.mxu2 %v2282_v43  ;;  %v12843_v43 = vld [vmem:[%s16412_s4 + $0x4] ss:$0 sm:$0xff] }
 0x429   :  { %v1937_v37 = vpop.f32.mrf.mxu3 }
 0x42a   :  { %v1938_v60 = vadd.f32 %v12751_v41, %v1937_v37  ;;  %v3154_v37 = vunpack.c.2.s8 %v9457_v47 }
 0x42b   :  { %v12796_v16 = vpop.f32.mrf.mxu0 }
 0x42c   :  { %v1965_v29 = vmax.f32 %v1938_v60, 0.0 }
 0x431   :  { %v1939_v57 = vpop.f32.mrf.mxu3 }
 0x432   :  { %v1940_v62 = vadd.f32 %v12751_v41, %v1939_v57  ;;  %v9456_v57 = vld [vmem:[%s16409_s1 + $0xd0] sm:$0xff] }
 0x433   :  { %v12799_v17 = vpop.f32.mrf.mxu0  ;;  %9629 = vmatmul.msk.bf16.gmra.mxu1 %vm254_vm0, %v10604_v59 }
 0x434   :  { %v1966_v45 = vmax.f32 %v1940_v62, 0.0  ;;  %v3152_v62 = vunpack.c.0.s8 %v9457_v47 }
 0x436   :  { %v2283_v33 = vpack.c.bf16 %v1966_v45, %v1965_v29  ;;  %v3153_v29 = vunpack.c.1.s8 %v9457_v47  ;;  %v3155_v45 = vunpack.c.3.s8 %v9457_v47  ;;  %v3146_v47 = vunpack.c.2.s8 %v9455_v24 }
 0x438   :  { %2320 = vmatmul.bf16.gmra.mxu2 %v2283_v33  ;;  %v3170_v33 = vcvt.s32.f32 %v3154_v37 }
 0x439   :  { %v1942_v6 = vpop.f32.mrf.mxu3 }
 0x43a   :  { %v1943_v7 = vadd.f32 %v12751_v41, %v1942_v6  ;;  %v10828_v6 = vld [vmem:[%s16410_s2 + $0x37] ss:$0 sm:$0xff] }
 0x43b   :  { %v12806_v32 = vpop.f32.mrf.mxu0 }
 0x43c   :  { %v1967_v54 = vmax.f32 %v1943_v7, 0.0  ;;  %v3150_v7 = vunpack.c.2.s8 %v9456_v57 }
 0x441   :  { %v1944_v61 = vpop.f32.mrf.mxu3 }
 0x442   :  { %v1945_v40 = vadd.f32 %v12751_v41, %v1944_v61  ;;  %v3151_v61 = vunpack.c.3.s8 %v9456_v57 }
 0x443   :  { %v12809_v20 = vpop.f32.mrf.mxu0 }
 0x444   :  { %v1968_v1 = vmax.f32 %v1945_v40, 0.0 }
 0x446   :  { %v2284_v48 = vpack.c.bf16 %v1968_v1, %v1967_v54  ;;  %v3168_v54 = vcvt.s32.f32 %v3152_v62  ;;  %v10826_v1 = vld [vmem:[%s16410_s2 + $0x36] ss:$0 sm:$0xff] }
 0x448   :  { %2325 = vmatmul.bf16.gmra.mxu2 %v2284_v48  ;;  %v3169_v48 = vcvt.s32.f32 %v3153_v29  ;;  %v10821_v29 = vld [vmem:[%s16410_s2 + $0x34] ss:$0 sm:$0xff] }
 0x449   :  { %v1947_v13 = vpop.f32.mrf.mxu3 }
 0x44a   :  { %v1948_v8 = vadd.f32 %v12751_v41, %v1947_v13  ;;  %v3171_v13 = vcvt.s32.f32 %v3155_v45  ;;  %v3218_v59 = vmul.f32 %v10826_v1, %v3169_v48  ;;  %v3145_v48 = vunpack.c.1.s8 %v9455_v24 }
 0x44b   :  { %v12816_v44 = vpop.f32.mrf.mxu0 }
 0x44c   :  { %v1969_v53 = vmax.f32 %v1948_v8, 0.0 }
 0x451   :  { %v1949_v27 = vpop.f32.mrf.mxu3 }
 0x452   :  { %v1950_v26 = vadd.f32 %v12751_v41, %v1949_v27 }
 0x453   :  { %v12819_v55 = vpop.f32.mrf.mxu0 }
 0x454   :  { %v1970_v56 = vmax.f32 %v1950_v26, 0.0  ;;  %v3219_v26 = vmul.f32 %v10828_v6, %v3170_v33  ;;  %v10824_v33 = vld [vmem:[%s16411_s3 + $0x35] ss:$0 sm:$0xff] }
 0x456   :  { %v2285_v51 = vpack.c.bf16 %v1970_v56, %v1969_v53  ;;  %v10829_v53 = vld [vmem:[%s16411_s3 + $0x37] ss:$0 sm:$0xff]  ;;  %v10605_v56 = vld [vmem:[%s16413_s5 + $0x1f8] sm:$0xff] }
 0x457   :  { %v3268_v37 = vadd.f32 %v10829_v53, %v3219_v26  ;;  %9630 = vmatmul.msk.bf16.gmra.mxu1 %vm254_vm0, %v10605_v56 }
 0x458   :  { %2330 = vmatmul.bf16.gmra.mxu2 %v2285_v51  ;;  %v3148_v51 = vunpack.c.0.s8 %v9456_v57 }
 0x459   :  { %v1952_v25 = vpop.f32.mrf.mxu3 }
 0x45a   :  { %v1953_v58 = vadd.f32 %v12751_v41, %v1952_v25  ;;  %v3149_v25 = vunpack.c.1.s8 %v9456_v57  ;;  %v3147_v57 = vunpack.c.3.s8 %v9455_v24  ;;  %v3164_v62 = vcvt.s32.f32 %v3148_v51  ;;  %v10822_v51 = vld [vmem:[%s16411_s3 + $0x34] ss:$0 sm:$0xff] }
 0x45b   :  { %v12823_v9 = vpop.f32.mrf.mxu0 }
 0x45c   :  { %v1971_v30 = vmax.f32 %v1953_v58, 0.0  ;;  %v3166_v58 = vcvt.s32.f32 %v3150_v7  ;;  %v3165_v45 = vcvt.s32.f32 %v3149_v25  ;;  %v3163_v26 = vcvt.s32.f32 %v3147_v57 }
 0x45d   :  { %v3213_v56 = vmul.f32 %v10821_v29, %v3164_v62  ;;  %v10820_v62 = vld [vmem:[%s16411_s3 + $0x33] ss:$0 sm:$0xff] }
 0x45e   :  { %v3214_v25 = vmul.f32 %v10821_v29, %v3165_v45 }
 0x461   :  { %v1954_v15 = vpop.f32.mrf.mxu3 }
 0x462   :  { %v1955_v2 = vadd.f32 %v12751_v41, %v1954_v15  ;;  %v10823_v15 = vld [vmem:[%s16410_s2 + $0x35] ss:$0 sm:$0xff] }
 0x463   :  { %v12829_v5 = vpop.f32.mrf.mxu0 }
 0x464   :  { %v1972_v10 = vmax.f32 %v1955_v2, 0.0  ;;  %v3167_v2 = vcvt.s32.f32 %v3151_v61 }
 0x466   :  { %v2286_v42 = vpack.c.bf16 %v1972_v10, %v1971_v30  ;;  %v3217_v10 = vmul.f32 %v10826_v1, %v3168_v54  ;;  %v3216_v61 = vmul.f32 %v10823_v15, %v3167_v2  ;;  %v9454_v1 = vld [vmem:[%s16409_s1 + $0xc0] sm:$0xff] }
 0x468   :  { %2335 = vmatmul.bf16.gmra.mxu2 %v2286_v42  ;;  %v10827_v42 = vld [vmem:[%s16411_s3 + $0x36] ss:$0 sm:$0xff] }
 0x46b   :  { %v12834_v22 = vpop.f32.mrf.mxu0 }
 0x473   :  { %v3409_v60 = vpop.f32.mrf.mxu0 }
 0x47b   :  { %v2301_v41 = vpop.f32.mrf.mxu2  ;;  %v3412_v30 = vpop.f32.mrf.mxu0 }
 0x47c   :  { %v2302_v14 = vadd.f32 %v12843_v43, %v2301_v41  ;;  %v3220_v41 = vmul.f32 %v10828_v6, %v3171_v13  ;;  %v3266_v6 = vadd.f32 %v10827_v42, %v3217_v10  ;;  %v3162_v13 = vcvt.s32.f32 %v3146_v47 }
 0x47e   :  { %v2341_v8 = vmax.f32 %v2302_v14, 0.0  ;;  %v3215_v14 = vmul.f32 %v10823_v15, %v3166_v58  ;;  %v3269_v54 = vadd.f32 %v10829_v53, %v3220_v41  ;;  %v3265_v15 = vadd.f32 %v10824_v33, %v3216_v61 }
 0x47f   :  { %v3429_v2 = vadd.f32 %v12834_v22, %v3266_v6  ;;  %v3262_v22 = vadd.f32 %v10822_v51, %v3213_v56  ;;  %v3140_v6 = vunpack.c.0.s8 %v9454_v1 }
 0x480   :  { %v3264_v53 = vadd.f32 %v10824_v33, %v3215_v14  ;;  %v3428_v33 = vadd.f32 %v12829_v5, %v3265_v15 }
 0x481   :  { %v3156_v15 = vcvt.s32.f32 %v3140_v6 }
 0x482   :  { %v3427_v14 = vadd.f32 %v12823_v9, %v3264_v53  ;;  %v10818_v9 = vld [vmem:[%s16411_s3 + $0x32] ss:$0 sm:$0xff] }
 0x483   :  { %v2303_v40 = vpop.f32.mrf.mxu2  ;;  %v3414_v58 = vpop.f32.mrf.mxu0 }
 0x484   :  { %v2304_v52 = vadd.f32 %v12843_v43, %v2303_v40  ;;  %v3267_v40 = vadd.f32 %v10827_v42, %v3218_v59  ;;  %v3142_v42 = vunpack.c.2.s8 %v9454_v1  ;;  %v3161_v59 = vcvt.s32.f32 %v3145_v48 }
 0x485   :  { %v3438_v53 = vpack.c.bf16 %v3428_v33, %v3427_v14 }
 0x486   :  { %v2342_v27 = vmax.f32 %v2304_v52, 0.0  ;;  %v3144_v52 = vunpack.c.0.s8 %v9455_v24  ;;  %v3430_v10 = vadd.f32 %v3409_v60, %v3267_v40  ;;  %v3432_v24 = vadd.f32 %v3414_v58, %v3269_v54 }
 0x487   :  { %v3263_v60 = vadd.f32 %v10822_v51, %v3214_v25  ;;  %v3141_v40 = vunpack.c.1.s8 %v9454_v1  ;;  %v3158_v54 = vcvt.s32.f32 %v3142_v42  ;;  %v10816_v42 = vld [vmem:[%s16411_s3 + $0x31] ss:$0 sm:$0xff] }
 0x488   :  { %v2663_v0 = vpack.c.bf16 %v2342_v27, %v2341_v8  ;;  %v3431_v8 = vadd.f32 %v3412_v30, %v3268_v37  ;;  %v10819_v27 = vld [vmem:[%s16410_s2 + $0x33] ss:$0 sm:$0xff]  ;;  %v3143_v30 = vunpack.c.3.s8 %v9454_v1  ;;  %v10817_v37 = vld [vmem:[%s16410_s2 + $0x32] ss:$0 sm:$0xff]  ;;  %v3439_v61 = vpack.c.bf16 %v3430_v10, %v3429_v2  ;;  %v10813_v2 = vld [vmem:[%s16410_s2 + $0x30] ss:$0 sm:$0xff] }
 0x489   :  { %v3211_v57 = vmul.f32 %v10819_v27, %v3162_v13  ;;  %v3212_v29 = vmul.f32 %v10819_v27, %v3163_v26  ;;  %v10815_v27 = vld [vmem:[%s16410_s2 + $0x31] ss:$0 sm:$0xff]  ;;  %v3210_v5 = vmul.f32 %v10817_v37, %v3161_v59  ;;  %v3425_v1 = vadd.f32 %v12816_v44, %v3262_v22 }
 0x48a   :  { %2684 = vmatmul.bf16.vlgmr.msra.gmra.mxu3 %v2663_v0  ;;  %v3160_v0 = vcvt.s32.f32 %v3144_v52  ;;  %v3440_v47 = vpack.c.bf16 %v3432_v24, %v3431_v8  ;;  %v3159_v52 = vcvt.s32.f32 %v3143_v30  ;;  %v12898_v8 = vpop.f32.mrf.mxu1  ;;  %v3426_v25 = vadd.f32 %v12819_v55, %v3263_v60 }
 0x48b   :  { %v2306_v7 = vpop.f32.mrf.mxu2  ;;  %v3260_v56 = vadd.f32 %v10820_v62, %v3211_v57  ;;  %v3261_v51 = vadd.f32 %v10820_v62, %v3212_v29  ;;  %v3157_v10 = vcvt.s32.f32 %v3141_v40  ;;  %v3207_v24 = vmul.f32 %v10815_v27, %v3158_v54  ;;  %v10617_v57 = vld [vmem:[%s16414_s6 + $0x88] sm:$0xff]  ;;  %v10814_v29 = vld [vmem:[%s16411_s3 + $0x30] ss:$0 sm:$0xff] }
 0x48c   :  { %v2307_v41 = vadd.f32 %v12843_v43, %v2306_v7  ;;  %3454 = vmatpush.bf16.msrb.mxu2 %v3440_v47  ;;  %v3209_v26 = vmul.f32 %v10817_v37, %v3160_v0  ;;  %v3208_v30 = vmul.f32 %v10815_v27, %v3159_v52  ;;  %v3259_v59 = vadd.f32 %v10818_v9, %v3210_v5 }
 0x48d   :  { %v3423_v55 = vadd.f32 %v12806_v32, %v3260_v56  ;;  %v3437_v47 = vpack.c.bf16 %v3426_v25, %v3425_v1  ;;  %v3205_v62 = vmul.f32 %v10813_v2, %v3156_v15  ;;  %v3206_v22 = vmul.f32 %v10813_v2, %v3157_v10  ;;  %4142 = vmatpush.bf16.msra.mxu0 %v10617_v57  ;;  %v10609_v2 = vld [vmem:[%s16413_s5 + $0x208] sm:$0xff] }
 0x48e   :  { %v2343_v48 = vmax.f32 %v2307_v41, 0.0  ;;  %v3258_v0 = vadd.f32 %v10818_v9, %v3209_v26  ;;  %v3424_v41 = vadd.f32 %v12809_v20, %v3261_v51  ;;  %v3256_v60 = vadd.f32 %v10816_v42, %v3207_v24 }
 0x48f   :  { %v3422_v20 = vadd.f32 %v12799_v17, %v3259_v59  ;;  %v10616_v17 = vld [vmem:[%s16414_s6 + $0x80] sm:$0xff] }
 0x490   :  { %3455 = vmatpush.bf16.msrb.mxu2 %v3439_v61  ;;  %v3421_v32 = vadd.f32 %v12796_v16, %v3258_v0  ;;  %v3436_v14 = vpack.c.bf16 %v3424_v41, %v3423_v55  ;;  %v3254_v61 = vadd.f32 %v10814_v29, %v3205_v62  ;;  %v3419_v40 = vadd.f32 %v12786_v49, %v3256_v60  ;;  %v10608_v49 = vld [vmem:[%s16413_s5 + $0x200] sm:$0xff] }
 0x491   :  { %4143 = vmatpush.bf16.msra.mxu0 %v10616_v17  ;;  %v10612_v17 = vld [vmem:[%s16413_s5 + $0x220] sm:$0xff] }
 0x492   :  { %v12916_v37 = vpop.f32.mrf.mxu1  ;;  %v3435_v52 = vpack.c.bf16 %v3422_v20, %v3421_v32  ;;  %v3417_v26 = vadd.f32 %v12776_v3, %v3254_v61 }
 0x493   :  { %v2308_v45 = vpop.f32.mrf.mxu2 }
 0x494   :  { %v2309_v7 = vadd.f32 %v12843_v43, %v2308_v45  ;;  %3456 = vmatpush.bf16.msrb.mxu2 %v3438_v53  ;;  %v3257_v45 = vadd.f32 %v10816_v42, %v3208_v30  ;;  %9712 = vmatmul.msk.bf16.vlgmr.msra.gmra.mxu0 %vm254_vm0, %v10608_v49 }
 0x496   :  { %v2344_v13 = vmax.f32 %v2309_v7, 0.0  ;;  %v3255_v7 = vadd.f32 %v10814_v29, %v3206_v22  ;;  %v3420_v54 = vadd.f32 %v12789_v63, %v3257_v45 }
 0x498   :  { %v2664_v58 = vpack.c.bf16 %v2344_v13, %v2343_v48  ;;  %3457 = vmatpush.bf16.msrb.mxu2 %v3437_v47  ;;  %v3418_v63 = vadd.f32 %v12779_v50, %v3255_v7  ;;  %v3434_v9 = vpack.c.bf16 %v3420_v54, %v3419_v40  ;;  %v10610_v47 = vld [vmem:[%s16413_s5 + $0x210] sm:$0xff] }
 0x49a   :  { %2689 = vmatmul.bf16.gmra.mxu3 %v2664_v58  ;;  %v12930_v27 = vpop.f32.mrf.mxu1  ;;  %v3433_v51 = vpack.c.bf16 %v3418_v63, %v3417_v26 }
 0x49b   :  { %v2311_v44 = vpop.f32.mrf.mxu2 }
 0x49c   :  { %v2312_v33 = vadd.f32 %v12843_v43, %v2311_v44  ;;  %3458 = vmatpush.bf16.msrb.mxu2 %v3436_v14 }
 0x49e   :  { %v2345_v13 = vmax.f32 %v2312_v33, 0.0  ;;  %v10611_v33 = vld [vmem:[%s16413_s5 + $0x218] sm:$0xff] }
 0x4a0   :  { %3459 = vmatpush.bf16.msrb.mxu2 %v3435_v52 }
 0x4a2   :  { %v12941_v1 = vpop.f32.mrf.mxu1 }
 0x4a3   :  { %v2313_v6 = vpop.f32.mrf.mxu2 }
 0x4a4   :  { %v2314_v48 = vadd.f32 %v12843_v43, %v2313_v6  ;;  %3460 = vmatpush.bf16.msrb.mxu2 %v3434_v9  ;;  %9713 = vmatmul.msk.bf16.gmra.mxu0 %vm254_vm0, %v10609_v2 }
 0x4a6   :  { %v2346_v16 = vmax.f32 %v2314_v48, 0.0 }
 0x4a8   :  { %v2665_v5 = vpack.c.bf16 %v2346_v16, %v2345_v13  ;;  %3461 = vmatpush.bf16.msrb.mxu2 %v3433_v51 }
 0x4aa   :  { %2694 = vmatmul.bf16.gmra.mxu3 %v2665_v5  ;;  %v12945_v15 = vpop.f32.mrf.mxu1 }
 0x4ab   :  { %v2316_v56 = vpop.f32.mrf.mxu2 }
 0x4ac   :  { %v2317_v3 = vadd.f32 %v12843_v43, %v2316_v56 }
 0x4ae   :  { %v2347_v58 = vmax.f32 %v2317_v3, 0.0 }
 0x4b2   :  { %v12951_v42 = vpop.f32.mrf.mxu1 }
 0x4b3   :  { %v2318_v25 = vpop.f32.mrf.mxu2 }
 0x4b4   :  { %v2319_v53 = vadd.f32 %v12843_v43, %v2318_v25  ;;  %9714 = vmatmul.msk.bf16.gmra.mxu0 %vm254_vm0, %v10610_v47 }
 0x4b6   :  { %v2348_v50 = vmax.f32 %v2319_v53, 0.0 }
 0x4b8   :  { %v2666_v10 = vpack.c.bf16 %v2348_v50, %v2347_v58  ;;  %v10613_v58 = vld [vmem:[%s16413_s5 + $0x228] sm:$0xff]  ;;  %v9546_v50 = vld [vmem:[%s16409_s1 + $0xf8] sm:$0xff] }
 0x4ba   :  { %2699 = vmatmul.bf16.gmra.mxu3 %v2666_v10  ;;  %v12955_v41 = vpop.f32.mrf.mxu1  ;;  %v3536_v10 = vunpack.c.0.s8 %v9546_v50 }
 0x4bb   :  { %v2321_v24 = vpop.f32.mrf.mxu2 }
 0x4bc   :  { %v2322_v30 = vadd.f32 %v12843_v43, %v2321_v24  ;;  %v3537_v24 = vunpack.c.1.s8 %v9546_v50  ;;  %v3552_v47 = vcvt.s32.f32 %v3536_v10 }
 0x4be   :  { %v2349_v59 = vmax.f32 %v2322_v30, 0.0  ;;  %v3538_v30 = vunpack.c.2.s8 %v9546_v50 }
 0x4c2   :  { %v12961_v29 = vpop.f32.mrf.mxu1 }
 0x4c3   :  { %v2323_v0 = vpop.f32.mrf.mxu2 }
 0x4c4   :  { %v2324_v44 = vadd.f32 %v12843_v43, %v2323_v0  ;;  %9715 = vmatmul.msk.bf16.gmra.mxu0 %vm254_vm0, %v10611_v33  ;;  %v3554_v0 = vcvt.s32.f32 %v3538_v30 }
 0x4c6   :  { %v2350_v55 = vmax.f32 %v2324_v44, 0.0  ;;  %v10845_v44 = vld [vmem:[%s16410_s2 + $0x3f] ss:$0 sm:$0xff] }
 0x4c8   :  { %v2667_v57 = vpack.c.bf16 %v2350_v55, %v2349_v59 }
 0x4ca   :  { %2704 = vmatmul.bf16.gmra.mxu3 %v2667_v57  ;;  %v12965_v14 = vpop.f32.mrf.mxu1  ;;  %v10843_v57 = vld [vmem:[%s16410_s2 + $0x3e] ss:$0 sm:$0xff] }
 0x4cb   :  { %v2326_v62 = vpop.f32.mrf.mxu2 }
 0x4cc   :  { %v2327_v22 = vadd.f32 %v12843_v43, %v2326_v62  ;;  %v3553_v62 = vcvt.s32.f32 %v3537_v24 }
 0x4ce   :  { %v2351_v32 = vmax.f32 %v2327_v22, 0.0  ;;  %v9544_v22 = vld [vmem:[%s16409_s1 + $0xe8] sm:$0xff] }
 0x4d2   :  { %v12971_v6 = vpop.f32.mrf.mxu1 }
 0x4d3   :  { %v2328_v60 = vpop.f32.mrf.mxu2 }
 0x4d4   :  { %v2329_v45 = vadd.f32 %v12843_v43, %v2328_v60  ;;  %9716 = vmatmul.msk.bf16.gmra.mxu0 %vm254_vm0, %v10612_v17  ;;  %v3603_v60 = vmul.f32 %v10845_v44, %v3554_v0  ;;  %v3539_v17 = vunpack.c.3.s8 %v9546_v50  ;;  %v10841_v50 = vld [vmem:[%s16411_s3 + $0x3d] ss:$0 sm:$0xff]  ;;  %v3528_v0 = vunpack.c.0.s8 %v9544_v22 }
 0x4d6   :  { %v2352_v20 = vmax.f32 %v2329_v45, 0.0  ;;  %v10846_v45 = vld [vmem:[%s16411_s3 + $0x3f] ss:$0 sm:$0xff] }
 0x4d8   :  { %v2668_v61 = vpack.c.bf16 %v2352_v20, %v2351_v32 }
 0x4da   :  { %2709 = vmatmul.bf16.gmra.mxu3 %v2668_v61  ;;  %v12975_v16 = vpop.f32.mrf.mxu1  ;;  %v10840_v61 = vld [vmem:[%s16410_s2 + $0x3d] ss:$0 sm:$0xff] }
 0x4db   :  { %v2331_v7 = vpop.f32.mrf.mxu2 }
 0x4dc   :  { %v2332_v40 = vadd.f32 %v12843_v43, %v2331_v7 }
 0x4de   :  { %v2353_v48 = vmax.f32 %v2332_v40, 0.0 }
 0x4e2   :  { %v12981_v63 = vpop.f32.mrf.mxu1 }
 0x4e3   :  { %v2333_v54 = vpop.f32.mrf.mxu2 }
 0x4e4   :  { %v2334_v52 = vadd.f32 %v12843_v43, %v2333_v54  ;;  %9717 = vmatmul.msk.bf16.gmra.mxu0 %vm254_vm0, %v10613_v58  ;;  %v3601_v54 = vmul.f32 %v10843_v57, %v3552_v47 }
 0x4e6   :  { %v2354_v13 = vmax.f32 %v2334_v52, 0.0  ;;  %v10844_v52 = vld [vmem:[%s16411_s3 + $0x3e] ss:$0 sm:$0xff] }
 0x4e7   :  { %v3650_v10 = vadd.f32 %v10844_v52, %v3601_v54 }
 0x4e8   :  { %v2669_v26 = vpack.c.bf16 %v2354_v13, %v2353_v48  ;;  %v3602_v48 = vmul.f32 %v10843_v57, %v3553_v62  ;;  %v10614_v13 = vld [vmem:[%s16413_s5 + $0x230] sm:$0xff]  ;;  %v9543_v57 = vld [vmem:[%s16409_s1 + $0xe0] sm:$0xff] }
 0x4ea   :  { %2714 = vmatmul.bf16.gmra.mxu3 %v2669_v26  ;;  %v12985_v25 = vpop.f32.mrf.mxu1  ;;  %v3530_v26 = vunpack.c.2.s8 %v9544_v22  ;;  %v3651_v24 = vadd.f32 %v10844_v52, %v3602_v48 }
 0x4eb   :  { %v2336_v49 = vpop.f32.mrf.mxu2 }
 0x4ec   :  { %v2337_v9 = vadd.f32 %v12843_v43, %v2336_v49  ;;  %v3531_v49 = vunpack.c.3.s8 %v9544_v22 }
 0x4ee   :  { %v2355_v51 = vmax.f32 %v2337_v9, 0.0  ;;  %v13021_v9 = vld [vmem:[%s16412_s4 + $0x5] ss:$0 sm:$0xff]  ;;  %v3547_v62 = vcvt.s32.f32 %v3531_v49  ;;  %v3544_v49 = vcvt.s32.f32 %v3528_v0  ;;  %v3525_v0 = vunpack.c.1.s8 %v9543_v57 }
 0x4f2   :  { %v3793_v2 = vpop.f32.mrf.mxu1 }
 0x4f3   :  { %v2338_v5 = vpop.f32.mrf.mxu2 }
 0x4f4   :  { %v2339_v56 = vadd.f32 %v12843_v43, %v2338_v5  ;;  %v9545_v43 = vld [vmem:[%s16409_s1 + $0xf0] sm:$0xff]  ;;  %v3652_v5 = vadd.f32 %v10846_v45, %v3603_v60  ;;  %9718 = vmatmul.msk.bf16.gmra.mxu0 %vm254_vm0, %v10614_v13  ;;  %v3813_v13 = vadd.f32 %v12985_v25, %v3650_v10  ;;  %v10837_v25 = vld [vmem:[%s16411_s3 + $0x3b] ss:$0 sm:$0xff] }
 0x4f5   :  { %v3534_v59 = vunpack.c.2.s8 %v9545_v43  ;;  %v3535_v55 = vunpack.c.3.s8 %v9545_v43  ;;  %v3532_v32 = vunpack.c.0.s8 %v9545_v43  ;;  %v3533_v20 = vunpack.c.1.s8 %v9545_v43 }
 0x4f6   :  { %v2356_v3 = vmax.f32 %v2339_v56, 0.0  ;;  %v3555_v56 = vcvt.s32.f32 %v3539_v17  ;;  %v3526_v17 = vunpack.c.2.s8 %v9543_v57 }
 0x4f7   :  { %v3550_v33 = vcvt.s32.f32 %v3534_v59  ;;  %v3551_v7 = vcvt.s32.f32 %v3535_v55  ;;  %v3529_v59 = vunpack.c.1.s8 %v9544_v22  ;;  %v3546_v55 = vcvt.s32.f32 %v3530_v26 }
 0x4f8   :  { %v2670_v53 = vpack.c.bf16 %v2356_v3, %v2355_v51  ;;  %v3548_v51 = vcvt.s32.f32 %v3532_v32  ;;  %v10838_v3 = vld [vmem:[%s16410_s2 + $0x3c] ss:$0 sm:$0xff]  ;;  %v3604_v30 = vmul.f32 %v10845_v44, %v3555_v56  ;;  %v3527_v26 = vunpack.c.3.s8 %v9543_v57 }
 0x4f9   :  { %v3599_v58 = vmul.f32 %v10840_v61, %v3550_v33  ;;  %v3600_v43 = vmul.f32 %v10840_v61, %v3551_v7  ;;  %v10836_v33 = vld [vmem:[%s16410_s2 + $0x3b] ss:$0 sm:$0xff]  ;;  %v10839_v44 = vld [vmem:[%s16411_s3 + $0x3c] ss:$0 sm:$0xff] }
 0x4fa   :  { %2719 = vmatmul.bf16.gmra.mxu3 %v2670_v53  ;;  %v3796_v40 = vpop.f32.mrf.mxu1  ;;  %v3549_v53 = vcvt.s32.f32 %v3533_v20  ;;  %v3653_v20 = vadd.f32 %v10846_v45, %v3604_v30  ;;  %v3597_v61 = vmul.f32 %v10838_v3, %v3548_v51 }
 0x4fb   :  { %v3815_v32 = vadd.f32 %v3796_v40, %v3652_v5  ;;  %v3648_v7 = vadd.f32 %v10841_v50, %v3599_v58  ;;  %v3649_v54 = vadd.f32 %v10841_v50, %v3600_v43  ;;  %v3814_v40 = vadd.f32 %v3793_v2, %v3651_v24 }
 0x4fc   :  { %v3598_v22 = vmul.f32 %v10838_v3, %v3549_v53  ;;  %v3545_v5 = vcvt.s32.f32 %v3529_v59  ;;  %v10834_v3 = vld [vmem:[%s16410_s2 + $0x3a] ss:$0 sm:$0xff]  ;;  %v3596_v2 = vmul.f32 %v10836_v33, %v3547_v62  ;;  %v3646_v53 = vadd.f32 %v10839_v44, %v3597_v61  ;;  %v10832_v62 = vld [vmem:[%s16410_s2 + $0x39] ss:$0 sm:$0xff] }
 0x4fd   :  { %v3811_v50 = vadd.f32 %v12975_v16, %v3648_v7  ;;  %v3812_v43 = vadd.f32 %v12981_v63, %v3649_v54  ;;  %v3823_v10 = vpack.c.bf16 %v3814_v40, %v3813_v13  ;;  %v3524_v24 = vunpack.c.0.s8 %v9543_v57  ;;  %v10835_v16 = vld [vmem:[%s16411_s3 + $0x3a] ss:$0 sm:$0xff]  ;;  %v10833_v40 = vld [vmem:[%s16411_s3 + $0x39] ss:$0 sm:$0xff] }
 0x4fe   :  { %v3647_v58 = vadd.f32 %v10839_v44, %v3598_v22  ;;  %v3542_v59 = vcvt.s32.f32 %v3526_v17  ;;  %v3594_v63 = vmul.f32 %v10834_v3, %v3545_v5  ;;  %v16526_v44 = vld [vmem:[#allocation18_spill] sm:$0xff]  ;;  %v10615_v7 = vld [vmem:[%s16413_s5 + $0x238] sm:$0xff] }
 0x4ff   :  { %v3822_v61 = vpack.c.bf16 %v3812_v43, %v3811_v50  ;;  %v3540_v54 = vcvt.s32.f32 %v3524_v24 }
 0x500   :  { %v3810_v57 = vadd.f32 %v12971_v6, %v3647_v58  ;;  %v3591_v6 = vmul.f32 %v10832_v62, %v3542_v59 }
 0x502   :  { %v3798_v52 = vpop.f32.mrf.mxu1 }
 0x503   :  { %v3816_v45 = vadd.f32 %v3798_v52, %v3653_v20  ;;  %v3645_v20 = vadd.f32 %v10837_v25, %v3596_v2  ;;  %v3541_v52 = vcvt.s32.f32 %v3525_v0 }
 0x504   :  { %9719 = vmatmul.msk.bf16.gmra.mxu0 %vm254_vm0, %v10615_v7 }
 0x505   :  { %v3824_v51 = vpack.c.bf16 %v3816_v45, %v3815_v32  ;;  %v3808_v5 = vadd.f32 %v12961_v29, %v3645_v20 }
 0x507   :  { %3838 = vmatpush.bf16.msrb.mxu3 %v3824_v51 }
 0x50b   :  { %3839 = vmatpush.bf16.msrb.mxu3 %v3823_v10 }
 0x50d   :  { %v2685_v47 = vpop.f32.mrf.mxu3 }
 0x50e   :  { %v2686_v60 = vadd.f32 %v13021_v9, %v2685_v47  ;;  %v3543_v47 = vcvt.s32.f32 %v3527_v26  ;;  %v3643_v26 = vadd.f32 %v10835_v16, %v3594_v63 }
 0x50f   :  { %3840 = vmatpush.bf16.msrb.mxu3 %v3822_v61 }
 0x510   :  { %v13041_v48 = vadd.f32 %v2686_v60, %v12446_v23  ;;  %v3595_v23 = vmul.f32 %v10836_v33, %v3546_v55  ;;  %v3593_v60 = vmul.f32 %v10834_v3, %v3544_v49  ;;  %v3809_v33 = vadd.f32 %v12965_v14, %v3646_v53  ;;  %v10830_v14 = vld [vmem:[%s16410_s2 + $0x38] ss:$0 sm:$0xff] }
 0x511   :  { %v3592_v45 = vmul.f32 %v10832_v62, %v3543_v47  ;;  %v3590_v2 = vmul.f32 %v10830_v14, %v3541_v52  ;;  %v3640_v53 = vadd.f32 %v10833_v40, %v3591_v6 }
 0x512   :  { %2741 = vadd.xlane.f32.xlu2 %v13041_v48  ;;  %v2789_v56 = vmul.f32 %v13041_v48, %v13041_v48  ;;  %v3644_v32 = vadd.f32 %v10837_v25, %v3595_v23  ;;  %v3642_v17 = vadd.f32 %v10835_v16, %v3593_v60  ;;  %v3589_v23 = vmul.f32 %v10830_v14, %v3540_v54  ;;  %v10831_v25 = vld [vmem:[%s16411_s3 + $0x38] ss:$0 sm:$0xff]  ;;  %v13102_v16 = vpop.f32.mrf.mxu0 }
 0x513   :  { %v3641_v58 = vadd.f32 %v10833_v40, %v3592_v45  ;;  %v3803_v0 = vadd.f32 %v12930_v27, %v3640_v53  ;;  %16527 = vst [vmem:[#allocation7_spill] sm:$0xff] %v13102_v16 }
 0x514   :  { %2805 = vadd.xlane.f32.xlu1 %v2789_v56  ;;  %v3807_v49 = vadd.f32 %v12955_v41, %v3644_v32  ;;  %v3821_v56 = vpack.c.bf16 %v3810_v57, %v3809_v33  ;;  %v3805_v50 = vadd.f32 %v12945_v15, %v3642_v17  ;;  %v3806_v41 = vadd.f32 %v12951_v42, %v3643_v26 }
 0x515   :  { %v2687_v30 = vpop.f32.mrf.mxu3  ;;  %v3638_v24 = vadd.f32 %v10831_v25, %v3589_v23  ;;  %v3804_v59 = vadd.f32 %v12941_v1, %v3641_v58 }
 0x516   :  { %v2688_v55 = vadd.f32 %v13021_v9, %v2687_v30  ;;  %v3820_v43 = vpack.c.bf16 %v3808_v5, %v3807_v49  ;;  %3841 = vmatpush.bf16.msrb.mxu3 %v3821_v56  ;;  %v3639_v30 = vadd.f32 %v10831_v25, %v3590_v2  ;;  %v3819_v47 = vpack.c.bf16 %v3806_v41, %v3805_v50 }
 0x517   :  { %v3818_v62 = vpack.c.bf16 %v3804_v59, %v3803_v0 }
 0x518   :  { %v13065_v22 = vadd.f32 %v2688_v55, %v16526_v44  ;;  %v3802_v55 = vadd.f32 %v12916_v37, %v3639_v30 }
 0x51a   :  { %2743 = vadd.xlane.f32.xlu0 %v13065_v22  ;;  %v2790_v13 = vmul.f32 %v13065_v22, %v13065_v22  ;;  %3842 = vmatpush.bf16.msrb.mxu3 %v3820_v43  ;;  %v13114_v32 = vpop.f32.mrf.mxu0 }
 0x51b   :  { %16528 = vst [vmem:[#allocation9_spill] sm:$0xff] %v13114_v32 }
 0x51c   :  { %2807 = vadd.xlane.f32.xlu2 %v2790_v13 }
 0x51d   :  { %v2690_v51 = vpop.f32.mrf.mxu3 }
 0x51e   :  { %v2691_v3 = vadd.f32 %v13021_v9, %v2690_v51  ;;  %3843 = vmatpush.bf16.msrb.mxu3 %v3819_v47 }
 0x520   :  { %v13089_v29 = vadd.f32 %v2691_v3, %v12531_v46  ;;  %v3801_v46 = vadd.f32 %v12898_v8, %v3638_v24 }
 0x522   :  { %2745 = vadd.xlane.f32.xlu0 %v13089_v29  ;;  %v2791_v10 = vmul.f32 %v13089_v29, %v13089_v29  ;;  %v3817_v1 = vpack.c.bf16 %v3802_v55, %v3801_v46  ;;  %3844 = vmatpush.bf16.msrb.mxu3 %v3818_v62  ;;  %v13123_v61 = vpop.f32.mrf.mxu0 }
 0x523   :  { %16529 = vst [vmem:[#allocation5_spill] sm:$0xff] %v13123_v61 }
 0x524   :  { %2809 = vadd.xlane.f32.xlu2 %v2791_v10 }
 0x525   :  { %v2692_v15 = vpop.f32.mrf.mxu3 }
 0x526   :  { %v2693_v42 = vadd.f32 %v13021_v9, %v2692_v15  ;;  %3845 = vmatpush.bf16.msrb.mxu3 %v3817_v1 }
 0x528   :  { %v13100_v60 = vadd.f32 %v2693_v42, %v12534_v31 }
 0x52a   :  { %2747 = vadd.xlane.f32.xlu1 %v13100_v60  ;;  %v2792_v27 = vmul.f32 %v13100_v60, %v13100_v60  ;;  %v13133_v14 = vpop.f32.mrf.mxu0 }
 0x52b   :  { %16531 = vst [vmem:[#allocation6_spill] sm:$0xff] %v13133_v14 }
 0x52c   :  { %2811 = vadd.xlane.f32.xlu0 %v2792_v27 }
 0x52d   :  { %v2695_v63 = vpop.f32.mrf.mxu3 }
 0x52e   :  { %v2696_v8 = vadd.f32 %v13021_v9, %v2695_v63 }
 0x530   :  { %v13109_v37 = vadd.f32 %v2696_v8, %v12604_v19 }
 0x532   :  { %2749 = vadd.xlane.f32.xlu1 %v13109_v37  ;;  %v2793_v31 = vmul.f32 %v13109_v37, %v13109_v37  ;;  %v13145_v26 = vpop.f32.mrf.mxu0 }
 0x534   :  { %2813 = vadd.xlane.f32.xlu0 %v2793_v31 }
 0x535   :  { %v2697_v20 = vpop.f32.mrf.mxu3 }
 0x536   :  { %v2698_v33 = vadd.f32 %v13021_v9, %v2697_v20 }
 0x538   :  { %v13118_v57 = vadd.f32 %v2698_v33, %v12607_v4 }
 0x53a   :  { %2751 = vadd.xlane.f32.xlu2 %v13118_v57  ;;  %v2794_v19 = vmul.f32 %v13118_v57, %v13118_v57  ;;  %v13157_v51 = vpop.f32.mrf.mxu0 }
 0x53b   :  { %16535 = vst [vmem:[#allocation13_spill] sm:$0xff] %v13157_v51 }
 0x53c   :  { %2815 = vadd.xlane.f32.xlu1 %v2794_v19 }
 0x53d   :  { %v2700_v44 = vpop.f32.mrf.mxu3 }
 0x53e   :  { %v2701_v7 = vadd.f32 %v13021_v9, %v2700_v44 }
 0x540   :  { %v13127_v54 = vadd.f32 %v2701_v7, %v12639_v18 }
 0x542   :  { %16530 = vst [vmem:[#allocation8_spill] sm:$0xff] %v13127_v54  ;;  %2753 = vadd.xlane.f32.xlu2 %v13127_v54  ;;  %v2795_v4 = vmul.f32 %v13127_v54, %v13127_v54  ;;  %v13166_v2 = vpop.f32.mrf.mxu0 }
 0x544   :  { %2817 = vadd.xlane.f32.xlu1 %v2795_v4 }
 0x545   :  { %v2702_v52 = vpop.f32.mrf.mxu3 }
 0x546   :  { %v2703_v13 = vadd.f32 %v13021_v9, %v2702_v52 }
 0x548   :  { %v13136_v6 = vadd.f32 %v2703_v13, %v12642_v35 }
 0x54a   :  { %16532 = vst [vmem:[#allocation10_spill] sm:$0xff] %v13136_v6  ;;  %2755 = vadd.xlane.f32.xlu0 %v13136_v6  ;;  %v2796_v18 = vmul.f32 %v13136_v6, %v13136_v6  ;;  %v13176_v10 = vpop.f32.mrf.mxu0 }
 0x54c   :  { %2819 = vadd.xlane.f32.xlu2 %v2796_v18 }
 0x54d   :  { %v2705_v40 = vpop.f32.mrf.mxu3 }
 0x54e   :  { %v2706_v45 = vadd.f32 %v13021_v9, %v2705_v40 }
 0x550   :  { %v13143_v17 = vadd.f32 %v2706_v45, %v12671_v21  ;;  %v13224_v45 = vld [vmem:[%s16409_s1 + $0x100] sm:$0xff] }
 0x552   :  { %16533 = vst [vmem:[#allocation11_spill] sm:$0xff] %v13143_v17  ;;  %2757 = vadd.xlane.f32.xlu0 %v13143_v17  ;;  %v2797_v35 = vmul.f32 %v13143_v17, %v13143_v17  ;;  %v13188_v47 = vpop.f32.mrf.mxu0 }
 0x554   :  { %2821 = vadd.xlane.f32.xlu2 %v2797_v35 }
 0x555   :  { %v2707_v49 = vpop.f32.mrf.mxu3 }
 0x556   :  { %v2708_v5 = vadd.f32 %v13021_v9, %v2707_v49  ;;  %v3908_v49 = vunpack.c.0.s8 %v13224_v45 }
 0x558   :  { %v13152_v56 = vadd.f32 %v2708_v5, %v12674_v11 }
 0x55a   :  { %16534 = vst [vmem:[#allocation12_spill] sm:$0xff] %v13152_v56  ;;  %2759 = vadd.xlane.f32.xlu1 %v13152_v56  ;;  %v2798_v21 = vmul.f32 %v13152_v56, %v13152_v56  ;;  %v13200_v55 = vpop.f32.mrf.mxu0  ;;  %v10860_v56 = vld [vmem:[%s16410_s2 + $0x46] ss:$0 sm:$0xff] }
 0x55c   :  { %2823 = vadd.xlane.f32.xlu0 %v2798_v21 }
 0x55d   :  { %v2710_v3 = vpop.f32.mrf.mxu3 }
 0x55e   :  { %v2711_v23 = vadd.f32 %v13021_v9, %v2710_v3 }
 0x560   :  { %v13161_v25 = vadd.f32 %v2711_v23, %v12698_v28 }
 0x562   :  { %16536 = vst [vmem:[#allocation14_spill] sm:$0xff] %v13161_v25  ;;  %2761 = vadd.xlane.f32.xlu1 %v13161_v25  ;;  %v2799_v11 = vmul.f32 %v13161_v25, %v13161_v25  ;;  %v13213_v44 = vpop.f32.mrf.mxu0 }
 0x564   :  { %2825 = vadd.xlane.f32.xlu0 %v2799_v11 }
 0x565   :  { %v2712_v53 = vpop.f32.mrf.mxu3 }
 0x566   :  { %v2713_v58 = vadd.f32 %v13021_v9, %v2712_v53 }
 0x568   :  { %v13170_v50 = vadd.f32 %v2713_v58, %v12701_v36  ;;  %v3924_v58 = vcvt.s32.f32 %v3908_v49 }
 0x56a   :  { %16537 = vst [vmem:[#allocation15_spill] sm:$0xff] %v13170_v50  ;;  %2763 = vadd.xlane.f32.xlu2 %v13170_v50  ;;  %v2800_v28 = vmul.f32 %v13170_v50, %v13170_v50  ;;  %v13219_v40 = vpop.f32.mrf.mxu0 }
 0x56c   :  { %2827 = vadd.xlane.f32.xlu1 %v2800_v28  ;;  %v13235_v28 = vld [vmem:[%s16410_s2 + $0x40] ss:$0 sm:$0xff] }
 0x56d   :  { %v2715_v41 = vpop.f32.mrf.mxu3 }
 0x56e   :  { %v2716_v43 = vadd.f32 %v13021_v9, %v2715_v41  ;;  %v13240_v41 = vld [vmem:[%s16409_s1 + $0x108] sm:$0xff] }
 0x570   :  { %v13179_v24 = vadd.f32 %v2716_v43, %v12716_v34 }
 0x572   :  { %16538 = vst [vmem:[#allocation16_spill] sm:$0xff] %v13179_v24  ;;  %2765 = vadd.xlane.f32.xlu2 %v13179_v24  ;;  %v2801_v36 = vmul.f32 %v13179_v24, %v13179_v24 }
 0x574   :  { %2829 = vadd.xlane.f32.xlu1 %v2801_v36 }
 0x575   :  { %v2717_v30 = vpop.f32.mrf.mxu3 }
 0x576   :  { %v2718_v0 = vadd.f32 %v13021_v9, %v2717_v30  ;;  %v3912_v30 = vunpack.c.0.s8 %v13240_v41 }
 0x578   :  { %v13186_v59 = vadd.f32 %v2718_v0, %v12719_v39 }
 0x57a   :  { %16539 = vst [vmem:[#allocation17_spill] sm:$0xff] %v13186_v59  ;;  %2767 = vadd.xlane.f32.xlu0 %v13186_v59  ;;  %v2802_v34 = vmul.f32 %v13186_v59, %v13186_v59 }
 0x57c   :  { %2831 = vadd.xlane.f32.xlu2 %v2802_v34 }
 0x57d   :  { %v2720_v15 = vpop.f32.mrf.mxu3 }
 0x57e   :  { %v2721_v42 = vadd.f32 %v13021_v9, %v2720_v15  ;;  %v13245_v15 = vpop.f32.mrf.mxu0 }
 0x580   :  { %v13195_v46 = vadd.f32 %v2721_v42, %v12733_v38 }
 0x582   :  { %16540 = vst [vmem:[#allocation18_spill] sm:$0xff] %v13195_v46  ;;  %2769 = vadd.xlane.f32.xlu0 %v13195_v46  ;;  %v2803_v39 = vmul.f32 %v13195_v46, %v13195_v46 }
 0x584   :  { %2833 = vadd.xlane.f32.xlu2 %v2803_v39 }
 0x585   :  { %v2742_v62 = vpop.xlane.xlu2 %2741  ;;  %v2722_v27 = vpop.f32.mrf.mxu3 }
 0x586   :  { %v13202_v1 = vmul.f32 0.0078125, %v2742_v62  ;;  %v2723_v63 = vadd.f32 %v13021_v9, %v2722_v27  ;;  %v13250_v62 = vmul.f32 %v13235_v28, %v3924_v58  ;;  %v3910_v27 = vunpack.c.2.s8 %v13224_v45 }
 0x587   :  { %v2806_v8 = vpop.xlane.xlu1 %2805 }
 0x588   :  { %v2853_v31 = vmul.f32 %v13202_v1, %v13202_v1  ;;  %v13208_v38 = vadd.f32 %v2723_v63, %v12736_v12  ;;  %v2837_v20 = vmul.f32 0.0078125, %v2806_v8  ;;  %16542 = vst [vmem:[#allocation20_spill] sm:$0xff] %v13250_v62  ;;  %v3911_v63 = vunpack.c.3.s8 %v13224_v45 }
 0x58a   :  { %16541 = vst [vmem:[#allocation19_spill] sm:$0xff] %v13208_v38  ;;  %v2869_v33 = vsub.f32 %v2837_v20, %v2853_v31  ;;  %2771 = vadd.xlane.f32.xlu1 %v13208_v38  ;;  %v2804_v19 = vmul.f32 %v13208_v38, %v13208_v38  ;;  %v3928_v31 = vcvt.s32.f32 %v3912_v30  ;;  %v13259_v20 = vld [vmem:[%s16410_s2 + $0x42] ss:$0 sm:$0xff]  ;;  %v13296_v38 = vpop.f32.mrf.mxu0 }
 0x58c   :  { %v2901_v7 = vadd.f32 1e-05, %v2869_v33  ;;  %2835 = vadd.xlane.f32.xlu0 %v2804_v19  ;;  %v13264_v33 = vld [vmem:[%s16409_s1 + $0x110] sm:$0xff] }
 0x58d   :  { %v2744_v4 = vpop.xlane.xlu0 %2743 }
 0x58e   :  { %11059 = vrsqrt.f32 %v2901_v7  ;;  %v13215_v9 = vmul.f32 0.0078125, %v2744_v4  ;;  %vm2923_vm5 = vweird.f32 %v2901_v7 }
 0x58f   :  { %v2808_v52 = vpop.xlane.xlu2 %2807 }
 0x590   :  { %v2854_v12 = vmul.f32 %v13215_v9, %v13215_v9  ;;  %v2838_v13 = vmul.f32 0.0078125, %v2808_v52 }
 0x592   :  { %v2870_v18 = vsub.f32 %v2838_v13, %v2854_v12  ;;  %v3913_v12 = vunpack.c.1.s8 %v13240_v41  ;;  %v3914_v13 = vunpack.c.2.s8 %v13240_v41 }
 0x594   :  { %v11060_v35 = vpop.eup %11059  ;;  %v13227_v5 = vadd.f32 1e-05, %v2870_v18 }
 0x595   :  { %v2918_v21 = vmul.f32 %v11060_v35, %v2901_v7  ;;  %v2746_v3 = vpop.xlane.xlu0 %2745  ;;  %vm2924_vm4 = vweird.f32 %v11060_v35 }
 0x596   :  { %11061 = vrsqrt.f32 %v13227_v5  ;;  %v13230_v23 = vmul.f32 0.0078125, %v2746_v3  ;;  %vm13278_vm6 = vmor %vm2923_vm5, %vm2924_vm4  ;;  %vm2933_vm8 = vweird.f32 %v13227_v5 }
 0x597   :  { %v2919_v11 = vmul.f32 %v11060_v35, %v2918_v21  ;;  %v2810_v53 = vpop.xlane.xlu2 %2809  ;;  %v3916_v21 = vunpack.c.0.s8 %v13264_v33 }
 0x598   :  { %v2855_v43 = vmul.f32 %v13230_v23, %v13230_v23  ;;  %v2839_v36 = vmul.f32 0.0078125, %v2810_v53  ;;  %v13276_v53 = vcvt.s32.f32 %v3910_v27  ;;  %v13292_v27 = vcvt.s32.f32 %v3913_v12 }
 0x599   :  { %v2920_v0 = vmul.f32 0.5, %v2919_v11  ;;  %v3917_v12 = vunpack.c.1.s8 %v13264_v33 }
 0x59a   :  { %v2871_v34 = vsub.f32 %v2839_v36, %v2855_v43  ;;  %v3918_v43 = vunpack.c.2.s8 %v13264_v33 }
 0x59b   :  { %v2921_v42 = vsub.f32 1.5, %v2920_v0  ;;  %v13285_v0 = vcvt.s32.f32 %v3911_v63  ;;  %v3932_v63 = vcvt.s32.f32 %v3916_v21  ;;  %v3933_v6 = vcvt.s32.f32 %v3917_v12 }
 0x59c   :  { %v13247_v39 = vpop.eup %11061  ;;  %v13254_v8 = vadd.f32 1e-05, %v2871_v34  ;;  %v13288_v34 = vmul.f32 %v13259_v20, %v3928_v31 }
 0x59d   :  { %v2922_v19 = vmul.f32 %v11060_v35, %v2921_v42  ;;  %v2928_v4 = vmul.f32 %v13247_v39, %v13227_v5  ;;  %v2748_v52 = vpop.xlane.xlu1 %2747  ;;  %vm2934_vm7 = vweird.f32 %v13247_v39 }
 0x59e   :  { %11063 = vrsqrt.f32 %v13254_v8  ;;  %v13271_v18 = vmul.f32 0.0078125, %v2748_v52  ;;  %v2885_v52 = vsub.f32 %v13041_v48, %v13202_v1  ;;  %v3934_v48 = vcvt.s32.f32 %v3918_v43  ;;  %v10855_v43 = vld [vmem:[%s16410_s2 + $0x44] ss:$0 sm:$0xff]  ;;  %vm2935_vm9 = vmor %vm2933_vm8, %vm2934_vm7 }
 0x59f   :  { %v2929_v3 = vmul.f32 %v13247_v39, %v2928_v4  ;;  %v2812_v11 = vpop.xlane.xlu0 %2811  ;;  %v2926_v7 = vsel %vm13278_vm6, %v11060_v35, %v2922_v19  ;;  %v3930_v4 = vcvt.s32.f32 %v3914_v13  ;;  %v13305_v35 = vld [vmem:[%s16415_s7 + $0x1] ss:$0 sm:$0xff]  ;;  %v13318_v13 = vld [vmem:[%s16410_s2 + $0x43] ss:$0 sm:$0xff]  ;;  %vm2943_vm11 = vweird.f32 %v13254_v8 }
 0x5a0   :  { %v2856_v36 = vmul.f32 %v13271_v18, %v13271_v18  ;;  %v2840_v30 = vmul.f32 0.0078125, %v2812_v11  ;;  %v3915_v11 = vunpack.c.3.s8 %v13240_v41  ;;  %v3077_v19 = vmul.f32 %v2926_v7, %v2885_v52  ;;  %v13313_v41 = vld [vmem:[%s16409_s1 + $0x118] sm:$0xff] }
 0x5a1   :  { %v2930_v42 = vmul.f32 0.5, %v2929_v3  ;;  %v3923_v14 = vunpack.c.3.s8 %v13313_v41 }
 0x5a2   :  { %v2872_v49 = vsub.f32 %v2840_v30, %v2856_v36  ;;  %v2886_v36 = vsub.f32 %v13065_v22, %v13215_v9  ;;  %v3921_v22 = vunpack.c.1.s8 %v13313_v41  ;;  %v3922_v9 = vunpack.c.2.s8 %v13313_v41 }
 0x5a3   :  { %v2931_v46 = vsub.f32 1.5, %v2930_v42  ;;  %v3098_v52 = vmul.f32 %v13305_v35, %v3077_v19  ;;  %v10863_v19 = vld [vmem:[%s16410_s2 + $0x47] ss:$0 sm:$0xff] }
 0x5a4   :  { %v13300_v31 = vpop.eup %11063  ;;  %v13308_v1 = vadd.f32 1e-05, %v2872_v49  ;;  %v3919_v49 = vunpack.c.3.s8 %v13264_v33  ;;  %v10858_v33 = vld [vmem:[%s16410_s2 + $0x45] ss:$0 sm:$0xff]  ;;  %v3938_v25 = vcvt.s32.f32 %v3922_v9 }
 0x5a5   :  { %v2932_v21 = vmul.f32 %v13247_v39, %v2931_v46  ;;  %v2938_v3 = vmul.f32 %v13300_v31, %v13254_v8  ;;  %v2750_v58 = vpop.xlane.xlu1 %2749  ;;  %v3920_v46 = vunpack.c.0.s8 %v13313_v41  ;;  %vm2944_vm10 = vweird.f32 %v13300_v31 }
 0x5a6   :  { %11065 = vrsqrt.f32 %v13308_v1  ;;  %v13334_v5 = vmul.f32 0.0078125, %v2750_v58  ;;  %v3935_v32 = vcvt.s32.f32 %v3919_v49  ;;  %v3987_v12 = vmul.f32 %v10863_v19, %v3938_v25  ;;  %vm13398_vm12 = vmor %vm2943_vm11, %vm2944_vm10 }
 0x5a7   :  { %v2936_v30 = vsel %vm2935_vm9, %v13247_v39, %v2932_v21  ;;  %v2939_v7 = vmul.f32 %v13300_v31, %v2938_v3  ;;  %v2814_v42 = vpop.xlane.xlu0 %2813  ;;  %v13349_v39 = vld [vmem:[%s16416_s8 + $0x1] ss:$0 sm:$0xff]  ;;  %v13352_v21 = vmul.f32 %v13318_v13, %v3930_v4  ;;  %v13354_v3 = vcvt.s32.f32 %v3915_v11  ;;  %v4180_v4 = vpop.f32.mrf.mxu0 }
 0x5a8   :  { %v3078_v59 = vmul.f32 %v2936_v30, %v2886_v36  ;;  %v2857_v58 = vmul.f32 %v13334_v5, %v13334_v5  ;;  %v2841_v24 = vmul.f32 0.0078125, %v2814_v42  ;;  %v13359_v36 = vmul.f32 %v10855_v43, %v3932_v63 }
 0x5a9   :  { %v2940_v50 = vmul.f32 0.5, %v2939_v7  ;;  %v3936_v42 = vcvt.s32.f32 %v3920_v46  ;;  %v3983_v11 = vmul.f32 %v10858_v33, %v3934_v48  ;;  %v3937_v7 = vcvt.s32.f32 %v3921_v22  ;;  %v10859_v48 = vld [vmem:[%s16411_s3 + $0x45] ss:$0 sm:$0xff] }
 0x5aa   :  { %v3099_v30 = vmul.f32 %v13305_v35, %v3078_v59  ;;  %v2873_v17 = vsub.f32 %v2841_v24, %v2857_v58  ;;  %v13370_v63 = vadd.f32 %v13349_v39, %v3098_v52  ;;  %v3939_v41 = vcvt.s32.f32 %v3923_v14 }
 0x5ab   :  { %v2941_v54 = vsub.f32 1.5, %v2940_v50  ;;  %v3985_v49 = vmul.f32 %v10860_v56, %v3936_v42  ;;  %v3986_v58 = vmul.f32 %v10860_v56, %v3937_v7  ;;  %v3982_v42 = vmul.f32 %v10855_v43, %v3933_v6 }
 0x5ac   :  { %v13365_v9 = vpop.eup %11065  ;;  %v13367_v16 = vadd.f32 1e-05, %v2873_v17  ;;  %16545 = vst [vmem:[#allocation21_spill] sm:$0xff] %v13370_v63  ;;  %v13373_v59 = vadd.f32 %v13349_v39, %v3099_v30  ;;  %v10864_v17 = vld [vmem:[%s16411_s3 + $0x47] ss:$0 sm:$0xff]  ;;  %v4032_v6 = vadd.f32 %v10859_v48, %v3983_v11  ;;  %v2887_v43 = vsub.f32 %v13089_v29, %v13230_v23 }
 0x5ad   :  { %v2942_v46 = vmul.f32 %v13300_v31, %v2941_v54  ;;  %v2948_v24 = vmul.f32 %v13365_v9, %v13308_v1  ;;  %v2752_v50 = vpop.xlane.xlu2 %2751  ;;  %v10861_v54 = vld [vmem:[%s16411_s3 + $0x46] ss:$0 sm:$0xff]  ;;  %v4036_v7 = vadd.f32 %v10864_v17, %v3987_v12  ;;  %vm2954_vm13 = vweird.f32 %v13365_v9 }
 0x5ae   :  { %16546 = vst [vmem:[#allocation22_spill] sm:$0xff] %v13373_v59  ;;  %11067 = vrsqrt.f32 %v13367_v16  ;;  %v13389_v22 = vmul.f32 0.0078125, %v2752_v50  ;;  %v3441_v25 = vpack.c.bf16 %v13373_v59, %v13370_v63  ;;  %v3984_v50 = vmul.f32 %v10858_v33, %v3935_v32 }
 0x5af   :  { %v2949_v52 = vmul.f32 %v13365_v9, %v2948_v24  ;;  %v2816_v30 = vpop.xlane.xlu1 %2815  ;;  %v2946_v56 = vsel %vm13398_vm12, %v13300_v31, %v2942_v46  ;;  %v4034_v24 = vadd.f32 %v10861_v54, %v3985_v49  ;;  %v4035_v32 = vadd.f32 %v10861_v54, %v3986_v58  ;;  %v4182_v31 = vpop.f32.mrf.mxu0 }
 0x5b0   :  { %v2858_v62 = vmul.f32 %v13389_v22, %v13389_v22  ;;  %v2842_v59 = vmul.f32 0.0078125, %v2816_v30  ;;  %3462 = vmatmul.bf16.vlgmr.msrb.gmra.mxu2 %v3441_v25  ;;  %v3988_v33 = vmul.f32 %v10863_v19, %v3939_v41  ;;  %v4033_v25 = vadd.f32 %v10859_v48, %v3984_v50  ;;  %v10856_v19 = vld [vmem:[%s16411_s3 + $0x44] ss:$0 sm:$0xff] }
 0x5b1   :  { %v2950_v8 = vmul.f32 0.5, %v2949_v52  ;;  %vm2953_vm14 = vweird.f32 %v13308_v1  ;;  %v3079_v14 = vmul.f32 %v2946_v56, %v2887_v43  ;;  %v4199_v23 = vadd.f32 %v4180_v4, %v4036_v7 }
 0x5b2   :  { %v2874_v63 = vsub.f32 %v2842_v59, %v2858_v62  ;;  %v4037_v59 = vadd.f32 %v10864_v17, %v3988_v33  ;;  %v2888_v46 = vsub.f32 %v13100_v60, %v13271_v18  ;;  %vm2955_vm15 = vmor %vm2953_vm14, %vm2954_vm13  ;;  %v4197_v1 = vadd.f32 %v13245_v15, %v4034_v24  ;;  %v10854_v60 = vld [vmem:[%s16411_s3 + $0x43] ss:$0 sm:$0xff] }
 0x5b3   :  { %v2951_v51 = vsub.f32 1.5, %v2950_v8  ;;  %v4198_v12 = vadd.f32 %v13296_v38, %v4035_v32  ;;  %v3100_v54 = vmul.f32 %v13305_v35, %v3079_v14  ;;  %v3980_v52 = vmul.f32 %v13318_v13, %v13354_v3 }
 0x5b4   :  { %v13410_v30 = vpop.eup %11067  ;;  %v13413_v61 = vadd.f32 1e-05, %v2874_v63  ;;  %v4200_v48 = vadd.f32 %v4182_v31, %v4037_v59  ;;  %v4030_v50 = vadd.f32 %v10856_v19, %v13359_v36  ;;  %v4031_v56 = vadd.f32 %v10856_v19, %v3982_v42 }
 0x5b5   :  { %v2952_v11 = vmul.f32 %v13365_v9, %v2951_v51  ;;  %v2958_v29 = vmul.f32 %v13410_v30, %v13367_v16  ;;  %v2754_v62 = vpop.xlane.xlu2 %2753  ;;  %v4195_v41 = vadd.f32 %v13213_v44, %v4032_v6  ;;  %v4196_v43 = vadd.f32 %v13219_v40, %v4033_v25  ;;  %v10852_v40 = vld [vmem:[%s16411_s3 + $0x42] ss:$0 sm:$0xff] }
 0x5b6   :  { %11069 = vrsqrt.f32 %v13413_v61  ;;  %v13427_v51 = vmul.f32 0.0078125, %v2754_v62  ;;  %v4208_v58 = vpack.c.bf16 %v4200_v48, %v4199_v23  ;;  %v4207_v32 = vpack.c.bf16 %v4198_v12, %v4197_v1 }
 0x5b7   :  { %v2956_v4 = vsel %vm2955_vm15, %v13365_v9, %v2952_v11  ;;  %v2959_v63 = vmul.f32 %v13410_v30, %v2958_v29  ;;  %v2818_v17 = vpop.xlane.xlu1 %2817  ;;  %v3978_v9 = vmul.f32 %v13259_v20, %v13292_v27  ;;  %v10849_v20 = vld [vmem:[%s16410_s2 + $0x41] ss:$0 sm:$0xff]  ;;  %v4028_v27 = vadd.f32 %v10854_v60, %v13352_v21 }
 0x5b8   :  { %v2859_v18 = vmul.f32 %v13427_v51, %v13427_v51  ;;  %v2843_v15 = vmul.f32 0.0078125, %v2818_v17  ;;  %v3080_v49 = vmul.f32 %v2956_v4, %v2888_v46  ;;  %4222 = vmatpush.bf16.msra.mxu2 %v4208_v58  ;;  %v13455_v3 = vadd.f32 %v13349_v39, %v3100_v54  ;;  %v10850_v46 = vld [vmem:[%s16411_s3 + $0x41] ss:$0 sm:$0xff] }
 0x5b9   :  { %v2960_v38 = vmul.f32 0.5, %v2959_v63  ;;  %v4029_v36 = vadd.f32 %v10854_v60, %v3980_v52  ;;  %vm2964_vm1 = vweird.f32 %v13410_v30  ;;  %v4193_v25 = vadd.f32 %v13188_v47, %v4030_v50 }
 0x5ba   :  { %v2875_v8 = vsub.f32 %v2843_v15, %v2859_v18  ;;  %v3101_v7 = vmul.f32 %v13305_v35, %v3080_v49  ;;  %v4194_v11 = vadd.f32 %v13200_v55, %v4031_v56  ;;  %v4206_v29 = vpack.c.bf16 %v4196_v43, %v4195_v41 }
 0x5bb   :  { %v2961_v24 = vsub.f32 1.5, %v2960_v38  ;;  %vm2963_vm2 = vweird.f32 %v13367_v16  ;;  %v16549_v59 = vunpack.c.1.s8 %v13224_v45  ;;  %v3975_v47 = vmul.f32 %v10849_v20, %v13276_v53 }
 0x5bc   :  { %v13446_v33 = vpop.eup %11069  ;;  %v13452_v13 = vadd.f32 1e-05, %v2875_v8  ;;  %v13458_v44 = vadd.f32 %v13349_v39, %v3101_v7  ;;  %4223 = vmatpush.bf16.msra.mxu2 %v4207_v32  ;;  %vm13484_vm3 = vmor %vm2963_vm2, %vm2964_vm1  ;;  %v3976_v45 = vmul.f32 %v10849_v20, %v13285_v0  ;;  %v4026_v4 = vadd.f32 %v10852_v40, %v13288_v34  ;;  %v16553_v32 = vld [vmem:[#allocation20_spill] sm:$0xff] }
 0x5bd   :  { %v2962_v42 = vmul.f32 %v13410_v30, %v2961_v24  ;;  %v2968_v21 = vmul.f32 %v13446_v33, %v13413_v61  ;;  %v2756_v6 = vpop.xlane.xlu0 %2755  ;;  %v3925_v19 = vcvt.s32.f32 %v16549_v59  ;;  %v4027_v12 = vadd.f32 %v10852_v40, %v3978_v9 }
 0x5be   :  { %11071 = vrsqrt.f32 %v13452_v13  ;;  %v13469_v31 = vmul.f32 0.0078125, %v2756_v6  ;;  %v3442_v14 = vpack.c.bf16 %v13458_v44, %v13455_v3  ;;  %v4191_v17 = vadd.f32 %v13166_v2, %v4028_v27 }
 0x5bf   :  { %v2969_v23 = vmul.f32 %v13446_v33, %v2968_v21  ;;  %v2820_v62 = vpop.xlane.xlu2 %2819  ;;  %v2966_v53 = vsel %vm13484_vm3, %v13410_v30, %v2962_v42  ;;  %v2889_v48 = vsub.f32 %v13109_v37, %v13334_v5  ;;  %v4192_v18 = vadd.f32 %v13176_v10, %v4029_v36  ;;  %v10848_v5 = vld [vmem:[%s16411_s3 + $0x40] ss:$0 sm:$0xff]  ;;  %v16555_v21 = vld [vmem:[#allocation6_spill] sm:$0xff] }
 0x5c0   :  { %v2860_v16 = vmul.f32 %v13469_v31, %v13469_v31  ;;  %v2844_v1 = vmul.f32 0.0078125, %v2820_v62  ;;  %3467 = vmatmul.bf16.gmra.mxu2 %v3442_v14  ;;  %v4205_v15 = vpack.c.bf16 %v4194_v11, %v4193_v25  ;;  %vm2974_vm4 = vweird.f32 %v13446_v33  ;;  %v16554_v42 = vld [vmem:[#allocation5_spill] sm:$0xff] }
 0x5c1   :  { %v2970_v63 = vmul.f32 0.5, %v2969_v23  ;;  %4224 = vmatpush.bf16.msra.mxu2 %v4206_v29  ;;  %v3974_v34 = vmul.f32 %v13235_v28, %v3925_v19  ;;  %v4024_v30 = vadd.f32 %v10850_v46, %v3975_v47  ;;  %v3081_v9 = vmul.f32 %v2966_v53, %v2889_v48 }
 0x5c2   :  { %v2876_v60 = vsub.f32 %v2844_v1, %v2860_v16  ;;  %v4025_v2 = vadd.f32 %v10850_v46, %v3976_v45  ;;  %vm2973_vm5 = vweird.f32 %v13413_v61  ;;  %v4189_v38 = vadd.f32 %v13145_v26, %v4026_v4  ;;  %v16552_v61 = vld [vmem:[#allocation13_spill] sm:$0xff]  ;;  %v16556_v46 = vld [vmem:[#allocation7_spill] sm:$0xff] }
 0x5c3   :  { %v2971_v49 = vsub.f32 1.5, %v2970_v63  ;;  %v2890_v28 = vsub.f32 %v13118_v57, %v13389_v22  ;;  %vm2975_vm6 = vmor %vm2973_vm5, %vm2974_vm4  ;;  %v4190_v50 = vadd.f32 %v16552_v61, %v4027_v12  ;;  %v4204_v56 = vpack.c.bf16 %v4192_v18, %v4191_v17  ;;  %v16557_v45 = vld [vmem:[#allocation9_spill] sm:$0xff] }
 0x5c4   :  { %v13500_v0 = vpop.eup %11071  ;;  %v13503_v54 = vadd.f32 1e-05, %v2876_v60  ;;  %v3102_v43 = vmul.f32 %v13305_v35, %v3081_v9  ;;  %v4022_v20 = vadd.f32 %v10848_v5, %v16553_v32  ;;  %v4023_v27 = vadd.f32 %v10848_v5, %v3974_v34 }
 0x5c5   :  { %v2972_v52 = vmul.f32 %v13446_v33, %v2971_v49  ;;  %v2978_v37 = vmul.f32 %v13500_v0, %v13452_v13  ;;  %v2758_v10 = vpop.xlane.xlu0 %2757  ;;  %4225 = vmatpush.bf16.msra.mxu2 %v4205_v15  ;;  %v4188_v6 = vadd.f32 %v16555_v21, %v4025_v2  ;;  %v4203_v25 = vpack.c.bf16 %v4190_v50, %v4189_v38  ;;  %v16558_v15 = vld [vmem:[#allocation8_spill] sm:$0xff] }
 0x5c6   :  { %11073 = vrsqrt.f32 %v13503_v54  ;;  %v13518_v58 = vmul.f32 0.0078125, %v2758_v10  ;;  %v13533_v23 = vadd.f32 %v13349_v39, %v3102_v43  ;;  %vm2984_vm7 = vweird.f32 %v13500_v0 }
 0x5c7   :  { %v2976_v8 = vsel %vm2975_vm6, %v13446_v33, %v2972_v52  ;;  %v2979_v7 = vmul.f32 %v13500_v0, %v2978_v37  ;;  %v2822_v41 = vpop.xlane.xlu2 %2821  ;;  %v4187_v33 = vadd.f32 %v16554_v42, %v4024_v30  ;;  %v4185_v55 = vadd.f32 %v16556_v46, %v4022_v20 }
 0x5c8   :  { %v2861_v26 = vmul.f32 %v13518_v58, %v13518_v58  ;;  %v2845_v57 = vmul.f32 0.0078125, %v2822_v41  ;;  %v3082_v22 = vmul.f32 %v2976_v8, %v2890_v28  ;;  %v4186_v4 = vadd.f32 %v16557_v45, %v4023_v27 }
 0x5c9   :  { %v2980_v24 = vmul.f32 0.5, %v2979_v7  ;;  %4226 = vmatpush.bf16.msra.mxu2 %v4204_v56  ;;  %v4202_v53 = vpack.c.bf16 %v4188_v6, %v4187_v33  ;;  %vm2983_vm8 = vweird.f32 %v13452_v13  ;;  %v2891_v49 = vsub.f32 %v16558_v15, %v13427_v51  ;;  %v10627_v56 = vld [vmem:[%s16414_s6 + $0x98] sm:$0xff] }
 0x5ca   :  { %v2877_v40 = vsub.f32 %v2845_v57, %v2861_v26  ;;  %v3103_v36 = vmul.f32 %v13305_v35, %v3082_v22  ;;  %vm2985_vm9 = vmor %vm2983_vm8, %vm2984_vm7  ;;  %v4201_v30 = vpack.c.bf16 %v4186_v4, %v4185_v55  ;;  %vm2993_vm11 = vweird.f32 %v13503_v54  ;;  %4920 = vmatpush.bf16.msra.mxu1 %v10627_v56 }
 0x5cb   :  { %v2981_v14 = vsub.f32 1.5, %v2980_v24 }
 0x5cc   :  { %v11074_v11 = vpop.eup %11073  ;;  %v13530_v29 = vadd.f32 1e-05, %v2877_v40  ;;  %v13536_v62 = vadd.f32 %v13349_v39, %v3103_v36 }
 0x5cd   :  { %v2982_v59 = vmul.f32 %v13500_v0, %v2981_v14  ;;  %v2988_v19 = vmul.f32 %v11074_v11, %v13503_v54  ;;  %v2760_v47 = vpop.xlane.xlu1 %2759  ;;  %4227 = vmatpush.bf16.msra.mxu2 %v4203_v25  ;;  %vm2994_vm10 = vweird.f32 %v11074_v11  ;;  %v10626_v25 = vld [vmem:[%s16414_s6 + $0x90] sm:$0xff] }
 0x5ce   :  { %11075 = vrsqrt.f32 %v13530_v29  ;;  %v13543_v16 = vmul.f32 0.0078125, %v2760_v47  ;;  %v3443_v1 = vpack.c.bf16 %v13536_v62, %v13533_v23  ;;  %vm2995_vm12 = vmor %vm2993_vm11, %vm2994_vm10  ;;  %vm3003_vm14 = vweird.f32 %v13530_v29  ;;  %4921 = vmatpush.bf16.msra.mxu1 %v10626_v25 }
 0x5cf   :  { %v2989_v63 = vmul.f32 %v11074_v11, %v2988_v19  ;;  %v2824_v12 = vpop.xlane.xlu0 %2823  ;;  %v2986_v60 = vsel %vm2985_vm9, %v13500_v0, %v2982_v59  ;;  %v16559_v0 = vld [vmem:[#allocation10_spill] sm:$0xff]  ;;  %v10618_v59 = vld [vmem:[%s16413_s5 + $0x240] sm:$0xff] }
 0x5d0   :  { %v2862_v17 = vmul.f32 %v13543_v16, %v13543_v16  ;;  %v2846_v48 = vmul.f32 0.0078125, %v2824_v12  ;;  %3472 = vmatmul.bf16.gmra.mxu2 %v3443_v1  ;;  %v3083_v52 = vmul.f32 %v2986_v60, %v2891_v49  ;;  %v2892_v38 = vsub.f32 %v16559_v0, %v13469_v31 }
 0x5d1   :  { %v2990_v18 = vmul.f32 0.5, %v2989_v63  ;;  %4228 = vmatpush.bf16.msra.mxu2 %v4202_v53  ;;  %9803 = vmatmul.msk.bf16.vlgmr.msra.gmra.mxu1 %vm254_vm0, %v10618_v59 }
 0x5d2   :  { %v2878_v34 = vsub.f32 %v2846_v48, %v2862_v17  ;;  %v3104_v41 = vmul.f32 %v13305_v35, %v3083_v52  ;;  %v16561_v48 = vld [vmem:[#allocation12_spill] sm:$0xff] }
 0x5d3   :  { %v2991_v9 = vsub.f32 1.5, %v2990_v18  ;;  %v2894_v60 = vsub.f32 %v16561_v48, %v13543_v16 }
 0x5d4   :  { %v11076_v13 = vpop.eup %11075  ;;  %v2910_v2 = vadd.f32 1e-05, %v2878_v34  ;;  %v13570_v32 = vadd.f32 %v13349_v39, %v3104_v41 }
 0x5d5   :  { %v2992_v37 = vmul.f32 %v11074_v11, %v2991_v9  ;;  %v2998_v10 = vmul.f32 %v11076_v13, %v13530_v29  ;;  %v2762_v5 = vpop.xlane.xlu1 %2761  ;;  %4229 = vmatpush.bf16.msra.mxu2 %v4201_v30  ;;  %vm3004_vm13 = vweird.f32 %v11076_v13  ;;  %v16560_v29 = vld [vmem:[#allocation11_spill] sm:$0xff] }
 0x5d6   :  { %11077 = vrsqrt.f32 %v2910_v2  ;;  %v13558_v51 = vmul.f32 0.0078125, %v2762_v5  ;;  %vm3005_vm15 = vmor %vm3003_vm14, %vm3004_vm13  ;;  %v2893_v46 = vsub.f32 %v16560_v29, %v13518_v58  ;;  %vm3013_vm2 = vweird.f32 %v2910_v2 }
 0x5d7   :  { %v2996_v28 = vsel %vm2995_vm12, %v11074_v11, %v2992_v37  ;;  %v2999_v61 = vmul.f32 %v11076_v13, %v2998_v10  ;;  %v2826_v50 = vpop.xlane.xlu0 %2825 }
 0x5d8   :  { %v2863_v54 = vmul.f32 %v13558_v51, %v13558_v51  ;;  %v2847_v8 = vmul.f32 0.0078125, %v2826_v50  ;;  %v3084_v7 = vmul.f32 %v2996_v28, %v2892_v38 }
 0x5d9   :  { %v3000_v31 = vmul.f32 0.5, %v2999_v61 }
 0x5da   :  { %v2879_v26 = vsub.f32 %v2847_v8, %v2863_v54  ;;  %v3105_v57 = vmul.f32 %v13305_v35, %v3084_v7 }
 0x5db   :  { %v3001_v22 = vsub.f32 1.5, %v3000_v31 }
 0x5dc   :  { %v11078_v43 = vpop.eup %11077  ;;  %v13567_v24 = vadd.f32 1e-05, %v2879_v26  ;;  %v13573_v20 = vadd.f32 %v13349_v39, %v3105_v57  ;;  %v10619_v26 = vld [vmem:[%s16413_s5 + $0x248] sm:$0xff] }
 0x5dd   :  { %v3002_v27 = vmul.f32 %v11076_v13, %v3001_v22  ;;  %v3008_v40 = vmul.f32 %v11078_v43, %v2910_v2  ;;  %v2764_v36 = vpop.xlane.xlu2 %2763  ;;  %vm3014_vm1 = vweird.f32 %v11078_v43 }
 0x5de   :  { %11079 = vrsqrt.f32 %v13567_v24  ;;  %v13576_v42 = vmul.f32 0.0078125, %v2764_v36  ;;  %v3444_v33 = vpack.c.bf16 %v13573_v20, %v13570_v32  ;;  %vm3015_vm3 = vmor %vm3013_vm2, %vm3014_vm1  ;;  %vm3023_vm5 = vweird.f32 %v13567_v24 }
 0x5df   :  { %v3009_v21 = vmul.f32 %v11078_v43, %v3008_v40  ;;  %v2828_v6 = vpop.xlane.xlu1 %2827  ;;  %v3006_v19 = vsel %vm3005_vm15, %v11076_v13, %v3002_v27 }
 0x5e0   :  { %v2864_v14 = vmul.f32 %v13576_v42, %v13576_v42  ;;  %v2848_v11 = vmul.f32 0.0078125, %v2828_v6  ;;  %3477 = vmatmul.bf16.gmra.mxu2 %v3444_v33  ;;  %v3085_v53 = vmul.f32 %v3006_v19, %v2893_v46 }
 0x5e1   :  { %v3010_v47 = vmul.f32 0.5, %v3009_v21  ;;  %9804 = vmatmul.msk.bf16.gmra.mxu1 %vm254_vm0, %v10619_v26  ;;  %v16565_v26 = vld [vmem:[#allocation17_spill] sm:$0xff] }
 0x5e2   :  { %v2880_v55 = vsub.f32 %v2848_v11, %v2864_v14  ;;  %v3106_v13 = vmul.f32 %v13305_v35, %v3085_v53  ;;  %v16563_v11 = vld [vmem:[#allocation15_spill] sm:$0xff] }
 0x5e3   :  { %v3011_v1 = vsub.f32 1.5, %v3010_v47  ;;  %v2896_v59 = vsub.f32 %v16563_v11, %v13576_v42 }
 0x5e4   :  { %v11080_v45 = vpop.eup %11079  ;;  %v2912_v4 = vadd.f32 1e-05, %v2880_v55  ;;  %v13602_v0 = vadd.f32 %v13349_v39, %v3106_v13 }
 0x5e5   :  { %v3012_v63 = vmul.f32 %v11078_v43, %v3011_v1  ;;  %v3018_v12 = vmul.f32 %v11080_v45, %v13567_v24  ;;  %v2766_v17 = vpop.xlane.xlu2 %2765  ;;  %vm3024_vm4 = vweird.f32 %v11080_v45 }
 0x5e6   :  { %11081 = vrsqrt.f32 %v2912_v4  ;;  %v13595_v18 = vmul.f32 0.0078125, %v2766_v17  ;;  %vm3025_vm6 = vmor %vm3023_vm5, %vm3024_vm4  ;;  %vm3033_vm8 = vweird.f32 %v2912_v4 }
 0x5e7   :  { %v3016_v58 = vsel %vm3015_vm3, %v11078_v43, %v3012_v63  ;;  %v3019_v15 = vmul.f32 %v11080_v45, %v3018_v12  ;;  %v2830_v49 = vpop.xlane.xlu1 %2829  ;;  %v16562_v43 = vld [vmem:[#allocation14_spill] sm:$0xff] }
 0x5e8   :  { %v2865_v34 = vmul.f32 %v13595_v18, %v13595_v18  ;;  %v2849_v30 = vmul.f32 0.0078125, %v2830_v49  ;;  %v3086_v9 = vmul.f32 %v3016_v58, %v2894_v60  ;;  %v2895_v27 = vsub.f32 %v16562_v43, %v13558_v51 }
 0x5e9   :  { %v3020_v2 = vmul.f32 0.5, %v3019_v15 }
 0x5ea   :  { %v2881_v52 = vsub.f32 %v2849_v30, %v2865_v34  ;;  %v3107_v37 = vmul.f32 %v13305_v35, %v3086_v9 }
 0x5eb   :  { %v3021_v10 = vsub.f32 1.5, %v3020_v2 }
 0x5ec   :  { %v11082_v16 = vpop.eup %11081  ;;  %v2913_v5 = vadd.f32 1e-05, %v2881_v52  ;;  %v13605_v38 = vadd.f32 %v13349_v39, %v3107_v37  ;;  %v10620_v37 = vld [vmem:[%s16413_s5 + $0x250] sm:$0xff] }
 0x5ed   :  { %v3022_v28 = vmul.f32 %v11080_v45, %v3021_v10  ;;  %v3028_v61 = vmul.f32 %v11082_v16, %v2912_v4  ;;  %v2768_v50 = vpop.xlane.xlu0 %2767  ;;  %vm3034_vm7 = vweird.f32 %v11082_v16 }
 0x5ee   :  { %11083 = vrsqrt.f32 %v2913_v5  ;;  %v13607_v56 = vmul.f32 0.0078125, %v2768_v50  ;;  %v3445_v54 = vpack.c.bf16 %v13605_v38, %v13602_v0  ;;  %vm3035_vm9 = vmor %vm3033_vm8, %vm3034_vm7  ;;  %vm3043_vm11 = vweird.f32 %v2913_v5 }
 0x5ef   :  { %v3029_v8 = vmul.f32 %v11082_v16, %v3028_v61  ;;  %v2832_v7 = vpop.xlane.xlu2 %2831  ;;  %v3026_v57 = vsel %vm3025_vm6, %v11080_v45, %v3022_v28  ;;  %v16564_v28 = vld [vmem:[#allocation16_spill] sm:$0xff] }
 0x5f0   :  { %v2866_v41 = vmul.f32 %v13607_v56, %v13607_v56  ;;  %v2850_v31 = vmul.f32 0.0078125, %v2832_v7  ;;  %3482 = vmatmul.bf16.gmra.mxu2 %v3445_v54  ;;  %v3087_v21 = vmul.f32 %v3026_v57, %v2895_v27  ;;  %v2897_v61 = vsub.f32 %v16564_v28, %v13595_v18 }
 0x5f1   :  { %v3030_v22 = vmul.f32 0.5, %v3029_v8  ;;  %9805 = vmatmul.msk.bf16.gmra.mxu1 %vm254_vm0, %v10620_v37  ;;  %v2898_v57 = vsub.f32 %v16565_v26, %v13607_v56 }
 0x5f2   :  { %v2882_v40 = vsub.f32 %v2850_v31, %v2866_v41  ;;  %v3108_v45 = vmul.f32 %v13305_v35, %v3087_v21 }
 0x5f3   :  { %v3031_v36 = vsub.f32 1.5, %v3030_v22 }
 0x5f4   :  { %v11084_v24 = vpop.eup %11083  ;;  %v2914_v33 = vadd.f32 1e-05, %v2882_v40  ;;  %v13629_v48 = vadd.f32 %v13349_v39, %v3108_v45 }
 0x5f5   :  { %v3032_v6 = vmul.f32 %v11082_v16, %v3031_v36  ;;  %v3038_v25 = vmul.f32 %v11084_v24, %v2913_v5  ;;  %v2770_v14 = vpop.xlane.xlu0 %2769  ;;  %vm3044_vm10 = vweird.f32 %v11084_v24 }
 0x5f6   :  { %11085 = vrsqrt.f32 %v2914_v33  ;;  %v13622_v19 = vmul.f32 0.0078125, %v2770_v14  ;;  %vm3045_vm12 = vmor %vm3043_vm11, %vm3044_vm10  ;;  %vm3053_vm14 = vweird.f32 %v2914_v33 }
 0x5f7   :  { %v3036_v51 = vsel %vm3035_vm9, %v11082_v16, %v3032_v6  ;;  %v3039_v47 = vmul.f32 %v11084_v24, %v3038_v25  ;;  %v2834_v29 = vpop.xlane.xlu2 %2833 }
 0x5f8   :  { %v2867_v46 = vmul.f32 %v13622_v19, %v13622_v19  ;;  %v2851_v55 = vmul.f32 0.0078125, %v2834_v29  ;;  %v3088_v1 = vmul.f32 %v3036_v51, %v2896_v59  ;;  %v10621_v59 = vld [vmem:[%s16413_s5 + $0x258] sm:$0xff]  ;;  %v16566_v29 = vld [vmem:[#allocation18_spill] sm:$0xff] }
 0x5f9   :  { %v3040_v4 = vmul.f32 0.5, %v3039_v47 }
 0x5fa   :  { %v2883_v53 = vsub.f32 %v2851_v55, %v2867_v46  ;;  %v3109_v63 = vmul.f32 %v13305_v35, %v3088_v1  ;;  %v2899_v46 = vsub.f32 %v16566_v29, %v13622_v19 }
 0x5fb   :  { %v3041_v12 = vsub.f32 1.5, %v3040_v4  ;;  %v16567_v4 = vld [vmem:[#allocation19_spill] sm:$0xff] }
 0x5fc   :  { %v11086_v42 = vpop.eup %11085  ;;  %v2915_v17 = vadd.f32 1e-05, %v2883_v53  ;;  %v13632_v60 = vadd.f32 %v13349_v39, %v3109_v63 }
 0x5fd   :  { %v3042_v58 = vmul.f32 %v11084_v24, %v3041_v12  ;;  %v3048_v15 = vmul.f32 %v11086_v42, %v2914_v33  ;;  %v2772_v49 = vpop.xlane.xlu1 %2771  ;;  %vm3054_vm13 = vweird.f32 %v11086_v42 }
 0x5fe   :  { %11087 = vrsqrt.f32 %v2915_v17  ;;  %v2788_v34 = vmul.f32 0.0078125, %v2772_v49  ;;  %v3446_v30 = vpack.c.bf16 %v13632_v60, %v13629_v48  ;;  %vm3055_vm15 = vmor %vm3053_vm14, %vm3054_vm13  ;;  %vm3063_vm2 = vweird.f32 %v2915_v17  ;;  %v10622_v49 = vld [vmem:[%s16413_s5 + $0x260] sm:$0xff] }
 0x5ff   :  { %v3049_v9 = vmul.f32 %v11086_v42, %v3048_v15  ;;  %v2836_v13 = vpop.xlane.xlu0 %2835  ;;  %v3046_v10 = vsel %vm3045_vm12, %v11084_v24, %v3042_v58 }
 0x600   :  { %v2868_v2 = vmul.f32 %v2788_v34, %v2788_v34  ;;  %v2852_v52 = vmul.f32 0.0078125, %v2836_v13  ;;  %3487 = vmatmul.bf16.gmra.mxu2 %v3446_v30  ;;  %v3089_v7 = vmul.f32 %v3046_v10, %v2897_v61  ;;  %v2900_v53 = vsub.f32 %v16567_v4, %v2788_v34  ;;  %v10624_v10 = vld [vmem:[%s16413_s5 + $0x270] sm:$0xff] }
 0x601   :  { %v3050_v16 = vmul.f32 0.5, %v3049_v9  ;;  %9806 = vmatmul.msk.bf16.gmra.mxu1 %vm254_vm0, %v10621_v59 }
 0x602   :  { %v2884_v50 = vsub.f32 %v2852_v52, %v2868_v2  ;;  %v3110_v18 = vmul.f32 %v13305_v35, %v3089_v7  ;;  %v10625_v7 = vld [vmem:[%s16413_s5 + $0x278] sm:$0xff] }
 0x603   :  { %v3051_v54 = vsub.f32 1.5, %v3050_v16 }
 0x604   :  { %v11088_v8 = vpop.eup %11087  ;;  %v2916_v5 = vadd.f32 1e-05, %v2884_v50  ;;  %v13647_v6 = vadd.f32 %v13349_v39, %v3110_v18  ;;  %v10636_v18 = vld [vmem:[%s16414_s6 + $0xa0] sm:$0xff] }
 0x605   :  { %v3052_v41 = vmul.f32 %v11086_v42, %v3051_v54  ;;  %v3058_v31 = vmul.f32 %v11088_v8, %v2915_v17  ;;  %vm3064_vm1 = vweird.f32 %v11088_v8 }
 0x606   :  { %11089 = vrsqrt.f32 %v2916_v5  ;;  %vm3065_vm3 = vmor %vm3063_vm2, %vm3064_vm1  ;;  %vm3073_vm5 = vweird.f32 %v2916_v5 }
 0x607   :  { %v3056_v22 = vsel %vm3055_vm15, %v11086_v42, %v3052_v41  ;;  %v3059_v43 = vmul.f32 %v11088_v8, %v3058_v31  ;;  %v10637_v31 = vld [vmem:[%s16414_s6 + $0xa8] sm:$0xff] }
 0x608   :  { %v3090_v27 = vmul.f32 %v3056_v22, %v2898_v57  ;;  %5304 = vmatpush.bf16.msrb.mxu0 %v10637_v31 }
 0x609   :  { %v3060_v40 = vmul.f32 0.5, %v3059_v43 }
 0x60a   :  { %v3111_v36 = vmul.f32 %v13305_v35, %v3090_v27 }
 0x60b   :  { %v3061_v24 = vsub.f32 1.5, %v3060_v40  ;;  %v10628_v40 = vld [vmem:[%s16413_s5 + $0x280] sm:$0xff] }
 0x60c   :  { %v11090_v21 = vpop.eup %11089  ;;  %v13650_v33 = vadd.f32 %v13349_v39, %v3111_v36  ;;  %5305 = vmatpush.bf16.msrb.mxu0 %v10636_v18 }
 0x60d   :  { %v3062_v25 = vmul.f32 %v11088_v8, %v3061_v24  ;;  %v3068_v56 = vmul.f32 %v11090_v21, %v2916_v5  ;;  %vm3074_vm4 = vweird.f32 %v11090_v21 }
 0x60e   :  { %v3447_v14 = vpack.c.bf16 %v13650_v33, %v13647_v6  ;;  %vm3075_vm6 = vmor %vm3073_vm5, %vm3074_vm4 }
 0x60f   :  { %v3069_v11 = vmul.f32 %v11090_v21, %v3068_v56  ;;  %v3066_v51 = vsel %vm3065_vm3, %v11088_v8, %v3062_v25  ;;  %9892 = vmatmul.msk.bf16.vlgmr.msrb.gmra.mxu0 %vm254_vm0, %v10628_v40 }
 0x610   :  { %3492 = vmatmul.bf16.gmra.mxu2 %v3447_v14  ;;  %v3091_v1 = vmul.f32 %v3066_v51, %v2899_v46 }
 0x611   :  { %v3070_v47 = vmul.f32 0.5, %v3069_v11  ;;  %9807 = vmatmul.msk.bf16.gmra.mxu1 %vm254_vm0, %v10622_v49 }
 0x612   :  { %v3112_v42 = vmul.f32 %v13305_v35, %v3091_v1 }
 0x613   :  { %v3071_v55 = vsub.f32 1.5, %v3070_v47  ;;  %v10629_v47 = vld [vmem:[%s16413_s5 + $0x288] sm:$0xff] }
 0x614   :  { %v13664_v58 = vadd.f32 %v13349_v39, %v3112_v42  ;;  %v10630_v42 = vld [vmem:[%s16413_s5 + $0x290] sm:$0xff] }
 0x615   :  { %v3072_v45 = vmul.f32 %v11090_v21, %v3071_v55 }
 0x617   :  { %v3076_v63 = vsel %vm3075_vm6, %v11090_v21, %v3072_v45 }
 0x618   :  { %v3092_v12 = vmul.f32 %v3076_v63, %v2900_v53 }
 0x61a   :  { %v3113_v17 = vmul.f32 %v13305_v35, %v3092_v12  ;;  %v10623_v35 = vld [vmem:[%s16413_s5 + $0x268] sm:$0xff] }
 0x61c   :  { %v13667_v19 = vadd.f32 %v13349_v39, %v3113_v17  ;;  %v13682_v39 = vld [vmem:[%s16412_s4 + $0x6] ss:$0 sm:$0xff] }
 0x61e   :  { %v3448_v15 = vpack.c.bf16 %v13667_v19, %v13664_v58 }
 0x61f   :  { %9893 = vmatmul.msk.bf16.gmra.mxu0 %vm254_vm0, %v10629_v47  ;;  %v13774_v47 = vld [vmem:[%s16412_s4 + $0x7] ss:$0 sm:$0xff] }
 0x620   :  { %3497 = vmatmul.bf16.gmra.mxu2 %v3448_v15 }
 0x621   :  { %9808 = vmatmul.msk.bf16.gmra.mxu1 %vm254_vm0, %v10623_v35 }
 0x62f   :  { %9894 = vmatmul.msk.bf16.gmra.mxu0 %vm254_vm0, %v10630_v42 }
 0x631   :  { %9809 = vmatmul.msk.bf16.gmra.mxu1 %vm254_vm0, %v10624_v10 }
 0x633   :  { %v3463_v34 = vpop.f32.mrf.mxu2 }
 0x634   :  { %v3464_v30 = vadd.f32 %v13682_v39, %v3463_v34 }
 0x636   :  { %v3503_v2 = vmax.f32 %v3464_v30, 0.0 }
 0x63b   :  { %v3465_v9 = vpop.f32.mrf.mxu2 }
 0x63c   :  { %v3466_v13 = vadd.f32 %v13682_v39, %v3465_v9 }
 0x63e   :  { %v3504_v52 = vmax.f32 %v3466_v13, 0.0 }
 0x640   :  { %v3825_v37 = vpack.c.bf16 %v3504_v52, %v3503_v2  ;;  %v10631_v52 = vld [vmem:[%s16413_s5 + $0x298] sm:$0xff] }
 0x641   :  { %9810 = vmatmul.msk.bf16.gmra.mxu1 %vm254_vm0, %v10625_v7  ;;  %9895 = vmatmul.msk.bf16.gmra.mxu0 %vm254_vm0, %v10631_v52  ;;  %v10632_v7 = vld [vmem:[%s16413_s5 + $0x2a0] sm:$0xff] }
 0x642   :  { %3846 = vmatmul.bf16.vlgmr.msrb.gmra.mxu3 %v3825_v37 }
 0x643   :  { %v3468_v16 = vpop.f32.mrf.mxu2 }
 0x644   :  { %v3469_v28 = vadd.f32 %v13682_v39, %v3468_v16 }
 0x646   :  { %v3505_v54 = vmax.f32 %v3469_v28, 0.0 }
 0x64b   :  { %v3470_v61 = vpop.f32.mrf.mxu2 }
 0x64c   :  { %v3471_v50 = vadd.f32 %v13682_v39, %v3470_v61 }
 0x64e   :  { %v3506_v8 = vmax.f32 %v3471_v50, 0.0  ;;  %v13707_v24 = vpop.f32.mrf.mxu1 }
 0x650   :  { %v3826_v5 = vpack.c.bf16 %v3506_v8, %v3505_v54 }
 0x651   :  { %9896 = vmatmul.msk.bf16.gmra.mxu0 %vm254_vm0, %v10632_v7 }
 0x652   :  { %3851 = vmatmul.bf16.gmra.mxu3 %v3826_v5 }
 0x653   :  { %v3473_v41 = vpop.f32.mrf.mxu2 }
 0x654   :  { %v3474_v26 = vadd.f32 %v13682_v39, %v3473_v41 }
 0x656   :  { %v3507_v43 = vmax.f32 %v3474_v26, 0.0  ;;  %v13710_v25 = vpop.f32.mrf.mxu1 }
 0x65b   :  { %v3475_v57 = vpop.f32.mrf.mxu2 }
 0x65c   :  { %v3476_v22 = vadd.f32 %v13682_v39, %v3475_v57 }
 0x65e   :  { %v3508_v27 = vmax.f32 %v3476_v22, 0.0  ;;  %v13717_v46 = vpop.f32.mrf.mxu1 }
 0x660   :  { %v3827_v36 = vpack.c.bf16 %v3508_v27, %v3507_v43 }
 0x662   :  { %3856 = vmatmul.bf16.gmra.mxu3 %v3827_v36 }
 0x663   :  { %v3478_v21 = vpop.f32.mrf.mxu2 }
 0x664   :  { %v3479_v56 = vadd.f32 %v13682_v39, %v3478_v21 }
 0x666   :  { %v3509_v59 = vmax.f32 %v3479_v56, 0.0  ;;  %v13720_v1 = vpop.f32.mrf.mxu1  ;;  %v10633_v56 = vld [vmem:[%s16413_s5 + $0x2a8] sm:$0xff] }
 0x667   :  { %9897 = vmatmul.msk.bf16.gmra.mxu0 %vm254_vm0, %v10633_v56 }
 0x66b   :  { %v3480_v14 = vpop.f32.mrf.mxu2 }
 0x66c   :  { %v3481_v11 = vadd.f32 %v13682_v39, %v3480_v14 }
 0x66e   :  { %v3510_v51 = vmax.f32 %v3481_v11, 0.0  ;;  %v13727_v15 = vpop.f32.mrf.mxu1  ;;  %v10634_v11 = vld [vmem:[%s16413_s5 + $0x2b0] sm:$0xff] }
 0x670   :  { %v3828_v29 = vpack.c.bf16 %v3510_v51, %v3509_v59  ;;  %v9726_v51 = vld [vmem:[%s16409_s1 + $0x138] sm:$0xff] }
 0x672   :  { %3861 = vmatmul.bf16.gmra.mxu3 %v3828_v29  ;;  %v4700_v29 = vunpack.c.2.s8 %v9726_v51 }
 0x673   :  { %v3483_v55 = vpop.f32.mrf.mxu2 }
 0x674   :  { %v3484_v45 = vadd.f32 %v13682_v39, %v3483_v55  ;;  %v4716_v42 = vcvt.s32.f32 %v4700_v29 }
 0x676   :  { %v3511_v63 = vmax.f32 %v3484_v45, 0.0  ;;  %v13730_v35 = vpop.f32.mrf.mxu1  ;;  %v9725_v45 = vld [vmem:[%s16409_s1 + $0x130] sm:$0xff] }
 0x677   :  { %9898 = vmatmul.msk.bf16.gmra.mxu0 %vm254_vm0, %v10634_v11  ;;  %v4694_v7 = vunpack.c.0.s8 %v9725_v45 }
 0x67b   :  { %v3485_v4 = vpop.f32.mrf.mxu2 }
 0x67c   :  { %v3486_v53 = vadd.f32 %v13682_v39, %v3485_v4  ;;  %v4698_v4 = vunpack.c.0.s8 %v9726_v51 }
 0x67e   :  { %v3512_v12 = vmax.f32 %v3486_v53, 0.0  ;;  %v13737_v10 = vpop.f32.mrf.mxu1  ;;  %v4699_v53 = vunpack.c.1.s8 %v9726_v51 }
 0x680   :  { %v3829_v17 = vpack.c.bf16 %v3512_v12, %v3511_v63  ;;  %v4701_v63 = vunpack.c.3.s8 %v9726_v51  ;;  %v4715_v52 = vcvt.s32.f32 %v4699_v53 }
 0x682   :  { %3866 = vmatmul.bf16.gmra.mxu3 %v3829_v17  ;;  %v10881_v17 = vld [vmem:[%s16410_s2 + $0x4f] ss:$0 sm:$0xff] }
 0x683   :  { %v3488_v49 = vpop.f32.mrf.mxu2 }
 0x684   :  { %v3489_v34 = vadd.f32 %v13682_v39, %v3488_v49  ;;  %v4696_v49 = vunpack.c.2.s8 %v9725_v45 }
 0x686   :  { %v3513_v13 = vmax.f32 %v3489_v34, 0.0  ;;  %v13740_v28 = vpop.f32.mrf.mxu1  ;;  %v4697_v34 = vunpack.c.3.s8 %v9725_v45 }
 0x68b   :  { %v3490_v30 = vpop.f32.mrf.mxu2 }
 0x68c   :  { %v3491_v9 = vadd.f32 %v13682_v39, %v3490_v30 }
 0x68e   :  { %v3514_v2 = vmax.f32 %v3491_v9, 0.0  ;;  %v13747_v31 = vpop.f32.mrf.mxu1  ;;  %v4714_v9 = vcvt.s32.f32 %v4698_v4  ;;  %v10874_v4 = vld [vmem:[%s16410_s2 + $0x4c] ss:$0 sm:$0xff] }
 0x690   :  { %v3830_v37 = vpack.c.bf16 %v3514_v2, %v3513_v13  ;;  %v10879_v13 = vld [vmem:[%s16410_s2 + $0x4e] ss:$0 sm:$0xff] }
 0x691   :  { %v4764_v56 = vmul.f32 %v10879_v13, %v4715_v52 }
 0x692   :  { %3871 = vmatmul.bf16.gmra.mxu3 %v3830_v37  ;;  %v4717_v37 = vcvt.s32.f32 %v4701_v63 }
 0x693   :  { %v3493_v16 = vpop.f32.mrf.mxu2 }
 0x694   :  { %v3494_v61 = vadd.f32 %v13682_v39, %v3493_v16  ;;  %v4766_v11 = vmul.f32 %v10881_v17, %v4717_v37 }
 0x696   :  { %v3515_v8 = vmax.f32 %v3494_v61, 0.0  ;;  %v13750_v57 = vpop.f32.mrf.mxu1 }
 0x69b   :  { %v3495_v50 = vpop.f32.mrf.mxu2 }
 0x69c   :  { %v3496_v54 = vadd.f32 %v13682_v39, %v3495_v50  ;;  %v4765_v50 = vmul.f32 %v10881_v17, %v4716_v42 }
 0x69e   :  { %v3516_v5 = vmax.f32 %v3496_v54, 0.0  ;;  %v13754_v21 = vpop.f32.mrf.mxu1  ;;  %v10882_v54 = vld [vmem:[%s16411_s3 + $0x4f] ss:$0 sm:$0xff] }
 0x69f   :  { %v4814_v51 = vadd.f32 %v10882_v54, %v4765_v50 }
 0x6a0   :  { %v3831_v41 = vpack.c.bf16 %v3516_v5, %v3515_v8  ;;  %v10635_v8 = vld [vmem:[%s16413_s5 + $0x2b8] sm:$0xff]  ;;  %v9724_v5 = vld [vmem:[%s16409_s1 + $0x128] sm:$0xff] }
 0x6a1   :  { %9899 = vmatmul.msk.bf16.gmra.mxu0 %vm254_vm0, %v10635_v8  ;;  %v4693_v29 = vunpack.c.3.s8 %v9724_v5  ;;  %v10875_v8 = vld [vmem:[%s16411_s3 + $0x4c] ss:$0 sm:$0xff] }
 0x6a2   :  { %3876 = vmatmul.bf16.gmra.mxu3 %v3831_v41  ;;  %v4695_v41 = vunpack.c.1.s8 %v9725_v45  ;;  %v4710_v45 = vcvt.s32.f32 %v4694_v7 }
 0x6a3   :  { %v3498_v26 = vpop.f32.mrf.mxu2 }
 0x6a4   :  { %v3499_v22 = vadd.f32 %v13682_v39, %v3498_v26  ;;  %v4712_v26 = vcvt.s32.f32 %v4696_v49  ;;  %v4711_v53 = vcvt.s32.f32 %v4695_v41  ;;  %v4759_v50 = vmul.f32 %v10874_v4, %v4710_v45 }
 0x6a6   :  { %v3517_v18 = vmax.f32 %v3499_v22, 0.0  ;;  %v13760_v14 = vpop.f32.mrf.mxu1  ;;  %v10876_v22 = vld [vmem:[%s16410_s2 + $0x4d] ss:$0 sm:$0xff]  ;;  %v4760_v7 = vmul.f32 %v10874_v4, %v4711_v53 }
 0x6a7   :  { %v4761_v63 = vmul.f32 %v10876_v22, %v4712_v26 }
 0x6ab   :  { %v3500_v43 = vpop.f32.mrf.mxu2 }
 0x6ac   :  { %v3501_v27 = vadd.f32 %v13682_v39, %v3500_v43  ;;  %v4713_v43 = vcvt.s32.f32 %v4697_v34 }
 0x6ae   :  { %v3518_v40 = vmax.f32 %v3501_v27, 0.0  ;;  %v13765_v59 = vpop.f32.mrf.mxu1  ;;  %v4762_v49 = vmul.f32 %v10876_v22, %v4713_v43 }
 0x6b0   :  { %v3832_v36 = vpack.c.bf16 %v3518_v40, %v3517_v18  ;;  %v4763_v18 = vmul.f32 %v10879_v13, %v4714_v9  ;;  %v10880_v40 = vld [vmem:[%s16411_s3 + $0x4e] ss:$0 sm:$0xff]  ;;  %v9723_v9 = vld [vmem:[%s16409_s1 + $0x120] sm:$0xff]  ;;  %v4690_v13 = vunpack.c.0.s8 %v9724_v5 }
 0x6b1   :  { %v4813_v34 = vadd.f32 %v10880_v40, %v4764_v56 }
 0x6b2   :  { %3881 = vmatmul.bf16.gmra.mxu3 %v3832_v36  ;;  %v4812_v17 = vadd.f32 %v10880_v40, %v4763_v18  ;;  %v4688_v18 = vunpack.c.2.s8 %v9723_v9  ;;  %v4706_v40 = vcvt.s32.f32 %v4690_v13 }
 0x6b4   :  { %v4975_v22 = vadd.f32 %v13765_v59, %v4812_v17  ;;  %v4808_v59 = vadd.f32 %v10875_v8, %v4759_v50  ;;  %v4687_v17 = vunpack.c.1.s8 %v9723_v9 }
 0x6b6   :  { %v4955_v55 = vpop.f32.mrf.mxu1 }
 0x6b7   :  { %v4976_v43 = vadd.f32 %v4955_v55, %v4813_v34  ;;  %v4809_v55 = vadd.f32 %v10875_v8, %v4760_v7  ;;  %v4704_v34 = vcvt.s32.f32 %v4688_v18 }
 0x6b9   :  { %v4972_v8 = vadd.f32 %v13750_v57, %v4809_v55 }
 0x6be   :  { %v4958_v27 = vpop.f32.mrf.mxu1 }
 0x6bf   :  { %v4977_v37 = vadd.f32 %v4958_v27, %v4814_v51  ;;  %v4689_v27 = vunpack.c.3.s8 %v9723_v9 }
 0x6c5   :  { %v3847_v39 = vpop.f32.mrf.mxu3 }
 0x6c6   :  { %v3848_v12 = vadd.f32 %v13774_v47, %v3847_v39  ;;  %v4692_v39 = vunpack.c.2.s8 %v9724_v5  ;;  %v4960_v41 = vpop.f32.mrf.mxu1 }
 0x6c8   :  { %v3887_v16 = vmax.f32 %v3848_v12, 0.0  ;;  %v10877_v12 = vld [vmem:[%s16411_s3 + $0x4d] ss:$0 sm:$0xff]  ;;  %v4708_v52 = vcvt.s32.f32 %v4692_v39  ;;  %v10870_v39 = vld [vmem:[%s16410_s2 + $0x4a] ss:$0 sm:$0xff] }
 0x6c9   :  { %v4811_v26 = vadd.f32 %v10877_v12, %v4762_v49  ;;  %v4686_v49 = vunpack.c.0.s8 %v9723_v9  ;;  %v4971_v9 = vadd.f32 %v13747_v31, %v4808_v59 }
 0x6cd   :  { %v3849_v30 = vpop.f32.mrf.mxu3 }
 0x6ce   :  { %v3850_v2 = vadd.f32 %v13774_v47, %v3849_v30  ;;  %v4815_v30 = vadd.f32 %v10882_v54, %v4766_v11  ;;  %v4810_v54 = vadd.f32 %v10877_v12, %v4761_v63  ;;  %v4974_v63 = vadd.f32 %v13760_v14, %v4811_v26  ;;  %v10866_v26 = vld [vmem:[%s16410_s2 + $0x48] ss:$0 sm:$0xff] }
 0x6cf   :  { %v4985_v12 = vpack.c.bf16 %v4976_v43, %v4975_v22  ;;  %v4703_v22 = vcvt.s32.f32 %v4687_v17 }
 0x6d0   :  { %v3888_v61 = vmax.f32 %v3850_v2, 0.0  ;;  %v4691_v2 = vunpack.c.1.s8 %v9724_v5  ;;  %v4978_v5 = vadd.f32 %v4960_v41, %v4815_v30  ;;  %v4973_v53 = vadd.f32 %v13754_v21, %v4810_v54  ;;  %v10871_v21 = vld [vmem:[%s16411_s3 + $0x4a] ss:$0 sm:$0xff] }
 0x6d1   :  { %v4705_v30 = vcvt.s32.f32 %v4689_v27  ;;  %v4702_v41 = vcvt.s32.f32 %v4686_v49 }
 0x6d2   :  { %v4209_v36 = vpack.c.bf16 %v3888_v61, %v3887_v16  ;;  %v10872_v16 = vld [vmem:[%s16410_s2 + $0x4b] ss:$0 sm:$0xff]  ;;  %v4709_v61 = vcvt.s32.f32 %v4693_v29  ;;  %v4986_v11 = vpack.c.bf16 %v4978_v5, %v4977_v37  ;;  %v10868_v37 = vld [vmem:[%s16410_s2 + $0x49] ss:$0 sm:$0xff]  ;;  %v4984_v7 = vpack.c.bf16 %v4974_v63, %v4973_v53 }
 0x6d3   :  { %v4757_v51 = vmul.f32 %v10872_v16, %v4708_v52  ;;  %v10873_v29 = vld [vmem:[%s16411_s3 + $0x4b] ss:$0 sm:$0xff]  ;;  %v13829_v52 = vpop.f32.mrf.mxu0  ;;  %v4753_v43 = vmul.f32 %v10868_v37, %v4704_v34  ;;  %v10869_v5 = vld [vmem:[%s16411_s3 + $0x49] ss:$0 sm:$0xff]  ;;  %v4754_v18 = vmul.f32 %v10868_v37, %v4705_v30 }
 0x6d4   :  { %4230 = vmatmul.bf16.vlgmr.msra.gmra.mxu2 %v4209_v36  ;;  %v4707_v36 = vcvt.s32.f32 %v4691_v2  ;;  %v4758_v45 = vmul.f32 %v10872_v16, %v4709_v61  ;;  %5000 = vmatpush.bf16.msra.mxu3 %v4986_v11  ;;  %v4755_v16 = vmul.f32 %v10870_v39, %v4706_v40 }
 0x6d5   :  { %v3852_v42 = vpop.f32.mrf.mxu3  ;;  %v4806_v61 = vadd.f32 %v10873_v29, %v4757_v51  ;;  %v4751_v51 = vmul.f32 %v10866_v26, %v4702_v41  ;;  %v4802_v59 = vadd.f32 %v10869_v5, %v4753_v43  ;;  %v4803_v55 = vadd.f32 %v10869_v5, %v4754_v18  ;;  %v10639_v41 = vld [vmem:[%s16413_s5 + $0x2c8] sm:$0xff] }
 0x6d6   :  { %v3853_v56 = vadd.f32 %v13774_v47, %v3852_v42  ;;  %v4756_v14 = vmul.f32 %v10870_v39, %v4707_v36  ;;  %v4807_v50 = vadd.f32 %v10873_v29, %v4758_v45  ;;  %v4804_v27 = vadd.f32 %v10871_v21, %v4755_v16  ;;  %v10647_v39 = vld [vmem:[%s16414_s6 + $0xb8] sm:$0xff]  ;;  %v10867_v29 = vld [vmem:[%s16411_s3 + $0x48] ss:$0 sm:$0xff] }
 0x6d7   :  { %v4969_v57 = vadd.f32 %v13737_v10, %v4806_v61  ;;  %v4752_v45 = vmul.f32 %v10866_v26, %v4703_v22  ;;  %5688 = vmatpush.bf16.msrb.mxu1 %v10647_v39  ;;  %v4800_v63 = vadd.f32 %v10867_v29, %v4751_v51  ;;  %v4965_v49 = vadd.f32 %v13717_v46, %v4802_v59  ;;  %v10638_v46 = vld [vmem:[%s16413_s5 + $0x2c0] sm:$0xff] }
 0x6d8   :  { %v3889_v13 = vmax.f32 %v3853_v56, 0.0  ;;  %5001 = vmatpush.bf16.msra.mxu3 %v4985_v12  ;;  %v4805_v40 = vadd.f32 %v10871_v21, %v4756_v14  ;;  %v4970_v36 = vadd.f32 %v13740_v28, %v4807_v50  ;;  %v4983_v56 = vpack.c.bf16 %v4972_v8, %v4971_v9 }
 0x6d9   :  { %v4967_v10 = vadd.f32 %v13727_v15, %v4804_v27  ;;  %v4801_v12 = vadd.f32 %v10867_v29, %v4752_v45  ;;  %v4966_v17 = vadd.f32 %v13720_v1, %v4803_v55  ;;  %v4963_v37 = vadd.f32 %v13707_v24, %v4800_v63 }
 0x6da   :  { %v4968_v28 = vadd.f32 %v13730_v35, %v4805_v40  ;;  %v10646_v35 = vld [vmem:[%s16414_s6 + $0xb0] sm:$0xff] }
 0x6db   :  { %v13847_v11 = vpop.f32.mrf.mxu0  ;;  %v4964_v1 = vadd.f32 %v13710_v25, %v4801_v12  ;;  %v4980_v16 = vpack.c.bf16 %v4966_v17, %v4965_v49  ;;  %5689 = vmatpush.bf16.msrb.mxu1 %v10646_v35 }
 0x6dc   :  { %5002 = vmatpush.bf16.msra.mxu3 %v4984_v7  ;;  %v4981_v34 = vpack.c.bf16 %v4968_v28, %v4967_v10 }
 0x6dd   :  { %v3854_v4 = vpop.f32.mrf.mxu3  ;;  %v4979_v61 = vpack.c.bf16 %v4964_v1, %v4963_v37 }
 0x6de   :  { %v3855_v42 = vadd.f32 %v13774_v47, %v3854_v4  ;;  %v4982_v4 = vpack.c.bf16 %v4970_v36, %v4969_v57  ;;  %9981 = vmatmul.msk.bf16.vlgmr.msrb.gmra.mxu1 %vm254_vm0, %v10638_v46  ;;  %v10640_v36 = vld [vmem:[%s16413_s5 + $0x2d0] sm:$0xff] }
 0x6e0   :  { %v3890_v2 = vmax.f32 %v3855_v42, 0.0  ;;  %5003 = vmatpush.bf16.msra.mxu3 %v4983_v56 }
 0x6e2   :  { %v4210_v54 = vpack.c.bf16 %v3890_v2, %v3889_v13 }
 0x6e3   :  { %v13861_v2 = vpop.f32.mrf.mxu0 }
 0x6e4   :  { %4235 = vmatmul.bf16.gmra.mxu2 %v4210_v54  ;;  %5004 = vmatpush.bf16.msra.mxu3 %v4982_v4  ;;  %v10641_v4 = vld [vmem:[%s16413_s5 + $0x2d8] sm:$0xff] }
 0x6e5   :  { %v3857_v31 = vpop.f32.mrf.mxu3 }
 0x6e6   :  { %v3858_v53 = vadd.f32 %v13774_v47, %v3857_v31 }
 0x6e8   :  { %v3891_v13 = vmax.f32 %v3858_v53, 0.0  ;;  %5005 = vmatpush.bf16.msra.mxu3 %v4981_v34 }
 0x6eb   :  { %v13872_v50 = vpop.f32.mrf.mxu0 }
 0x6ec   :  { %5006 = vmatpush.bf16.msra.mxu3 %v4980_v16 }
 0x6ed   :  { %v3859_v42 = vpop.f32.mrf.mxu3 }
 0x6ee   :  { %v3860_v30 = vadd.f32 %v13774_v47, %v3859_v42  ;;  %9982 = vmatmul.msk.bf16.gmra.mxu1 %vm254_vm0, %v10639_v41 }
 0x6f0   :  { %v3892_v15 = vmax.f32 %v3860_v30, 0.0  ;;  %5007 = vmatpush.bf16.msra.mxu3 %v4979_v61 }
 0x6f2   :  { %v4211_v21 = vpack.c.bf16 %v3892_v15, %v3891_v13  ;;  %v10642_v15 = vld [vmem:[%s16413_s5 + $0x2e0] sm:$0xff] }
 0x6f3   :  { %v13876_v54 = vpop.f32.mrf.mxu0 }
 0x6f4   :  { %4240 = vmatmul.bf16.gmra.mxu2 %v4211_v21 }
 0x6f5   :  { %v3862_v14 = vpop.f32.mrf.mxu3 }
 0x6f6   :  { %v3863_v24 = vadd.f32 %v13774_v47, %v3862_v14 }
 0x6f8   :  { %v3893_v7 = vmax.f32 %v3863_v24, 0.0 }
 0x6fb   :  { %v13882_v43 = vpop.f32.mrf.mxu0 }
 0x6fd   :  { %v3864_v9 = vpop.f32.mrf.mxu3 }
 0x6fe   :  { %v3865_v8 = vadd.f32 %v13774_v47, %v3864_v9  ;;  %9983 = vmatmul.msk.bf16.gmra.mxu1 %vm254_vm0, %v10640_v36  ;;  %v10896_v36 = vld [vmem:[%s16410_s2 + $0x56] ss:$0 sm:$0xff] }
 0x700   :  { %v3894_v25 = vmax.f32 %v3865_v8, 0.0  ;;  %v10643_v8 = vld [vmem:[%s16413_s5 + $0x2e8] sm:$0xff] }
 0x702   :  { %v4212_v26 = vpack.c.bf16 %v3894_v25, %v3893_v7  ;;  %v9815_v7 = vld [vmem:[%s16409_s1 + $0x158] sm:$0xff] }
 0x703   :  { %v13886_v57 = vpop.f32.mrf.mxu0  ;;  %v5082_v41 = vunpack.c.0.s8 %v9815_v7 }
 0x704   :  { %4245 = vmatmul.bf16.gmra.mxu2 %v4212_v26  ;;  %v5083_v26 = vunpack.c.1.s8 %v9815_v7 }
 0x705   :  { %v3867_v22 = vpop.f32.mrf.mxu3 }
 0x706   :  { %v3868_v5 = vadd.f32 %v13774_v47, %v3867_v22  ;;  %v5084_v22 = vunpack.c.2.s8 %v9815_v7 }
 0x708   :  { %v3895_v31 = vmax.f32 %v3868_v5, 0.0  ;;  %v5100_v5 = vcvt.s32.f32 %v5084_v22 }
 0x70b   :  { %v13892_v51 = vpop.f32.mrf.mxu0 }
 0x70d   :  { %v3869_v18 = vpop.f32.mrf.mxu3 }
 0x70e   :  { %v3870_v27 = vadd.f32 %v13774_v47, %v3869_v18  ;;  %9984 = vmatmul.msk.bf16.gmra.mxu1 %vm254_vm0, %v10641_v4  ;;  %v10898_v18 = vld [vmem:[%s16410_s2 + $0x57] ss:$0 sm:$0xff]  ;;  %v10893_v4 = vld [vmem:[%s16410_s2 + $0x55] ss:$0 sm:$0xff] }
 0x710   :  { %v3896_v40 = vmax.f32 %v3870_v27, 0.0 }
 0x712   :  { %v4213_v56 = vpack.c.bf16 %v3896_v40, %v3895_v31  ;;  %v5098_v40 = vcvt.s32.f32 %v5082_v41 }
 0x713   :  { %v13896_v28 = vpop.f32.mrf.mxu0 }
 0x714   :  { %4250 = vmatmul.bf16.gmra.mxu2 %v4213_v56  ;;  %v5099_v56 = vcvt.s32.f32 %v5083_v26 }
 0x715   :  { %v3872_v39 = vpop.f32.mrf.mxu3 }
 0x716   :  { %v3873_v29 = vadd.f32 %v13774_v47, %v3872_v39  ;;  %v9813_v39 = vld [vmem:[%s16409_s1 + $0x148] sm:$0xff] }
 0x717   :  { %v5074_v22 = vunpack.c.0.s8 %v9813_v39 }
 0x718   :  { %v3897_v55 = vmax.f32 %v3873_v29, 0.0  ;;  %v5149_v29 = vmul.f32 %v10898_v18, %v5100_v5  ;;  %v5075_v5 = vunpack.c.1.s8 %v9813_v39 }
 0x71b   :  { %v13902_v12 = vpop.f32.mrf.mxu0 }
 0x71d   :  { %v3874_v45 = vpop.f32.mrf.mxu3 }
 0x71e   :  { %v3875_v59 = vadd.f32 %v13774_v47, %v3874_v45  ;;  %9985 = vmatmul.msk.bf16.gmra.mxu1 %vm254_vm0, %v10642_v15  ;;  %v10899_v45 = vld [vmem:[%s16411_s3 + $0x57] ss:$0 sm:$0xff]  ;;  %v5076_v15 = vunpack.c.2.s8 %v9813_v39 }
 0x720   :  { %v3898_v10 = vmax.f32 %v3875_v59, 0.0 }
 0x722   :  { %v4214_v53 = vpack.c.bf16 %v3898_v10, %v3897_v55 }
 0x723   :  { %v13906_v13 = vpop.f32.mrf.mxu0 }
 0x724   :  { %4255 = vmatmul.bf16.gmra.mxu2 %v4214_v53 }
 0x725   :  { %v3877_v63 = vpop.f32.mrf.mxu3 }
 0x726   :  { %v3878_v42 = vadd.f32 %v13774_v47, %v3877_v63 }
 0x728   :  { %v3899_v34 = vmax.f32 %v3878_v42, 0.0  ;;  %v5147_v42 = vmul.f32 %v10896_v36, %v5098_v40  ;;  %v9812_v40 = vld [vmem:[%s16409_s1 + $0x140] sm:$0xff] }
 0x72b   :  { %v13912_v46 = vpop.f32.mrf.mxu0 }
 0x72d   :  { %v3879_v49 = vpop.f32.mrf.mxu3 }
 0x72e   :  { %v3880_v17 = vadd.f32 %v13774_v47, %v3879_v49  ;;  %9986 = vmatmul.msk.bf16.gmra.mxu1 %vm254_vm0, %v10643_v8  ;;  %v10897_v49 = vld [vmem:[%s16411_s3 + $0x56] ss:$0 sm:$0xff]  ;;  %v10894_v8 = vld [vmem:[%s16411_s3 + $0x55] ss:$0 sm:$0xff] }
 0x730   :  { %v3900_v30 = vmax.f32 %v3880_v17, 0.0  ;;  %v5148_v17 = vmul.f32 %v10896_v36, %v5099_v56 }
 0x732   :  { %v4215_v35 = vpack.c.bf16 %v3900_v30, %v3899_v34  ;;  %v10644_v34 = vld [vmem:[%s16413_s5 + $0x2f0] sm:$0xff]  ;;  %v5085_v30 = vunpack.c.3.s8 %v9815_v7  ;;  %v5197_v41 = vadd.f32 %v10897_v49, %v5148_v17 }
 0x733   :  { %v13916_v24 = vpop.f32.mrf.mxu0 }
 0x734   :  { %4260 = vmatmul.bf16.gmra.mxu2 %v4215_v35  ;;  %v5077_v35 = vunpack.c.3.s8 %v9813_v39 }
 0x735   :  { %v3882_v37 = vpop.f32.mrf.mxu3 }
 0x736   :  { %v3883_v1 = vadd.f32 %v13774_v47, %v3882_v37  ;;  %v13952_v37 = vld [vmem:[%s16412_s4 + $0x8] ss:$0 sm:$0xff]  ;;  %v5093_v36 = vcvt.s32.f32 %v5077_v35  ;;  %v5090_v35 = vcvt.s32.f32 %v5074_v22 }
 0x738   :  { %v3901_v14 = vmax.f32 %v3883_v1, 0.0  ;;  %v5198_v1 = vadd.f32 %v10899_v45, %v5149_v29 }
 0x73b   :  { %v5339_v25 = vpop.f32.mrf.mxu0 }
 0x73d   :  { %v3884_v16 = vpop.f32.mrf.mxu3 }
 0x73e   :  { %v3885_v21 = vadd.f32 %v13774_v47, %v3884_v16  ;;  %v9814_v47 = vld [vmem:[%s16409_s1 + $0x150] sm:$0xff]  ;;  %v5101_v16 = vcvt.s32.f32 %v5085_v30  ;;  %9987 = vmatmul.msk.bf16.gmra.mxu1 %vm254_vm0, %v10644_v34  ;;  %v5072_v30 = vunpack.c.2.s8 %v9812_v40 }
 0x73f   :  { %v5080_v27 = vunpack.c.2.s8 %v9814_v47  ;;  %v5081_v31 = vunpack.c.3.s8 %v9814_v47  ;;  %v5078_v59 = vunpack.c.0.s8 %v9814_v47  ;;  %v5079_v55 = vunpack.c.1.s8 %v9814_v47 }
 0x740   :  { %v3902_v61 = vmax.f32 %v3885_v21, 0.0  ;;  %v5196_v47 = vadd.f32 %v10897_v49, %v5147_v42  ;;  %v5150_v26 = vmul.f32 %v10898_v18, %v5101_v16  ;;  %v10892_v18 = vld [vmem:[%s16411_s3 + $0x54] ss:$0 sm:$0xff]  ;;  %v16568_v49 = vld [vmem:[#allocation21_spill] sm:$0xff] }
 0x741   :  { %v5096_v10 = vcvt.s32.f32 %v5080_v27  ;;  %v5097_v53 = vcvt.s32.f32 %v5081_v31  ;;  %v5094_v21 = vcvt.s32.f32 %v5078_v59  ;;  %v5092_v27 = vcvt.s32.f32 %v5076_v15 }
 0x742   :  { %v4216_v9 = vpack.c.bf16 %v3902_v61, %v3901_v14  ;;  %v10891_v14 = vld [vmem:[%s16410_s2 + $0x54] ss:$0 sm:$0xff]  ;;  %v5095_v61 = vcvt.s32.f32 %v5079_v55  ;;  %v5199_v59 = vadd.f32 %v10899_v45, %v5150_v26  ;;  %v10889_v55 = vld [vmem:[%s16410_s2 + $0x53] ss:$0 sm:$0xff]  ;;  %v5359_v34 = vadd.f32 %v13916_v24, %v5196_v47 }
 0x743   :  { %v5342_v63 = vpop.f32.mrf.mxu0  ;;  %v5146_v7 = vmul.f32 %v10893_v4, %v5097_v53  ;;  %v5073_v15 = vunpack.c.3.s8 %v9812_v40  ;;  %v10890_v24 = vld [vmem:[%s16411_s3 + $0x53] ss:$0 sm:$0xff]  ;;  %v5070_v26 = vunpack.c.0.s8 %v9812_v40 }
 0x744   :  { %4265 = vmatmul.bf16.gmra.mxu2 %v4216_v9  ;;  %v5145_v9 = vmul.f32 %v10893_v4, %v5096_v10  ;;  %v5361_v29 = vadd.f32 %v5342_v63, %v5198_v1  ;;  %v5143_v10 = vmul.f32 %v10891_v14, %v5094_v21  ;;  %v5144_v39 = vmul.f32 %v10891_v14, %v5095_v61  ;;  %v10887_v14 = vld [vmem:[%s16410_s2 + $0x52] ss:$0 sm:$0xff] }
 0x745   :  { %v5195_v53 = vadd.f32 %v10894_v8, %v5146_v7  ;;  %v5360_v63 = vadd.f32 %v5339_v25, %v5197_v41  ;;  %v5091_v1 = vcvt.s32.f32 %v5075_v5  ;;  %v5141_v61 = vmul.f32 %v10889_v55, %v5092_v27 }
 0x746   :  { %v5194_v4 = vadd.f32 %v10894_v8, %v5145_v9  ;;  %v5142_v25 = vmul.f32 %v10889_v55, %v5093_v36  ;;  %v5192_v9 = vadd.f32 %v10892_v18, %v5143_v10  ;;  %v5193_v8 = vadd.f32 %v10892_v18, %v5144_v39  ;;  %v10885_v36 = vld [vmem:[%s16410_s2 + $0x51] ss:$0 sm:$0xff]  ;;  %v16569_v39 = vld [vmem:[#allocation22_spill] sm:$0xff] }
 0x747   :  { %v5358_v47 = vadd.f32 %v13912_v46, %v5195_v53  ;;  %v5369_v41 = vpack.c.bf16 %v5360_v63, %v5359_v34  ;;  %v5071_v5 = vunpack.c.1.s8 %v9812_v40  ;;  %v5140_v46 = vmul.f32 %v10887_v14, %v5091_v1  ;;  %v10645_v53 = vld [vmem:[%s16413_s5 + $0x2f8] sm:$0xff]  ;;  %v10886_v63 = vld [vmem:[%s16411_s3 + $0x51] ss:$0 sm:$0xff] }
 0x748   :  { %v5357_v7 = vadd.f32 %v13906_v13, %v5194_v4  ;;  %v10888_v13 = vld [vmem:[%s16411_s3 + $0x52] ss:$0 sm:$0xff]  ;;  %v5191_v55 = vadd.f32 %v10890_v24, %v5142_v25  ;;  %v5355_v10 = vadd.f32 %v13896_v28, %v5192_v9  ;;  %v5356_v40 = vadd.f32 %v13902_v12, %v5193_v8  ;;  %v10883_v28 = vld [vmem:[%s16410_s2 + $0x50] ss:$0 sm:$0xff] }
 0x74a   :  { %v5368_v18 = vpack.c.bf16 %v5358_v47, %v5357_v7  ;;  %v5354_v1 = vadd.f32 %v13892_v51, %v5191_v55 }
 0x74b   :  { %v5344_v42 = vpop.f32.mrf.mxu0 }
 0x74c   :  { %v5362_v45 = vadd.f32 %v5344_v42, %v5199_v59  ;;  %v5190_v59 = vadd.f32 %v10890_v24, %v5141_v61  ;;  %v5086_v42 = vcvt.s32.f32 %v5070_v26  ;;  %v10884_v24 = vld [vmem:[%s16411_s3 + $0x50] ss:$0 sm:$0xff] }
 0x74e   :  { %v5370_v21 = vpack.c.bf16 %v5362_v45, %v5361_v29  ;;  %v5139_v29 = vmul.f32 %v10887_v14, %v5090_v35  ;;  %9988 = vmatmul.msk.bf16.gmra.mxu1 %vm254_vm0, %v10645_v53  ;;  %v5353_v35 = vadd.f32 %v13886_v57, %v5190_v59  ;;  %v5135_v61 = vmul.f32 %v10883_v28, %v5086_v42 }
 0x750   :  { %5384 = vmatpush.bf16.msrb.mxu2 %v5370_v21  ;;  %v5366_v47 = vpack.c.bf16 %v5354_v1, %v5353_v35  ;;  %v5184_v26 = vadd.f32 %v10884_v24, %v5135_v61 }
 0x754   :  { %5385 = vmatpush.bf16.msrb.mxu2 %v5369_v41 }
 0x757   :  { %v4231_v31 = vpop.f32.mrf.mxu2 }
 0x758   :  { %v4232_v56 = vadd.f32 %v13952_v37, %v4231_v31  ;;  %v5088_v31 = vcvt.s32.f32 %v5072_v30  ;;  %v5188_v30 = vadd.f32 %v10888_v13, %v5139_v29  ;;  %5386 = vmatpush.bf16.msrb.mxu2 %v5368_v18 }
 0x75a   :  { %v13972_v17 = vadd.f32 %v4232_v56, %v16568_v49  ;;  %v5089_v56 = vcvt.s32.f32 %v5073_v15  ;;  %v5087_v49 = vcvt.s32.f32 %v5071_v5  ;;  %v5137_v12 = vmul.f32 %v10885_v36, %v5088_v31 }
 0x75b   :  { %v5189_v15 = vadd.f32 %v10888_v13, %v5140_v46  ;;  %v5351_v7 = vadd.f32 %v13876_v54, %v5188_v30  ;;  %v14033_v13 = vpop.f32.mrf.mxu1 }
 0x75c   :  { %4287 = vadd.xlane.f32.xlu1 %v13972_v17  ;;  %v4335_v16 = vmul.f32 %v13972_v17, %v13972_v17  ;;  %v5138_v45 = vmul.f32 %v10885_v36, %v5089_v56  ;;  %v5136_v25 = vmul.f32 %v10883_v28, %v5087_v49  ;;  %v5186_v9 = vadd.f32 %v10886_v63, %v5137_v12 }
 0x75d   :  { %v5352_v57 = vadd.f32 %v13882_v43, %v5189_v15  ;;  %16570 = vst [vmem:[#allocation13_spill] sm:$0xff] %v14033_v13 }
 0x75e   :  { %4351 = vadd.xlane.f32.xlu0 %v4335_v16  ;;  %v5367_v16 = vpack.c.bf16 %v5356_v40, %v5355_v10  ;;  %v5187_v8 = vadd.f32 %v10886_v63, %v5138_v45  ;;  %v5349_v5 = vadd.f32 %v13861_v2, %v5186_v9 }
 0x75f   :  { %v4233_v22 = vpop.f32.mrf.mxu2  ;;  %v5365_v56 = vpack.c.bf16 %v5352_v57, %v5351_v7 }
 0x760   :  { %v4234_v27 = vadd.f32 %v13952_v37, %v4233_v22  ;;  %5387 = vmatpush.bf16.msrb.mxu2 %v5367_v16  ;;  %v5185_v22 = vadd.f32 %v10884_v24, %v5136_v25  ;;  %v5350_v31 = vadd.f32 %v13872_v50, %v5187_v8 }
 0x762   :  { %v13996_v4 = vadd.f32 %v4234_v27, %v16569_v39  ;;  %v5348_v27 = vadd.f32 %v13847_v11, %v5185_v22  ;;  %v5364_v36 = vpack.c.bf16 %v5350_v31, %v5349_v5 }
 0x763   :  { %v14045_v59 = vpop.f32.mrf.mxu1 }
 0x764   :  { %4289 = vadd.xlane.f32.xlu2 %v13996_v4  ;;  %v4336_v34 = vmul.f32 %v13996_v4, %v13996_v4  ;;  %5388 = vmatpush.bf16.msrb.mxu2 %v5366_v47  ;;  %16571 = vst [vmem:[#allocation20_spill] sm:$0xff] %v14045_v59 }
 0x766   :  { %4353 = vadd.xlane.f32.xlu1 %v4336_v34 }
 0x767   :  { %v4236_v21 = vpop.f32.mrf.mxu2 }
 0x768   :  { %v4237_v14 = vadd.f32 %v13952_v37, %v4236_v21  ;;  %5389 = vmatpush.bf16.msrb.mxu2 %v5365_v56 }
 0x76a   :  { %v14020_v51 = vadd.f32 %v4237_v14, %v13455_v3  ;;  %v5347_v3 = vadd.f32 %v13829_v52, %v5184_v26 }
 0x76b   :  { %v14054_v18 = vpop.f32.mrf.mxu1 }
 0x76c   :  { %4291 = vadd.xlane.f32.xlu2 %v14020_v51  ;;  %v4337_v41 = vmul.f32 %v14020_v51, %v14020_v51  ;;  %v5363_v50 = vpack.c.bf16 %v5348_v27, %v5347_v3  ;;  %5390 = vmatpush.bf16.msrb.mxu2 %v5364_v36  ;;  %16572 = vst [vmem:[#allocation5_spill] sm:$0xff] %v14054_v18 }
 0x76e   :  { %4355 = vadd.xlane.f32.xlu1 %v4337_v41 }
 0x76f   :  { %v4238_v54 = vpop.f32.mrf.mxu2 }
 0x770   :  { %v4239_v43 = vadd.f32 %v13952_v37, %v4238_v54  ;;  %5391 = vmatpush.bf16.msrb.mxu2 %v5363_v50 }
 0x772   :  { %v14031_v29 = vadd.f32 %v4239_v43, %v13458_v44 }
 0x773   :  { %v14064_v28 = vpop.f32.mrf.mxu1 }
 0x774   :  { %4293 = vadd.xlane.f32.xlu0 %v14031_v29  ;;  %v4338_v2 = vmul.f32 %v14031_v29, %v14031_v29  ;;  %16574 = vst [vmem:[#allocation7_spill] sm:$0xff] %v14064_v28 }
 0x776   :  { %4357 = vadd.xlane.f32.xlu2 %v4338_v2 }
 0x777   :  { %v4241_v46 = vpop.f32.mrf.mxu2 }
 0x778   :  { %v4242_v52 = vadd.f32 %v13952_v37, %v4241_v46 }
 0x77a   :  { %v14040_v11 = vadd.f32 %v4242_v52, %v13533_v23 }
 0x77b   :  { %v14076_v15 = vpop.f32.mrf.mxu1 }
 0x77c   :  { %4295 = vadd.xlane.f32.xlu0 %v14040_v11  ;;  %v4339_v44 = vmul.f32 %v14040_v11, %v14040_v11 }
 0x77e   :  { %4359 = vadd.xlane.f32.xlu2 %v4339_v44 }
 0x77f   :  { %v4243_v55 = vpop.f32.mrf.mxu2 }
 0x780   :  { %v4244_v10 = vadd.f32 %v13952_v37, %v4243_v55 }
 0x782   :  { %v14049_v40 = vadd.f32 %v4244_v10, %v13536_v62 }
 0x783   :  { %v14088_v21 = vpop.f32.mrf.mxu1 }
 0x784   :  { %4297 = vadd.xlane.f32.xlu1 %v14049_v40  ;;  %v4340_v23 = vmul.f32 %v14049_v40, %v14049_v40  ;;  %16578 = vst [vmem:[#allocation11_spill] sm:$0xff] %v14088_v21 }
 0x786   :  { %4361 = vadd.xlane.f32.xlu0 %v4340_v23 }
 0x787   :  { %v4246_v39 = vpop.f32.mrf.mxu2 }
 0x788   :  { %v4247_v53 = vadd.f32 %v13952_v37, %v4246_v39 }
 0x78a   :  { %v14058_v42 = vadd.f32 %v4247_v53, %v13570_v32 }
 0x78b   :  { %v14097_v25 = vpop.f32.mrf.mxu1 }
 0x78c   :  { %16573 = vst [vmem:[#allocation6_spill] sm:$0xff] %v14058_v42  ;;  %4299 = vadd.xlane.f32.xlu1 %v14058_v42  ;;  %v4341_v62 = vmul.f32 %v14058_v42, %v14058_v42 }
 0x78e   :  { %4363 = vadd.xlane.f32.xlu0 %v4341_v62 }
 0x78f   :  { %v4248_v49 = vpop.f32.mrf.mxu2 }
 0x790   :  { %v4249_v34 = vadd.f32 %v13952_v37, %v4248_v49 }
 0x792   :  { %v14067_v12 = vadd.f32 %v4249_v34, %v13573_v20 }
 0x793   :  { %v14107_v41 = vpop.f32.mrf.mxu1 }
 0x794   :  { %16575 = vst [vmem:[#allocation9_spill] sm:$0xff] %v14067_v12  ;;  %4301 = vadd.xlane.f32.xlu2 %v14067_v12  ;;  %v4342_v32 = vmul.f32 %v14067_v12, %v14067_v12 }
 0x796   :  { %4365 = vadd.xlane.f32.xlu1 %v4342_v32 }
 0x797   :  { %v4251_v63 = vpop.f32.mrf.mxu2 }
 0x798   :  { %v4252_v45 = vadd.f32 %v13952_v37, %v4251_v63 }
 0x79a   :  { %v14074_v30 = vadd.f32 %v4252_v45, %v13602_v0  ;;  %v14155_v45 = vld [vmem:[%s16409_s1 + $0x160] sm:$0xff] }
 0x79b   :  { %v14119_v56 = vpop.f32.mrf.mxu1 }
 0x79c   :  { %16576 = vst [vmem:[#allocation8_spill] sm:$0xff] %v14074_v30  ;;  %4303 = vadd.xlane.f32.xlu2 %v14074_v30  ;;  %v4343_v20 = vmul.f32 %v14074_v30, %v14074_v30 }
 0x79e   :  { %4367 = vadd.xlane.f32.xlu1 %v4343_v20 }
 0x79f   :  { %v4253_v35 = vpop.f32.mrf.mxu2 }
 0x7a0   :  { %v4254_v1 = vadd.f32 %v13952_v37, %v4253_v35  ;;  %v5454_v35 = vunpack.c.0.s8 %v14155_v45 }
 0x7a2   :  { %v14083_v16 = vadd.f32 %v4254_v1, %v13605_v38 }
 0x7a3   :  { %v14131_v27 = vpop.f32.mrf.mxu1 }
 0x7a4   :  { %16577 = vst [vmem:[#allocation10_spill] sm:$0xff] %v14083_v16  ;;  %4305 = vadd.xlane.f32.xlu0 %v14083_v16  ;;  %v4344_v0 = vmul.f32 %v14083_v16, %v14083_v16  ;;  %v10913_v16 = vld [vmem:[%s16410_s2 + $0x5e] ss:$0 sm:$0xff] }
 0x7a6   :  { %4369 = vadd.xlane.f32.xlu2 %v4344_v0 }
 0x7a7   :  { %v4256_v14 = vpop.f32.mrf.mxu2 }
 0x7a8   :  { %v4257_v61 = vadd.f32 %v13952_v37, %v4256_v14 }
 0x7aa   :  { %v14092_v24 = vadd.f32 %v4257_v61, %v13629_v48 }
 0x7ab   :  { %v14144_v39 = vpop.f32.mrf.mxu1 }
 0x7ac   :  { %16579 = vst [vmem:[#allocation12_spill] sm:$0xff] %v14092_v24  ;;  %4307 = vadd.xlane.f32.xlu0 %v14092_v24  ;;  %v4345_v38 = vmul.f32 %v14092_v24, %v14092_v24 }
 0x7ae   :  { %4371 = vadd.xlane.f32.xlu2 %v4345_v38 }
 0x7af   :  { %v4258_v9 = vpop.f32.mrf.mxu2 }
 0x7b0   :  { %v4259_v8 = vadd.f32 %v13952_v37, %v4258_v9 }
 0x7b2   :  { %v14101_v7 = vadd.f32 %v4259_v8, %v13632_v60  ;;  %v5470_v8 = vcvt.s32.f32 %v5454_v35 }
 0x7b3   :  { %v14150_v63 = vpop.f32.mrf.mxu1 }
 0x7b4   :  { %16580 = vst [vmem:[#allocation14_spill] sm:$0xff] %v14101_v7  ;;  %4309 = vadd.xlane.f32.xlu1 %v14101_v7  ;;  %v4346_v48 = vmul.f32 %v14101_v7, %v14101_v7 }
 0x7b6   :  { %4373 = vadd.xlane.f32.xlu0 %v4346_v48  ;;  %v14166_v48 = vld [vmem:[%s16410_s2 + $0x58] ss:$0 sm:$0xff] }
 0x7b7   :  { %v4261_v57 = vpop.f32.mrf.mxu2 }
 0x7b8   :  { %v4262_v47 = vadd.f32 %v13952_v37, %v4261_v57  ;;  %v14171_v57 = vld [vmem:[%s16409_s1 + $0x168] sm:$0xff] }
 0x7ba   :  { %v14110_v26 = vadd.f32 %v4262_v47, %v13647_v6 }
 0x7bc   :  { %16581 = vst [vmem:[#allocation15_spill] sm:$0xff] %v14110_v26  ;;  %4311 = vadd.xlane.f32.xlu1 %v14110_v26  ;;  %v4347_v60 = vmul.f32 %v14110_v26, %v14110_v26 }
 0x7be   :  { %4375 = vadd.xlane.f32.xlu0 %v4347_v60 }
 0x7bf   :  { %v4263_v22 = vpop.f32.mrf.mxu2 }
 0x7c0   :  { %v4264_v5 = vadd.f32 %v13952_v37, %v4263_v22  ;;  %v5458_v22 = vunpack.c.0.s8 %v14171_v57 }
 0x7c2   :  { %v14117_v31 = vadd.f32 %v4264_v5, %v13650_v33 }
 0x7c4   :  { %16582 = vst [vmem:[#allocation16_spill] sm:$0xff] %v14117_v31  ;;  %4313 = vadd.xlane.f32.xlu2 %v14117_v31  ;;  %v4348_v6 = vmul.f32 %v14117_v31, %v14117_v31 }
 0x7c6   :  { %4377 = vadd.xlane.f32.xlu1 %v4348_v6 }
 0x7c7   :  { %v4266_v54 = vpop.f32.mrf.mxu2 }
 0x7c8   :  { %v4267_v43 = vadd.f32 %v13952_v37, %v4266_v54  ;;  %v14176_v54 = vpop.f32.mrf.mxu1 }
 0x7ca   :  { %v14126_v3 = vadd.f32 %v4267_v43, %v13664_v58 }
 0x7cc   :  { %16583 = vst [vmem:[#allocation17_spill] sm:$0xff] %v14126_v3  ;;  %4315 = vadd.xlane.f32.xlu2 %v14126_v3  ;;  %v4349_v33 = vmul.f32 %v14126_v3, %v14126_v3 }
 0x7ce   :  { %4379 = vadd.xlane.f32.xlu1 %v4349_v33 }
 0x7cf   :  { %v4288_v36 = vpop.xlane.xlu1 %4287  ;;  %v4268_v2 = vpop.f32.mrf.mxu2 }
 0x7d0   :  { %v14133_v50 = vmul.f32 0.0078125, %v4288_v36  ;;  %v4269_v46 = vadd.f32 %v13952_v37, %v4268_v2  ;;  %v14181_v36 = vmul.f32 %v14166_v48, %v5470_v8  ;;  %v5456_v2 = vunpack.c.2.s8 %v14155_v45 }
 0x7d1   :  { %v4352_v52 = vpop.xlane.xlu0 %4351 }
 0x7d2   :  { %v4399_v44 = vmul.f32 %v14133_v50, %v14133_v50  ;;  %v14139_v58 = vadd.f32 %v4269_v46, %v13667_v19  ;;  %v4383_v55 = vmul.f32 0.0078125, %v4352_v52  ;;  %16585 = vst [vmem:[#allocation19_spill] sm:$0xff] %v14181_v36  ;;  %v5457_v46 = vunpack.c.3.s8 %v14155_v45 }
 0x7d4   :  { %16584 = vst [vmem:[#allocation18_spill] sm:$0xff] %v14139_v58  ;;  %v4415_v10 = vsub.f32 %v4383_v55, %v4399_v44  ;;  %4317 = vadd.xlane.f32.xlu0 %v14139_v58  ;;  %v4350_v23 = vmul.f32 %v14139_v58, %v14139_v58  ;;  %v5474_v44 = vcvt.s32.f32 %v5458_v22  ;;  %v14190_v55 = vld [vmem:[%s16410_s2 + $0x5a] ss:$0 sm:$0xff]  ;;  %v14227_v58 = vpop.f32.mrf.mxu1 }
 0x7d6   :  { %v4447_v53 = vadd.f32 1e-05, %v4415_v10  ;;  %4381 = vadd.xlane.f32.xlu2 %v4350_v23  ;;  %v14195_v10 = vld [vmem:[%s16409_s1 + $0x170] sm:$0xff] }
 0x7d7   :  { %v4290_v62 = vpop.xlane.xlu2 %4289 }
 0x7d8   :  { %11091 = vrsqrt.f32 %v4447_v53  ;;  %v14146_v37 = vmul.f32 0.0078125, %v4290_v62  ;;  %vm4469_vm8 = vweird.f32 %v4447_v53 }
 0x7d9   :  { %v4354_v49 = vpop.xlane.xlu1 %4353 }
 0x7da   :  { %v4400_v19 = vmul.f32 %v14146_v37, %v14146_v37  ;;  %v4384_v34 = vmul.f32 0.0078125, %v4354_v49 }
 0x7dc   :  { %v4416_v32 = vsub.f32 %v4384_v34, %v4400_v19  ;;  %v5459_v19 = vunpack.c.1.s8 %v14171_v57  ;;  %v5460_v34 = vunpack.c.2.s8 %v14171_v57 }
 0x7de   :  { %v11092_v20 = vpop.eup %11091  ;;  %v14158_v1 = vadd.f32 1e-05, %v4416_v32 }
 0x7df   :  { %v4464_v0 = vmul.f32 %v11092_v20, %v4447_v53  ;;  %v4292_v14 = vpop.xlane.xlu2 %4291  ;;  %vm4470_vm7 = vweird.f32 %v11092_v20 }
 0x7e0   :  { %11093 = vrsqrt.f32 %v14158_v1  ;;  %v14161_v61 = vmul.f32 0.0078125, %v4292_v14  ;;  %vm14209_vm9 = vmor %vm4469_vm8, %vm4470_vm7  ;;  %vm4479_vm11 = vweird.f32 %v14158_v1 }
 0x7e1   :  { %v4465_v38 = vmul.f32 %v11092_v20, %v4464_v0  ;;  %v4356_v9 = vpop.xlane.xlu1 %4355  ;;  %v5462_v0 = vunpack.c.0.s8 %v14195_v10 }
 0x7e2   :  { %v4401_v47 = vmul.f32 %v14161_v61, %v14161_v61  ;;  %v4385_v60 = vmul.f32 0.0078125, %v4356_v9  ;;  %v14207_v9 = vcvt.s32.f32 %v5456_v2  ;;  %v14223_v2 = vcvt.s32.f32 %v5459_v19 }
 0x7e3   :  { %v4466_v5 = vmul.f32 0.5, %v4465_v38  ;;  %v5463_v19 = vunpack.c.1.s8 %v14195_v10 }
 0x7e4   :  { %v4417_v6 = vsub.f32 %v4385_v60, %v4401_v47  ;;  %v5464_v47 = vunpack.c.2.s8 %v14195_v10 }
 0x7e5   :  { %v4467_v43 = vsub.f32 1.5, %v4466_v5  ;;  %v14216_v5 = vcvt.s32.f32 %v5457_v46  ;;  %v5478_v46 = vcvt.s32.f32 %v5462_v0  ;;  %v5479_v12 = vcvt.s32.f32 %v5463_v19 }
 0x7e6   :  { %v14178_v33 = vpop.eup %11093  ;;  %v14185_v52 = vadd.f32 1e-05, %v4417_v6  ;;  %v14219_v6 = vmul.f32 %v14190_v55, %v5474_v44 }
 0x7e7   :  { %v4468_v23 = vmul.f32 %v11092_v20, %v4467_v43  ;;  %v4474_v62 = vmul.f32 %v14178_v33, %v14158_v1  ;;  %v4294_v49 = vpop.xlane.xlu0 %4293  ;;  %vm4480_vm10 = vweird.f32 %v14178_v33 }
 0x7e8   :  { %11095 = vrsqrt.f32 %v14185_v52  ;;  %v14202_v32 = vmul.f32 0.0078125, %v4294_v49  ;;  %v4431_v49 = vsub.f32 %v13972_v17, %v14133_v50  ;;  %v5480_v17 = vcvt.s32.f32 %v5464_v47  ;;  %v10908_v47 = vld [vmem:[%s16410_s2 + $0x5c] ss:$0 sm:$0xff]  ;;  %vm4481_vm12 = vmor %vm4479_vm11, %vm4480_vm10 }
 0x7e9   :  { %v4475_v14 = vmul.f32 %v14178_v33, %v4474_v62  ;;  %v4358_v38 = vpop.xlane.xlu2 %4357  ;;  %v4472_v53 = vsel %vm14209_vm9, %v11092_v20, %v4468_v23  ;;  %v5476_v62 = vcvt.s32.f32 %v5460_v34  ;;  %v14236_v20 = vld [vmem:[%s16415_s7 + $0x2] ss:$0 sm:$0xff]  ;;  %v14249_v34 = vld [vmem:[%s16410_s2 + $0x5b] ss:$0 sm:$0xff]  ;;  %vm4489_vm14 = vweird.f32 %v14185_v52 }
 0x7ea   :  { %v4402_v60 = vmul.f32 %v14202_v32, %v14202_v32  ;;  %v4386_v22 = vmul.f32 0.0078125, %v4358_v38  ;;  %v5461_v38 = vunpack.c.3.s8 %v14171_v57  ;;  %v4623_v23 = vmul.f32 %v4472_v53, %v4431_v49  ;;  %v14244_v57 = vld [vmem:[%s16409_s1 + $0x178] sm:$0xff] }
 0x7eb   :  { %v4476_v43 = vmul.f32 0.5, %v4475_v14  ;;  %v5469_v28 = vunpack.c.3.s8 %v14244_v57 }
 0x7ec   :  { %v4418_v35 = vsub.f32 %v4386_v22, %v4402_v60  ;;  %v4432_v60 = vsub.f32 %v13996_v4, %v14146_v37  ;;  %v5467_v4 = vunpack.c.1.s8 %v14244_v57  ;;  %v5468_v37 = vunpack.c.2.s8 %v14244_v57 }
 0x7ed   :  { %v4477_v3 = vsub.f32 1.5, %v4476_v43  ;;  %v4644_v49 = vmul.f32 %v14236_v20, %v4623_v23  ;;  %v10916_v23 = vld [vmem:[%s16410_s2 + $0x5f] ss:$0 sm:$0xff] }
 0x7ee   :  { %v14231_v44 = vpop.eup %11095  ;;  %v14239_v50 = vadd.f32 1e-05, %v4418_v35  ;;  %v5465_v35 = vunpack.c.3.s8 %v14195_v10  ;;  %v10911_v10 = vld [vmem:[%s16410_s2 + $0x5d] ss:$0 sm:$0xff]  ;;  %v5484_v24 = vcvt.s32.f32 %v5468_v37 }
 0x7ef   :  { %v4478_v0 = vmul.f32 %v14178_v33, %v4477_v3  ;;  %v4484_v14 = vmul.f32 %v14231_v44, %v14185_v52  ;;  %v4296_v8 = vpop.xlane.xlu0 %4295  ;;  %v5466_v3 = vunpack.c.0.s8 %v14244_v57  ;;  %vm4490_vm13 = vweird.f32 %v14231_v44 }
 0x7f0   :  { %11097 = vrsqrt.f32 %v14239_v50  ;;  %v14265_v1 = vmul.f32 0.0078125, %v4296_v8  ;;  %v5481_v59 = vcvt.s32.f32 %v5465_v35  ;;  %v5533_v19 = vmul.f32 %v10916_v23, %v5484_v24  ;;  %vm14329_vm15 = vmor %vm4489_vm14, %vm4490_vm13 }
 0x7f1   :  { %v4482_v22 = vsel %vm4481_vm12, %v14178_v33, %v4478_v0  ;;  %v4485_v53 = vmul.f32 %v14231_v44, %v4484_v14  ;;  %v4360_v43 = vpop.xlane.xlu2 %4359  ;;  %v14280_v33 = vld [vmem:[%s16416_s8 + $0x2] ss:$0 sm:$0xff]  ;;  %v14283_v0 = vmul.f32 %v14249_v34, %v5476_v62  ;;  %v14285_v14 = vcvt.s32.f32 %v5461_v38  ;;  %v5726_v62 = vpop.f32.mrf.mxu1 }
 0x7f2   :  { %v4624_v31 = vmul.f32 %v4482_v22, %v4432_v60  ;;  %v4403_v8 = vmul.f32 %v14265_v1, %v14265_v1  ;;  %v4387_v26 = vmul.f32 0.0078125, %v4360_v43  ;;  %v14290_v60 = vmul.f32 %v10908_v47, %v5478_v46 }
 0x7f3   :  { %v4486_v7 = vmul.f32 0.5, %v4485_v53  ;;  %v5482_v43 = vcvt.s32.f32 %v5466_v3  ;;  %v5529_v38 = vmul.f32 %v10911_v10, %v5480_v17  ;;  %v5483_v53 = vcvt.s32.f32 %v5467_v4  ;;  %v10912_v17 = vld [vmem:[%s16411_s3 + $0x5d] ss:$0 sm:$0xff] }
 0x7f4   :  { %v4645_v22 = vmul.f32 %v14236_v20, %v4624_v31  ;;  %v4419_v30 = vsub.f32 %v4387_v26, %v4403_v8  ;;  %v14301_v46 = vadd.f32 %v14280_v33, %v4644_v49  ;;  %v5485_v57 = vcvt.s32.f32 %v5469_v28 }
 0x7f5   :  { %v4487_v42 = vsub.f32 1.5, %v4486_v7  ;;  %v5531_v35 = vmul.f32 %v10913_v16, %v5482_v43  ;;  %v5532_v8 = vmul.f32 %v10913_v16, %v5483_v53  ;;  %v5528_v43 = vmul.f32 %v10908_v47, %v5479_v12 }
 0x7f6   :  { %v14296_v37 = vpop.eup %11097  ;;  %v14298_v13 = vadd.f32 1e-05, %v4419_v30  ;;  %16588 = vst [vmem:[#allocation21_spill] sm:$0xff] %v14301_v46  ;;  %v14304_v31 = vadd.f32 %v14280_v33, %v4645_v22  ;;  %v10917_v30 = vld [vmem:[%s16411_s3 + $0x5f] ss:$0 sm:$0xff]  ;;  %v5578_v12 = vadd.f32 %v10912_v17, %v5529_v38  ;;  %v4433_v47 = vsub.f32 %v14020_v51, %v14161_v61 }
 0x7f7   :  { %v4488_v3 = vmul.f32 %v14231_v44, %v4487_v42  ;;  %v4494_v26 = vmul.f32 %v14296_v37, %v14239_v50  ;;  %v4298_v7 = vpop.xlane.xlu1 %4297  ;;  %v10914_v42 = vld [vmem:[%s16411_s3 + $0x5e] ss:$0 sm:$0xff]  ;;  %v5582_v53 = vadd.f32 %v10917_v30, %v5533_v19  ;;  %vm4500_vm1 = vweird.f32 %v14296_v37 }
 0x7f8   :  { %16589 = vst [vmem:[#allocation22_spill] sm:$0xff] %v14304_v31  ;;  %11099 = vrsqrt.f32 %v14298_v13  ;;  %v14320_v4 = vmul.f32 0.0078125, %v4298_v7  ;;  %v4987_v24 = vpack.c.bf16 %v14304_v31, %v14301_v46  ;;  %v5530_v7 = vmul.f32 %v10911_v10, %v5481_v59 }
 0x7f9   :  { %v4495_v49 = vmul.f32 %v14296_v37, %v4494_v26  ;;  %v4362_v22 = vpop.xlane.xlu0 %4361  ;;  %v4492_v16 = vsel %vm14329_vm15, %v14231_v44, %v4488_v3  ;;  %v5580_v26 = vadd.f32 %v10914_v42, %v5531_v35  ;;  %v5581_v59 = vadd.f32 %v10914_v42, %v5532_v8  ;;  %v5728_v44 = vpop.f32.mrf.mxu1 }
 0x7fa   :  { %v4404_v36 = vmul.f32 %v14320_v4, %v14320_v4  ;;  %v4388_v31 = vmul.f32 0.0078125, %v4362_v22  ;;  %5008 = vmatmul.bf16.vlgmr.msra.gmra.mxu3 %v4987_v24  ;;  %v5534_v10 = vmul.f32 %v10916_v23, %v5485_v57  ;;  %v5579_v24 = vadd.f32 %v10912_v17, %v5530_v7  ;;  %v10909_v23 = vld [vmem:[%s16411_s3 + $0x5c] ss:$0 sm:$0xff] }
 0x7fb   :  { %v4496_v52 = vmul.f32 0.5, %v4495_v49  ;;  %vm4499_vm2 = vweird.f32 %v14239_v50  ;;  %v4625_v28 = vmul.f32 %v4492_v16, %v4433_v47  ;;  %v5745_v61 = vadd.f32 %v5726_v62, %v5582_v53 }
 0x7fc   :  { %v4420_v46 = vsub.f32 %v4388_v31, %v4404_v36  ;;  %v5583_v31 = vadd.f32 %v10917_v30, %v5534_v10  ;;  %v4434_v3 = vsub.f32 %v14031_v29, %v14202_v32  ;;  %vm4501_vm3 = vmor %vm4499_vm2, %vm4500_vm1  ;;  %v5743_v50 = vadd.f32 %v14176_v54, %v5580_v26  ;;  %v10907_v29 = vld [vmem:[%s16411_s3 + $0x5b] ss:$0 sm:$0xff] }
 0x7fd   :  { %v4497_v21 = vsub.f32 1.5, %v4496_v52  ;;  %v5744_v19 = vadd.f32 %v14227_v58, %v5581_v59  ;;  %v4646_v42 = vmul.f32 %v14236_v20, %v4625_v28  ;;  %v5526_v49 = vmul.f32 %v14249_v34, %v14285_v14 }
 0x7fe   :  { %v14341_v22 = vpop.eup %11099  ;;  %v14344_v18 = vadd.f32 1e-05, %v4420_v46  ;;  %v5746_v17 = vadd.f32 %v5728_v44, %v5583_v31  ;;  %v5576_v7 = vadd.f32 %v10909_v23, %v14290_v60  ;;  %v5577_v16 = vadd.f32 %v10909_v23, %v5528_v43 }
 0x7ff   :  { %v4498_v38 = vmul.f32 %v14296_v37, %v4497_v21  ;;  %v4504_v51 = vmul.f32 %v14341_v22, %v14298_v13  ;;  %v4300_v36 = vpop.xlane.xlu1 %4299  ;;  %v5741_v57 = vadd.f32 %v14144_v39, %v5578_v12  ;;  %v5742_v47 = vadd.f32 %v14150_v63, %v5579_v24  ;;  %v10905_v63 = vld [vmem:[%s16411_s3 + $0x5a] ss:$0 sm:$0xff] }
 0x800   :  { %11101 = vrsqrt.f32 %v14344_v18  ;;  %v14358_v21 = vmul.f32 0.0078125, %v4300_v36  ;;  %v5754_v8 = vpack.c.bf16 %v5746_v17, %v5745_v61  ;;  %v5753_v59 = vpack.c.bf16 %v5744_v19, %v5743_v50 }
 0x801   :  { %v4502_v62 = vsel %vm4501_vm3, %v14296_v37, %v4498_v38  ;;  %v4505_v46 = vmul.f32 %v14341_v22, %v4504_v51  ;;  %v4364_v30 = vpop.xlane.xlu0 %4363  ;;  %v5524_v37 = vmul.f32 %v14190_v55, %v14223_v2  ;;  %v10902_v55 = vld [vmem:[%s16410_s2 + $0x59] ss:$0 sm:$0xff]  ;;  %v5574_v2 = vadd.f32 %v10907_v29, %v14283_v0 }
 0x802   :  { %v4405_v32 = vmul.f32 %v14358_v21, %v14358_v21  ;;  %v4389_v54 = vmul.f32 0.0078125, %v4364_v30  ;;  %v4626_v35 = vmul.f32 %v4502_v62, %v4434_v3  ;;  %5768 = vmatpush.bf16.msrb.mxu3 %v5754_v8  ;;  %v14386_v14 = vadd.f32 %v14280_v33, %v4646_v42  ;;  %v10903_v3 = vld [vmem:[%s16411_s3 + $0x59] ss:$0 sm:$0xff] }
 0x803   :  { %v4506_v58 = vmul.f32 0.5, %v4505_v46  ;;  %v5575_v60 = vadd.f32 %v10907_v29, %v5526_v49  ;;  %vm4510_vm4 = vweird.f32 %v14341_v22  ;;  %v5739_v24 = vadd.f32 %v14119_v56, %v5576_v7 }
 0x804   :  { %v4421_v52 = vsub.f32 %v4389_v54, %v4405_v32  ;;  %v4647_v53 = vmul.f32 %v14236_v20, %v4626_v35  ;;  %v5740_v38 = vadd.f32 %v14131_v27, %v5577_v16  ;;  %v5752_v51 = vpack.c.bf16 %v5742_v47, %v5741_v57 }
 0x805   :  { %v4507_v26 = vsub.f32 1.5, %v4506_v58  ;;  %vm4509_vm5 = vweird.f32 %v14298_v13  ;;  %v16592_v31 = vunpack.c.1.s8 %v14155_v45  ;;  %v5521_v56 = vmul.f32 %v10902_v55, %v14207_v9 }
 0x806   :  { %v14377_v10 = vpop.eup %11101  ;;  %v14383_v34 = vadd.f32 1e-05, %v4421_v52  ;;  %v14389_v39 = vadd.f32 %v14280_v33, %v4647_v53  ;;  %5769 = vmatpush.bf16.msrb.mxu3 %v5753_v59  ;;  %vm14415_vm6 = vmor %vm4509_vm5, %vm4510_vm4  ;;  %v5522_v45 = vmul.f32 %v10902_v55, %v14216_v5  ;;  %v5572_v62 = vadd.f32 %v10905_v63, %v14219_v6  ;;  %v16596_v59 = vld [vmem:[#allocation19_spill] sm:$0xff] }
 0x807   :  { %v4508_v43 = vmul.f32 %v14341_v22, %v4507_v26  ;;  %v4514_v0 = vmul.f32 %v14377_v10, %v14344_v18  ;;  %v4302_v12 = vpop.xlane.xlu2 %4301  ;;  %v5471_v23 = vcvt.s32.f32 %v16592_v31  ;;  %v5573_v19 = vadd.f32 %v10905_v63, %v5524_v37 }
 0x808   :  { %11103 = vrsqrt.f32 %v14383_v34  ;;  %v14400_v44 = vmul.f32 0.0078125, %v4302_v12  ;;  %v4988_v28 = vpack.c.bf16 %v14389_v39, %v14386_v14  ;;  %v5737_v30 = vadd.f32 %v14097_v25, %v5574_v2 }
 0x809   :  { %v4515_v61 = vmul.f32 %v14377_v10, %v4514_v0  ;;  %v4366_v36 = vpop.xlane.xlu1 %4365  ;;  %v4512_v9 = vsel %vm14415_vm6, %v14341_v22, %v4508_v43  ;;  %v4435_v17 = vsub.f32 %v14040_v11, %v14265_v1  ;;  %v5738_v32 = vadd.f32 %v14107_v41, %v5575_v60  ;;  %v10901_v1 = vld [vmem:[%s16411_s3 + $0x58] ss:$0 sm:$0xff]  ;;  %v16597_v43 = vld [vmem:[#allocation5_spill] sm:$0xff]  ;;  %v16598_v0 = vld [vmem:[#allocation7_spill] sm:$0xff] }
 0x80a   :  { %v4406_v13 = vmul.f32 %v14400_v44, %v14400_v44  ;;  %v4390_v50 = vmul.f32 0.0078125, %v4366_v36  ;;  %5013 = vmatmul.bf16.gmra.mxu3 %v4988_v28  ;;  %v5751_v54 = vpack.c.bf16 %v5740_v38, %v5739_v24  ;;  %vm4520_vm7 = vweird.f32 %v14377_v10 }
 0x80b   :  { %v4516_v46 = vmul.f32 0.5, %v4515_v61  ;;  %5770 = vmatpush.bf16.msrb.mxu3 %v5752_v51  ;;  %v5520_v6 = vmul.f32 %v14166_v48, %v5471_v23  ;;  %v5570_v22 = vadd.f32 %v10903_v3, %v5521_v56  ;;  %v4627_v37 = vmul.f32 %v4512_v9, %v4435_v17 }
 0x80c   :  { %v4422_v29 = vsub.f32 %v4390_v50, %v4406_v13  ;;  %v5571_v25 = vadd.f32 %v10903_v3, %v5522_v45  ;;  %vm4519_vm8 = vweird.f32 %v14344_v18  ;;  %v5735_v58 = vadd.f32 %v14076_v15, %v5572_v62  ;;  %v16595_v18 = vld [vmem:[#allocation11_spill] sm:$0xff]  ;;  %v16599_v3 = vld [vmem:[#allocation13_spill] sm:$0xff]  ;;  %v16600_v45 = vld [vmem:[#allocation20_spill] sm:$0xff] }
 0x80d   :  { %v4517_v35 = vsub.f32 1.5, %v4516_v46  ;;  %v4436_v48 = vsub.f32 %v14049_v40, %v14320_v4  ;;  %vm4521_vm9 = vmor %vm4519_vm8, %vm4520_vm7  ;;  %v5736_v7 = vadd.f32 %v16595_v18, %v5573_v19  ;;  %v5750_v16 = vpack.c.bf16 %v5738_v32, %v5737_v30 }
 0x80e   :  { %v14431_v5 = vpop.eup %11103  ;;  %v14434_v42 = vadd.f32 1e-05, %v4422_v29  ;;  %v4648_v47 = vmul.f32 %v14236_v20, %v4627_v37  ;;  %v5568_v55 = vadd.f32 %v10901_v1, %v16596_v59  ;;  %v5569_v2 = vadd.f32 %v10901_v1, %v5520_v6 }
 0x80f   :  { %v4518_v49 = vmul.f32 %v14377_v10, %v4517_v35  ;;  %v4524_v11 = vmul.f32 %v14431_v5, %v14383_v34  ;;  %v4304_v41 = vpop.xlane.xlu2 %4303  ;;  %5771 = vmatpush.bf16.msrb.mxu3 %v5751_v54  ;;  %v5734_v12 = vadd.f32 %v16598_v0, %v5571_v25  ;;  %v5749_v24 = vpack.c.bf16 %v5736_v7, %v5735_v58  ;;  %v16601_v54 = vld [vmem:[#allocation6_spill] sm:$0xff] }
 0x810   :  { %11105 = vrsqrt.f32 %v14434_v42  ;;  %v14449_v8 = vmul.f32 0.0078125, %v4304_v41  ;;  %v14464_v61 = vadd.f32 %v14280_v33, %v4648_v47  ;;  %vm4530_vm10 = vweird.f32 %v14431_v5 }
 0x811   :  { %v4522_v52 = vsel %vm4521_vm9, %v14377_v10, %v4518_v49  ;;  %v4525_v53 = vmul.f32 %v14431_v5, %v4524_v11  ;;  %v4368_v57 = vpop.xlane.xlu1 %4367  ;;  %v5733_v10 = vadd.f32 %v16597_v43, %v5570_v22  ;;  %v5731_v27 = vadd.f32 %v16599_v3, %v5568_v55 }
 0x812   :  { %v4407_v15 = vmul.f32 %v14449_v8, %v14449_v8  ;;  %v4391_v40 = vmul.f32 0.0078125, %v4368_v57  ;;  %v4628_v4 = vmul.f32 %v4522_v52, %v4436_v48  ;;  %v5732_v62 = vadd.f32 %v16600_v45, %v5569_v2 }
 0x813   :  { %v4526_v26 = vmul.f32 0.5, %v4525_v53  ;;  %5772 = vmatpush.bf16.msrb.mxu3 %v5750_v16  ;;  %v5748_v9 = vpack.c.bf16 %v5734_v12, %v5733_v10  ;;  %vm4529_vm11 = vweird.f32 %v14383_v34  ;;  %v4437_v35 = vsub.f32 %v16601_v54, %v14358_v21  ;;  %v10657_v16 = vld [vmem:[%s16414_s6 + $0xc8] sm:$0xff] }
 0x814   :  { %v4423_v63 = vsub.f32 %v4391_v40, %v4407_v15  ;;  %v4649_v60 = vmul.f32 %v14236_v20, %v4628_v4  ;;  %vm4531_vm12 = vmor %vm4529_vm11, %vm4530_vm10  ;;  %v5747_v22 = vpack.c.bf16 %v5732_v62, %v5731_v27  ;;  %vm4539_vm14 = vweird.f32 %v14434_v42  ;;  %6466 = vmatpush.bf16.msra.mxu0 %v10657_v16 }
 0x815   :  { %v4527_v28 = vsub.f32 1.5, %v4526_v26 }
 0x816   :  { %v11106_v38 = vpop.eup %11105  ;;  %v14461_v51 = vadd.f32 1e-05, %v4423_v63  ;;  %v14467_v36 = vadd.f32 %v14280_v33, %v4649_v60 }
 0x817   :  { %v4528_v31 = vmul.f32 %v14431_v5, %v4527_v28  ;;  %v4534_v23 = vmul.f32 %v11106_v38, %v14434_v42  ;;  %v4306_v56 = vpop.xlane.xlu0 %4305  ;;  %5773 = vmatpush.bf16.msrb.mxu3 %v5749_v24  ;;  %vm4540_vm13 = vweird.f32 %v11106_v38  ;;  %v10656_v24 = vld [vmem:[%s16414_s6 + $0xc0] sm:$0xff] }
 0x818   :  { %11107 = vrsqrt.f32 %v14461_v51  ;;  %v14474_v13 = vmul.f32 0.0078125, %v4306_v56  ;;  %v4989_v50 = vpack.c.bf16 %v14467_v36, %v14464_v61  ;;  %vm4541_vm15 = vmor %vm4539_vm14, %vm4540_vm13  ;;  %vm4549_vm2 = vweird.f32 %v14461_v51  ;;  %6467 = vmatpush.bf16.msra.mxu0 %v10656_v24 }
 0x819   :  { %v4535_v46 = vmul.f32 %v11106_v38, %v4534_v23  ;;  %v4370_v19 = vpop.xlane.xlu2 %4369  ;;  %v4532_v29 = vsel %vm4531_vm12, %v14431_v5, %v4528_v31  ;;  %v16602_v5 = vld [vmem:[#allocation9_spill] sm:$0xff] }
 0x81a   :  { %v4408_v30 = vmul.f32 %v14474_v13, %v14474_v13  ;;  %v4392_v17 = vmul.f32 0.0078125, %v4370_v19  ;;  %5018 = vmatmul.bf16.gmra.mxu3 %v4989_v50  ;;  %v4629_v49 = vmul.f32 %v4532_v29, %v4437_v35  ;;  %v4438_v58 = vsub.f32 %v16602_v5, %v14400_v44  ;;  %v10648_v31 = vld [vmem:[%s16413_s5 + $0x300] sm:$0xff] }
 0x81b   :  { %v4536_v32 = vmul.f32 0.5, %v4535_v46  ;;  %5774 = vmatpush.bf16.msrb.mxu3 %v5748_v9  ;;  %10072 = vmatmul.msk.bf16.vlgmr.msra.gmra.mxu0 %vm254_vm0, %v10648_v31 }
 0x81c   :  { %v4424_v6 = vsub.f32 %v4392_v17, %v4408_v30  ;;  %v4650_v57 = vmul.f32 %v14236_v20, %v4629_v49  ;;  %v16604_v17 = vld [vmem:[#allocation10_spill] sm:$0xff] }
 0x81d   :  { %v4537_v37 = vsub.f32 1.5, %v4536_v32  ;;  %v4440_v29 = vsub.f32 %v16604_v17, %v14474_v13 }
 0x81e   :  { %v11108_v34 = vpop.eup %11107  ;;  %v4456_v25 = vadd.f32 1e-05, %v4424_v6  ;;  %v14501_v59 = vadd.f32 %v14280_v33, %v4650_v57 }
 0x81f   :  { %v4538_v11 = vmul.f32 %v11106_v38, %v4537_v37  ;;  %v4544_v41 = vmul.f32 %v11108_v34, %v14461_v51  ;;  %v4308_v1 = vpop.xlane.xlu0 %4307  ;;  %5775 = vmatpush.bf16.msrb.mxu3 %v5747_v22  ;;  %vm4550_vm1 = vweird.f32 %v11108_v34  ;;  %v16603_v51 = vld [vmem:[#allocation8_spill] sm:$0xff] }
 0x820   :  { %11109 = vrsqrt.f32 %v4456_v25  ;;  %v14489_v21 = vmul.f32 0.0078125, %v4308_v1  ;;  %vm4551_vm3 = vmor %vm4549_vm2, %vm4550_vm1  ;;  %v4439_v3 = vsub.f32 %v16603_v51, %v14449_v8  ;;  %vm4559_vm5 = vweird.f32 %v4456_v25 }
 0x821   :  { %v4542_v48 = vsel %vm4541_vm15, %v11106_v38, %v4538_v11  ;;  %v4545_v18 = vmul.f32 %v11108_v34, %v4544_v41  ;;  %v4372_v7 = vpop.xlane.xlu2 %4371 }
 0x822   :  { %v4409_v42 = vmul.f32 %v14489_v21, %v14489_v21  ;;  %v4393_v52 = vmul.f32 0.0078125, %v4372_v7  ;;  %v4630_v53 = vmul.f32 %v4542_v48, %v4438_v58 }
 0x823   :  { %v4546_v44 = vmul.f32 0.5, %v4545_v18 }
 0x824   :  { %v4425_v15 = vsub.f32 %v4393_v52, %v4409_v42  ;;  %v4651_v40 = vmul.f32 %v14236_v20, %v4630_v53 }
 0x825   :  { %v4547_v4 = vsub.f32 1.5, %v4546_v44 }
 0x826   :  { %v11110_v47 = vpop.eup %11109  ;;  %v14498_v26 = vadd.f32 1e-05, %v4425_v15  ;;  %v14504_v55 = vadd.f32 %v14280_v33, %v4651_v40  ;;  %v10649_v15 = vld [vmem:[%s16413_s5 + $0x308] sm:$0xff] }
 0x827   :  { %v4548_v2 = vmul.f32 %v11108_v34, %v4547_v4  ;;  %v4554_v63 = vmul.f32 %v11110_v47, %v4456_v25  ;;  %v4310_v60 = vpop.xlane.xlu1 %4309  ;;  %vm4560_vm4 = vweird.f32 %v11110_v47 }
 0x828   :  { %11111 = vrsqrt.f32 %v14498_v26  ;;  %v14507_v43 = vmul.f32 0.0078125, %v4310_v60  ;;  %v4990_v10 = vpack.c.bf16 %v14504_v55, %v14501_v59  ;;  %vm4561_vm6 = vmor %vm4559_vm5, %vm4560_vm4  ;;  %vm4569_vm8 = vweird.f32 %v14498_v26 }
 0x829   :  { %v4555_v0 = vmul.f32 %v11110_v47, %v4554_v63  ;;  %v4374_v12 = vpop.xlane.xlu0 %4373  ;;  %v4552_v23 = vsel %vm4551_vm3, %v11108_v34, %v4548_v2 }
 0x82a   :  { %v4410_v28 = vmul.f32 %v14507_v43, %v14507_v43  ;;  %v4394_v38 = vmul.f32 0.0078125, %v4374_v12  ;;  %5023 = vmatmul.bf16.gmra.mxu3 %v4990_v10  ;;  %v4631_v9 = vmul.f32 %v4552_v23, %v4439_v3 }
 0x82b   :  { %v4556_v56 = vmul.f32 0.5, %v4555_v0  ;;  %10073 = vmatmul.msk.bf16.gmra.mxu0 %vm254_vm0, %v10649_v15  ;;  %v16608_v15 = vld [vmem:[#allocation16_spill] sm:$0xff] }
 0x82c   :  { %v4426_v27 = vsub.f32 %v4394_v38, %v4410_v28  ;;  %v4652_v34 = vmul.f32 %v14236_v20, %v4631_v9  ;;  %v16606_v38 = vld [vmem:[#allocation14_spill] sm:$0xff] }
 0x82d   :  { %v4557_v50 = vsub.f32 1.5, %v4556_v56  ;;  %v4442_v31 = vsub.f32 %v16606_v38, %v14507_v43 }
 0x82e   :  { %v11112_v45 = vpop.eup %11111  ;;  %v4458_v62 = vadd.f32 1e-05, %v4426_v27  ;;  %v14533_v5 = vadd.f32 %v14280_v33, %v4652_v34 }
 0x82f   :  { %v4558_v46 = vmul.f32 %v11110_v47, %v4557_v50  ;;  %v4564_v19 = vmul.f32 %v11112_v45, %v14498_v26  ;;  %v4312_v30 = vpop.xlane.xlu1 %4311  ;;  %vm4570_vm7 = vweird.f32 %v11112_v45 }
 0x830   :  { %11113 = vrsqrt.f32 %v4458_v62  ;;  %v14526_v32 = vmul.f32 0.0078125, %v4312_v30  ;;  %vm4571_vm9 = vmor %vm4569_vm8, %vm4570_vm7  ;;  %vm4579_vm11 = vweird.f32 %v4458_v62 }
 0x831   :  { %v4562_v8 = vsel %vm4561_vm6, %v11110_v47, %v4558_v46  ;;  %v4565_v54 = vmul.f32 %v11112_v45, %v4564_v19  ;;  %v4376_v35 = vpop.xlane.xlu0 %4375  ;;  %v16605_v47 = vld [vmem:[#allocation12_spill] sm:$0xff] }
 0x832   :  { %v4411_v6 = vmul.f32 %v14526_v32, %v14526_v32  ;;  %v4395_v22 = vmul.f32 0.0078125, %v4376_v35  ;;  %v4632_v37 = vmul.f32 %v4562_v8, %v4440_v29  ;;  %v4441_v2 = vsub.f32 %v16605_v47, %v14489_v21 }
 0x833   :  { %v4566_v25 = vmul.f32 0.5, %v4565_v54 }
 0x834   :  { %v4427_v49 = vsub.f32 %v4395_v22, %v4411_v6  ;;  %v4653_v11 = vmul.f32 %v14236_v20, %v4632_v37 }
 0x835   :  { %v4567_v41 = vsub.f32 1.5, %v4566_v25 }
 0x836   :  { %v11114_v13 = vpop.eup %11113  ;;  %v4459_v1 = vadd.f32 1e-05, %v4427_v49  ;;  %v14536_v58 = vadd.f32 %v14280_v33, %v4653_v11  ;;  %v10650_v11 = vld [vmem:[%s16413_s5 + $0x310] sm:$0xff] }
 0x837   :  { %v4568_v48 = vmul.f32 %v11112_v45, %v4567_v41  ;;  %v4574_v18 = vmul.f32 %v11114_v13, %v4458_v62  ;;  %v4314_v7 = vpop.xlane.xlu2 %4313  ;;  %vm4580_vm10 = vweird.f32 %v11114_v13 }
 0x838   :  { %11115 = vrsqrt.f32 %v4459_v1  ;;  %v14538_v16 = vmul.f32 0.0078125, %v4314_v7  ;;  %v4991_v42 = vpack.c.bf16 %v14536_v58, %v14533_v5  ;;  %vm4581_vm12 = vmor %vm4579_vm11, %vm4580_vm10  ;;  %vm4589_vm14 = vweird.f32 %v4459_v1 }
 0x839   :  { %v4575_v52 = vmul.f32 %v11114_v13, %v4574_v18  ;;  %v4378_v53 = vpop.xlane.xlu1 %4377  ;;  %v4572_v40 = vsel %vm4571_vm9, %v11112_v45, %v4568_v48  ;;  %v16607_v48 = vld [vmem:[#allocation15_spill] sm:$0xff] }
 0x83a   :  { %v4412_v57 = vmul.f32 %v14538_v16, %v14538_v16  ;;  %v4396_v44 = vmul.f32 0.0078125, %v4378_v53  ;;  %5028 = vmatmul.bf16.gmra.mxu3 %v4991_v42  ;;  %v4633_v0 = vmul.f32 %v4572_v40, %v4441_v2  ;;  %v4443_v18 = vsub.f32 %v16607_v48, %v14526_v32 }
 0x83b   :  { %v4576_v4 = vmul.f32 0.5, %v4575_v52  ;;  %10074 = vmatmul.msk.bf16.gmra.mxu0 %vm254_vm0, %v10650_v11  ;;  %v4444_v40 = vsub.f32 %v16608_v15, %v14538_v16 }
 0x83c   :  { %v4428_v63 = vsub.f32 %v4396_v44, %v4412_v57  ;;  %v4654_v45 = vmul.f32 %v14236_v20, %v4633_v0 }
 0x83d   :  { %v4577_v60 = vsub.f32 1.5, %v4576_v4 }
 0x83e   :  { %v11116_v26 = vpop.eup %11115  ;;  %v4460_v10 = vadd.f32 1e-05, %v4428_v63  ;;  %v14560_v17 = vadd.f32 %v14280_v33, %v4654_v45 }
 0x83f   :  { %v4578_v12 = vmul.f32 %v11114_v13, %v4577_v60  ;;  %v4584_v24 = vmul.f32 %v11116_v26, %v4459_v1  ;;  %v4316_v28 = vpop.xlane.xlu2 %4315  ;;  %vm4590_vm13 = vweird.f32 %v11116_v26 }
 0x840   :  { %11117 = vrsqrt.f32 %v4460_v10  ;;  %v14553_v23 = vmul.f32 0.0078125, %v4316_v28  ;;  %vm4591_vm15 = vmor %vm4589_vm14, %vm4590_vm13  ;;  %vm4599_vm2 = vweird.f32 %v4460_v10 }
 0x841   :  { %v4582_v21 = vsel %vm4581_vm12, %v11114_v13, %v4578_v12  ;;  %v4585_v56 = vmul.f32 %v11116_v26, %v4584_v24  ;;  %v4380_v51 = vpop.xlane.xlu1 %4379 }
 0x842   :  { %v4413_v3 = vmul.f32 %v14553_v23, %v14553_v23  ;;  %v4397_v27 = vmul.f32 0.0078125, %v4380_v51  ;;  %v4634_v50 = vmul.f32 %v4582_v21, %v4442_v31  ;;  %v10651_v31 = vld [vmem:[%s16413_s5 + $0x318] sm:$0xff]  ;;  %v16609_v51 = vld [vmem:[#allocation17_spill] sm:$0xff] }
 0x843   :  { %v4586_v62 = vmul.f32 0.5, %v4585_v56 }
 0x844   :  { %v4429_v9 = vsub.f32 %v4397_v27, %v4413_v3  ;;  %v4655_v46 = vmul.f32 %v14236_v20, %v4634_v50  ;;  %v4445_v3 = vsub.f32 %v16609_v51, %v14553_v23 }
 0x845   :  { %v4587_v19 = vsub.f32 1.5, %v4586_v62  ;;  %v16610_v62 = vld [vmem:[#allocation18_spill] sm:$0xff] }
 0x846   :  { %v11118_v43 = vpop.eup %11117  ;;  %v4461_v30 = vadd.f32 1e-05, %v4429_v9  ;;  %v14563_v29 = vadd.f32 %v14280_v33, %v4655_v46 }
 0x847   :  { %v4588_v8 = vmul.f32 %v11116_v26, %v4587_v19  ;;  %v4594_v54 = vmul.f32 %v11118_v43, %v4460_v10  ;;  %v4318_v35 = vpop.xlane.xlu0 %4317  ;;  %vm4600_vm1 = vweird.f32 %v11118_v43 }
 0x848   :  { %11119 = vrsqrt.f32 %v4461_v30  ;;  %v4334_v6 = vmul.f32 0.0078125, %v4318_v35  ;;  %v4992_v22 = vpack.c.bf16 %v14563_v29, %v14560_v17  ;;  %vm4601_vm3 = vmor %vm4599_vm2, %vm4600_vm1  ;;  %vm4609_vm5 = vweird.f32 %v4461_v30  ;;  %v10652_v35 = vld [vmem:[%s16413_s5 + $0x320] sm:$0xff] }
 0x849   :  { %v4595_v37 = vmul.f32 %v11118_v43, %v4594_v54  ;;  %v4382_v34 = vpop.xlane.xlu2 %4381  ;;  %v4592_v41 = vsel %vm4591_vm15, %v11116_v26, %v4588_v8 }
 0x84a   :  { %v4414_v25 = vmul.f32 %v4334_v6, %v4334_v6  ;;  %v4398_v49 = vmul.f32 0.0078125, %v4382_v34  ;;  %5033 = vmatmul.bf16.gmra.mxu3 %v4992_v22  ;;  %v4635_v53 = vmul.f32 %v4592_v41, %v4443_v18  ;;  %v4446_v9 = vsub.f32 %v16610_v62, %v4334_v6  ;;  %v10654_v41 = vld [vmem:[%s16413_s5 + $0x330] sm:$0xff] }
 0x84b   :  { %v4596_v13 = vmul.f32 0.5, %v4595_v37  ;;  %10075 = vmatmul.msk.bf16.gmra.mxu0 %vm254_vm0, %v10651_v31 }
 0x84c   :  { %v4430_v7 = vsub.f32 %v4398_v49, %v4414_v25  ;;  %v4656_v32 = vmul.f32 %v14236_v20, %v4635_v53  ;;  %v10655_v53 = vld [vmem:[%s16413_s5 + $0x338] sm:$0xff] }
 0x84d   :  { %v4597_v42 = vsub.f32 1.5, %v4596_v13 }
 0x84e   :  { %v11120_v52 = vpop.eup %11119  ;;  %v4462_v1 = vadd.f32 1e-05, %v4430_v7  ;;  %v14578_v12 = vadd.f32 %v14280_v33, %v4656_v32  ;;  %v10666_v32 = vld [vmem:[%s16414_s6 + $0xd0] sm:$0xff] }
 0x84f   :  { %v4598_v57 = vmul.f32 %v11118_v43, %v4597_v42  ;;  %v4604_v44 = vmul.f32 %v11120_v52, %v4461_v30  ;;  %vm4610_vm4 = vweird.f32 %v11120_v52 }
 0x850   :  { %11121 = vrsqrt.f32 %v4462_v1  ;;  %vm4611_vm6 = vmor %vm4609_vm5, %vm4610_vm4  ;;  %vm4619_vm8 = vweird.f32 %v4462_v1 }
 0x851   :  { %v4602_v4 = vsel %vm4601_vm3, %v11118_v43, %v4598_v57  ;;  %v4605_v47 = vmul.f32 %v11120_v52, %v4604_v44  ;;  %v10667_v44 = vld [vmem:[%s16414_s6 + $0xd8] sm:$0xff] }
 0x852   :  { %v4636_v2 = vmul.f32 %v4602_v4, %v4444_v40  ;;  %6850 = vmatpush.bf16.msra.mxu1 %v10667_v44 }
 0x853   :  { %v4606_v63 = vmul.f32 0.5, %v4605_v47 }
 0x854   :  { %v4657_v60 = vmul.f32 %v14236_v20, %v4636_v2 }
 0x855   :  { %v4607_v26 = vsub.f32 1.5, %v4606_v63  ;;  %v10658_v63 = vld [vmem:[%s16413_s5 + $0x340] sm:$0xff] }
 0x856   :  { %v11122_v0 = vpop.eup %11121  ;;  %v14581_v10 = vadd.f32 %v14280_v33, %v4657_v60  ;;  %6851 = vmatpush.bf16.msra.mxu1 %v10666_v32 }
 0x857   :  { %v4608_v24 = vmul.f32 %v11120_v52, %v4607_v26  ;;  %v4614_v16 = vmul.f32 %v11122_v0, %v4462_v1  ;;  %vm4620_vm7 = vweird.f32 %v11122_v0 }
 0x858   :  { %v4993_v28 = vpack.c.bf16 %v14581_v10, %v14578_v12  ;;  %vm4621_vm9 = vmor %vm4619_vm8, %vm4620_vm7 }
 0x859   :  { %v4615_v38 = vmul.f32 %v11122_v0, %v4614_v16  ;;  %v4612_v21 = vsel %vm4611_vm6, %v11120_v52, %v4608_v24  ;;  %10161 = vmatmul.msk.bf16.vlgmr.msra.gmra.mxu1 %vm254_vm0, %v10658_v63 }
 0x85a   :  { %5038 = vmatmul.bf16.gmra.mxu3 %v4993_v28  ;;  %v4637_v50 = vmul.f32 %v4612_v21, %v4445_v3 }
 0x85b   :  { %v4616_v56 = vmul.f32 0.5, %v4615_v38  ;;  %10076 = vmatmul.msk.bf16.gmra.mxu0 %vm254_vm0, %v10652_v35 }
 0x85c   :  { %v4658_v43 = vmul.f32 %v14236_v20, %v4637_v50 }
 0x85d   :  { %v4617_v27 = vsub.f32 1.5, %v4616_v56  ;;  %v10659_v56 = vld [vmem:[%s16413_s5 + $0x348] sm:$0xff] }
 0x85e   :  { %v14595_v8 = vadd.f32 %v14280_v33, %v4658_v43  ;;  %v10660_v43 = vld [vmem:[%s16413_s5 + $0x350] sm:$0xff] }
 0x85f   :  { %v4618_v45 = vmul.f32 %v11122_v0, %v4617_v27 }
 0x861   :  { %v4622_v46 = vsel %vm4621_vm9, %v11122_v0, %v4618_v45 }
 0x862   :  { %v4638_v19 = vmul.f32 %v4622_v46, %v4446_v9 }
 0x864   :  { %v4659_v30 = vmul.f32 %v14236_v20, %v4638_v19  ;;  %v10653_v20 = vld [vmem:[%s16413_s5 + $0x328] sm:$0xff] }
 0x866   :  { %v14598_v23 = vadd.f32 %v14280_v33, %v4659_v30  ;;  %v14613_v33 = vld [vmem:[%s16412_s4 + $0x9] ss:$0 sm:$0xff] }
 0x868   :  { %v4994_v54 = vpack.c.bf16 %v14598_v23, %v14595_v8 }
 0x869   :  { %10162 = vmatmul.msk.bf16.gmra.mxu1 %vm254_vm0, %v10659_v56  ;;  %v14705_v56 = vld [vmem:[%s16412_s4 + $0xa] ss:$0 sm:$0xff] }
 0x86a   :  { %5043 = vmatmul.bf16.gmra.mxu3 %v4994_v54 }
 0x86b   :  { %10077 = vmatmul.msk.bf16.gmra.mxu0 %vm254_vm0, %v10653_v20 }
 0x879   :  { %10163 = vmatmul.msk.bf16.gmra.mxu1 %vm254_vm0, %v10660_v43 }
 0x87b   :  { %10078 = vmatmul.msk.bf16.gmra.mxu0 %vm254_vm0, %v10654_v41 }
 0x87d   :  { %v5009_v6 = vpop.f32.mrf.mxu3 }
 0x87e   :  { %v5010_v22 = vadd.f32 %v14613_v33, %v5009_v6 }
 0x880   :  { %v5049_v25 = vmax.f32 %v5010_v22, 0.0 }
 0x885   :  { %v5011_v37 = vpop.f32.mrf.mxu3 }
 0x886   :  { %v5012_v34 = vadd.f32 %v14613_v33, %v5011_v37 }
 0x888   :  { %v5050_v49 = vmax.f32 %v5012_v34, 0.0 }
 0x88a   :  { %v5371_v11 = vpack.c.bf16 %v5050_v49, %v5049_v25  ;;  %v10661_v49 = vld [vmem:[%s16413_s5 + $0x358] sm:$0xff] }
 0x88b   :  { %10079 = vmatmul.msk.bf16.gmra.mxu0 %vm254_vm0, %v10655_v53  ;;  %10164 = vmatmul.msk.bf16.gmra.mxu1 %vm254_vm0, %v10661_v49  ;;  %v10662_v53 = vld [vmem:[%s16413_s5 + $0x360] sm:$0xff] }
 0x88c   :  { %5392 = vmatmul.bf16.vlgmr.msrb.gmra.mxu2 %v5371_v11 }
 0x88d   :  { %v5014_v13 = vpop.f32.mrf.mxu3 }
 0x88e   :  { %v5015_v48 = vadd.f32 %v14613_v33, %v5014_v13 }
 0x890   :  { %v5051_v42 = vmax.f32 %v5015_v48, 0.0 }
 0x895   :  { %v5016_v18 = vpop.f32.mrf.mxu3 }
 0x896   :  { %v5017_v7 = vadd.f32 %v14613_v33, %v5016_v18 }
 0x898   :  { %v5052_v52 = vmax.f32 %v5017_v7, 0.0  ;;  %v14638_v26 = vpop.f32.mrf.mxu0 }
 0x89a   :  { %v5372_v1 = vpack.c.bf16 %v5052_v52, %v5051_v42 }
 0x89b   :  { %10165 = vmatmul.msk.bf16.gmra.mxu1 %vm254_vm0, %v10662_v53 }
 0x89c   :  { %5397 = vmatmul.bf16.gmra.mxu2 %v5372_v1 }
 0x89d   :  { %v5019_v57 = vpop.f32.mrf.mxu3 }
 0x89e   :  { %v5020_v15 = vadd.f32 %v14613_v33, %v5019_v57 }
 0x8a0   :  { %v5053_v47 = vmax.f32 %v5020_v15, 0.0  ;;  %v14641_v24 = vpop.f32.mrf.mxu0 }
 0x8a5   :  { %v5021_v40 = vpop.f32.mrf.mxu3 }
 0x8a6   :  { %v5022_v4 = vadd.f32 %v14613_v33, %v5021_v40 }
 0x8a8   :  { %v5054_v2 = vmax.f32 %v5022_v4, 0.0  ;;  %v14648_v3 = vpop.f32.mrf.mxu0 }
 0x8aa   :  { %v5373_v60 = vpack.c.bf16 %v5054_v2, %v5053_v47 }
 0x8ac   :  { %5402 = vmatmul.bf16.gmra.mxu2 %v5373_v60 }
 0x8ad   :  { %v5024_v0 = vpop.f32.mrf.mxu3 }
 0x8ae   :  { %v5025_v16 = vadd.f32 %v14613_v33, %v5024_v0 }
 0x8b0   :  { %v5055_v31 = vmax.f32 %v5025_v16, 0.0  ;;  %v14651_v50 = vpop.f32.mrf.mxu0  ;;  %v10663_v16 = vld [vmem:[%s16413_s5 + $0x368] sm:$0xff] }
 0x8b1   :  { %10166 = vmatmul.msk.bf16.gmra.mxu1 %vm254_vm0, %v10663_v16 }
 0x8b5   :  { %v5026_v28 = vpop.f32.mrf.mxu3 }
 0x8b6   :  { %v5027_v38 = vadd.f32 %v14613_v33, %v5026_v28 }
 0x8b8   :  { %v5056_v21 = vmax.f32 %v5027_v38, 0.0  ;;  %v14658_v54 = vpop.f32.mrf.mxu0  ;;  %v10664_v38 = vld [vmem:[%s16413_s5 + $0x370] sm:$0xff] }
 0x8ba   :  { %v5374_v51 = vpack.c.bf16 %v5056_v21, %v5055_v31  ;;  %v9995_v21 = vld [vmem:[%s16409_s1 + $0x198] sm:$0xff] }
 0x8bc   :  { %5407 = vmatmul.bf16.gmra.mxu2 %v5374_v51  ;;  %v6246_v51 = vunpack.c.2.s8 %v9995_v21 }
 0x8bd   :  { %v5029_v27 = vpop.f32.mrf.mxu3 }
 0x8be   :  { %v5030_v45 = vadd.f32 %v14613_v33, %v5029_v27  ;;  %v6262_v43 = vcvt.s32.f32 %v6246_v51 }
 0x8c0   :  { %v5057_v46 = vmax.f32 %v5030_v45, 0.0  ;;  %v14661_v20 = vpop.f32.mrf.mxu0  ;;  %v9994_v45 = vld [vmem:[%s16409_s1 + $0x190] sm:$0xff] }
 0x8c1   :  { %10167 = vmatmul.msk.bf16.gmra.mxu1 %vm254_vm0, %v10664_v38  ;;  %v6240_v53 = vunpack.c.0.s8 %v9994_v45 }
 0x8c5   :  { %v5031_v62 = vpop.f32.mrf.mxu3 }
 0x8c6   :  { %v5032_v9 = vadd.f32 %v14613_v33, %v5031_v62  ;;  %v6244_v62 = vunpack.c.0.s8 %v9995_v21 }
 0x8c8   :  { %v5058_v19 = vmax.f32 %v5032_v9, 0.0  ;;  %v14668_v41 = vpop.f32.mrf.mxu0  ;;  %v6245_v9 = vunpack.c.1.s8 %v9995_v21 }
 0x8ca   :  { %v5375_v30 = vpack.c.bf16 %v5058_v19, %v5057_v46  ;;  %v6247_v46 = vunpack.c.3.s8 %v9995_v21  ;;  %v6261_v49 = vcvt.s32.f32 %v6245_v9 }
 0x8cc   :  { %5412 = vmatmul.bf16.gmra.mxu2 %v5375_v30  ;;  %v10934_v30 = vld [vmem:[%s16410_s2 + $0x67] ss:$0 sm:$0xff] }
 0x8cd   :  { %v5034_v35 = vpop.f32.mrf.mxu3 }
 0x8ce   :  { %v5035_v6 = vadd.f32 %v14613_v33, %v5034_v35  ;;  %v6242_v35 = vunpack.c.2.s8 %v9994_v45 }
 0x8d0   :  { %v5059_v34 = vmax.f32 %v5035_v6, 0.0  ;;  %v14671_v48 = vpop.f32.mrf.mxu0  ;;  %v6243_v6 = vunpack.c.3.s8 %v9994_v45 }
 0x8d5   :  { %v5036_v22 = vpop.f32.mrf.mxu3 }
 0x8d6   :  { %v5037_v37 = vadd.f32 %v14613_v33, %v5036_v22 }
 0x8d8   :  { %v5060_v25 = vmax.f32 %v5037_v37, 0.0  ;;  %v14678_v44 = vpop.f32.mrf.mxu0  ;;  %v6260_v37 = vcvt.s32.f32 %v6244_v62  ;;  %v10927_v62 = vld [vmem:[%s16410_s2 + $0x64] ss:$0 sm:$0xff] }
 0x8da   :  { %v5376_v11 = vpack.c.bf16 %v5060_v25, %v5059_v34  ;;  %v10932_v34 = vld [vmem:[%s16410_s2 + $0x66] ss:$0 sm:$0xff] }
 0x8db   :  { %v6310_v16 = vmul.f32 %v10932_v34, %v6261_v49 }
 0x8dc   :  { %5417 = vmatmul.bf16.gmra.mxu2 %v5376_v11  ;;  %v6263_v11 = vcvt.s32.f32 %v6247_v46 }
 0x8dd   :  { %v5039_v13 = vpop.f32.mrf.mxu3 }
 0x8de   :  { %v5040_v18 = vadd.f32 %v14613_v33, %v5039_v13  ;;  %v6312_v38 = vmul.f32 %v10934_v30, %v6263_v11 }
 0x8e0   :  { %v5061_v52 = vmax.f32 %v5040_v18, 0.0  ;;  %v14681_v40 = vpop.f32.mrf.mxu0 }
 0x8e5   :  { %v5041_v7 = vpop.f32.mrf.mxu3 }
 0x8e6   :  { %v5042_v42 = vadd.f32 %v14613_v33, %v5041_v7  ;;  %v6311_v7 = vmul.f32 %v10934_v30, %v6262_v43 }
 0x8e8   :  { %v5062_v1 = vmax.f32 %v5042_v42, 0.0  ;;  %v14685_v0 = vpop.f32.mrf.mxu0  ;;  %v10935_v42 = vld [vmem:[%s16411_s3 + $0x67] ss:$0 sm:$0xff] }
 0x8e9   :  { %v6360_v21 = vadd.f32 %v10935_v42, %v6311_v7 }
 0x8ea   :  { %v5377_v57 = vpack.c.bf16 %v5062_v1, %v5061_v52  ;;  %v10665_v52 = vld [vmem:[%s16413_s5 + $0x378] sm:$0xff]  ;;  %v9993_v1 = vld [vmem:[%s16409_s1 + $0x188] sm:$0xff] }
 0x8eb   :  { %10168 = vmatmul.msk.bf16.gmra.mxu1 %vm254_vm0, %v10665_v52  ;;  %v6239_v51 = vunpack.c.3.s8 %v9993_v1  ;;  %v10928_v52 = vld [vmem:[%s16411_s3 + $0x64] ss:$0 sm:$0xff] }
 0x8ec   :  { %5422 = vmatmul.bf16.gmra.mxu2 %v5377_v57  ;;  %v6241_v57 = vunpack.c.1.s8 %v9994_v45  ;;  %v6256_v45 = vcvt.s32.f32 %v6240_v53 }
 0x8ed   :  { %v5044_v15 = vpop.f32.mrf.mxu3 }
 0x8ee   :  { %v5045_v4 = vadd.f32 %v14613_v33, %v5044_v15  ;;  %v6258_v15 = vcvt.s32.f32 %v6242_v35  ;;  %v6257_v9 = vcvt.s32.f32 %v6241_v57  ;;  %v6305_v7 = vmul.f32 %v10927_v62, %v6256_v45 }
 0x8f0   :  { %v5063_v32 = vmax.f32 %v5045_v4, 0.0  ;;  %v14691_v28 = vpop.f32.mrf.mxu0  ;;  %v10929_v4 = vld [vmem:[%s16410_s2 + $0x65] ss:$0 sm:$0xff]  ;;  %v6306_v53 = vmul.f32 %v10927_v62, %v6257_v9 }
 0x8f1   :  { %v6307_v46 = vmul.f32 %v10929_v4, %v6258_v15 }
 0x8f5   :  { %v5046_v47 = vpop.f32.mrf.mxu3 }
 0x8f6   :  { %v5047_v2 = vadd.f32 %v14613_v33, %v5046_v47  ;;  %v6259_v47 = vcvt.s32.f32 %v6243_v6 }
 0x8f8   :  { %v5064_v63 = vmax.f32 %v5047_v2, 0.0  ;;  %v14696_v31 = vpop.f32.mrf.mxu0  ;;  %v6308_v35 = vmul.f32 %v10929_v4, %v6259_v47 }
 0x8fa   :  { %v5378_v60 = vpack.c.bf16 %v5064_v63, %v5063_v32  ;;  %v6309_v32 = vmul.f32 %v10932_v34, %v6260_v37  ;;  %v10933_v63 = vld [vmem:[%s16411_s3 + $0x66] ss:$0 sm:$0xff]  ;;  %v6236_v34 = vunpack.c.0.s8 %v9993_v1 }
 0x8fb   :  { %v6359_v6 = vadd.f32 %v10933_v63, %v6310_v16  ;;  %v9992_v37 = vld [vmem:[%s16409_s1 + $0x180] sm:$0xff] }
 0x8fc   :  { %5427 = vmatmul.bf16.gmra.mxu2 %v5378_v60  ;;  %v6358_v30 = vadd.f32 %v10933_v63, %v6309_v32  ;;  %v6234_v32 = vunpack.c.2.s8 %v9992_v37  ;;  %v6252_v63 = vcvt.s32.f32 %v6236_v34 }
 0x8fe   :  { %v6521_v4 = vadd.f32 %v14696_v31, %v6358_v30  ;;  %v6354_v31 = vadd.f32 %v10928_v52, %v6305_v7  ;;  %v6233_v30 = vunpack.c.1.s8 %v9992_v37 }
 0x900   :  { %v6501_v27 = vpop.f32.mrf.mxu0 }
 0x901   :  { %v6522_v47 = vadd.f32 %v6501_v27, %v6359_v6  ;;  %v6355_v27 = vadd.f32 %v10928_v52, %v6306_v53  ;;  %v6250_v6 = vcvt.s32.f32 %v6234_v32 }
 0x903   :  { %v6518_v52 = vadd.f32 %v14681_v40, %v6355_v27 }
 0x908   :  { %v6504_v2 = vpop.f32.mrf.mxu0 }
 0x909   :  { %v6523_v11 = vadd.f32 %v6504_v2, %v6360_v21  ;;  %v6235_v2 = vunpack.c.3.s8 %v9992_v37 }
 0x90f   :  { %v5393_v33 = vpop.f32.mrf.mxu2 }
 0x910   :  { %v5394_v19 = vadd.f32 %v14705_v56, %v5393_v33  ;;  %v6238_v33 = vunpack.c.2.s8 %v9993_v1  ;;  %v6506_v57 = vpop.f32.mrf.mxu0 }
 0x912   :  { %v5433_v13 = vmax.f32 %v5394_v19, 0.0  ;;  %v10930_v19 = vld [vmem:[%s16411_s3 + $0x65] ss:$0 sm:$0xff]  ;;  %v6254_v49 = vcvt.s32.f32 %v6238_v33  ;;  %v10923_v33 = vld [vmem:[%s16410_s2 + $0x62] ss:$0 sm:$0xff] }
 0x913   :  { %v6357_v15 = vadd.f32 %v10930_v19, %v6308_v35  ;;  %v6232_v35 = vunpack.c.0.s8 %v9992_v37  ;;  %v6517_v37 = vadd.f32 %v14678_v44, %v6354_v31 }
 0x917   :  { %v5395_v22 = vpop.f32.mrf.mxu2 }
 0x918   :  { %v5396_v25 = vadd.f32 %v14705_v56, %v5395_v22  ;;  %v6361_v22 = vadd.f32 %v10935_v42, %v6312_v38  ;;  %v6356_v42 = vadd.f32 %v10930_v19, %v6307_v46  ;;  %v6520_v46 = vadd.f32 %v14691_v28, %v6357_v15  ;;  %v10919_v15 = vld [vmem:[%s16410_s2 + $0x60] ss:$0 sm:$0xff] }
 0x919   :  { %v6531_v19 = vpack.c.bf16 %v6522_v47, %v6521_v4  ;;  %v6249_v4 = vcvt.s32.f32 %v6233_v30 }
 0x91a   :  { %v5434_v18 = vmax.f32 %v5396_v25, 0.0  ;;  %v6237_v25 = vunpack.c.1.s8 %v9993_v1  ;;  %v6524_v1 = vadd.f32 %v6506_v57, %v6361_v22  ;;  %v6519_v9 = vadd.f32 %v14685_v0, %v6356_v42  ;;  %v10924_v0 = vld [vmem:[%s16411_s3 + $0x62] ss:$0 sm:$0xff] }
 0x91b   :  { %v6251_v22 = vcvt.s32.f32 %v6235_v2  ;;  %v6248_v57 = vcvt.s32.f32 %v6232_v35 }
 0x91c   :  { %v5755_v60 = vpack.c.bf16 %v5434_v18, %v5433_v13  ;;  %v10925_v13 = vld [vmem:[%s16410_s2 + $0x63] ss:$0 sm:$0xff]  ;;  %v6255_v18 = vcvt.s32.f32 %v6239_v51  ;;  %v6532_v38 = vpack.c.bf16 %v6524_v1, %v6523_v11  ;;  %v10921_v11 = vld [vmem:[%s16410_s2 + $0x61] ss:$0 sm:$0xff]  ;;  %v6530_v53 = vpack.c.bf16 %v6520_v46, %v6519_v9 }
 0x91d   :  { %v6303_v21 = vmul.f32 %v10925_v13, %v6254_v49  ;;  %v10926_v51 = vld [vmem:[%s16411_s3 + $0x63] ss:$0 sm:$0xff]  ;;  %v14760_v49 = vpop.f32.mrf.mxu1  ;;  %v6299_v47 = vmul.f32 %v10921_v11, %v6250_v6  ;;  %v10922_v1 = vld [vmem:[%s16411_s3 + $0x61] ss:$0 sm:$0xff]  ;;  %v6300_v32 = vmul.f32 %v10921_v11, %v6251_v22 }
 0x91e   :  { %5776 = vmatmul.bf16.vlgmr.msrb.gmra.mxu3 %v5755_v60  ;;  %v6253_v60 = vcvt.s32.f32 %v6237_v25  ;;  %v6304_v45 = vmul.f32 %v10925_v13, %v6255_v18  ;;  %6546 = vmatpush.bf16.msra.mxu2 %v6532_v38  ;;  %v6301_v13 = vmul.f32 %v10923_v33, %v6252_v63 }
 0x91f   :  { %v5398_v43 = vpop.f32.mrf.mxu2  ;;  %v6352_v18 = vadd.f32 %v10926_v51, %v6303_v21  ;;  %v6297_v21 = vmul.f32 %v10919_v15, %v6248_v57  ;;  %v6348_v31 = vadd.f32 %v10922_v1, %v6299_v47  ;;  %v6349_v27 = vadd.f32 %v10922_v1, %v6300_v32  ;;  %v10669_v57 = vld [vmem:[%s16413_s5 + $0x388] sm:$0xff] }
 0x920   :  { %v5399_v16 = vadd.f32 %v14705_v56, %v5398_v43  ;;  %v6302_v28 = vmul.f32 %v10923_v33, %v6253_v60  ;;  %v6353_v7 = vadd.f32 %v10926_v51, %v6304_v45  ;;  %v6350_v2 = vadd.f32 %v10924_v0, %v6301_v13  ;;  %v10677_v33 = vld [vmem:[%s16414_s6 + $0xe8] sm:$0xff]  ;;  %v10920_v51 = vld [vmem:[%s16411_s3 + $0x60] ss:$0 sm:$0xff] }
 0x921   :  { %v6515_v40 = vadd.f32 %v14668_v41, %v6352_v18  ;;  %v6298_v45 = vmul.f32 %v10919_v15, %v6249_v4  ;;  %7234 = vmatpush.bf16.msrb.mxu0 %v10677_v33  ;;  %v6346_v46 = vadd.f32 %v10920_v51, %v6297_v21  ;;  %v6511_v35 = vadd.f32 %v14648_v3, %v6348_v31  ;;  %v10668_v3 = vld [vmem:[%s16413_s5 + $0x380] sm:$0xff] }
 0x922   :  { %v5435_v34 = vmax.f32 %v5399_v16, 0.0  ;;  %6547 = vmatpush.bf16.msra.mxu2 %v6531_v19  ;;  %v6351_v63 = vadd.f32 %v10924_v0, %v6302_v28  ;;  %v6516_v60 = vadd.f32 %v14671_v48, %v6353_v7  ;;  %v6529_v16 = vpack.c.bf16 %v6518_v52, %v6517_v37 }
 0x923   :  { %v6513_v41 = vadd.f32 %v14658_v54, %v6350_v2  ;;  %v6347_v19 = vadd.f32 %v10920_v51, %v6298_v45  ;;  %v6512_v30 = vadd.f32 %v14651_v50, %v6349_v27  ;;  %v6509_v11 = vadd.f32 %v14638_v26, %v6346_v46 }
 0x924   :  { %v6514_v48 = vadd.f32 %v14661_v20, %v6351_v63  ;;  %v10676_v20 = vld [vmem:[%s16414_s6 + $0xe0] sm:$0xff] }
 0x925   :  { %v14778_v38 = vpop.f32.mrf.mxu1  ;;  %v6510_v50 = vadd.f32 %v14641_v24, %v6347_v19  ;;  %v6526_v13 = vpack.c.bf16 %v6512_v30, %v6511_v35  ;;  %7235 = vmatpush.bf16.msrb.mxu0 %v10676_v20 }
 0x926   :  { %6548 = vmatpush.bf16.msra.mxu2 %v6530_v53  ;;  %v6527_v6 = vpack.c.bf16 %v6514_v48, %v6513_v41 }
 0x927   :  { %v5400_v62 = vpop.f32.mrf.mxu2  ;;  %v6525_v18 = vpack.c.bf16 %v6510_v50, %v6509_v11 }
 0x928   :  { %v5401_v43 = vadd.f32 %v14705_v56, %v5400_v62  ;;  %v6528_v62 = vpack.c.bf16 %v6516_v60, %v6515_v40  ;;  %10250 = vmatmul.msk.bf16.vlgmr.msrb.gmra.mxu0 %vm254_vm0, %v10668_v3  ;;  %v10670_v60 = vld [vmem:[%s16413_s5 + $0x390] sm:$0xff] }
 0x92a   :  { %v5436_v25 = vmax.f32 %v5401_v43, 0.0  ;;  %6549 = vmatpush.bf16.msra.mxu2 %v6529_v16 }
 0x92c   :  { %v5756_v42 = vpack.c.bf16 %v5436_v25, %v5435_v34 }
 0x92d   :  { %v14792_v25 = vpop.f32.mrf.mxu1 }
 0x92e   :  { %5781 = vmatmul.bf16.gmra.mxu3 %v5756_v42  ;;  %6550 = vmatpush.bf16.msra.mxu2 %v6528_v62  ;;  %v10671_v62 = vld [vmem:[%s16413_s5 + $0x398] sm:$0xff] }
 0x92f   :  { %v5403_v44 = vpop.f32.mrf.mxu2 }
 0x930   :  { %v5404_v9 = vadd.f32 %v14705_v56, %v5403_v44 }
 0x932   :  { %v5437_v34 = vmax.f32 %v5404_v9, 0.0  ;;  %6551 = vmatpush.bf16.msra.mxu2 %v6527_v6 }
 0x935   :  { %v14803_v7 = vpop.f32.mrf.mxu1 }
 0x936   :  { %6552 = vmatpush.bf16.msra.mxu2 %v6526_v13 }
 0x937   :  { %v5405_v43 = vpop.f32.mrf.mxu2 }
 0x938   :  { %v5406_v22 = vadd.f32 %v14705_v56, %v5405_v43  ;;  %10251 = vmatmul.msk.bf16.gmra.mxu0 %vm254_vm0, %v10669_v57 }
 0x93a   :  { %v5438_v54 = vmax.f32 %v5406_v22, 0.0  ;;  %6553 = vmatpush.bf16.msra.mxu2 %v6525_v18 }
 0x93c   :  { %v5757_v0 = vpack.c.bf16 %v5438_v54, %v5437_v34  ;;  %v10672_v54 = vld [vmem:[%s16413_s5 + $0x3a0] sm:$0xff] }
 0x93d   :  { %v14807_v42 = vpop.f32.mrf.mxu1 }
 0x93e   :  { %5786 = vmatmul.bf16.gmra.mxu3 %v5757_v0 }
 0x93f   :  { %v5408_v28 = vpop.f32.mrf.mxu2 }
 0x940   :  { %v5409_v26 = vadd.f32 %v14705_v56, %v5408_v28 }
 0x942   :  { %v5439_v53 = vmax.f32 %v5409_v26, 0.0 }
 0x945   :  { %v14813_v47 = vpop.f32.mrf.mxu1 }
 0x947   :  { %v5410_v37 = vpop.f32.mrf.mxu2 }
 0x948   :  { %v5411_v52 = vadd.f32 %v14705_v56, %v5410_v37  ;;  %10252 = vmatmul.msk.bf16.gmra.mxu0 %vm254_vm0, %v10670_v60  ;;  %v10949_v60 = vld [vmem:[%s16410_s2 + $0x6e] ss:$0 sm:$0xff] }
 0x94a   :  { %v5440_v24 = vmax.f32 %v5411_v52, 0.0  ;;  %v10673_v52 = vld [vmem:[%s16413_s5 + $0x3a8] sm:$0xff] }
 0x94c   :  { %v5758_v15 = vpack.c.bf16 %v5440_v24, %v5439_v53  ;;  %v10084_v53 = vld [vmem:[%s16409_s1 + $0x1b8] sm:$0xff] }
 0x94d   :  { %v14817_v40 = vpop.f32.mrf.mxu1  ;;  %v6628_v57 = vunpack.c.0.s8 %v10084_v53 }
 0x94e   :  { %5791 = vmatmul.bf16.gmra.mxu3 %v5758_v15  ;;  %v6629_v15 = vunpack.c.1.s8 %v10084_v53 }
 0x94f   :  { %v5413_v4 = vpop.f32.mrf.mxu2 }
 0x950   :  { %v5414_v1 = vadd.f32 %v14705_v56, %v5413_v4  ;;  %v6630_v4 = vunpack.c.2.s8 %v10084_v53 }
 0x952   :  { %v5441_v44 = vmax.f32 %v5414_v1, 0.0  ;;  %v6646_v1 = vcvt.s32.f32 %v6630_v4 }
 0x955   :  { %v14823_v21 = vpop.f32.mrf.mxu1 }
 0x957   :  { %v5415_v32 = vpop.f32.mrf.mxu2 }
 0x958   :  { %v5416_v2 = vadd.f32 %v14705_v56, %v5415_v32  ;;  %10253 = vmatmul.msk.bf16.gmra.mxu0 %vm254_vm0, %v10671_v62  ;;  %v10951_v32 = vld [vmem:[%s16410_s2 + $0x6f] ss:$0 sm:$0xff]  ;;  %v10946_v62 = vld [vmem:[%s16410_s2 + $0x6d] ss:$0 sm:$0xff] }
 0x95a   :  { %v5442_v63 = vmax.f32 %v5416_v2, 0.0 }
 0x95c   :  { %v5759_v16 = vpack.c.bf16 %v5442_v63, %v5441_v44  ;;  %v6644_v63 = vcvt.s32.f32 %v6628_v57 }
 0x95d   :  { %v14827_v48 = vpop.f32.mrf.mxu1 }
 0x95e   :  { %5796 = vmatmul.bf16.gmra.mxu3 %v5759_v16  ;;  %v6645_v16 = vcvt.s32.f32 %v6629_v15 }
 0x95f   :  { %v5418_v33 = vpop.f32.mrf.mxu2 }
 0x960   :  { %v5419_v51 = vadd.f32 %v14705_v56, %v5418_v33  ;;  %v10082_v33 = vld [vmem:[%s16409_s1 + $0x1a8] sm:$0xff] }
 0x961   :  { %v6620_v4 = vunpack.c.0.s8 %v10082_v33 }
 0x962   :  { %v5443_v27 = vmax.f32 %v5419_v51, 0.0  ;;  %v6695_v51 = vmul.f32 %v10951_v32, %v6646_v1  ;;  %v6621_v1 = vunpack.c.1.s8 %v10082_v33 }
 0x965   :  { %v14833_v19 = vpop.f32.mrf.mxu1 }
 0x967   :  { %v5420_v45 = vpop.f32.mrf.mxu2 }
 0x968   :  { %v5421_v31 = vadd.f32 %v14705_v56, %v5420_v45  ;;  %10254 = vmatmul.msk.bf16.gmra.mxu0 %vm254_vm0, %v10672_v54  ;;  %v10952_v45 = vld [vmem:[%s16411_s3 + $0x6f] ss:$0 sm:$0xff]  ;;  %v6622_v54 = vunpack.c.2.s8 %v10082_v33 }
 0x96a   :  { %v5444_v41 = vmax.f32 %v5421_v31, 0.0 }
 0x96c   :  { %v5760_v9 = vpack.c.bf16 %v5444_v41, %v5443_v27 }
 0x96d   :  { %v14837_v34 = vpop.f32.mrf.mxu1 }
 0x96e   :  { %5801 = vmatmul.bf16.gmra.mxu3 %v5760_v9 }
 0x96f   :  { %v5423_v46 = vpop.f32.mrf.mxu2 }
 0x970   :  { %v5424_v43 = vadd.f32 %v14705_v56, %v5423_v46 }
 0x972   :  { %v5445_v6 = vmax.f32 %v5424_v43, 0.0  ;;  %v6693_v43 = vmul.f32 %v10949_v60, %v6644_v63  ;;  %v10081_v63 = vld [vmem:[%s16409_s1 + $0x1a0] sm:$0xff] }
 0x975   :  { %v14843_v3 = vpop.f32.mrf.mxu1 }
 0x977   :  { %v5425_v35 = vpop.f32.mrf.mxu2 }
 0x978   :  { %v5426_v30 = vadd.f32 %v14705_v56, %v5425_v35  ;;  %10255 = vmatmul.msk.bf16.gmra.mxu0 %vm254_vm0, %v10673_v52  ;;  %v10950_v35 = vld [vmem:[%s16411_s3 + $0x6e] ss:$0 sm:$0xff]  ;;  %v10947_v52 = vld [vmem:[%s16411_s3 + $0x6d] ss:$0 sm:$0xff] }
 0x97a   :  { %v5446_v22 = vmax.f32 %v5426_v30, 0.0  ;;  %v6694_v30 = vmul.f32 %v10949_v60, %v6645_v16 }
 0x97c   :  { %v5761_v20 = vpack.c.bf16 %v5446_v22, %v5445_v6  ;;  %v10674_v6 = vld [vmem:[%s16413_s5 + $0x3b0] sm:$0xff]  ;;  %v6631_v22 = vunpack.c.3.s8 %v10084_v53  ;;  %v6743_v57 = vadd.f32 %v10950_v35, %v6694_v30 }
 0x97d   :  { %v14847_v26 = vpop.f32.mrf.mxu1 }
 0x97e   :  { %5806 = vmatmul.bf16.gmra.mxu3 %v5761_v20  ;;  %v6623_v20 = vunpack.c.3.s8 %v10082_v33 }
 0x97f   :  { %v5428_v11 = vpop.f32.mrf.mxu2 }
 0x980   :  { %v5429_v50 = vadd.f32 %v14705_v56, %v5428_v11  ;;  %v14883_v11 = vld [vmem:[%s16412_s4 + $0xb] ss:$0 sm:$0xff]  ;;  %v6639_v60 = vcvt.s32.f32 %v6623_v20  ;;  %v6636_v20 = vcvt.s32.f32 %v6620_v4 }
 0x982   :  { %v5447_v28 = vmax.f32 %v5429_v50, 0.0  ;;  %v6744_v50 = vadd.f32 %v10952_v45, %v6695_v51 }
 0x985   :  { %v6885_v24 = vpop.f32.mrf.mxu1 }
 0x987   :  { %v5430_v13 = vpop.f32.mrf.mxu2 }
 0x988   :  { %v5431_v0 = vadd.f32 %v14705_v56, %v5430_v13  ;;  %v10083_v56 = vld [vmem:[%s16409_s1 + $0x1b0] sm:$0xff]  ;;  %v6647_v13 = vcvt.s32.f32 %v6631_v22  ;;  %10256 = vmatmul.msk.bf16.gmra.mxu0 %vm254_vm0, %v10674_v6  ;;  %v6618_v22 = vunpack.c.2.s8 %v10081_v63 }
 0x989   :  { %v6626_v2 = vunpack.c.2.s8 %v10083_v56  ;;  %v6627_v44 = vunpack.c.3.s8 %v10083_v56  ;;  %v6624_v31 = vunpack.c.0.s8 %v10083_v56  ;;  %v6625_v27 = vunpack.c.1.s8 %v10083_v56 }
 0x98a   :  { %v5448_v18 = vmax.f32 %v5431_v0, 0.0  ;;  %v6742_v56 = vadd.f32 %v10950_v35, %v6693_v43  ;;  %v6696_v15 = vmul.f32 %v10951_v32, %v6647_v13  ;;  %v10945_v32 = vld [vmem:[%s16411_s3 + $0x6c] ss:$0 sm:$0xff]  ;;  %v16611_v35 = vld [vmem:[#allocation21_spill] sm:$0xff] }
 0x98b   :  { %v6642_v41 = vcvt.s32.f32 %v6626_v2  ;;  %v6643_v9 = vcvt.s32.f32 %v6627_v44  ;;  %v6640_v0 = vcvt.s32.f32 %v6624_v31  ;;  %v6638_v2 = vcvt.s32.f32 %v6622_v54 }
 0x98c   :  { %v5762_v37 = vpack.c.bf16 %v5448_v18, %v5447_v28  ;;  %v10944_v28 = vld [vmem:[%s16410_s2 + $0x6c] ss:$0 sm:$0xff]  ;;  %v6641_v18 = vcvt.s32.f32 %v6625_v27  ;;  %v6745_v31 = vadd.f32 %v10952_v45, %v6696_v15  ;;  %v10942_v27 = vld [vmem:[%s16410_s2 + $0x6b] ss:$0 sm:$0xff]  ;;  %v6905_v6 = vadd.f32 %v14847_v26, %v6742_v56 }
 0x98d   :  { %v6888_v46 = vpop.f32.mrf.mxu1  ;;  %v6692_v53 = vmul.f32 %v10946_v62, %v6643_v9  ;;  %v6619_v54 = vunpack.c.3.s8 %v10081_v63  ;;  %v10943_v26 = vld [vmem:[%s16411_s3 + $0x6b] ss:$0 sm:$0xff]  ;;  %v6616_v15 = vunpack.c.0.s8 %v10081_v63 }
 0x98e   :  { %5811 = vmatmul.bf16.gmra.mxu3 %v5762_v37  ;;  %v6691_v37 = vmul.f32 %v10946_v62, %v6642_v41  ;;  %v6907_v51 = vadd.f32 %v6888_v46, %v6744_v50  ;;  %v6689_v41 = vmul.f32 %v10944_v28, %v6640_v0  ;;  %v6690_v33 = vmul.f32 %v10944_v28, %v6641_v18  ;;  %v10940_v28 = vld [vmem:[%s16410_s2 + $0x6a] ss:$0 sm:$0xff] }
 0x98f   :  { %v6741_v9 = vadd.f32 %v10947_v52, %v6692_v53  ;;  %v6906_v46 = vadd.f32 %v6885_v24, %v6743_v57  ;;  %v6637_v50 = vcvt.s32.f32 %v6621_v1  ;;  %v6687_v18 = vmul.f32 %v10942_v27, %v6638_v2 }
 0x990   :  { %v6740_v62 = vadd.f32 %v10947_v52, %v6691_v37  ;;  %v6688_v24 = vmul.f32 %v10942_v27, %v6639_v60  ;;  %v6738_v37 = vadd.f32 %v10945_v32, %v6689_v41  ;;  %v6739_v52 = vadd.f32 %v10945_v32, %v6690_v33  ;;  %v10938_v60 = vld [vmem:[%s16410_s2 + $0x69] ss:$0 sm:$0xff] }
 0x991   :  { %v6904_v56 = vadd.f32 %v14843_v3, %v6741_v9  ;;  %v6915_v57 = vpack.c.bf16 %v6906_v46, %v6905_v6  ;;  %v6617_v1 = vunpack.c.1.s8 %v10081_v63  ;;  %v6686_v3 = vmul.f32 %v10940_v28, %v6637_v50  ;;  %v16612_v33 = vld [vmem:[#allocation22_spill] sm:$0xff]  ;;  %v10675_v9 = vld [vmem:[%s16413_s5 + $0x3b8] sm:$0xff] }
 0x992   :  { %v6903_v53 = vadd.f32 %v14837_v34, %v6740_v62  ;;  %v10941_v34 = vld [vmem:[%s16411_s3 + $0x6a] ss:$0 sm:$0xff]  ;;  %v6737_v27 = vadd.f32 %v10943_v26, %v6688_v24  ;;  %v6901_v41 = vadd.f32 %v14827_v48, %v6738_v37  ;;  %v6902_v63 = vadd.f32 %v14833_v19, %v6739_v52  ;;  %v10936_v48 = vld [vmem:[%s16410_s2 + $0x68] ss:$0 sm:$0xff]  ;;  %v10939_v46 = vld [vmem:[%s16411_s3 + $0x69] ss:$0 sm:$0xff] }
 0x994   :  { %v6914_v32 = vpack.c.bf16 %v6904_v56, %v6903_v53  ;;  %v6900_v50 = vadd.f32 %v14823_v21, %v6737_v27 }
 0x995   :  { %v6890_v43 = vpop.f32.mrf.mxu1 }
 0x996   :  { %v6908_v45 = vadd.f32 %v6890_v43, %v6745_v31  ;;  %v6736_v31 = vadd.f32 %v10943_v26, %v6687_v18  ;;  %v6632_v43 = vcvt.s32.f32 %v6616_v15  ;;  %v10937_v26 = vld [vmem:[%s16411_s3 + $0x68] ss:$0 sm:$0xff] }
 0x998   :  { %v6916_v0 = vpack.c.bf16 %v6908_v45, %v6907_v51  ;;  %v6685_v51 = vmul.f32 %v10940_v28, %v6636_v20  ;;  %10257 = vmatmul.msk.bf16.gmra.mxu0 %vm254_vm0, %v10675_v9  ;;  %v6899_v20 = vadd.f32 %v14817_v40, %v6736_v31  ;;  %v6681_v18 = vmul.f32 %v10936_v48, %v6632_v43 }
 0x99a   :  { %6930 = vmatpush.bf16.msra.mxu3 %v6916_v0  ;;  %v6912_v56 = vpack.c.bf16 %v6900_v50, %v6899_v20  ;;  %v6730_v15 = vadd.f32 %v10937_v26, %v6681_v18 }
 0x99e   :  { %6931 = vmatpush.bf16.msra.mxu3 %v6915_v57 }
 0x9a1   :  { %v5777_v44 = vpop.f32.mrf.mxu3 }
 0x9a2   :  { %v5778_v16 = vadd.f32 %v14883_v11, %v5777_v44  ;;  %v6634_v44 = vcvt.s32.f32 %v6618_v22  ;;  %v6734_v22 = vadd.f32 %v10941_v34, %v6685_v51  ;;  %6932 = vmatpush.bf16.msra.mxu3 %v6914_v32 }
 0x9a4   :  { %v14903_v30 = vadd.f32 %v5778_v16, %v16611_v35  ;;  %v6635_v16 = vcvt.s32.f32 %v6619_v54  ;;  %v6633_v35 = vcvt.s32.f32 %v6617_v1  ;;  %v6683_v19 = vmul.f32 %v10938_v60, %v6634_v44 }
 0x9a5   :  { %v6735_v54 = vadd.f32 %v10941_v34, %v6686_v3  ;;  %v6897_v53 = vadd.f32 %v14807_v42, %v6734_v22  ;;  %v14964_v34 = vpop.f32.mrf.mxu0 }
 0x9a6   :  { %5833 = vadd.xlane.f32.xlu0 %v14903_v30  ;;  %v5881_v13 = vmul.f32 %v14903_v30, %v14903_v30  ;;  %v6684_v45 = vmul.f32 %v10938_v60, %v6635_v16  ;;  %v6682_v24 = vmul.f32 %v10936_v48, %v6633_v35  ;;  %v6732_v37 = vadd.f32 %v10939_v46, %v6683_v19 }
 0x9a7   :  { %v6898_v40 = vadd.f32 %v14813_v47, %v6735_v54  ;;  %16613 = vst [vmem:[#allocation11_spill] sm:$0xff] %v14964_v34 }
 0x9a8   :  { %5897 = vadd.xlane.f32.xlu2 %v5881_v13  ;;  %v6913_v13 = vpack.c.bf16 %v6902_v63, %v6901_v41  ;;  %v6733_v52 = vadd.f32 %v10939_v46, %v6684_v45  ;;  %v6895_v1 = vadd.f32 %v14792_v25, %v6732_v37 }
 0x9a9   :  { %v5779_v4 = vpop.f32.mrf.mxu3  ;;  %v6911_v16 = vpack.c.bf16 %v6898_v40, %v6897_v53 }
 0x9aa   :  { %v5780_v2 = vadd.f32 %v14883_v11, %v5779_v4  ;;  %6933 = vmatpush.bf16.msra.mxu3 %v6913_v13  ;;  %v6731_v4 = vadd.f32 %v10937_v26, %v6682_v24  ;;  %v6896_v44 = vadd.f32 %v14803_v7, %v6733_v52 }
 0x9ac   :  { %v14927_v62 = vadd.f32 %v5780_v2, %v16612_v33  ;;  %v6894_v2 = vadd.f32 %v14778_v38, %v6731_v4  ;;  %v6910_v60 = vpack.c.bf16 %v6896_v44, %v6895_v1 }
 0x9ad   :  { %v14976_v31 = vpop.f32.mrf.mxu0 }
 0x9ae   :  { %5835 = vadd.xlane.f32.xlu1 %v14927_v62  ;;  %v5882_v6 = vmul.f32 %v14927_v62, %v14927_v62  ;;  %6934 = vmatpush.bf16.msra.mxu3 %v6912_v56  ;;  %16614 = vst [vmem:[#allocation19_spill] sm:$0xff] %v14976_v31 }
 0x9b0   :  { %5899 = vadd.xlane.f32.xlu0 %v5882_v6 }
 0x9b1   :  { %v5782_v0 = vpop.f32.mrf.mxu3 }
 0x9b2   :  { %v5783_v28 = vadd.f32 %v14883_v11, %v5782_v0  ;;  %6935 = vmatpush.bf16.msra.mxu3 %v6911_v16 }
 0x9b4   :  { %v14951_v21 = vadd.f32 %v5783_v28, %v14386_v14  ;;  %v6893_v14 = vadd.f32 %v14760_v49, %v6730_v15 }
 0x9b5   :  { %v14985_v32 = vpop.f32.mrf.mxu0 }
 0x9b6   :  { %5837 = vadd.xlane.f32.xlu1 %v14951_v21  ;;  %v5883_v57 = vmul.f32 %v14951_v21, %v14951_v21  ;;  %v6909_v7 = vpack.c.bf16 %v6894_v2, %v6893_v14  ;;  %6936 = vmatpush.bf16.msra.mxu3 %v6910_v60  ;;  %16615 = vst [vmem:[#allocation5_spill] sm:$0xff] %v14985_v32 }
 0x9b8   :  { %5901 = vadd.xlane.f32.xlu0 %v5883_v57 }
 0x9b9   :  { %v5784_v42 = vpop.f32.mrf.mxu3 }
 0x9ba   :  { %v5785_v47 = vadd.f32 %v14883_v11, %v5784_v42  ;;  %6937 = vmatpush.bf16.msra.mxu3 %v6909_v7 }
 0x9bc   :  { %v14962_v51 = vadd.f32 %v5785_v47, %v14389_v39 }
 0x9bd   :  { %v14995_v48 = vpop.f32.mrf.mxu0 }
 0x9be   :  { %5839 = vadd.xlane.f32.xlu2 %v14962_v51  ;;  %v5884_v25 = vmul.f32 %v14962_v51, %v14962_v51  ;;  %16617 = vst [vmem:[#allocation13_spill] sm:$0xff] %v14995_v48 }
 0x9c0   :  { %5903 = vadd.xlane.f32.xlu1 %v5884_v25 }
 0x9c1   :  { %v5787_v3 = vpop.f32.mrf.mxu3 }
 0x9c2   :  { %v5788_v49 = vadd.f32 %v14883_v11, %v5787_v3 }
 0x9c4   :  { %v14971_v38 = vadd.f32 %v5788_v49, %v14464_v61 }
 0x9c5   :  { %v15007_v54 = vpop.f32.mrf.mxu0 }
 0x9c6   :  { %5841 = vadd.xlane.f32.xlu2 %v14971_v38  ;;  %v5885_v39 = vmul.f32 %v14971_v38, %v14971_v38 }
 0x9c8   :  { %5905 = vadd.xlane.f32.xlu1 %v5885_v39 }
 0x9c9   :  { %v5789_v27 = vpop.f32.mrf.mxu3 }
 0x9ca   :  { %v5790_v41 = vadd.f32 %v14883_v11, %v5789_v27 }
 0x9cc   :  { %v14980_v63 = vadd.f32 %v5790_v41, %v14467_v36 }
 0x9cd   :  { %v15019_v0 = vpop.f32.mrf.mxu0 }
 0x9ce   :  { %5843 = vadd.xlane.f32.xlu0 %v14980_v63  ;;  %v5886_v61 = vmul.f32 %v14980_v63, %v14980_v63  ;;  %16621 = vst [vmem:[#allocation8_spill] sm:$0xff] %v15019_v0 }
 0x9d0   :  { %5907 = vadd.xlane.f32.xlu2 %v5886_v61 }
 0x9d1   :  { %v5792_v33 = vpop.f32.mrf.mxu3 }
 0x9d2   :  { %v5793_v9 = vadd.f32 %v14883_v11, %v5792_v33 }
 0x9d4   :  { %v14989_v43 = vadd.f32 %v5793_v9, %v14501_v59 }
 0x9d5   :  { %v15028_v24 = vpop.f32.mrf.mxu0 }
 0x9d6   :  { %16616 = vst [vmem:[#allocation7_spill] sm:$0xff] %v14989_v43  ;;  %5845 = vadd.xlane.f32.xlu0 %v14989_v43  ;;  %v5887_v36 = vmul.f32 %v14989_v43, %v14989_v43 }
 0x9d8   :  { %5909 = vadd.xlane.f32.xlu2 %v5887_v36 }
 0x9d9   :  { %v5794_v35 = vpop.f32.mrf.mxu3 }
 0x9da   :  { %v5795_v6 = vadd.f32 %v14883_v11, %v5794_v35 }
 0x9dc   :  { %v14998_v19 = vadd.f32 %v5795_v6, %v14504_v55 }
 0x9dd   :  { %v15038_v57 = vpop.f32.mrf.mxu0 }
 0x9de   :  { %16618 = vst [vmem:[#allocation20_spill] sm:$0xff] %v14998_v19  ;;  %5847 = vadd.xlane.f32.xlu1 %v14998_v19  ;;  %v5888_v59 = vmul.f32 %v14998_v19, %v14998_v19 }
 0x9e0   :  { %5911 = vadd.xlane.f32.xlu0 %v5888_v59 }
 0x9e1   :  { %v5797_v46 = vpop.f32.mrf.mxu3 }
 0x9e2   :  { %v5798_v45 = vadd.f32 %v14883_v11, %v5797_v46 }
 0x9e4   :  { %v15005_v22 = vadd.f32 %v5798_v45, %v14533_v5  ;;  %v15086_v45 = vld [vmem:[%s16409_s1 + $0x1c0] sm:$0xff] }
 0x9e5   :  { %v15050_v16 = vpop.f32.mrf.mxu0 }
 0x9e6   :  { %16619 = vst [vmem:[#allocation6_spill] sm:$0xff] %v15005_v22  ;;  %5849 = vadd.xlane.f32.xlu1 %v15005_v22  ;;  %v5889_v55 = vmul.f32 %v15005_v22, %v15005_v22 }
 0x9e8   :  { %5913 = vadd.xlane.f32.xlu0 %v5889_v55 }
 0x9e9   :  { %v5799_v20 = vpop.f32.mrf.mxu3 }
 0x9ea   :  { %v5800_v50 = vadd.f32 %v14883_v11, %v5799_v20  ;;  %v7000_v20 = vunpack.c.0.s8 %v15086_v45 }
 0x9ec   :  { %v15014_v13 = vadd.f32 %v5800_v50, %v14536_v58 }
 0x9ed   :  { %v15062_v2 = vpop.f32.mrf.mxu0 }
 0x9ee   :  { %16620 = vst [vmem:[#allocation9_spill] sm:$0xff] %v15014_v13  ;;  %5851 = vadd.xlane.f32.xlu2 %v15014_v13  ;;  %v5890_v5 = vmul.f32 %v15014_v13, %v15014_v13  ;;  %v10966_v13 = vld [vmem:[%s16410_s2 + $0x76] ss:$0 sm:$0xff] }
 0x9f0   :  { %5915 = vadd.xlane.f32.xlu1 %v5890_v5 }
 0x9f1   :  { %v5802_v28 = vpop.f32.mrf.mxu3 }
 0x9f2   :  { %v5803_v18 = vadd.f32 %v14883_v11, %v5802_v28 }
 0x9f4   :  { %v15023_v26 = vadd.f32 %v5803_v18, %v14560_v17 }
 0x9f5   :  { %v15075_v33 = vpop.f32.mrf.mxu0 }
 0x9f6   :  { %16622 = vst [vmem:[#allocation10_spill] sm:$0xff] %v15023_v26  ;;  %5853 = vadd.xlane.f32.xlu2 %v15023_v26  ;;  %v5891_v58 = vmul.f32 %v15023_v26, %v15023_v26 }
 0x9f8   :  { %5917 = vadd.xlane.f32.xlu1 %v5891_v58 }
 0x9f9   :  { %v5804_v37 = vpop.f32.mrf.mxu3 }
 0x9fa   :  { %v5805_v52 = vadd.f32 %v14883_v11, %v5804_v37 }
 0x9fc   :  { %v15032_v53 = vadd.f32 %v5805_v52, %v14563_v29  ;;  %v7016_v52 = vcvt.s32.f32 %v7000_v20 }
 0x9fd   :  { %v15081_v46 = vpop.f32.mrf.mxu0 }
 0x9fe   :  { %16623 = vst [vmem:[#allocation12_spill] sm:$0xff] %v15032_v53  ;;  %5855 = vadd.xlane.f32.xlu0 %v15032_v53  ;;  %v5892_v17 = vmul.f32 %v15032_v53, %v15032_v53 }
 0xa00   :  { %5919 = vadd.xlane.f32.xlu2 %v5892_v17  ;;  %v15097_v17 = vld [vmem:[%s16410_s2 + $0x70] ss:$0 sm:$0xff] }
 0xa01   :  { %v5807_v40 = vpop.f32.mrf.mxu3 }
 0xa02   :  { %v5808_v56 = vadd.f32 %v14883_v11, %v5807_v40  ;;  %v15102_v40 = vld [vmem:[%s16409_s1 + $0x1c8] sm:$0xff] }
 0xa04   :  { %v15041_v15 = vadd.f32 %v5808_v56, %v14578_v12 }
 0xa06   :  { %16624 = vst [vmem:[#allocation14_spill] sm:$0xff] %v15041_v15  ;;  %5857 = vadd.xlane.f32.xlu0 %v15041_v15  ;;  %v5893_v29 = vmul.f32 %v15041_v15, %v15041_v15 }
 0xa08   :  { %5921 = vadd.xlane.f32.xlu2 %v5893_v29 }
 0xa09   :  { %v5809_v4 = vpop.f32.mrf.mxu3 }
 0xa0a   :  { %v5810_v1 = vadd.f32 %v14883_v11, %v5809_v4  ;;  %v7004_v4 = vunpack.c.0.s8 %v15102_v40 }
 0xa0c   :  { %v15048_v44 = vadd.f32 %v5810_v1, %v14581_v10 }
 0xa0e   :  { %16625 = vst [vmem:[#allocation15_spill] sm:$0xff] %v15048_v44  ;;  %5859 = vadd.xlane.f32.xlu1 %v15048_v44  ;;  %v5894_v12 = vmul.f32 %v15048_v44, %v15048_v44 }
 0xa10   :  { %5923 = vadd.xlane.f32.xlu0 %v5894_v12 }
 0xa11   :  { %v5812_v42 = vpop.f32.mrf.mxu3 }
 0xa12   :  { %v5813_v47 = vadd.f32 %v14883_v11, %v5812_v42  ;;  %v15107_v42 = vpop.f32.mrf.mxu0 }
 0xa14   :  { %v15057_v14 = vadd.f32 %v5813_v47, %v14595_v8 }
 0xa16   :  { %16626 = vst [vmem:[#allocation16_spill] sm:$0xff] %v15057_v14  ;;  %5861 = vadd.xlane.f32.xlu1 %v15057_v14  ;;  %v5895_v10 = vmul.f32 %v15057_v14, %v15057_v14 }
 0xa18   :  { %5925 = vadd.xlane.f32.xlu0 %v5895_v10 }
 0xa19   :  { %v5834_v60 = vpop.xlane.xlu0 %5833  ;;  %v5814_v25 = vpop.f32.mrf.mxu3 }
 0xa1a   :  { %v15064_v7 = vmul.f32 0.0078125, %v5834_v60  ;;  %v5815_v3 = vadd.f32 %v14883_v11, %v5814_v25  ;;  %v15112_v60 = vmul.f32 %v15097_v17, %v7016_v52  ;;  %v7002_v25 = vunpack.c.2.s8 %v15086_v45 }
 0xa1b   :  { %v5898_v49 = vpop.xlane.xlu2 %5897 }
 0xa1c   :  { %v5945_v39 = vmul.f32 %v15064_v7, %v15064_v7  ;;  %v15070_v8 = vadd.f32 %v5815_v3, %v14598_v23  ;;  %v5929_v27 = vmul.f32 0.0078125, %v5898_v49  ;;  %16628 = vst [vmem:[#allocation18_spill] sm:$0xff] %v15112_v60  ;;  %v7003_v3 = vunpack.c.3.s8 %v15086_v45 }
 0xa1e   :  { %16627 = vst [vmem:[#allocation17_spill] sm:$0xff] %v15070_v8  ;;  %v5961_v41 = vsub.f32 %v5929_v27, %v5945_v39  ;;  %5863 = vadd.xlane.f32.xlu2 %v15070_v8  ;;  %v5896_v61 = vmul.f32 %v15070_v8, %v15070_v8  ;;  %v7020_v39 = vcvt.s32.f32 %v7004_v4  ;;  %v15121_v27 = vld [vmem:[%s16410_s2 + $0x72] ss:$0 sm:$0xff]  ;;  %v15158_v8 = vpop.f32.mrf.mxu0 }
 0xa20   :  { %v5993_v9 = vadd.f32 1e-05, %v5961_v41  ;;  %5927 = vadd.xlane.f32.xlu1 %v5896_v61  ;;  %v15126_v41 = vld [vmem:[%s16409_s1 + $0x1d0] sm:$0xff] }
 0xa21   :  { %v5836_v36 = vpop.xlane.xlu1 %5835 }
 0xa22   :  { %11123 = vrsqrt.f32 %v5993_v9  ;;  %v15077_v11 = vmul.f32 0.0078125, %v5836_v36  ;;  %vm6015_vm11 = vweird.f32 %v5993_v9 }
 0xa23   :  { %v5900_v35 = vpop.xlane.xlu0 %5899 }
 0xa24   :  { %v5946_v23 = vmul.f32 %v15077_v11, %v15077_v11  ;;  %v5930_v6 = vmul.f32 0.0078125, %v5900_v35 }
 0xa26   :  { %v5962_v59 = vsub.f32 %v5930_v6, %v5946_v23  ;;  %v7005_v23 = vunpack.c.1.s8 %v15102_v40  ;;  %v7006_v6 = vunpack.c.2.s8 %v15102_v40 }
 0xa28   :  { %v11124_v55 = vpop.eup %11123  ;;  %v15089_v50 = vadd.f32 1e-05, %v5962_v59 }
 0xa29   :  { %v6010_v5 = vmul.f32 %v11124_v55, %v5993_v9  ;;  %v5838_v28 = vpop.xlane.xlu1 %5837  ;;  %vm6016_vm10 = vweird.f32 %v11124_v55 }
 0xa2a   :  { %11125 = vrsqrt.f32 %v15089_v50  ;;  %v15092_v18 = vmul.f32 0.0078125, %v5838_v28  ;;  %vm15140_vm12 = vmor %vm6015_vm11, %vm6016_vm10  ;;  %vm6025_vm14 = vweird.f32 %v15089_v50 }
 0xa2b   :  { %v6011_v58 = vmul.f32 %v11124_v55, %v6010_v5  ;;  %v5902_v37 = vpop.xlane.xlu0 %5901  ;;  %v7008_v5 = vunpack.c.0.s8 %v15126_v41 }
 0xa2c   :  { %v5947_v56 = vmul.f32 %v15092_v18, %v15092_v18  ;;  %v5931_v29 = vmul.f32 0.0078125, %v5902_v37  ;;  %v15138_v37 = vcvt.s32.f32 %v7002_v25  ;;  %v15154_v25 = vcvt.s32.f32 %v7005_v23 }
 0xa2d   :  { %v6012_v1 = vmul.f32 0.5, %v6011_v58  ;;  %v7009_v23 = vunpack.c.1.s8 %v15126_v41 }
 0xa2e   :  { %v5963_v12 = vsub.f32 %v5931_v29, %v5947_v56  ;;  %v7010_v56 = vunpack.c.2.s8 %v15126_v41 }
 0xa2f   :  { %v6013_v47 = vsub.f32 1.5, %v6012_v1  ;;  %v15147_v1 = vcvt.s32.f32 %v7003_v3  ;;  %v7024_v3 = vcvt.s32.f32 %v7008_v5  ;;  %v7025_v19 = vcvt.s32.f32 %v7009_v23 }
 0xa30   :  { %v15109_v10 = vpop.eup %11125  ;;  %v15116_v49 = vadd.f32 1e-05, %v5963_v12  ;;  %v15150_v12 = vmul.f32 %v15121_v27, %v7020_v39 }
 0xa31   :  { %v6014_v61 = vmul.f32 %v11124_v55, %v6013_v47  ;;  %v6020_v36 = vmul.f32 %v15109_v10, %v15089_v50  ;;  %v5840_v35 = vpop.xlane.xlu2 %5839  ;;  %vm6026_vm13 = vweird.f32 %v15109_v10 }
 0xa32   :  { %11127 = vrsqrt.f32 %v15116_v49  ;;  %v15133_v59 = vmul.f32 0.0078125, %v5840_v35  ;;  %v5977_v35 = vsub.f32 %v14903_v30, %v15064_v7  ;;  %v7026_v30 = vcvt.s32.f32 %v7010_v56  ;;  %v10961_v56 = vld [vmem:[%s16410_s2 + $0x74] ss:$0 sm:$0xff]  ;;  %vm6027_vm15 = vmor %vm6025_vm14, %vm6026_vm13 }
 0xa33   :  { %v6021_v28 = vmul.f32 %v15109_v10, %v6020_v36  ;;  %v5904_v58 = vpop.xlane.xlu1 %5903  ;;  %v6018_v9 = vsel %vm15140_vm12, %v11124_v55, %v6014_v61  ;;  %v7022_v36 = vcvt.s32.f32 %v7006_v6  ;;  %v15167_v55 = vld [vmem:[%s16415_s7 + $0x3] ss:$0 sm:$0xff]  ;;  %v15180_v6 = vld [vmem:[%s16410_s2 + $0x73] ss:$0 sm:$0xff]  ;;  %vm6035_vm2 = vweird.f32 %v15116_v49 }
 0xa34   :  { %v5948_v29 = vmul.f32 %v15133_v59, %v15133_v59  ;;  %v5932_v4 = vmul.f32 0.0078125, %v5904_v58  ;;  %v7007_v58 = vunpack.c.3.s8 %v15102_v40  ;;  %v6169_v61 = vmul.f32 %v6018_v9, %v5977_v35  ;;  %v15175_v40 = vld [vmem:[%s16409_s1 + $0x1d8] sm:$0xff] }
 0xa35   :  { %v6022_v47 = vmul.f32 0.5, %v6021_v28  ;;  %v7015_v48 = vunpack.c.3.s8 %v15175_v40 }
 0xa36   :  { %v5964_v20 = vsub.f32 %v5932_v4, %v5948_v29  ;;  %v5978_v29 = vsub.f32 %v14927_v62, %v15077_v11  ;;  %v7013_v62 = vunpack.c.1.s8 %v15175_v40  ;;  %v7014_v11 = vunpack.c.2.s8 %v15175_v40 }
 0xa37   :  { %v6023_v14 = vsub.f32 1.5, %v6022_v47  ;;  %v6190_v35 = vmul.f32 %v15167_v55, %v6169_v61  ;;  %v10969_v61 = vld [vmem:[%s16410_s2 + $0x77] ss:$0 sm:$0xff] }
 0xa38   :  { %v15162_v39 = vpop.eup %11127  ;;  %v15170_v7 = vadd.f32 1e-05, %v5964_v20  ;;  %v7011_v20 = vunpack.c.3.s8 %v15126_v41  ;;  %v10964_v41 = vld [vmem:[%s16410_s2 + $0x75] ss:$0 sm:$0xff]  ;;  %v7030_v26 = vcvt.s32.f32 %v7014_v11 }
 0xa39   :  { %v6024_v5 = vmul.f32 %v15109_v10, %v6023_v14  ;;  %v6030_v28 = vmul.f32 %v15162_v39, %v15116_v49  ;;  %v5842_v52 = vpop.xlane.xlu2 %5841  ;;  %v7012_v14 = vunpack.c.0.s8 %v15175_v40  ;;  %vm6036_vm1 = vweird.f32 %v15162_v39 }
 0xa3a   :  { %11129 = vrsqrt.f32 %v15170_v7  ;;  %v15196_v50 = vmul.f32 0.0078125, %v5842_v52  ;;  %v7027_v31 = vcvt.s32.f32 %v7011_v20  ;;  %v7079_v23 = vmul.f32 %v10969_v61, %v7030_v26  ;;  %vm15260_vm3 = vmor %vm6035_vm2, %vm6036_vm1 }
 0xa3b   :  { %v6028_v4 = vsel %vm6027_vm15, %v15109_v10, %v6024_v5  ;;  %v6031_v9 = vmul.f32 %v15162_v39, %v6030_v28  ;;  %v5906_v47 = vpop.xlane.xlu1 %5905  ;;  %v15211_v10 = vld [vmem:[%s16416_s8 + $0x3] ss:$0 sm:$0xff]  ;;  %v15214_v5 = vmul.f32 %v15180_v6, %v7022_v36  ;;  %v15216_v28 = vcvt.s32.f32 %v7007_v58  ;;  %v7272_v36 = vpop.f32.mrf.mxu0 }
 0xa3c   :  { %v6170_v44 = vmul.f32 %v6028_v4, %v5978_v29  ;;  %v5949_v52 = vmul.f32 %v15196_v50, %v15196_v50  ;;  %v5933_v15 = vmul.f32 0.0078125, %v5906_v47  ;;  %v15221_v29 = vmul.f32 %v10961_v56, %v7024_v3 }
 0xa3d   :  { %v6032_v53 = vmul.f32 0.5, %v6031_v9  ;;  %v7028_v47 = vcvt.s32.f32 %v7012_v14  ;;  %v7075_v58 = vmul.f32 %v10964_v41, %v7026_v30  ;;  %v7029_v9 = vcvt.s32.f32 %v7013_v62  ;;  %v10965_v30 = vld [vmem:[%s16411_s3 + $0x75] ss:$0 sm:$0xff] }
 0xa3e   :  { %v6191_v4 = vmul.f32 %v15167_v55, %v6170_v44  ;;  %v5965_v22 = vsub.f32 %v5933_v15, %v5949_v52  ;;  %v15232_v3 = vadd.f32 %v15211_v10, %v6190_v35  ;;  %v7031_v40 = vcvt.s32.f32 %v7015_v48 }
 0xa3f   :  { %v6033_v43 = vsub.f32 1.5, %v6032_v53  ;;  %v7077_v20 = vmul.f32 %v10966_v13, %v7028_v47  ;;  %v7078_v52 = vmul.f32 %v10966_v13, %v7029_v9  ;;  %v7074_v47 = vmul.f32 %v10961_v56, %v7025_v19 }
 0xa40   :  { %v15227_v11 = vpop.eup %11129  ;;  %v15229_v34 = vadd.f32 1e-05, %v5965_v22  ;;  %16631 = vst [vmem:[#allocation21_spill] sm:$0xff] %v15232_v3  ;;  %v15235_v44 = vadd.f32 %v15211_v10, %v6191_v4  ;;  %v10970_v22 = vld [vmem:[%s16411_s3 + $0x77] ss:$0 sm:$0xff]  ;;  %v7124_v19 = vadd.f32 %v10965_v30, %v7075_v58  ;;  %v5979_v56 = vsub.f32 %v14951_v21, %v15092_v18 }
 0xa41   :  { %v6034_v14 = vmul.f32 %v15162_v39, %v6033_v43  ;;  %v6040_v15 = vmul.f32 %v15227_v11, %v15170_v7  ;;  %v5844_v53 = vpop.xlane.xlu0 %5843  ;;  %v10967_v43 = vld [vmem:[%s16411_s3 + $0x76] ss:$0 sm:$0xff]  ;;  %v7128_v9 = vadd.f32 %v10970_v22, %v7079_v23  ;;  %vm6046_vm4 = vweird.f32 %v15227_v11 }
 0xa42   :  { %16632 = vst [vmem:[#allocation22_spill] sm:$0xff] %v15235_v44  ;;  %11131 = vrsqrt.f32 %v15229_v34  ;;  %v15251_v62 = vmul.f32 0.0078125, %v5844_v53  ;;  %v6533_v26 = vpack.c.bf16 %v15235_v44, %v15232_v3  ;;  %v7076_v53 = vmul.f32 %v10964_v41, %v7027_v31 }
 0xa43   :  { %v6041_v35 = vmul.f32 %v15227_v11, %v6040_v15  ;;  %v5908_v4 = vpop.xlane.xlu2 %5907  ;;  %v6038_v13 = vsel %vm15260_vm3, %v15162_v39, %v6034_v14  ;;  %v7126_v15 = vadd.f32 %v10967_v43, %v7077_v20  ;;  %v7127_v31 = vadd.f32 %v10967_v43, %v7078_v52  ;;  %v7274_v39 = vpop.f32.mrf.mxu0 }
 0xa44   :  { %v5950_v60 = vmul.f32 %v15251_v62, %v15251_v62  ;;  %v5934_v44 = vmul.f32 0.0078125, %v5908_v4  ;;  %6554 = vmatmul.bf16.vlgmr.msra.gmra.mxu2 %v6533_v26  ;;  %v7080_v41 = vmul.f32 %v10969_v61, %v7031_v40  ;;  %v7125_v26 = vadd.f32 %v10965_v30, %v7076_v53  ;;  %v10962_v61 = vld [vmem:[%s16411_s3 + $0x74] ss:$0 sm:$0xff] }
 0xa45   :  { %v6042_v49 = vmul.f32 0.5, %v6041_v35  ;;  %vm6045_vm5 = vweird.f32 %v15170_v7  ;;  %v6171_v48 = vmul.f32 %v6038_v13, %v5979_v56  ;;  %v7291_v18 = vadd.f32 %v7272_v36, %v7128_v9 }
 0xa46   :  { %v5966_v3 = vsub.f32 %v5934_v44, %v5950_v60  ;;  %v7129_v44 = vadd.f32 %v10970_v22, %v7080_v41  ;;  %v5980_v14 = vsub.f32 %v14962_v51, %v15133_v59  ;;  %vm6047_vm6 = vmor %vm6045_vm5, %vm6046_vm4  ;;  %v7289_v7 = vadd.f32 %v15107_v42, %v7126_v15  ;;  %v10960_v51 = vld [vmem:[%s16411_s3 + $0x73] ss:$0 sm:$0xff] }
 0xa47   :  { %v6043_v0 = vsub.f32 1.5, %v6042_v49  ;;  %v7290_v23 = vadd.f32 %v15158_v8, %v7127_v31  ;;  %v6192_v43 = vmul.f32 %v15167_v55, %v6171_v48  ;;  %v7072_v35 = vmul.f32 %v15180_v6, %v15216_v28 }
 0xa48   :  { %v15272_v4 = vpop.eup %11131  ;;  %v15275_v32 = vadd.f32 1e-05, %v5966_v3  ;;  %v7292_v30 = vadd.f32 %v7274_v39, %v7129_v44  ;;  %v7122_v53 = vadd.f32 %v10962_v61, %v15221_v29  ;;  %v7123_v13 = vadd.f32 %v10962_v61, %v7074_v47 }
 0xa49   :  { %v6044_v58 = vmul.f32 %v15227_v11, %v6043_v0  ;;  %v6050_v21 = vmul.f32 %v15272_v4, %v15229_v34  ;;  %v5846_v60 = vpop.xlane.xlu0 %5845  ;;  %v7287_v40 = vadd.f32 %v15075_v33, %v7124_v19  ;;  %v7288_v56 = vadd.f32 %v15081_v46, %v7125_v26  ;;  %v10958_v46 = vld [vmem:[%s16411_s3 + $0x72] ss:$0 sm:$0xff] }
 0xa4a   :  { %11133 = vrsqrt.f32 %v15275_v32  ;;  %v15289_v0 = vmul.f32 0.0078125, %v5846_v60  ;;  %v7300_v52 = vpack.c.bf16 %v7292_v30, %v7291_v18  ;;  %v7299_v31 = vpack.c.bf16 %v7290_v23, %v7289_v7 }
 0xa4b   :  { %v6048_v36 = vsel %vm6047_vm6, %v15227_v11, %v6044_v58  ;;  %v6051_v3 = vmul.f32 %v15272_v4, %v6050_v21  ;;  %v5910_v22 = vpop.xlane.xlu2 %5909  ;;  %v7070_v11 = vmul.f32 %v15121_v27, %v15154_v25  ;;  %v10955_v27 = vld [vmem:[%s16410_s2 + $0x71] ss:$0 sm:$0xff]  ;;  %v7120_v25 = vadd.f32 %v10960_v51, %v15214_v5 }
 0xa4c   :  { %v5951_v59 = vmul.f32 %v15289_v0, %v15289_v0  ;;  %v5935_v42 = vmul.f32 0.0078125, %v5910_v22  ;;  %v6172_v20 = vmul.f32 %v6048_v36, %v5980_v14  ;;  %7314 = vmatpush.bf16.msrb.mxu2 %v7300_v52  ;;  %v15317_v28 = vadd.f32 %v15211_v10, %v6192_v43  ;;  %v10956_v14 = vld [vmem:[%s16411_s3 + $0x71] ss:$0 sm:$0xff] }
 0xa4d   :  { %v6052_v8 = vmul.f32 0.5, %v6051_v3  ;;  %v7121_v29 = vadd.f32 %v10960_v51, %v7072_v35  ;;  %vm6056_vm7 = vweird.f32 %v15272_v4  ;;  %v7285_v26 = vadd.f32 %v15050_v16, %v7122_v53 }
 0xa4e   :  { %v5967_v49 = vsub.f32 %v5935_v42, %v5951_v59  ;;  %v6193_v9 = vmul.f32 %v15167_v55, %v6172_v20  ;;  %v7286_v58 = vadd.f32 %v15062_v2, %v7123_v13  ;;  %v7298_v21 = vpack.c.bf16 %v7288_v56, %v7287_v40 }
 0xa4f   :  { %v6053_v15 = vsub.f32 1.5, %v6052_v8  ;;  %vm6055_vm8 = vweird.f32 %v15229_v34  ;;  %v16635_v44 = vunpack.c.1.s8 %v15086_v45  ;;  %v7067_v16 = vmul.f32 %v10955_v27, %v15138_v37 }
 0xa50   :  { %v15308_v41 = vpop.eup %11133  ;;  %v15314_v6 = vadd.f32 1e-05, %v5967_v49  ;;  %v15320_v33 = vadd.f32 %v15211_v10, %v6193_v9  ;;  %7315 = vmatpush.bf16.msrb.mxu2 %v7299_v31  ;;  %vm15346_vm9 = vmor %vm6055_vm8, %vm6056_vm7  ;;  %v7068_v45 = vmul.f32 %v10955_v27, %v15147_v1  ;;  %v7118_v36 = vadd.f32 %v10958_v46, %v15150_v12  ;;  %v16639_v31 = vld [vmem:[#allocation18_spill] sm:$0xff] }
 0xa51   :  { %v6054_v47 = vmul.f32 %v15272_v4, %v6053_v15  ;;  %v6060_v5 = vmul.f32 %v15308_v41, %v15275_v32  ;;  %v5848_v19 = vpop.xlane.xlu1 %5847  ;;  %v7017_v61 = vcvt.s32.f32 %v16635_v44  ;;  %v7119_v23 = vadd.f32 %v10958_v46, %v7070_v11 }
 0xa52   :  { %11135 = vrsqrt.f32 %v15314_v6  ;;  %v15331_v39 = vmul.f32 0.0078125, %v5848_v19  ;;  %v6534_v48 = vpack.c.bf16 %v15320_v33, %v15317_v28  ;;  %v7283_v22 = vadd.f32 %v15028_v24, %v7120_v25 }
 0xa53   :  { %v6061_v18 = vmul.f32 %v15308_v41, %v6060_v5  ;;  %v5912_v60 = vpop.xlane.xlu0 %5911  ;;  %v6058_v37 = vsel %vm15346_vm9, %v15272_v4, %v6054_v47  ;;  %v5981_v30 = vsub.f32 %v14971_v38, %v15196_v50  ;;  %v7284_v59 = vadd.f32 %v15038_v57, %v7121_v29  ;;  %v10954_v50 = vld [vmem:[%s16411_s3 + $0x70] ss:$0 sm:$0xff]  ;;  %v16640_v47 = vld [vmem:[#allocation5_spill] sm:$0xff] }
 0xa54   :  { %v5952_v34 = vmul.f32 %v15331_v39, %v15331_v39  ;;  %v5936_v7 = vmul.f32 0.0078125, %v5912_v60  ;;  %6559 = vmatmul.bf16.gmra.mxu2 %v6534_v48  ;;  %v7297_v42 = vpack.c.bf16 %v7286_v58, %v7285_v26  ;;  %vm6066_vm10 = vweird.f32 %v15308_v41  ;;  %v16641_v5 = vld [vmem:[#allocation13_spill] sm:$0xff] }
 0xa55   :  { %v6062_v3 = vmul.f32 0.5, %v6061_v18  ;;  %7316 = vmatpush.bf16.msrb.mxu2 %v7298_v21  ;;  %v7066_v12 = vmul.f32 %v15097_v17, %v7017_v61  ;;  %v7116_v4 = vadd.f32 %v10956_v14, %v7067_v16  ;;  %v6173_v11 = vmul.f32 %v6058_v37, %v5981_v30 }
 0xa56   :  { %v5968_v51 = vsub.f32 %v5936_v7, %v5952_v34  ;;  %v7117_v24 = vadd.f32 %v10956_v14, %v7068_v45  ;;  %vm6065_vm11 = vweird.f32 %v15275_v32  ;;  %v7281_v8 = vadd.f32 %v15007_v54, %v7118_v36  ;;  %v16638_v32 = vld [vmem:[#allocation8_spill] sm:$0xff]  ;;  %v16642_v14 = vld [vmem:[#allocation11_spill] sm:$0xff] }
 0xa57   :  { %v6063_v20 = vsub.f32 1.5, %v6062_v3  ;;  %v5982_v17 = vsub.f32 %v14980_v63, %v15251_v62  ;;  %vm6067_vm12 = vmor %vm6065_vm11, %vm6066_vm10  ;;  %v7282_v53 = vadd.f32 %v16638_v32, %v7119_v23  ;;  %v7296_v13 = vpack.c.bf16 %v7284_v59, %v7283_v22  ;;  %v16643_v45 = vld [vmem:[#allocation19_spill] sm:$0xff] }
 0xa58   :  { %v15362_v1 = vpop.eup %11135  ;;  %v15365_v43 = vadd.f32 1e-05, %v5968_v51  ;;  %v6194_v56 = vmul.f32 %v15167_v55, %v6173_v11  ;;  %v7114_v27 = vadd.f32 %v10954_v50, %v16639_v31  ;;  %v7115_v25 = vadd.f32 %v10954_v50, %v7066_v12 }
 0xa59   :  { %v6064_v35 = vmul.f32 %v15308_v41, %v6063_v20  ;;  %v6070_v38 = vmul.f32 %v15362_v1, %v15314_v6  ;;  %v5850_v57 = vpop.xlane.xlu1 %5849  ;;  %7317 = vmatpush.bf16.msrb.mxu2 %v7297_v42  ;;  %v7280_v19 = vadd.f32 %v16641_v5, %v7117_v24  ;;  %v7295_v26 = vpack.c.bf16 %v7282_v53, %v7281_v8  ;;  %v16644_v42 = vld [vmem:[#allocation7_spill] sm:$0xff] }
 0xa5a   :  { %11137 = vrsqrt.f32 %v15365_v43  ;;  %v15380_v52 = vmul.f32 0.0078125, %v5850_v57  ;;  %v15395_v18 = vadd.f32 %v15211_v10, %v6194_v56  ;;  %vm6076_vm13 = vweird.f32 %v15362_v1 }
 0xa5b   :  { %v6068_v49 = vsel %vm6067_vm12, %v15308_v41, %v6064_v35  ;;  %v6071_v9 = vmul.f32 %v15362_v1, %v6070_v38  ;;  %v5914_v40 = vpop.xlane.xlu0 %5913  ;;  %v7279_v41 = vadd.f32 %v16640_v47, %v7116_v4  ;;  %v7277_v2 = vadd.f32 %v16642_v14, %v7114_v27 }
 0xa5c   :  { %v5953_v54 = vmul.f32 %v15380_v52, %v15380_v52  ;;  %v5937_v63 = vmul.f32 0.0078125, %v5914_v40  ;;  %v6174_v62 = vmul.f32 %v6068_v49, %v5982_v17  ;;  %v7278_v36 = vadd.f32 %v16643_v45, %v7115_v25 }
 0xa5d   :  { %v6072_v15 = vmul.f32 0.5, %v6071_v9  ;;  %7318 = vmatpush.bf16.msrb.mxu2 %v7296_v13  ;;  %v7294_v37 = vpack.c.bf16 %v7280_v19, %v7279_v41  ;;  %vm6075_vm14 = vweird.f32 %v15314_v6  ;;  %v5983_v20 = vsub.f32 %v16644_v42, %v15289_v0  ;;  %v10687_v13 = vld [vmem:[%s16414_s6 + $0xf8] sm:$0xff] }
 0xa5e   :  { %v5969_v46 = vsub.f32 %v5937_v63, %v5953_v54  ;;  %v6195_v29 = vmul.f32 %v15167_v55, %v6174_v62  ;;  %vm6077_vm15 = vmor %vm6075_vm14, %vm6076_vm13  ;;  %v7293_v4 = vpack.c.bf16 %v7278_v36, %v7277_v2  ;;  %vm6085_vm2 = vweird.f32 %v15365_v43  ;;  %8012 = vmatpush.bf16.msrb.mxu1 %v10687_v13 }
 0xa5f   :  { %v6073_v48 = vsub.f32 1.5, %v6072_v15 }
 0xa60   :  { %v11138_v58 = vpop.eup %11137  ;;  %v15392_v21 = vadd.f32 1e-05, %v5969_v46  ;;  %v15398_v60 = vadd.f32 %v15211_v10, %v6195_v29 }
 0xa61   :  { %v6074_v44 = vmul.f32 %v15362_v1, %v6073_v48  ;;  %v6080_v61 = vmul.f32 %v11138_v58, %v15365_v43  ;;  %v5852_v16 = vpop.xlane.xlu2 %5851  ;;  %7319 = vmatpush.bf16.msrb.mxu2 %v7295_v26  ;;  %vm6086_vm1 = vweird.f32 %v11138_v58  ;;  %v10686_v26 = vld [vmem:[%s16414_s6 + $0xf0] sm:$0xff] }
 0xa62   :  { %11139 = vrsqrt.f32 %v15392_v21  ;;  %v15405_v34 = vmul.f32 0.0078125, %v5852_v16  ;;  %v6535_v7 = vpack.c.bf16 %v15398_v60, %v15395_v18  ;;  %vm6087_vm3 = vmor %vm6085_vm2, %vm6086_vm1  ;;  %vm6095_vm5 = vweird.f32 %v15392_v21  ;;  %8013 = vmatpush.bf16.msrb.mxu1 %v10686_v26 }
 0xa63   :  { %v6081_v3 = vmul.f32 %v11138_v58, %v6080_v61  ;;  %v5916_v23 = vpop.xlane.xlu1 %5915  ;;  %v6078_v51 = vsel %vm6077_vm15, %v15362_v1, %v6074_v44  ;;  %v16645_v1 = vld [vmem:[#allocation20_spill] sm:$0xff]  ;;  %v10678_v44 = vld [vmem:[%s16413_s5 + $0x3c0] sm:$0xff] }
 0xa64   :  { %v5954_v22 = vmul.f32 %v15405_v34, %v15405_v34  ;;  %v5938_v30 = vmul.f32 0.0078125, %v5916_v23  ;;  %6564 = vmatmul.bf16.gmra.mxu2 %v6535_v7  ;;  %v6175_v35 = vmul.f32 %v6078_v51, %v5983_v20  ;;  %v5984_v8 = vsub.f32 %v16645_v1, %v15331_v39 }
 0xa65   :  { %v6082_v59 = vmul.f32 0.5, %v6081_v3  ;;  %7320 = vmatpush.bf16.msrb.mxu2 %v7294_v37  ;;  %10341 = vmatmul.msk.bf16.vlgmr.msrb.gmra.mxu1 %vm254_vm0, %v10678_v44 }
 0xa66   :  { %v5970_v12 = vsub.f32 %v5938_v30, %v5954_v22  ;;  %v6196_v40 = vmul.f32 %v15167_v55, %v6175_v35  ;;  %v16647_v30 = vld [vmem:[#allocation9_spill] sm:$0xff] }
 0xa67   :  { %v6083_v11 = vsub.f32 1.5, %v6082_v59  ;;  %v5986_v51 = vsub.f32 %v16647_v30, %v15405_v34 }
 0xa68   :  { %v11140_v6 = vpop.eup %11139  ;;  %v6002_v24 = vadd.f32 1e-05, %v5970_v12  ;;  %v15432_v31 = vadd.f32 %v15211_v10, %v6196_v40 }
 0xa69   :  { %v6084_v38 = vmul.f32 %v11138_v58, %v6083_v11  ;;  %v6090_v57 = vmul.f32 %v11140_v6, %v15392_v21  ;;  %v5854_v50 = vpop.xlane.xlu2 %5853  ;;  %7321 = vmatpush.bf16.msrb.mxu2 %v7293_v4  ;;  %vm6096_vm4 = vweird.f32 %v11140_v6  ;;  %v16646_v21 = vld [vmem:[#allocation6_spill] sm:$0xff] }
 0xa6a   :  { %11141 = vrsqrt.f32 %v6002_v24  ;;  %v15420_v0 = vmul.f32 0.0078125, %v5854_v50  ;;  %vm6097_vm6 = vmor %vm6095_vm5, %vm6096_vm4  ;;  %v5985_v14 = vsub.f32 %v16646_v21, %v15380_v52  ;;  %vm6105_vm8 = vweird.f32 %v6002_v24 }
 0xa6b   :  { %v6088_v17 = vsel %vm6087_vm3, %v11138_v58, %v6084_v38  ;;  %v6091_v32 = vmul.f32 %v11140_v6, %v6090_v57  ;;  %v5918_v53 = vpop.xlane.xlu1 %5917 }
 0xa6c   :  { %v5955_v43 = vmul.f32 %v15420_v0, %v15420_v0  ;;  %v5939_v49 = vmul.f32 0.0078125, %v5918_v53  ;;  %v6176_v9 = vmul.f32 %v6088_v17, %v5984_v8 }
 0xa6d   :  { %v6092_v39 = vmul.f32 0.5, %v6091_v32 }
 0xa6e   :  { %v5971_v54 = vsub.f32 %v5939_v49, %v5955_v43  ;;  %v6197_v63 = vmul.f32 %v15167_v55, %v6176_v9 }
 0xa6f   :  { %v6093_v62 = vsub.f32 1.5, %v6092_v39 }
 0xa70   :  { %v11142_v56 = vpop.eup %11141  ;;  %v15429_v15 = vadd.f32 1e-05, %v5971_v54  ;;  %v15435_v27 = vadd.f32 %v15211_v10, %v6197_v63  ;;  %v10679_v54 = vld [vmem:[%s16413_s5 + $0x3c8] sm:$0xff] }
 0xa71   :  { %v6094_v25 = vmul.f32 %v11140_v6, %v6093_v62  ;;  %v6100_v46 = vmul.f32 %v11142_v56, %v6002_v24  ;;  %v5856_v29 = vpop.xlane.xlu0 %5855  ;;  %vm6106_vm7 = vweird.f32 %v11142_v56 }
 0xa72   :  { %11143 = vrsqrt.f32 %v15429_v15  ;;  %v15438_v47 = vmul.f32 0.0078125, %v5856_v29  ;;  %v6536_v41 = vpack.c.bf16 %v15435_v27, %v15432_v31  ;;  %vm6107_vm9 = vmor %vm6105_vm8, %vm6106_vm7  ;;  %vm6115_vm11 = vweird.f32 %v15429_v15 }
 0xa73   :  { %v6101_v5 = vmul.f32 %v11142_v56, %v6100_v46  ;;  %v5920_v19 = vpop.xlane.xlu2 %5919  ;;  %v6098_v61 = vsel %vm6097_vm6, %v11140_v6, %v6094_v25 }
 0xa74   :  { %v5956_v48 = vmul.f32 %v15438_v47, %v15438_v47  ;;  %v5940_v58 = vmul.f32 0.0078125, %v5920_v19  ;;  %6569 = vmatmul.bf16.gmra.mxu2 %v6536_v41  ;;  %v6177_v37 = vmul.f32 %v6098_v61, %v5985_v14 }
 0xa75   :  { %v6102_v16 = vmul.f32 0.5, %v6101_v5  ;;  %10342 = vmatmul.msk.bf16.gmra.mxu1 %vm254_vm0, %v10679_v54  ;;  %v16651_v54 = vld [vmem:[#allocation15_spill] sm:$0xff] }
 0xa76   :  { %v5972_v2 = vsub.f32 %v5940_v58, %v5956_v48  ;;  %v6198_v6 = vmul.f32 %v15167_v55, %v6177_v37  ;;  %v16649_v58 = vld [vmem:[#allocation12_spill] sm:$0xff] }
 0xa77   :  { %v6103_v7 = vsub.f32 1.5, %v6102_v16  ;;  %v5988_v44 = vsub.f32 %v16649_v58, %v15438_v47 }
 0xa78   :  { %v11144_v45 = vpop.eup %11143  ;;  %v6004_v36 = vadd.f32 1e-05, %v5972_v2  ;;  %v15464_v1 = vadd.f32 %v15211_v10, %v6198_v6 }
 0xa79   :  { %v6104_v3 = vmul.f32 %v11142_v56, %v6103_v7  ;;  %v6110_v23 = vmul.f32 %v11144_v45, %v15429_v15  ;;  %v5858_v22 = vpop.xlane.xlu0 %5857  ;;  %vm6116_vm10 = vweird.f32 %v11144_v45 }
 0xa7a   :  { %11145 = vrsqrt.f32 %v6004_v36  ;;  %v15457_v59 = vmul.f32 0.0078125, %v5858_v22  ;;  %vm6117_vm12 = vmor %vm6115_vm11, %vm6116_vm10  ;;  %vm6125_vm14 = vweird.f32 %v6004_v36 }
 0xa7b   :  { %v6108_v52 = vsel %vm6107_vm9, %v11142_v56, %v6104_v3  ;;  %v6111_v42 = vmul.f32 %v11144_v45, %v6110_v23  ;;  %v5922_v20 = vpop.xlane.xlu2 %5921  ;;  %v16648_v56 = vld [vmem:[#allocation10_spill] sm:$0xff] }
 0xa7c   :  { %v5957_v12 = vmul.f32 %v15457_v59, %v15457_v59  ;;  %v5941_v4 = vmul.f32 0.0078125, %v5922_v20  ;;  %v6178_v11 = vmul.f32 %v6108_v52, %v5986_v51  ;;  %v5987_v25 = vsub.f32 %v16648_v56, %v15420_v0 }
 0xa7d   :  { %v6112_v24 = vmul.f32 0.5, %v6111_v42 }
 0xa7e   :  { %v5973_v35 = vsub.f32 %v5941_v4, %v5957_v12  ;;  %v6199_v38 = vmul.f32 %v15167_v55, %v6178_v11 }
 0xa7f   :  { %v6113_v57 = vsub.f32 1.5, %v6112_v24 }
 0xa80   :  { %v11146_v34 = vpop.eup %11145  ;;  %v6005_v50 = vadd.f32 1e-05, %v5973_v35  ;;  %v15467_v8 = vadd.f32 %v15211_v10, %v6199_v38  ;;  %v10680_v38 = vld [vmem:[%s16413_s5 + $0x3d0] sm:$0xff] }
 0xa81   :  { %v6114_v17 = vmul.f32 %v11144_v45, %v6113_v57  ;;  %v6120_v32 = vmul.f32 %v11146_v34, %v6004_v36  ;;  %v5860_v53 = vpop.xlane.xlu1 %5859  ;;  %vm6126_vm13 = vweird.f32 %v11146_v34 }
 0xa82   :  { %11147 = vrsqrt.f32 %v6005_v50  ;;  %v15469_v13 = vmul.f32 0.0078125, %v5860_v53  ;;  %v6537_v43 = vpack.c.bf16 %v15467_v8, %v15464_v1  ;;  %vm6127_vm15 = vmor %vm6125_vm14, %vm6126_vm13  ;;  %vm6135_vm2 = vweird.f32 %v6005_v50 }
 0xa83   :  { %v6121_v49 = vmul.f32 %v11146_v34, %v6120_v32  ;;  %v5924_v9 = vpop.xlane.xlu0 %5923  ;;  %v6118_v63 = vsel %vm6117_vm12, %v11144_v45, %v6114_v17  ;;  %v16650_v17 = vld [vmem:[#allocation14_spill] sm:$0xff] }
 0xa84   :  { %v5958_v40 = vmul.f32 %v15469_v13, %v15469_v13  ;;  %v5942_v39 = vmul.f32 0.0078125, %v5924_v9  ;;  %6574 = vmatmul.bf16.gmra.mxu2 %v6537_v43  ;;  %v6179_v5 = vmul.f32 %v6118_v63, %v5987_v25  ;;  %v5989_v32 = vsub.f32 %v16650_v17, %v15457_v59 }
 0xa85   :  { %v6122_v62 = vmul.f32 0.5, %v6121_v49  ;;  %10343 = vmatmul.msk.bf16.gmra.mxu1 %vm254_vm0, %v10680_v38  ;;  %v5990_v63 = vsub.f32 %v16651_v54, %v15469_v13 }
 0xa86   :  { %v5974_v46 = vsub.f32 %v5942_v39, %v5958_v40  ;;  %v6200_v45 = vmul.f32 %v15167_v55, %v6179_v5 }
 0xa87   :  { %v6123_v29 = vsub.f32 1.5, %v6122_v62 }
 0xa88   :  { %v11148_v15 = vpop.eup %11147  ;;  %v6006_v41 = vadd.f32 1e-05, %v5974_v46  ;;  %v15491_v30 = vadd.f32 %v15211_v10, %v6200_v45 }
 0xa89   :  { %v6124_v19 = vmul.f32 %v11146_v34, %v6123_v29  ;;  %v6130_v26 = vmul.f32 %v11148_v15, %v6005_v50  ;;  %v5862_v48 = vpop.xlane.xlu1 %5861  ;;  %vm6136_vm1 = vweird.f32 %v11148_v15 }
 0xa8a   :  { %11149 = vrsqrt.f32 %v6006_v41  ;;  %v15484_v61 = vmul.f32 0.0078125, %v5862_v48  ;;  %vm6137_vm3 = vmor %vm6135_vm2, %vm6136_vm1  ;;  %vm6145_vm5 = vweird.f32 %v6006_v41 }
 0xa8b   :  { %v6128_v0 = vsel %vm6127_vm15, %v11146_v34, %v6124_v19  ;;  %v6131_v16 = vmul.f32 %v11148_v15, %v6130_v26  ;;  %v5926_v21 = vpop.xlane.xlu0 %5925 }
 0xa8c   :  { %v5959_v14 = vmul.f32 %v15484_v61, %v15484_v61  ;;  %v5943_v2 = vmul.f32 0.0078125, %v5926_v21  ;;  %v6180_v7 = vmul.f32 %v6128_v0, %v5988_v44  ;;  %v10681_v44 = vld [vmem:[%s16413_s5 + $0x3d8] sm:$0xff] }
 0xa8d   :  { %v6132_v36 = vmul.f32 0.5, %v6131_v16  ;;  %v16652_v21 = vld [vmem:[#allocation16_spill] sm:$0xff] }
 0xa8e   :  { %v5975_v37 = vsub.f32 %v5943_v2, %v5959_v14  ;;  %v6201_v3 = vmul.f32 %v15167_v55, %v6180_v7  ;;  %v5991_v14 = vsub.f32 %v16652_v21, %v15484_v61 }
 0xa8f   :  { %v6133_v23 = vsub.f32 1.5, %v6132_v36  ;;  %v16653_v36 = vld [vmem:[#allocation17_spill] sm:$0xff] }
 0xa90   :  { %v11150_v47 = vpop.eup %11149  ;;  %v6007_v22 = vadd.f32 1e-05, %v5975_v37  ;;  %v15494_v51 = vadd.f32 %v15211_v10, %v6201_v3 }
 0xa91   :  { %v6134_v52 = vmul.f32 %v11148_v15, %v6133_v23  ;;  %v6140_v42 = vmul.f32 %v11150_v47, %v6006_v41  ;;  %v5864_v20 = vpop.xlane.xlu2 %5863  ;;  %vm6146_vm4 = vweird.f32 %v11150_v47 }
 0xa92   :  { %11151 = vrsqrt.f32 %v6007_v22  ;;  %v5880_v12 = vmul.f32 0.0078125, %v5864_v20  ;;  %v6538_v4 = vpack.c.bf16 %v15494_v51, %v15491_v30  ;;  %vm6147_vm6 = vmor %vm6145_vm5, %vm6146_vm4  ;;  %vm6155_vm8 = vweird.f32 %v6007_v22  ;;  %v10682_v20 = vld [vmem:[%s16413_s5 + $0x3e0] sm:$0xff] }
 0xa93   :  { %v6141_v11 = vmul.f32 %v11150_v47, %v6140_v42  ;;  %v5928_v6 = vpop.xlane.xlu1 %5927  ;;  %v6138_v57 = vsel %vm6137_vm3, %v11148_v15, %v6134_v52 }
 0xa94   :  { %v5960_v24 = vmul.f32 %v5880_v12, %v5880_v12  ;;  %v5944_v35 = vmul.f32 0.0078125, %v5928_v6  ;;  %6579 = vmatmul.bf16.gmra.mxu2 %v6538_v4  ;;  %v6181_v9 = vmul.f32 %v6138_v57, %v5989_v32  ;;  %v5992_v37 = vsub.f32 %v16653_v36, %v5880_v12  ;;  %v10684_v57 = vld [vmem:[%s16413_s5 + $0x3f0] sm:$0xff] }
 0xa95   :  { %v6142_v34 = vmul.f32 0.5, %v6141_v11  ;;  %10344 = vmatmul.msk.bf16.gmra.mxu1 %vm254_vm0, %v10681_v44 }
 0xa96   :  { %v5976_v53 = vsub.f32 %v5944_v35, %v5960_v24  ;;  %v6202_v59 = vmul.f32 %v15167_v55, %v6181_v9  ;;  %v10685_v9 = vld [vmem:[%s16413_s5 + $0x3f8] sm:$0xff] }
 0xa97   :  { %v6143_v43 = vsub.f32 1.5, %v6142_v34 }
 0xa98   :  { %v11152_v49 = vpop.eup %11151  ;;  %v6008_v50 = vadd.f32 1e-05, %v5976_v53  ;;  %v15509_v19 = vadd.f32 %v15211_v10, %v6202_v59  ;;  %v10696_v59 = vld [vmem:[%s16414_s6 + $0x100] sm:$0xff] }
 0xa99   :  { %v6144_v40 = vmul.f32 %v11150_v47, %v6143_v43  ;;  %v6150_v39 = vmul.f32 %v11152_v49, %v6007_v22  ;;  %vm6156_vm7 = vweird.f32 %v11152_v49 }
 0xa9a   :  { %11153 = vrsqrt.f32 %v6008_v50  ;;  %vm6157_vm9 = vmor %vm6155_vm8, %vm6156_vm7  ;;  %vm6165_vm11 = vweird.f32 %v6008_v50 }
 0xa9b   :  { %v6148_v62 = vsel %vm6147_vm6, %v11150_v47, %v6144_v40  ;;  %v6151_v56 = vmul.f32 %v11152_v49, %v6150_v39  ;;  %v10697_v39 = vld [vmem:[%s16414_s6 + $0x108] sm:$0xff] }
 0xa9c   :  { %v6182_v25 = vmul.f32 %v6148_v62, %v5990_v63  ;;  %8396 = vmatpush.bf16.msra.mxu0 %v10697_v39 }
 0xa9d   :  { %v6152_v46 = vmul.f32 0.5, %v6151_v56 }
 0xa9e   :  { %v6203_v29 = vmul.f32 %v15167_v55, %v6182_v25 }
 0xa9f   :  { %v6153_v15 = vsub.f32 1.5, %v6152_v46  ;;  %v10688_v46 = vld [vmem:[%s16413_s5 + $0x400] sm:$0xff] }
 0xaa0   :  { %v11154_v5 = vpop.eup %11153  ;;  %v15512_v41 = vadd.f32 %v15211_v10, %v6203_v29  ;;  %8397 = vmatpush.bf16.msra.mxu0 %v10696_v59 }
 0xaa1   :  { %v6154_v26 = vmul.f32 %v11152_v49, %v6153_v15  ;;  %v6160_v13 = vmul.f32 %v11154_v5, %v6008_v50  ;;  %vm6166_vm10 = vweird.f32 %v11154_v5 }
 0xaa2   :  { %v6539_v48 = vpack.c.bf16 %v15512_v41, %v15509_v19  ;;  %vm6167_vm12 = vmor %vm6165_vm11, %vm6166_vm10 }
 0xaa3   :  { %v6161_v58 = vmul.f32 %v11154_v5, %v6160_v13  ;;  %v6158_v0 = vsel %vm6157_vm9, %v11152_v49, %v6154_v26  ;;  %10430 = vmatmul.msk.bf16.vlgmr.msra.gmra.mxu0 %vm254_vm0, %v10688_v46 }
 0xaa4   :  { %6584 = vmatmul.bf16.gmra.mxu2 %v6539_v48  ;;  %v6183_v7 = vmul.f32 %v6158_v0, %v5991_v14 }
 0xaa5   :  { %v6162_v16 = vmul.f32 0.5, %v6161_v58  ;;  %10345 = vmatmul.msk.bf16.gmra.mxu1 %vm254_vm0, %v10682_v20 }
 0xaa6   :  { %v6204_v47 = vmul.f32 %v15167_v55, %v6183_v7 }
 0xaa7   :  { %v6163_v2 = vsub.f32 1.5, %v6162_v16  ;;  %v10689_v16 = vld [vmem:[%s16413_s5 + $0x408] sm:$0xff] }
 0xaa8   :  { %v15526_v52 = vadd.f32 %v15211_v10, %v6204_v47  ;;  %v10690_v47 = vld [vmem:[%s16413_s5 + $0x410] sm:$0xff] }
 0xaa9   :  { %v6164_v45 = vmul.f32 %v11154_v5, %v6163_v2 }
 0xaab   :  { %v6168_v3 = vsel %vm6167_vm12, %v11154_v5, %v6164_v45 }
 0xaac   :  { %v6184_v23 = vmul.f32 %v6168_v3, %v5992_v37 }
 0xaae   :  { %v6205_v22 = vmul.f32 %v15167_v55, %v6184_v23  ;;  %v10683_v55 = vld [vmem:[%s16413_s5 + $0x3e8] sm:$0xff] }
 0xab0   :  { %v15529_v61 = vadd.f32 %v15211_v10, %v6205_v22  ;;  %v15544_v10 = vld [vmem:[%s16412_s4 + $0xc] ss:$0 sm:$0xff] }
 0xab2   :  { %v6540_v42 = vpack.c.bf16 %v15529_v61, %v15526_v52 }
 0xab3   :  { %10431 = vmatmul.msk.bf16.gmra.mxu0 %vm254_vm0, %v10689_v16  ;;  %v15636_v16 = vld [vmem:[%s16412_s4 + $0xd] ss:$0 sm:$0xff] }
 0xab4   :  { %6589 = vmatmul.bf16.gmra.mxu2 %v6540_v42 }
 0xab5   :  { %10346 = vmatmul.msk.bf16.gmra.mxu1 %vm254_vm0, %v10683_v55 }
 0xac3   :  { %10432 = vmatmul.msk.bf16.gmra.mxu0 %vm254_vm0, %v10690_v47 }
 0xac5   :  { %10347 = vmatmul.msk.bf16.gmra.mxu1 %vm254_vm0, %v10684_v57 }
 0xac7   :  { %v6555_v12 = vpop.f32.mrf.mxu2 }
 0xac8   :  { %v6556_v4 = vadd.f32 %v15544_v10, %v6555_v12 }
 0xaca   :  { %v6595_v24 = vmax.f32 %v6556_v4, 0.0 }
 0xacf   :  { %v6557_v11 = vpop.f32.mrf.mxu2 }
 0xad0   :  { %v6558_v6 = vadd.f32 %v15544_v10, %v6557_v11 }
 0xad2   :  { %v6596_v35 = vmax.f32 %v6558_v6, 0.0 }
 0xad4   :  { %v6917_v38 = vpack.c.bf16 %v6596_v35, %v6595_v24  ;;  %v10691_v35 = vld [vmem:[%s16413_s5 + $0x418] sm:$0xff] }
 0xad5   :  { %10348 = vmatmul.msk.bf16.gmra.mxu1 %vm254_vm0, %v10685_v9  ;;  %10433 = vmatmul.msk.bf16.gmra.mxu0 %vm254_vm0, %v10691_v35  ;;  %v10692_v9 = vld [vmem:[%s16413_s5 + $0x420] sm:$0xff] }
 0xad6   :  { %6938 = vmatmul.bf16.vlgmr.msra.gmra.mxu3 %v6917_v38 }
 0xad7   :  { %v6560_v34 = vpop.f32.mrf.mxu2 }
 0xad8   :  { %v6561_v17 = vadd.f32 %v15544_v10, %v6560_v34 }
 0xada   :  { %v6597_v43 = vmax.f32 %v6561_v17, 0.0 }
 0xadf   :  { %v6562_v32 = vpop.f32.mrf.mxu2 }
 0xae0   :  { %v6563_v53 = vadd.f32 %v15544_v10, %v6562_v32 }
 0xae2   :  { %v6598_v49 = vmax.f32 %v6563_v53, 0.0  ;;  %v15569_v15 = vpop.f32.mrf.mxu1 }
 0xae4   :  { %v6918_v50 = vpack.c.bf16 %v6598_v49, %v6597_v43 }
 0xae5   :  { %10434 = vmatmul.msk.bf16.gmra.mxu0 %vm254_vm0, %v10692_v9 }
 0xae6   :  { %6943 = vmatmul.bf16.gmra.mxu3 %v6918_v50 }
 0xae7   :  { %v6565_v40 = vpop.f32.mrf.mxu2 }
 0xae8   :  { %v6566_v54 = vadd.f32 %v15544_v10, %v6565_v40 }
 0xaea   :  { %v6599_v56 = vmax.f32 %v6566_v54, 0.0  ;;  %v15572_v26 = vpop.f32.mrf.mxu1 }
 0xaef   :  { %v6567_v63 = vpop.f32.mrf.mxu2 }
 0xaf0   :  { %v6568_v62 = vadd.f32 %v15544_v10, %v6567_v63 }
 0xaf2   :  { %v6600_v25 = vmax.f32 %v6568_v62, 0.0  ;;  %v15579_v14 = vpop.f32.mrf.mxu1 }
 0xaf4   :  { %v6919_v29 = vpack.c.bf16 %v6600_v25, %v6599_v56 }
 0xaf6   :  { %6948 = vmatmul.bf16.gmra.mxu3 %v6919_v29 }
 0xaf7   :  { %v6570_v5 = vpop.f32.mrf.mxu2 }
 0xaf8   :  { %v6571_v13 = vadd.f32 %v15544_v10, %v6570_v5 }
 0xafa   :  { %v6601_v44 = vmax.f32 %v6571_v13, 0.0  ;;  %v15582_v7 = vpop.f32.mrf.mxu1  ;;  %v10693_v13 = vld [vmem:[%s16413_s5 + $0x428] sm:$0xff] }
 0xafb   :  { %10435 = vmatmul.msk.bf16.gmra.mxu0 %vm254_vm0, %v10693_v13 }
 0xaff   :  { %v6572_v48 = vpop.f32.mrf.mxu2 }
 0xb00   :  { %v6573_v58 = vadd.f32 %v15544_v10, %v6572_v48 }
 0xb02   :  { %v6602_v0 = vmax.f32 %v6573_v58, 0.0  ;;  %v15589_v42 = vpop.f32.mrf.mxu1  ;;  %v10694_v58 = vld [vmem:[%s16413_s5 + $0x430] sm:$0xff] }
 0xb04   :  { %v6920_v21 = vpack.c.bf16 %v6602_v0, %v6601_v44  ;;  %v10264_v0 = vld [vmem:[%s16409_s1 + $0x1f8] sm:$0xff] }
 0xb06   :  { %6953 = vmatmul.bf16.gmra.mxu3 %v6920_v21  ;;  %v7792_v21 = vunpack.c.2.s8 %v10264_v0 }
 0xb07   :  { %v6575_v2 = vpop.f32.mrf.mxu2 }
 0xb08   :  { %v6576_v45 = vadd.f32 %v15544_v10, %v6575_v2  ;;  %v7808_v47 = vcvt.s32.f32 %v7792_v21 }
 0xb0a   :  { %v6603_v3 = vmax.f32 %v6576_v45, 0.0  ;;  %v15592_v55 = vpop.f32.mrf.mxu1  ;;  %v10263_v45 = vld [vmem:[%s16409_s1 + $0x1f0] sm:$0xff] }
 0xb0b   :  { %10436 = vmatmul.msk.bf16.gmra.mxu0 %vm254_vm0, %v10694_v58  ;;  %v7786_v9 = vunpack.c.0.s8 %v10263_v45 }
 0xb0f   :  { %v6577_v36 = vpop.f32.mrf.mxu2 }
 0xb10   :  { %v6578_v37 = vadd.f32 %v15544_v10, %v6577_v36  ;;  %v7790_v36 = vunpack.c.0.s8 %v10264_v0 }
 0xb12   :  { %v6604_v23 = vmax.f32 %v6578_v37, 0.0  ;;  %v15599_v57 = vpop.f32.mrf.mxu1  ;;  %v7791_v37 = vunpack.c.1.s8 %v10264_v0 }
 0xb14   :  { %v6921_v22 = vpack.c.bf16 %v6604_v23, %v6603_v3  ;;  %v7793_v3 = vunpack.c.3.s8 %v10264_v0  ;;  %v7807_v35 = vcvt.s32.f32 %v7791_v37 }
 0xb16   :  { %6958 = vmatmul.bf16.gmra.mxu3 %v6921_v22  ;;  %v10987_v22 = vld [vmem:[%s16410_s2 + $0x7f] ss:$0 sm:$0xff] }
 0xb17   :  { %v6580_v20 = vpop.f32.mrf.mxu2 }
 0xb18   :  { %v6581_v12 = vadd.f32 %v15544_v10, %v6580_v20  ;;  %v7788_v20 = vunpack.c.2.s8 %v10263_v45 }
 0xb1a   :  { %v6605_v6 = vmax.f32 %v6581_v12, 0.0  ;;  %v15602_v17 = vpop.f32.mrf.mxu1  ;;  %v7789_v12 = vunpack.c.3.s8 %v10263_v45 }
 0xb1f   :  { %v6582_v4 = vpop.f32.mrf.mxu2 }
 0xb20   :  { %v6583_v11 = vadd.f32 %v15544_v10, %v6582_v4 }
 0xb22   :  { %v6606_v24 = vmax.f32 %v6583_v11, 0.0  ;;  %v15609_v39 = vpop.f32.mrf.mxu1  ;;  %v7806_v11 = vcvt.s32.f32 %v7790_v36  ;;  %v10980_v36 = vld [vmem:[%s16410_s2 + $0x7c] ss:$0 sm:$0xff] }
 0xb24   :  { %v6922_v38 = vpack.c.bf16 %v6606_v24, %v6605_v6  ;;  %v10985_v6 = vld [vmem:[%s16410_s2 + $0x7e] ss:$0 sm:$0xff] }
 0xb25   :  { %v7856_v13 = vmul.f32 %v10985_v6, %v7807_v35 }
 0xb26   :  { %6963 = vmatmul.bf16.gmra.mxu3 %v6922_v38  ;;  %v7809_v38 = vcvt.s32.f32 %v7793_v3 }
 0xb27   :  { %v6585_v34 = vpop.f32.mrf.mxu2 }
 0xb28   :  { %v6586_v32 = vadd.f32 %v15544_v10, %v6585_v34  ;;  %v7858_v58 = vmul.f32 %v10987_v22, %v7809_v38 }
 0xb2a   :  { %v6607_v49 = vmax.f32 %v6586_v32, 0.0  ;;  %v15612_v63 = vpop.f32.mrf.mxu1 }
 0xb2f   :  { %v6587_v53 = vpop.f32.mrf.mxu2 }
 0xb30   :  { %v6588_v43 = vadd.f32 %v15544_v10, %v6587_v53  ;;  %v7857_v53 = vmul.f32 %v10987_v22, %v7808_v47 }
 0xb32   :  { %v6608_v50 = vmax.f32 %v6588_v43, 0.0  ;;  %v15616_v5 = vpop.f32.mrf.mxu1  ;;  %v10988_v43 = vld [vmem:[%s16411_s3 + $0x7f] ss:$0 sm:$0xff] }
 0xb33   :  { %v7906_v21 = vadd.f32 %v10988_v43, %v7857_v53  ;;  %v10978_v53 = vld [vmem:[%s16410_s2 + $0x7b] ss:$0 sm:$0xff] }
 0xb34   :  { %v6923_v40 = vpack.c.bf16 %v6608_v50, %v6607_v49  ;;  %v10695_v49 = vld [vmem:[%s16413_s5 + $0x438] sm:$0xff]  ;;  %v10262_v50 = vld [vmem:[%s16409_s1 + $0x1e8] sm:$0xff] }
 0xb35   :  { %v7785_v0 = vunpack.c.3.s8 %v10262_v50  ;;  %10437 = vmatmul.msk.bf16.gmra.mxu0 %vm254_vm0, %v10695_v49 }
 0xb36   :  { %6968 = vmatmul.bf16.gmra.mxu3 %v6923_v40  ;;  %v7787_v40 = vunpack.c.1.s8 %v10263_v45  ;;  %v7802_v45 = vcvt.s32.f32 %v7786_v9 }
 0xb37   :  { %v6590_v54 = vpop.f32.mrf.mxu2  ;;  %v7801_v38 = vcvt.s32.f32 %v7785_v0 }
 0xb38   :  { %v6591_v62 = vadd.f32 %v15544_v10, %v6590_v54  ;;  %v7804_v54 = vcvt.s32.f32 %v7788_v20  ;;  %v7803_v37 = vcvt.s32.f32 %v7787_v40  ;;  %v7851_v49 = vmul.f32 %v10980_v36, %v7802_v45 }
 0xb3a   :  { %v6609_v59 = vmax.f32 %v6591_v62, 0.0  ;;  %v15622_v48 = vpop.f32.mrf.mxu1  ;;  %v10982_v62 = vld [vmem:[%s16410_s2 + $0x7d] ss:$0 sm:$0xff]  ;;  %v7852_v9 = vmul.f32 %v10980_v36, %v7803_v37 }
 0xb3b   :  { %v7853_v3 = vmul.f32 %v10982_v62, %v7804_v54 }
 0xb3f   :  { %v6592_v56 = vpop.f32.mrf.mxu2 }
 0xb40   :  { %v6593_v25 = vadd.f32 %v15544_v10, %v6592_v56  ;;  %v7805_v56 = vcvt.s32.f32 %v7789_v12 }
 0xb42   :  { %v6610_v46 = vmax.f32 %v6593_v25, 0.0  ;;  %v15627_v44 = vpop.f32.mrf.mxu1  ;;  %v7854_v20 = vmul.f32 %v10982_v62, %v7805_v56 }
 0xb44   :  { %v6924_v29 = vpack.c.bf16 %v6610_v46, %v6609_v59  ;;  %v7855_v59 = vmul.f32 %v10985_v6, %v7806_v11  ;;  %v10986_v46 = vld [vmem:[%s16411_s3 + $0x7e] ss:$0 sm:$0xff]  ;;  %v7782_v11 = vunpack.c.0.s8 %v10262_v50  ;;  %v10261_v6 = vld [vmem:[%s16409_s1 + $0x1e0] sm:$0xff] }
 0xb45   :  { %v7905_v12 = vadd.f32 %v10986_v46, %v7856_v13  ;;  %v7781_v13 = vunpack.c.3.s8 %v10261_v6 }
 0xb46   :  { %6973 = vmatmul.bf16.gmra.mxu3 %v6924_v29  ;;  %v7904_v22 = vadd.f32 %v10986_v46, %v7855_v59  ;;  %v7778_v46 = vunpack.c.0.s8 %v10261_v6  ;;  %v7798_v0 = vcvt.s32.f32 %v7782_v11 }
 0xb48   :  { %v8067_v56 = vadd.f32 %v15627_v44, %v7904_v22 }
 0xb4a   :  { %v15638_v2 = vpop.f32.mrf.mxu1 }
 0xb52   :  { %v8050_v25 = vpop.f32.mrf.mxu1 }
 0xb59   :  { %v6939_v10 = vpop.f32.mrf.mxu3 }
 0xb5a   :  { %v6940_v23 = vadd.f32 %v15636_v16, %v6939_v10  ;;  %v7784_v10 = vunpack.c.2.s8 %v10262_v50 }
 0xb5c   :  { %v6979_v34 = vmax.f32 %v6940_v23, 0.0  ;;  %v10983_v23 = vld [vmem:[%s16411_s3 + $0x7d] ss:$0 sm:$0xff]  ;;  %v7800_v35 = vcvt.s32.f32 %v7784_v10  ;;  %v10989_v10 = vld [vmem:[%s16410_s2 + $0x80] ss:$0 sm:$0xff] }
 0xb5d   :  { %v7902_v40 = vadd.f32 %v10983_v23, %v7853_v3  ;;  %v7903_v62 = vadd.f32 %v10983_v23, %v7854_v20  ;;  %v7850_v3 = vmul.f32 %v10978_v53, %v7801_v38 }
 0xb5e   :  { %v7849_v37 = vmul.f32 %v10978_v53, %v7800_v35 }
 0xb61   :  { %v6941_v4 = vpop.f32.mrf.mxu3 }
 0xb62   :  { %v6942_v24 = vadd.f32 %v15636_v16, %v6941_v4  ;;  %v7907_v4 = vadd.f32 %v10988_v43, %v7858_v58  ;;  %v10981_v43 = vld [vmem:[%s16411_s3 + $0x7c] ss:$0 sm:$0xff] }
 0xb63   :  { %v7900_v23 = vadd.f32 %v10981_v43, %v7851_v49  ;;  %v7901_v20 = vadd.f32 %v10981_v43, %v7852_v9  ;;  %v8399_v43 = vpop.f32.mrf.mxu0 }
 0xb64   :  { %v6980_v32 = vmax.f32 %v6942_v24, 0.0  ;;  %v7783_v24 = vunpack.c.1.s8 %v10262_v50  ;;  %v8052_v50 = vpop.f32.mrf.mxu1 }
 0xb65   :  { %v8070_v59 = vadd.f32 %v8052_v50, %v7907_v4  ;;  %v8066_v4 = vadd.f32 %v15622_v48, %v7903_v62  ;;  %v10974_v48 = vld [vmem:[%s16410_s2 + $0x79] ss:$0 sm:$0xff] }
 0xb66   :  { %v7301_v29 = vpack.c.bf16 %v6980_v32, %v6979_v34  ;;  %v8069_v34 = vadd.f32 %v8050_v25, %v7906_v21  ;;  %v15679_v32 = vld [vmem:[%s16409_s1 + $0x200] sm:$0xff]  ;;  %v8068_v25 = vadd.f32 %v15638_v2, %v7905_v12  ;;  %v10976_v21 = vld [vmem:[%s16410_s2 + $0x7a] ss:$0 sm:$0xff]  ;;  %v7799_v45 = vcvt.s32.f32 %v7783_v24  ;;  %v10979_v2 = vld [vmem:[%s16411_s3 + $0x7b] ss:$0 sm:$0xff] }
 0xb67   :  { %v8162_v54 = vunpack.c.0.s8 %v15679_v32  ;;  %v8065_v12 = vadd.f32 %v15616_v5, %v7902_v40  ;;  %v7779_v24 = vunpack.c.1.s8 %v10261_v6  ;;  %v7847_v38 = vmul.f32 %v10976_v21, %v7798_v0 }
 0xb68   :  { %7322 = vmatmul.bf16.vlgmr.msrb.gmra.mxu2 %v7301_v29  ;;  %v7780_v29 = vunpack.c.2.s8 %v10261_v6  ;;  %v8078_v44 = vpack.c.bf16 %v8070_v59, %v8069_v34  ;;  %v8077_v11 = vpack.c.bf16 %v8068_v25, %v8067_v56  ;;  %v7797_v34 = vcvt.s32.f32 %v7781_v13  ;;  %v10977_v6 = vld [vmem:[%s16411_s3 + $0x7a] ss:$0 sm:$0xff] }
 0xb69   :  { %v6944_v47 = vpop.f32.mrf.mxu3  ;;  %v8178_v58 = vcvt.s32.f32 %v8162_v54  ;;  %v10990_v54 = vld [vmem:[%s16411_s3 + $0x80] ss:$0 sm:$0xff]  ;;  %v8163_v5 = vunpack.c.1.s8 %v15679_v32  ;;  %v7848_v9 = vmul.f32 %v10976_v21, %v7799_v45  ;;  %v7898_v40 = vadd.f32 %v10979_v2, %v7849_v37 }
 0xb6a   :  { %v6945_v36 = vadd.f32 %v15636_v16, %v6944_v47  ;;  %8092 = vmatpush.bf16.msrb.mxu3 %v8078_v44  ;;  %v7796_v47 = vcvt.s32.f32 %v7780_v29  ;;  %v7899_v62 = vadd.f32 %v10979_v2, %v7850_v3  ;;  %v8063_v56 = vadd.f32 %v15609_v39, %v7900_v23  ;;  %v10975_v39 = vld [vmem:[%s16411_s3 + $0x79] ss:$0 sm:$0xff] }
 0xb6b   :  { %v8227_v35 = vmul.f32 %v10989_v10, %v8178_v58  ;;  %v8064_v25 = vadd.f32 %v15612_v63, %v7901_v20  ;;  %v8076_v59 = vpack.c.bf16 %v8066_v4, %v8065_v12  ;;  %v8179_v13 = vcvt.s32.f32 %v8163_v5 }
 0xb6c   :  { %v6981_v53 = vmax.f32 %v6945_v36, 0.0  ;;  %v7794_v0 = vcvt.s32.f32 %v7778_v46  ;;  %v10972_v36 = vld [vmem:[%s16410_s2 + $0x78] ss:$0 sm:$0xff]  ;;  %v7795_v44 = vcvt.s32.f32 %v7779_v24  ;;  %v7845_v21 = vmul.f32 %v10974_v48, %v7796_v47 }
 0xb6d   :  { %v8276_v58 = vadd.f32 %v10990_v54, %v8227_v35  ;;  %v7846_v45 = vmul.f32 %v10974_v48, %v7797_v34  ;;  %v7896_v63 = vadd.f32 %v10977_v6, %v7847_v38  ;;  %v7897_v37 = vadd.f32 %v10977_v6, %v7848_v9  ;;  %v10973_v24 = vld [vmem:[%s16411_s3 + $0x78] ss:$0 sm:$0xff] }
 0xb6e   :  { %8093 = vmatpush.bf16.msrb.mxu3 %v8077_v11  ;;  %v8061_v3 = vadd.f32 %v15599_v57, %v7898_v40  ;;  %v8062_v46 = vadd.f32 %v15602_v17, %v7899_v62  ;;  %v8075_v23 = vpack.c.bf16 %v8064_v25, %v8063_v56  ;;  %v7843_v4 = vmul.f32 %v10972_v36, %v7794_v0  ;;  %v10707_v11 = vld [vmem:[%s16414_s6 + $0x118] sm:$0xff]  ;;  %v10992_v25 = vld [vmem:[%s16411_s3 + $0x81] ss:$0 sm:$0xff] }
 0xb6f   :  { %v15723_v12 = vadd.f32 %v8399_v43, %v8276_v58  ;;  %v7844_v57 = vmul.f32 %v10972_v36, %v7795_v44  ;;  %v7894_v47 = vadd.f32 %v10975_v39, %v7845_v21  ;;  %v7895_v17 = vadd.f32 %v10975_v39, %v7846_v45  ;;  %8780 = vmatpush.bf16.msra.mxu1 %v10707_v11  ;;  %v10991_v43 = vld [vmem:[%s16410_s2 + $0x81] ss:$0 sm:$0xff]  ;;  %v10706_v58 = vld [vmem:[%s16414_s6 + $0x110] sm:$0xff]  ;;  %s11230_s6 = smov 128  }
 0xb70   :  { %v8059_v35 = vadd.f32 %v15589_v42, %v7896_v63  ;;  %v8074_v38 = vpack.c.bf16 %v8062_v46, %v8061_v3  ;;  %v7892_v48 = vadd.f32 %v10973_v24, %v7843_v4  ;;  %v10698_v0 = vld [vmem:[%s16413_s5 + $0x440] sm:$0xff] }
 0xb71   :  { %v6946_v22 = vpop.f32.mrf.mxu3  ;;  %v7893_v6 = vadd.f32 %v10973_v24, %v7844_v57  ;;  %v8057_v42 = vadd.f32 %v15579_v14, %v7894_v47  ;;  %v8165_v14 = vunpack.c.3.s8 %v15679_v32  ;;  %v10993_v4 = vld [vmem:[%s16410_s2 + $0x82] ss:$0 sm:$0xff] }
 0xb72   :  { %v6947_v50 = vadd.f32 %v15636_v16, %v6946_v22  ;;  %v8228_v22 = vmul.f32 %v10989_v10, %v8179_v13  ;;  %8094 = vmatpush.bf16.msrb.mxu3 %v8076_v59  ;;  %v8401_v10 = vpop.f32.mrf.mxu0  ;;  %v10994_v57 = vld [vmem:[%s16411_s3 + $0x82] ss:$0 sm:$0xff] }
 0xb73   :  { %v8056_v36 = vadd.f32 %v15572_v26, %v7893_v6  ;;  %8781 = vmatpush.bf16.msra.mxu1 %v10706_v58  ;;  %v8181_v21 = vcvt.s32.f32 %v8165_v14  ;;  %v10351_v26 = vld [vmem:[%s16409_s1 + $0x208] sm:$0xff] }
 0xb74   :  { %v6982_v49 = vmax.f32 %v6947_v50, 0.0  ;;  %v8277_v20 = vadd.f32 %v10990_v54, %v8228_v22  ;;  %v8164_v50 = vunpack.c.2.s8 %v15679_v32  ;;  %v8060_v54 = vadd.f32 %v15592_v55, %v7897_v37 }
 0xb75   :  { %v8058_v55 = vadd.f32 %v15582_v7, %v7895_v17  ;;  %v8055_v7 = vadd.f32 %v15569_v15, %v7892_v48  ;;  %v8230_v45 = vmul.f32 %v10991_v43, %v8181_v21  ;;  %v8166_v46 = vunpack.c.0.s8 %v10351_v26  ;;  %v10700_v21 = vld [vmem:[%s16413_s5 + $0x450] sm:$0xff] }
 0xb76   :  { %v7302_v29 = vpack.c.bf16 %v6982_v49, %v6981_v53  ;;  %v15732_v34 = vadd.f32 %v8401_v10, %v8277_v20  ;;  %8095 = vmatpush.bf16.msrb.mxu3 %v8075_v23  ;;  %v8180_v49 = vcvt.s32.f32 %v8164_v50  ;;  %v8073_v40 = vpack.c.bf16 %v8060_v54, %v8059_v35  ;;  %10519 = vmatmul.msk.bf16.vlgmr.msra.gmra.mxu1 %vm254_vm0, %v10698_v0 }
 0xb77   :  { %v8072_v44 = vpack.c.bf16 %v8058_v55, %v8057_v42  ;;  %v8071_v32 = vpack.c.bf16 %v8056_v36, %v8055_v7  ;;  %v8279_v15 = vadd.f32 %v10992_v25, %v8230_v45  ;;  %v8182_v20 = vcvt.s32.f32 %v8166_v46  ;;  %v10996_v7 = vld [vmem:[%s16411_s3 + $0x83] ss:$0 sm:$0xff] }
 0xb78   :  { %7327 = vmatmul.bf16.gmra.mxu2 %v7302_v29  ;;  %v8455_v53 = vpack.c.bf16 %v15732_v34, %v15723_v12  ;;  %v8229_v56 = vmul.f32 %v10991_v43, %v8180_v49  ;;  %v8167_v54 = vunpack.c.1.s8 %v10351_v26  ;;  %v11008_v12 = vld [vmem:[%s16410_s2 + $0x89] ss:$0 sm:$0xff] }
 0xb79   :  { %v6949_v2 = vpop.f32.mrf.mxu3  ;;  %v8231_v24 = vmul.f32 %v10993_v4, %v8182_v20 }
 0xb7a   :  { %v6950_v5 = vadd.f32 %v15636_v16, %v6949_v2  ;;  %8096 = vmatpush.bf16.msrb.mxu3 %v8074_v38  ;;  %v8404_v13 = vpop.f32.mrf.mxu0  ;;  %v8278_v39 = vadd.f32 %v10992_v25, %v8229_v56  ;;  %v10699_v38 = vld [vmem:[%s16413_s5 + $0x448] sm:$0xff]  ;;  %v8183_v43 = vcvt.s32.f32 %v8167_v54 }
 0xb7c   :  { %v6983_v59 = vmax.f32 %v6950_v5, 0.0  ;;  %v15758_v37 = vadd.f32 %v8404_v13, %v8278_v39  ;;  %v8280_v5 = vadd.f32 %v10994_v57, %v8231_v24  ;;  %v8232_v48 = vmul.f32 %v10993_v4, %v8183_v43 }
 0xb7e   :  { %8097 = vmatpush.bf16.msrb.mxu3 %v8073_v40  ;;  %v8168_v40 = vunpack.c.2.s8 %v10351_v26 }
 0xb80   :  { %v8184_v25 = vcvt.s32.f32 %v8168_v40 }
 0xb81   :  { %v6951_v9 = vpop.f32.mrf.mxu3 }
 0xb82   :  { %v6952_v62 = vadd.f32 %v15636_v16, %v6951_v9  ;;  %8098 = vmatpush.bf16.msrb.mxu3 %v8072_v44  ;;  %v8406_v2 = vpop.f32.mrf.mxu0  ;;  %v8281_v9 = vadd.f32 %v10994_v57, %v8232_v48 }
 0xb83   :  { %v15763_v3 = vadd.f32 %v8406_v2, %v8279_v15 }
 0xb84   :  { %v6984_v29 = vmax.f32 %v6952_v62, 0.0 }
 0xb85   :  { %v8456_v23 = vpack.c.bf16 %v15763_v3, %v15758_v37 }
 0xb86   :  { %v7303_v22 = vpack.c.bf16 %v6984_v29, %v6983_v59  ;;  %8099 = vmatpush.bf16.msrb.mxu3 %v8071_v32  ;;  %10520 = vmatmul.msk.bf16.gmra.mxu1 %vm254_vm0, %v10699_v38  ;;  %v10995_v59 = vld [vmem:[%s16410_s2 + $0x83] ss:$0 sm:$0xff] }
 0xb87   :  { %v8233_v14 = vmul.f32 %v10995_v59, %v8184_v25 }
 0xb88   :  { %7332 = vmatmul.bf16.gmra.mxu2 %v7303_v22  ;;  %v8169_v22 = vunpack.c.3.s8 %v10351_v26 }
 0xb89   :  { %v6954_v63 = vpop.f32.mrf.mxu3 }
 0xb8a   :  { %v6955_v10 = vadd.f32 %v15636_v16, %v6954_v63  ;;  %v8409_v35 = vpop.f32.mrf.mxu0  ;;  %v8185_v45 = vcvt.s32.f32 %v8169_v22  ;;  %v8282_v63 = vadd.f32 %v10996_v7, %v8233_v14  ;;  %v10353_v22 = vld [vmem:[%s16409_s1 + $0x218] sm:$0xff] }
 0xb8b   :  { %v15779_v42 = vadd.f32 %v8409_v35, %v8280_v5 }
 0xb8c   :  { %v6985_v47 = vmax.f32 %v6955_v10, 0.0  ;;  %v8234_v32 = vmul.f32 %v10995_v59, %v8185_v45  ;;  %v8175_v45 = vunpack.c.1.s8 %v10353_v22 }
 0xb8e   :  { %v8283_v2 = vadd.f32 %v10996_v7, %v8234_v32 }
 0xb91   :  { %v6956_v11 = vpop.f32.mrf.mxu3 }
 0xb92   :  { %v6957_v50 = vadd.f32 %v15636_v16, %v6956_v11  ;;  %v8411_v55 = vpop.f32.mrf.mxu0 }
 0xb93   :  { %v15781_v62 = vadd.f32 %v8411_v55, %v8281_v9  ;;  %v10702_v55 = vld [vmem:[%s16413_s5 + $0x460] sm:$0xff] }
 0xb94   :  { %v6986_v17 = vmax.f32 %v6957_v50, 0.0 }
 0xb95   :  { %v8457_v56 = vpack.c.bf16 %v15781_v62, %v15779_v42 }
 0xb96   :  { %v7304_v49 = vpack.c.bf16 %v6986_v17, %v6985_v47  ;;  %10521 = vmatmul.msk.bf16.gmra.mxu1 %vm254_vm0, %v10700_v21  ;;  %v10701_v17 = vld [vmem:[%s16413_s5 + $0x458] sm:$0xff] }
 0xb98   :  { %7337 = vmatmul.bf16.gmra.mxu2 %v7304_v49 }
 0xb99   :  { %v6959_v6 = vpop.f32.mrf.mxu3 }
 0xb9a   :  { %v6960_v29 = vadd.f32 %v15636_v16, %v6959_v6  ;;  %v8414_v44 = vpop.f32.mrf.mxu0 }
 0xb9b   :  { %v15797_v46 = vadd.f32 %v8414_v44, %v8282_v63  ;;  %v10703_v44 = vld [vmem:[%s16413_s5 + $0x468] sm:$0xff]  ;;  %v8176_v63 = vunpack.c.2.s8 %v10353_v22 }
 0xb9c   :  { %v6987_v0 = vmax.f32 %v6960_v29, 0.0 }
 0xb9d   :  { %v8192_v32 = vcvt.s32.f32 %v8176_v63 }
 0xba1   :  { %v6961_v13 = vpop.f32.mrf.mxu3 }
 0xba2   :  { %v6962_v58 = vadd.f32 %v15636_v16, %v6961_v13  ;;  %v8416_v20 = vpop.f32.mrf.mxu0 }
 0xba3   :  { %v15799_v4 = vadd.f32 %v8416_v20, %v8283_v2 }
 0xba4   :  { %v6988_v36 = vmax.f32 %v6962_v58, 0.0 }
 0xba5   :  { %v8458_v26 = vpack.c.bf16 %v15799_v4, %v15797_v46  ;;  %v11007_v46 = vld [vmem:[%s16411_s3 + $0x88] ss:$0 sm:$0xff] }
 0xba6   :  { %v7305_v39 = vpack.c.bf16 %v6988_v36, %v6987_v0  ;;  %10522 = vmatmul.msk.bf16.gmra.mxu1 %vm254_vm0, %v10701_v17 }
 0xba8   :  { %7342 = vmatmul.bf16.gmra.mxu2 %v7305_v39  ;;  %v8174_v39 = vunpack.c.0.s8 %v10353_v22 }
 0xba9   :  { %v6964_v15 = vpop.f32.mrf.mxu3 }
 0xbaa   :  { %v6965_v10 = vadd.f32 %v15636_v16, %v6964_v15  ;;  %v15805_v47 = vpop.f32.mrf.mxu0  ;;  %v11004_v15 = vld [vmem:[%s16410_s2 + $0x87] ss:$0 sm:$0xff] }
 0xbac   :  { %v6989_v24 = vmax.f32 %v6965_v10, 0.0  ;;  %v8190_v10 = vcvt.s32.f32 %v8174_v39 }
 0xbb1   :  { %v6966_v11 = vpop.f32.mrf.mxu3 }
 0xbb2   :  { %v6967_v50 = vadd.f32 %v15636_v16, %v6966_v11  ;;  %v15811_v38 = vpop.f32.mrf.mxu0  ;;  %v11002_v11 = vld [vmem:[%s16410_s2 + $0x86] ss:$0 sm:$0xff] }
 0xbb4   :  { %v6990_v57 = vmax.f32 %v6967_v50, 0.0  ;;  %v8191_v50 = vcvt.s32.f32 %v8175_v45 }
 0xbb6   :  { %v7306_v35 = vpack.c.bf16 %v6990_v57, %v6989_v24  ;;  %10523 = vmatmul.msk.bf16.gmra.mxu1 %vm254_vm0, %v10702_v55  ;;  %v8241_v24 = vmul.f32 %v11004_v15, %v8192_v32  ;;  %v11005_v57 = vld [vmem:[%s16411_s3 + $0x87] ss:$0 sm:$0xff]  ;;  %v8240_v55 = vmul.f32 %v11002_v11, %v8191_v50  ;;  %v10998_v50 = vld [vmem:[%s16411_s3 + $0x84] ss:$0 sm:$0xff] }
 0xbb8   :  { %7347 = vmatmul.bf16.gmra.mxu2 %v7306_v35 }
 0xbb9   :  { %v6969_v54 = vpop.f32.mrf.mxu3 }
 0xbba   :  { %v6970_v49 = vadd.f32 %v15636_v16, %v6969_v54  ;;  %v15815_v9 = vpop.f32.mrf.mxu0 }
 0xbbc   :  { %v6991_v48 = vmax.f32 %v6970_v49, 0.0  ;;  %v10999_v49 = vld [vmem:[%s16410_s2 + $0x85] ss:$0 sm:$0xff] }
 0xbc1   :  { %v6971_v43 = vpop.f32.mrf.mxu3 }
 0xbc2   :  { %v6972_v5 = vadd.f32 %v15636_v16, %v6971_v43  ;;  %v15821_v59 = vpop.f32.mrf.mxu0 }
 0xbc4   :  { %v6992_v6 = vmax.f32 %v6972_v5, 0.0 }
 0xbc6   :  { %v7307_v40 = vpack.c.bf16 %v6992_v6, %v6991_v48  ;;  %10524 = vmatmul.msk.bf16.gmra.mxu1 %vm254_vm0, %v10703_v44  ;;  %v8239_v48 = vmul.f32 %v11002_v11, %v8190_v10  ;;  %v11003_v6 = vld [vmem:[%s16411_s3 + $0x86] ss:$0 sm:$0xff] }
 0xbc7   :  { %v8289_v45 = vadd.f32 %v11003_v6, %v8240_v55 }
 0xbc8   :  { %7352 = vmatmul.bf16.gmra.mxu2 %v7307_v40  ;;  %v10704_v40 = vld [vmem:[%s16413_s5 + $0x470] sm:$0xff] }
 0xbc9   :  { %v6974_v25 = vpop.f32.mrf.mxu3 }
 0xbca   :  { %v6975_v29 = vadd.f32 %v15636_v16, %v6974_v25  ;;  %v8429_v0 = vpop.f32.mrf.mxu0  ;;  %v8177_v25 = vunpack.c.3.s8 %v10353_v22  ;;  %v8288_v22 = vadd.f32 %v11003_v6, %v8239_v48 }
 0xbcc   :  { %v6993_v14 = vmax.f32 %v6975_v29, 0.0  ;;  %v15856_v29 = vld [vmem:[%s16412_s4 + $0xe] ss:$0 sm:$0xff]  ;;  %v8451_v48 = vadd.f32 %v8429_v0, %v8288_v22 }
 0xbd1   :  { %v6976_v13 = vpop.f32.mrf.mxu3 }
 0xbd2   :  { %v6977_v58 = vadd.f32 %v15636_v16, %v6976_v13  ;;  %v8431_v21 = vpop.f32.mrf.mxu0  ;;  %v10352_v16 = vld [vmem:[%s16409_s1 + $0x210] sm:$0xff]  ;;  %v8290_v13 = vadd.f32 %v11005_v57, %v8241_v24 }
 0xbd3   :  { %v8172_v2 = vunpack.c.2.s8 %v10352_v16  ;;  %v8173_v20 = vunpack.c.3.s8 %v10352_v16  ;;  %v8170_v17 = vunpack.c.0.s8 %v10352_v16  ;;  %v8171_v35 = vunpack.c.1.s8 %v10352_v16  ;;  %v11000_v16 = vld [vmem:[%s16411_s3 + $0x85] ss:$0 sm:$0xff] }
 0xbd4   :  { %v6994_v7 = vmax.f32 %v6977_v58, 0.0  ;;  %v8193_v58 = vcvt.s32.f32 %v8177_v25  ;;  %v8452_v6 = vadd.f32 %v8431_v21, %v8289_v45 }
 0xbd5   :  { %v8188_v54 = vcvt.s32.f32 %v8172_v2  ;;  %v8189_v43 = vcvt.s32.f32 %v8173_v20 }
 0xbd6   :  { %v7308_v36 = vpack.c.bf16 %v6994_v7, %v6993_v14  ;;  %v8186_v14 = vcvt.s32.f32 %v8170_v17  ;;  %v10997_v7 = vld [vmem:[%s16410_s2 + $0x84] ss:$0 sm:$0xff]  ;;  %10525 = vmatmul.msk.bf16.gmra.mxu1 %vm254_vm0, %v10704_v40  ;;  %v8242_v63 = vmul.f32 %v11004_v15, %v8193_v58  ;;  %v8461_v58 = vpack.c.bf16 %v8452_v6, %v8451_v48 }
 0xbd7   :  { %v8237_v44 = vmul.f32 %v10999_v49, %v8188_v54  ;;  %v8238_v39 = vmul.f32 %v10999_v49, %v8189_v43  ;;  %v16654_v49 = vld [vmem:[#allocation21_spill] sm:$0xff] }
 0xbd8   :  { %7357 = vmatmul.bf16.gmra.mxu2 %v7308_v36  ;;  %v8187_v36 = vcvt.s32.f32 %v8171_v35  ;;  %v8291_v10 = vadd.f32 %v11005_v57, %v8242_v63  ;;  %v8235_v11 = vmul.f32 %v10997_v7, %v8186_v14  ;;  %v10439_v63 = vld [vmem:[%s16409_s1 + $0x220] sm:$0xff] }
 0xbd9   :  { %v8286_v17 = vadd.f32 %v11000_v16, %v8237_v44  ;;  %v8287_v35 = vadd.f32 %v11000_v16, %v8238_v39  ;;  %v16655_v44 = vld [vmem:[#allocation22_spill] sm:$0xff] }
 0xbda   :  { %v8434_v5 = vpop.f32.mrf.mxu0  ;;  %v8236_v24 = vmul.f32 %v10997_v7, %v8187_v36  ;;  %v8284_v55 = vadd.f32 %v10998_v50, %v8235_v11 }
 0xbdb   :  { %v8453_v20 = vadd.f32 %v8434_v5, %v8290_v13  ;;  %v8449_v25 = vadd.f32 %v15815_v9, %v8286_v17  ;;  %v8450_v13 = vadd.f32 %v15821_v59, %v8287_v35  ;;  %v10705_v9 = vld [vmem:[%s16413_s5 + $0x478] sm:$0xff]  ;;  %s8947_s5 = sshll.u32 %s16417_s9, 4  ;;  %s8948_s5 = int_to_ptr.hbm [resolvable:$true] %s8947_s5 }
 0xbdc   :  { %v8285_v40 = vadd.f32 %v10998_v50, %v8236_v24  ;;  %v8447_v21 = vadd.f32 %v15805_v47, %v8284_v55  ;;  %v8547_v24 = vunpack.c.1.s8 %v10439_v63 }
 0xbdd   :  { %v8460_v36 = vpack.c.bf16 %v8450_v13, %v8449_v25  ;;  %v8549_v25 = vunpack.c.3.s8 %v10439_v63 }
 0xbde   :  { %v8448_v7 = vadd.f32 %v15811_v38, %v8285_v40 }
 0xbe0   :  { %v8459_v39 = vpack.c.bf16 %v8448_v7, %v8447_v21 }
 0xbe2   :  { %v8436_v54 = vpop.f32.mrf.mxu0 }
 0xbe3   :  { %v8454_v15 = vadd.f32 %v8436_v54, %v8291_v10 }
 0xbe5   :  { %v8462_v5 = vpack.c.bf16 %v8454_v15, %v8453_v20 }
 0xbe6   :  { %10526 = vmatmul.msk.bf16.gmra.mxu1 %vm254_vm0, %v10705_v9 }
 0xbe7   :  { %8476 = vmatpush.bf16.msra.mxu2 %v8462_v5  ;;  %v11009_v5 = vld [vmem:[%s16411_s3 + $0x89] ss:$0 sm:$0xff] }
 0xbeb   :  { %v7323_v32 = vpop.f32.mrf.mxu2  ;;  %8477 = vmatpush.bf16.msra.mxu2 %v8461_v58  ;;  %v8565_v58 = vcvt.s32.f32 %v8549_v25 }
 0xbec   :  { %v7324_v2 = vadd.f32 %v15856_v29, %v7323_v32  ;;  %v8546_v32 = vunpack.c.0.s8 %v10439_v63 }
 0xbee   :  { %v15870_v43 = vadd.f32 %v7324_v2, %v16654_v49  ;;  %v8562_v20 = vcvt.s32.f32 %v8546_v32 }
 0xbef   :  { %8478 = vmatpush.bf16.msra.mxu2 %v8460_v36 }
 0xbf0   :  { %7379 = vadd.xlane.f32.xlu2 %v15870_v43  ;;  %v7427_v57 = vmul.f32 %v15870_v43, %v15870_v43 }
 0xbf2   :  { %7443 = vadd.xlane.f32.xlu1 %v7427_v57 }
 0xbf3   :  { %v7325_v14 = vpop.f32.mrf.mxu2  ;;  %8479 = vmatpush.bf16.msra.mxu2 %v8459_v39  ;;  %v8783_v4 = vpop.f32.mrf.mxu1  ;;  %v10440_v39 = vld [vmem:[%s16409_s1 + $0x228] sm:$0xff] }
 0xbf4   :  { %v7326_v0 = vadd.f32 %v15856_v29, %v7325_v14  ;;  %v8553_v25 = vunpack.c.3.s8 %v10440_v39 }
 0xbf6   :  { %v15881_v16 = vadd.f32 %v7326_v0, %v16655_v44 }
 0xbf7   :  { %8480 = vmatpush.bf16.msra.mxu2 %v8458_v26 }
 0xbf8   :  { %7381 = vadd.xlane.f32.xlu0 %v15881_v16  ;;  %v7428_v59 = vmul.f32 %v15881_v16, %v15881_v16 }
 0xbfa   :  { %7445 = vadd.xlane.f32.xlu2 %v7428_v59 }
 0xbfb   :  { %v7328_v47 = vpop.f32.mrf.mxu2  ;;  %8481 = vmatpush.bf16.msra.mxu2 %v8457_v56  ;;  %v8785_v48 = vpop.f32.mrf.mxu1 }
 0xbfc   :  { %v7329_v38 = vadd.f32 %v15856_v29, %v7328_v47  ;;  %v8550_v47 = vunpack.c.0.s8 %v10440_v39 }
 0xbfe   :  { %v15892_v22 = vadd.f32 %v7329_v38, %v15317_v28  ;;  %v11006_v28 = vld [vmem:[%s16410_s2 + $0x88] ss:$0 sm:$0xff]  ;;  %v11010_v38 = vld [vmem:[%s16410_s2 + $0x8a] ss:$0 sm:$0xff] }
 0xbff   :  { %v8611_v50 = vmul.f32 %v11006_v28, %v8562_v20  ;;  %8482 = vmatpush.bf16.msra.mxu2 %v8456_v23  ;;  %v8548_v23 = vunpack.c.2.s8 %v10439_v63  ;;  %v8566_v63 = vcvt.s32.f32 %v8550_v47  ;;  %v11011_v20 = vld [vmem:[%s16411_s3 + $0x8a] ss:$0 sm:$0xff] }
 0xc00   :  { %7383 = vadd.xlane.f32.xlu0 %v15892_v22  ;;  %v7429_v45 = vmul.f32 %v15892_v22, %v15892_v22 }
 0xc01   :  { %v8660_v17 = vadd.f32 %v11007_v46, %v8611_v50  ;;  %v8564_v6 = vcvt.s32.f32 %v8548_v23 }
 0xc02   :  { %7447 = vadd.xlane.f32.xlu2 %v7429_v45 }
 0xc03   :  { %v7330_v2 = vpop.f32.mrf.mxu2  ;;  %v15926_v54 = vadd.f32 %v8783_v4, %v8660_v17  ;;  %8483 = vmatpush.bf16.msra.mxu2 %v8455_v53  ;;  %v8613_v57 = vmul.f32 %v11008_v12, %v8564_v6  ;;  %v8788_v55 = vpop.f32.mrf.mxu1 }
 0xc04   :  { %v7331_v10 = vadd.f32 %v15856_v29, %v7330_v2  ;;  %v8615_v2 = vmul.f32 %v11010_v38, %v8566_v63 }
 0xc05   :  { %v8662_v13 = vadd.f32 %v11009_v5, %v8613_v57 }
 0xc06   :  { %v15908_v11 = vadd.f32 %v7331_v10, %v15320_v33  ;;  %v8563_v33 = vcvt.s32.f32 %v8547_v24  ;;  %v8664_v4 = vadd.f32 %v11011_v20, %v8615_v2 }
 0xc07   :  { %v15955_v7 = vadd.f32 %v8788_v55, %v8662_v13 }
 0xc08   :  { %7385 = vadd.xlane.f32.xlu1 %v15908_v11  ;;  %v7430_v26 = vmul.f32 %v15908_v11, %v15908_v11  ;;  %v8612_v56 = vmul.f32 %v11006_v28, %v8563_v33 }
 0xc0a   :  { %7449 = vadd.xlane.f32.xlu0 %v7430_v26  ;;  %v8661_v49 = vadd.f32 %v11007_v46, %v8612_v56  ;;  %v8551_v46 = vunpack.c.1.s8 %v10440_v39 }
 0xc0b   :  { %v7333_v42 = vpop.f32.mrf.mxu2  ;;  %v8790_v44 = vpop.f32.mrf.mxu1 }
 0xc0c   :  { %v7334_v62 = vadd.f32 %v15856_v29, %v7333_v42  ;;  %v15934_v3 = vadd.f32 %v8785_v48, %v8661_v49  ;;  %v8567_v26 = vcvt.s32.f32 %v8551_v46 }
 0xc0e   :  { %v15924_v35 = vadd.f32 %v7334_v62, %v15395_v18 }
 0xc10   :  { %7387 = vadd.xlane.f32.xlu1 %v15924_v35  ;;  %v7431_v37 = vmul.f32 %v15924_v35, %v15924_v35 }
 0xc12   :  { %7451 = vadd.xlane.f32.xlu0 %v7431_v37  ;;  %v8552_v37 = vunpack.c.2.s8 %v10440_v39 }
 0xc13   :  { %v7335_v34 = vpop.f32.mrf.mxu2  ;;  %v8793_v10 = vpop.f32.mrf.mxu1 }
 0xc14   :  { %v7336_v53 = vadd.f32 %v15856_v29, %v7335_v34  ;;  %v15984_v42 = vadd.f32 %v8793_v10, %v8664_v4  ;;  %v8568_v6 = vcvt.s32.f32 %v8552_v37 }
 0xc16   :  { %v15943_v15 = vadd.f32 %v7336_v53, %v15398_v60  ;;  %v8614_v60 = vmul.f32 %v11008_v12, %v8565_v58  ;;  %v8569_v58 = vcvt.s32.f32 %v8553_v25 }
 0xc18   :  { %7389 = vadd.xlane.f32.xlu2 %v15943_v15  ;;  %v7432_v40 = vmul.f32 %v15943_v15, %v15943_v15  ;;  %v8663_v36 = vadd.f32 %v11009_v5, %v8614_v60  ;;  %v11013_v5 = vld [vmem:[%s16411_s3 + $0x8b] ss:$0 sm:$0xff] }
 0xc1a   :  { %7453 = vadd.xlane.f32.xlu1 %v7432_v40  ;;  %v15960_v59 = vadd.f32 %v8790_v44, %v8663_v36 }
 0xc1b   :  { %v7338_v14 = vpop.f32.mrf.mxu2  ;;  %v8795_v56 = vpop.f32.mrf.mxu1 }
 0xc1c   :  { %v7339_v0 = vadd.f32 %v15856_v29, %v7338_v14 }
 0xc1e   :  { %v15953_v21 = vadd.f32 %v7339_v0, %v15432_v31 }
 0xc20   :  { %7391 = vadd.xlane.f32.xlu2 %v15953_v21  ;;  %v7433_v9 = vmul.f32 %v15953_v21, %v15953_v21 }
 0xc22   :  { %7455 = vadd.xlane.f32.xlu1 %v7433_v9 }
 0xc23   :  { %v7340_v45 = vpop.f32.mrf.mxu2  ;;  %v8798_v55 = vpop.f32.mrf.mxu1 }
 0xc24   :  { %v7341_v32 = vadd.f32 %v15856_v29, %v7340_v45 }
 0xc26   :  { %v15972_v28 = vadd.f32 %v7341_v32, %v15435_v27  ;;  %v8616_v27 = vmul.f32 %v11010_v38, %v8567_v26 }
 0xc28   :  { %7393 = vadd.xlane.f32.xlu0 %v15972_v28  ;;  %v7434_v50 = vmul.f32 %v15972_v28, %v15972_v28  ;;  %v8665_v62 = vadd.f32 %v11011_v20, %v8616_v27 }
 0xc2a   :  { %7457 = vadd.xlane.f32.xlu2 %v7434_v50  ;;  %v15989_v48 = vadd.f32 %v8795_v56, %v8665_v62 }
 0xc2b   :  { %v7343_v24 = vpop.f32.mrf.mxu2  ;;  %v8800_v9 = vpop.f32.mrf.mxu1 }
 0xc2c   :  { %v7344_v17 = vadd.f32 %v15856_v29, %v7343_v24 }
 0xc2e   :  { %v15982_v33 = vadd.f32 %v7344_v17, %v15464_v1  ;;  %v11012_v1 = vld [vmem:[%s16410_s2 + $0x8b] ss:$0 sm:$0xff] }
 0xc2f   :  { %v8617_v57 = vmul.f32 %v11012_v1, %v8568_v6 }
 0xc30   :  { %7395 = vadd.xlane.f32.xlu0 %v15982_v33  ;;  %v7435_v49 = vmul.f32 %v15982_v33, %v15982_v33 }
 0xc31   :  { %v8666_v13 = vadd.f32 %v11013_v5, %v8617_v57 }
 0xc32   :  { %7459 = vadd.xlane.f32.xlu2 %v7435_v49 }
 0xc33   :  { %v7345_v12 = vpop.f32.mrf.mxu2  ;;  %v16010_v36 = vadd.f32 %v8798_v55, %v8666_v13  ;;  %v16037_v26 = vpop.f32.mrf.mxu1 }
 0xc34   :  { %v7346_v34 = vadd.f32 %v15856_v29, %v7345_v12 }
 0xc36   :  { %v15998_v53 = vadd.f32 %v7346_v34, %v15467_v8  ;;  %v8618_v8 = vmul.f32 %v11012_v1, %v8569_v58 }
 0xc38   :  { %7397 = vadd.xlane.f32.xlu1 %v15998_v53  ;;  %v7436_v40 = vmul.f32 %v15998_v53, %v15998_v53  ;;  %v8667_v44 = vadd.f32 %v11013_v5, %v8618_v8 }
 0xc3a   :  { %7461 = vadd.xlane.f32.xlu0 %v7436_v40  ;;  %v16015_v39 = vadd.f32 %v8800_v9, %v8667_v44 }
 0xc3b   :  { %v7348_v14 = vpop.f32.mrf.mxu2  ;;  %v16049_v62 = vpop.f32.mrf.mxu1 }
 0xc3c   :  { %v7349_v0 = vadd.f32 %v15856_v29, %v7348_v14 }
 0xc3e   :  { %v16008_v60 = vadd.f32 %v7349_v0, %v15491_v30 }
 0xc40   :  { %7399 = vadd.xlane.f32.xlu1 %v16008_v60  ;;  %v7437_v47 = vmul.f32 %v16008_v60, %v16008_v60 }
 0xc42   :  { %7463 = vadd.xlane.f32.xlu0 %v7437_v47 }
 0xc43   :  { %v7350_v45 = vpop.f32.mrf.mxu2  ;;  %v16058_v55 = vpop.f32.mrf.mxu1 }
 0xc44   :  { %v7351_v63 = vadd.f32 %v15856_v29, %v7350_v45 }
 0xc46   :  { %v16021_v30 = vadd.f32 %v7351_v63, %v15494_v51 }
 0xc48   :  { %16656 = vst [vmem:[#allocation8_spill] sm:$0xff] %v16021_v30  ;;  %7401 = vadd.xlane.f32.xlu2 %v16021_v30  ;;  %v7438_v32 = vmul.f32 %v16021_v30, %v16021_v30 }
 0xc4a   :  { %7465 = vadd.xlane.f32.xlu1 %v7438_v32 }
 0xc4b   :  { %v7353_v2 = vpop.f32.mrf.mxu2  ;;  %v16064_v0 = vpop.f32.mrf.mxu1 }
 0xc4c   :  { %v7354_v20 = vadd.f32 %v15856_v29, %v7353_v2 }
 0xc4e   :  { %v16028_v10 = vadd.f32 %v7354_v20, %v15509_v19 }
 0xc50   :  { %16657 = vst [vmem:[#allocation18_spill] sm:$0xff] %v16028_v10  ;;  %7403 = vadd.xlane.f32.xlu2 %v16028_v10  ;;  %v7439_v50 = vmul.f32 %v16028_v10, %v16028_v10 }
 0xc52   :  { %7467 = vadd.xlane.f32.xlu1 %v7439_v50 }
 0xc53   :  { %v7355_v51 = vpop.f32.mrf.mxu2 }
 0xc54   :  { %v7356_v46 = vadd.f32 %v15856_v29, %v7355_v51 }
 0xc56   :  { %v16035_v4 = vadd.f32 %v7356_v46, %v15512_v41  ;;  %v16070_v46 = vpop.f32.mrf.mxu1 }
 0xc58   :  { %16658 = vst [vmem:[#allocation5_spill] sm:$0xff] %v16035_v4  ;;  %7405 = vadd.xlane.f32.xlu0 %v16035_v4  ;;  %v7440_v19 = vmul.f32 %v16035_v4, %v16035_v4 }
 0xc5a   :  { %7469 = vadd.xlane.f32.xlu2 %v7440_v19 }
 0xc5b   :  { %v7358_v24 = vpop.f32.mrf.mxu2 }
 0xc5c   :  { %v7359_v17 = vadd.f32 %v15856_v29, %v7358_v24 }
 0xc5e   :  { %v16044_v27 = vadd.f32 %v7359_v17, %v15526_v52 }
 0xc60   :  { %16659 = vst [vmem:[#allocation13_spill] sm:$0xff] %v16044_v27  ;;  %7407 = vadd.xlane.f32.xlu0 %v16044_v27  ;;  %v7441_v41 = vmul.f32 %v16044_v27, %v16044_v27 }
 0xc62   :  { %7471 = vadd.xlane.f32.xlu2 %v7441_v41  ;;  %v16077_v41 = vld [vmem:[%s16409_s1 + $0x230] sm:$0xff] }
 0xc63   :  { %v7380_v56 = vpop.xlane.xlu2 %7379  ;;  %v7360_v49 = vpop.f32.mrf.mxu2 }
 0xc64   :  { %v7411_v37 = vmul.f32 0.0078125, %v7380_v56  ;;  %v7361_v6 = vadd.f32 %v15856_v29, %v7360_v49 }
 0xc65   :  { %v7444_v1 = vpop.xlane.xlu1 %7443 }
 0xc66   :  { %v7491_v12 = vmul.f32 %v7411_v37, %v7411_v37  ;;  %v16053_v34 = vadd.f32 %v7361_v6, %v15529_v61  ;;  %v7475_v52 = vmul.f32 0.0078125, %v7444_v1 }
 0xc68   :  { %16660 = vst [vmem:[#allocation11_spill] sm:$0xff] %v16053_v34  ;;  %v7507_v57 = vsub.f32 %v7475_v52, %v7491_v12  ;;  %7409 = vadd.xlane.f32.xlu1 %v16053_v34  ;;  %v7442_v5 = vmul.f32 %v16053_v34, %v16053_v34  ;;  %v8554_v12 = vunpack.c.0.s8 %v16077_v41 }
 0xc6a   :  { %v7539_v40 = vadd.f32 1e-05, %v7507_v57  ;;  %7473 = vadd.xlane.f32.xlu0 %v7442_v5  ;;  %v8556_v5 = vunpack.c.2.s8 %v16077_v41 }
 0xc6b   :  { %v7382_v25 = vpop.xlane.xlu0 %7381 }
 0xc6c   :  { %11155 = vrsqrt.f32 %v7539_v40  ;;  %v16060_v13 = vmul.f32 0.0078125, %v7382_v25  ;;  %vm7561_vm13 = vweird.f32 %v7539_v40 }
 0xc6d   :  { %v7446_v29 = vpop.xlane.xlu2 %7445 }
 0xc6e   :  { %v7492_v61 = vmul.f32 %v16060_v13, %v16060_v13  ;;  %v7476_v58 = vmul.f32 0.0078125, %v7446_v29 }
 0xc70   :  { %v7508_v14 = vsub.f32 %v7476_v58, %v7492_v61 }
 0xc72   :  { %v11156_v8 = vpop.eup %11155  ;;  %v7540_v44 = vadd.f32 1e-05, %v7508_v14  ;;  %v7523_v14 = vsub.f32 %v15870_v43, %v7411_v37  ;;  %v16102_v43 = vld [vmem:[%s16409_s1 + $0x238] sm:$0xff] }
 0xc73   :  { %v7556_v9 = vmul.f32 %v11156_v8, %v7539_v40  ;;  %v7384_v47 = vpop.xlane.xlu0 %7383  ;;  %vm7562_vm0 = vweird.f32 %v11156_v8  ;;  %v8561_v27 = vunpack.c.3.s8 %v16102_v43 }
 0xc74   :  { %11157 = vrsqrt.f32 %v7540_v44  ;;  %v16066_v45 = vmul.f32 0.0078125, %v7384_v47  ;;  %vm7563_vm14 = vmor %vm7561_vm13, %vm7562_vm0  ;;  %v16087_v47 = vpop.f32.mrf.mxu1  ;;  %vm7571_vm1 = vweird.f32 %v7540_v44 }
 0xc75   :  { %v7557_v63 = vmul.f32 %v11156_v8, %v7556_v9  ;;  %v7448_v32 = vpop.xlane.xlu2 %7447 }
 0xc76   :  { %v7493_v2 = vmul.f32 %v16066_v45, %v16066_v45  ;;  %v7477_v20 = vmul.f32 0.0078125, %v7448_v32 }
 0xc77   :  { %v7558_v50 = vmul.f32 0.5, %v7557_v63  ;;  %v8570_v63 = vcvt.s32.f32 %v8554_v12  ;;  %v7524_v12 = vsub.f32 %v15881_v16, %v16060_v13  ;;  %v8560_v16 = vunpack.c.2.s8 %v16102_v43 }
 0xc78   :  { %v7509_v51 = vsub.f32 %v7477_v20, %v7493_v2  ;;  %v16094_v2 = vld [vmem:[%s16415_s7 + $0x4] ss:$0 sm:$0xff]  ;;  %s11231_s7 = smov 8  }
 0xc79   :  { %v7559_v19 = vsub.f32 1.5, %v7558_v50  ;;  %v8555_v50 = vunpack.c.1.s8 %v16077_v41 }
 0xc7a   :  { %v11158_v24 = vpop.eup %11157  ;;  %v16072_v17 = vadd.f32 1e-05, %v7509_v51 }
 0xc7b   :  { %v7560_v56 = vmul.f32 %v11156_v8, %v7559_v19  ;;  %v7566_v49 = vmul.f32 %v11158_v24, %v7540_v44  ;;  %v7386_v6 = vpop.xlane.xlu1 %7385  ;;  %vm7572_vm15 = vweird.f32 %v11158_v24  ;;  %v8571_v18 = vcvt.s32.f32 %v8555_v50 }
 0xc7c   :  { %11159 = vrsqrt.f32 %v16072_v17  ;;  %v16080_v1 = vmul.f32 0.0078125, %v7386_v6  ;;  %v11014_v6 = vld [vmem:[%s16410_s2 + $0x8c] ss:$0 sm:$0xff]  ;;  %vm7573_vm2 = vmor %vm7571_vm1, %vm7572_vm15  ;;  %vm7581_vm4 = vweird.f32 %v16072_v17 }
 0xc7d   :  { %v7567_v52 = vmul.f32 %v11158_v24, %v7566_v49  ;;  %v7450_v57 = vpop.xlane.xlu0 %7449  ;;  %v7564_v61 = vsel %vm7563_vm14, %v11156_v8, %v7560_v56  ;;  %v8572_v8 = vcvt.s32.f32 %v8556_v5  ;;  %v8557_v56 = vunpack.c.3.s8 %v16077_v41  ;;  %v11017_v41 = vld [vmem:[%s16410_s2 + $0x8d] ss:$0 sm:$0xff] }
 0xc7e   :  { %v7494_v25 = vmul.f32 %v16080_v1, %v16080_v1  ;;  %v7478_v29 = vmul.f32 0.0078125, %v7450_v57  ;;  %v7715_v20 = vmul.f32 %v7564_v61, %v7523_v14 }
 0xc7f   :  { %v7568_v58 = vmul.f32 0.5, %v7567_v52  ;;  %v8558_v52 = vunpack.c.0.s8 %v16102_v43  ;;  %v8621_v31 = vmul.f32 %v11017_v41, %v8572_v8  ;;  %v8573_v38 = vcvt.s32.f32 %v8557_v56  ;;  %v11023_v56 = vld [vmem:[%s16411_s3 + $0x8f] ss:$0 sm:$0xff] }
 0xc80   :  { %v7510_v9 = vsub.f32 %v7478_v29, %v7494_v25  ;;  %v8559_v29 = vunpack.c.1.s8 %v16102_v43  ;;  %v7736_v13 = vmul.f32 %v16094_v2, %v7715_v20  ;;  %v8577_v43 = vcvt.s32.f32 %v8561_v27 }
 0xc81   :  { %v7569_v32 = vsub.f32 1.5, %v7568_v58 }
 0xc82   :  { %v16089_v40 = vpop.eup %11159  ;;  %v16097_v51 = vadd.f32 1e-05, %v7510_v9 }
 0xc83   :  { %v7570_v37 = vmul.f32 %v11158_v24, %v7569_v32  ;;  %v7576_v19 = vmul.f32 %v16089_v40, %v16072_v17  ;;  %v7388_v49 = vpop.xlane.xlu1 %7387  ;;  %v8576_v32 = vcvt.s32.f32 %v8560_v16  ;;  %vm7582_vm3 = vweird.f32 %v16089_v40 }
 0xc84   :  { %11161 = vrsqrt.f32 %v16097_v51  ;;  %v16115_v44 = vmul.f32 0.0078125, %v7388_v49  ;;  %v8574_v49 = vcvt.s32.f32 %v8558_v52  ;;  %vm16173_vm5 = vmor %vm7581_vm4, %vm7582_vm3  ;;  %vm7591_vm7 = vweird.f32 %v16097_v51 }
 0xc85   :  { %v7574_v57 = vsel %vm7573_vm2, %v11158_v24, %v7570_v37  ;;  %v7577_v5 = vmul.f32 %v16089_v40, %v7576_v19  ;;  %v7452_v25 = vpop.xlane.xlu0 %7451  ;;  %v16129_v24 = vld [vmem:[%s16416_s8 + $0x4] ss:$0 sm:$0xff]  ;;  %v11022_v37 = vld [vmem:[%s16410_s2 + $0x8f] ss:$0 sm:$0xff]  ;;  %v16134_v19 = vmul.f32 %v11014_v6, %v8570_v63 }
 0xc86   :  { %v7716_v61 = vmul.f32 %v7574_v57, %v7524_v12  ;;  %v7495_v58 = vmul.f32 %v16115_v44, %v16115_v44  ;;  %v7479_v14 = vmul.f32 0.0078125, %v7452_v25  ;;  %v11019_v12 = vld [vmem:[%s16410_s2 + $0x8e] ss:$0 sm:$0xff]  ;;  %v8818_v25 = vpop.f32.mrf.mxu1  ;;  %v16145_v63 = vadd.f32 %v16129_v24, %v7736_v13  ;;  %v11018_v13 = vld [vmem:[%s16411_s3 + $0x8d] ss:$0 sm:$0xff] }
 0xc87   :  { %v7578_v9 = vmul.f32 0.5, %v7577_v5  ;;  %v8575_v5 = vcvt.s32.f32 %v8559_v29  ;;  %v8625_v29 = vmul.f32 %v11022_v37, %v8576_v32 }
 0xc88   :  { %v7737_v20 = vmul.f32 %v16094_v2, %v7716_v61  ;;  %v7511_v57 = vsub.f32 %v7479_v14, %v7495_v58  ;;  %16661 = vst [vmem:[#allocation19_spill] sm:$0xff] %v16145_v63  ;;  %v8623_v58 = vmul.f32 %v11019_v12, %v8574_v49  ;;  %v8620_v49 = vmul.f32 %v11014_v6, %v8571_v18 }
 0xc89   :  { %v7579_v23 = vsub.f32 1.5, %v7578_v9  ;;  %v8670_v18 = vadd.f32 %v11018_v13, %v8621_v31  ;;  %v7525_v6 = vsub.f32 %v15892_v22, %v16066_v45 }
 0xc8a   :  { %v16140_v16 = vpop.eup %11161  ;;  %v16142_v34 = vadd.f32 1e-05, %v7511_v57  ;;  %v16148_v52 = vadd.f32 %v16129_v24, %v7737_v20  ;;  %v8624_v20 = vmul.f32 %v11019_v12, %v8575_v5  ;;  %v8674_v5 = vadd.f32 %v11023_v56, %v8625_v29 }
 0xc8b   :  { %v7580_v61 = vmul.f32 %v16089_v40, %v7579_v23  ;;  %v7586_v50 = vmul.f32 %v16140_v16, %v16097_v51  ;;  %v7390_v8 = vpop.xlane.xlu2 %7389  ;;  %v11020_v23 = vld [vmem:[%s16411_s3 + $0x8e] ss:$0 sm:$0xff]  ;;  %vm7592_vm6 = vweird.f32 %v16140_v16 }
 0xc8c   :  { %16662 = vst [vmem:[#allocation7_spill] sm:$0xff] %v16148_v52  ;;  %11163 = vrsqrt.f32 %v16142_v34  ;;  %v16164_v14 = vmul.f32 0.0078125, %v7390_v8  ;;  %v8079_v9 = vpack.c.bf16 %v16148_v52, %v16145_v63  ;;  %v8622_v8 = vmul.f32 %v11017_v41, %v8573_v38  ;;  %vm7593_vm8 = vmor %vm7591_vm7, %vm7592_vm6 }
 0xc8d   :  { %v7587_v32 = vmul.f32 %v16140_v16, %v7586_v50  ;;  %v7454_v57 = vpop.xlane.xlu1 %7453  ;;  %v7584_v17 = vsel %vm16173_vm5, %v16089_v40, %v7580_v61  ;;  %v8672_v50 = vadd.f32 %v11020_v23, %v8623_v58  ;;  %v8673_v38 = vadd.f32 %v11020_v23, %v8624_v20 }
 0xc8e   :  { %v7496_v10 = vmul.f32 %v16164_v14, %v16164_v14  ;;  %v7480_v52 = vmul.f32 0.0078125, %v7454_v57  ;;  %8100 = vmatmul.bf16.vlgmr.msrb.gmra.mxu3 %v8079_v9  ;;  %v8626_v41 = vmul.f32 %v11022_v37, %v8577_v43  ;;  %v8671_v9 = vadd.f32 %v11018_v13, %v8622_v8  ;;  %v8820_v40 = vpop.f32.mrf.mxu1  ;;  %v11015_v37 = vld [vmem:[%s16411_s3 + $0x8c] ss:$0 sm:$0xff] }
 0xc8f   :  { %v7588_v12 = vmul.f32 0.5, %v7587_v32  ;;  %v7717_v27 = vmul.f32 %v7584_v17, %v7525_v6  ;;  %v7526_v61 = vsub.f32 %v15908_v11, %v16080_v1  ;;  %v8835_v51 = vadd.f32 %v16070_v46, %v8672_v50 }
 0xc90   :  { %v7512_v63 = vsub.f32 %v7480_v52, %v7496_v10  ;;  %v8837_v10 = vadd.f32 %v8818_v25, %v8674_v5  ;;  %v8675_v52 = vadd.f32 %v11023_v56, %v8626_v41  ;;  %v8836_v29 = vadd.f32 %v16087_v47, %v8673_v38 }
 0xc91   :  { %v7589_v30 = vsub.f32 1.5, %v7588_v12  ;;  %v7738_v23 = vmul.f32 %v16094_v2, %v7717_v27  ;;  %v8668_v20 = vadd.f32 %v11015_v37, %v16134_v19  ;;  %v8669_v8 = vadd.f32 %v11015_v37, %v8620_v49 }
 0xc92   :  { %v16185_v57 = vpop.eup %11163  ;;  %v16188_v4 = vadd.f32 1e-05, %v7512_v63  ;;  %v8838_v13 = vadd.f32 %v8820_v40, %v8675_v52  ;;  %v8833_v12 = vadd.f32 %v16058_v55, %v8670_v18  ;;  %v8834_v47 = vadd.f32 %v16064_v0, %v8671_v9 }
 0xc93   :  { %v7590_v31 = vmul.f32 %v16140_v16, %v7589_v30  ;;  %v7596_v22 = vmul.f32 %v16185_v57, %v16142_v34  ;;  %v7392_v45 = vpop.xlane.xlu2 %7391  ;;  %v8845_v43 = vpack.c.bf16 %v8836_v29, %v8835_v51  ;;  %v16217_v38 = vadd.f32 %v16129_v24, %v7738_v23 }
 0xc94   :  { %11165 = vrsqrt.f32 %v16188_v4  ;;  %v16202_v30 = vmul.f32 0.0078125, %v7392_v45  ;;  %v8846_v32 = vpack.c.bf16 %v8838_v13, %v8837_v10  ;;  %vm7602_vm9 = vweird.f32 %v16185_v57 }
 0xc95   :  { %v7594_v25 = vsel %vm7593_vm8, %v16140_v16, %v7590_v31  ;;  %v7597_v63 = vmul.f32 %v16185_v57, %v7596_v22  ;;  %v7456_v56 = vpop.xlane.xlu1 %7455  ;;  %v8831_v0 = vadd.f32 %v16037_v26, %v8668_v20  ;;  %v8832_v40 = vadd.f32 %v16049_v62, %v8669_v8 }
 0xc96   :  { %v7497_v11 = vmul.f32 %v16202_v30, %v16202_v30  ;;  %v7481_v1 = vmul.f32 0.0078125, %v7456_v56  ;;  %v7718_v58 = vmul.f32 %v7594_v25, %v7526_v61  ;;  %8860 = vmatpush.bf16.msra.mxu3 %v8846_v32  ;;  %v8844_v27 = vpack.c.bf16 %v8834_v47, %v8833_v12 }
 0xc97   :  { %v7598_v46 = vmul.f32 0.5, %v7597_v63  ;;  %vm7601_vm10 = vweird.f32 %v16142_v34  ;;  %v7527_v37 = vsub.f32 %v15924_v35, %v16115_v44  ;;  %v8843_v62 = vpack.c.bf16 %v8832_v40, %v8831_v0 }
 0xc98   :  { %v7513_v17 = vsub.f32 %v7481_v1, %v7497_v11  ;;  %v7739_v16 = vmul.f32 %v16094_v2, %v7718_v58  ;;  %vm7603_vm11 = vmor %vm7601_vm10, %vm7602_vm9  ;;  %vm7611_vm0 = vweird.f32 %v16188_v4 }
 0xc99   :  { %v7599_v5 = vsub.f32 1.5, %v7598_v46 }
 0xc9a   :  { %v11166_v6 = vpop.eup %11165  ;;  %v16214_v50 = vadd.f32 1e-05, %v7513_v17  ;;  %v16220_v41 = vadd.f32 %v16129_v24, %v7739_v16  ;;  %8861 = vmatpush.bf16.msra.mxu3 %v8845_v43 }
 0xc9b   :  { %v7600_v19 = vmul.f32 %v16185_v57, %v7599_v5  ;;  %v7606_v55 = vmul.f32 %v11166_v6, %v16188_v4  ;;  %v7394_v49 = vpop.xlane.xlu0 %7393  ;;  %vm7612_vm12 = vweird.f32 %v11166_v6 }
 0xc9c   :  { %11167 = vrsqrt.f32 %v16214_v50  ;;  %v16227_v18 = vmul.f32 0.0078125, %v7394_v49  ;;  %v8080_v9 = vpack.c.bf16 %v16220_v41, %v16217_v38  ;;  %vm7613_vm13 = vmor %vm7611_vm0, %vm7612_vm12  ;;  %vm7621_vm15 = vweird.f32 %v16214_v50 }
 0xc9d   :  { %v7607_v31 = vmul.f32 %v11166_v6, %v7606_v55  ;;  %v7458_v22 = vpop.xlane.xlu2 %7457  ;;  %v7604_v45 = vsel %vm7603_vm11, %v16185_v57, %v7600_v19  ;;  %v7528_v57 = vsub.f32 %v15943_v15, %v16164_v14  ;;  %v16665_v14 = vpack.c.bf16 %v16015_v39, %v16010_v36 }
 0xc9e   :  { %v7498_v10 = vmul.f32 %v16227_v18, %v16227_v18  ;;  %v7482_v26 = vmul.f32 0.0078125, %v7458_v22  ;;  %8105 = vmatmul.bf16.gmra.mxu3 %v8080_v9  ;;  %v7719_v63 = vmul.f32 %v7604_v45, %v7527_v37  ;;  %v16666_v49 = vpack.c.bf16 %v15989_v48, %v15984_v42 }
 0xc9f   :  { %v7608_v52 = vmul.f32 0.5, %v7607_v31  ;;  %8862 = vmatpush.bf16.msra.mxu3 %v8844_v27  ;;  %v7529_v31 = vsub.f32 %v15953_v21, %v16202_v30 }
 0xca0   :  { %v7514_v61 = vsub.f32 %v7482_v26, %v7498_v10  ;;  %v7740_v4 = vmul.f32 %v16094_v2, %v7719_v63 }
 0xca1   :  { %v7609_v51 = vsub.f32 1.5, %v7608_v52 }
 0xca2   :  { %v11168_v34 = vpop.eup %11167  ;;  %v7546_v25 = vadd.f32 1e-05, %v7514_v61  ;;  %v16252_v12 = vadd.f32 %v16129_v24, %v7740_v4  ;;  %v7530_v61 = vsub.f32 %v15972_v28, %v16227_v18 }
 0xca3   :  { %v7610_v29 = vmul.f32 %v11166_v6, %v7609_v51  ;;  %v7616_v56 = vmul.f32 %v11168_v34, %v16214_v50  ;;  %v7396_v13 = vpop.xlane.xlu0 %7395  ;;  %8863 = vmatpush.bf16.msra.mxu3 %v8843_v62  ;;  %vm7622_vm14 = vweird.f32 %v11168_v34  ;;  %v16667_v50 = vpack.c.bf16 %v15960_v59, %v15955_v7 }
 0xca4   :  { %11169 = vrsqrt.f32 %v7546_v25  ;;  %v16242_v35 = vmul.f32 0.0078125, %v7396_v13  ;;  %vm7623_vm1 = vmor %vm7621_vm15, %vm7622_vm14  ;;  %vm7631_vm3 = vweird.f32 %v7546_v25  ;;  %v16668_v7 = vpack.c.bf16 %v15934_v3, %v15926_v54 }
 0xca5   :  { %v7614_v44 = vsel %vm7613_vm13, %v11166_v6, %v7610_v29  ;;  %v7617_v11 = vmul.f32 %v11168_v34, %v7616_v56  ;;  %v7460_v1 = vpop.xlane.xlu2 %7459 }
 0xca6   :  { %v7499_v58 = vmul.f32 %v16242_v35, %v16242_v35  ;;  %v7483_v23 = vmul.f32 0.0078125, %v7460_v1  ;;  %v7720_v46 = vmul.f32 %v7614_v44, %v7528_v57 }
 0xca7   :  { %v7618_v32 = vmul.f32 0.5, %v7617_v11  ;;  %8864 = vmatpush.bf16.msra.mxu3 %v16665_v14  ;;  %v7531_v14 = vsub.f32 %v15982_v33, %v16242_v35 }
 0xca8   :  { %v7515_v20 = vsub.f32 %v7483_v23, %v7499_v58  ;;  %v7741_v8 = vmul.f32 %v16094_v2, %v7720_v46 }
 0xca9   :  { %v7619_v15 = vsub.f32 1.5, %v7618_v32 }
 0xcaa   :  { %v11170_v17 = vpop.eup %11169  ;;  %v7547_v16 = vadd.f32 1e-05, %v7515_v20  ;;  %v16255_v47 = vadd.f32 %v16129_v24, %v7741_v8 }
 0xcab   :  { %v7620_v5 = vmul.f32 %v11168_v34, %v7619_v15  ;;  %v7626_v43 = vmul.f32 %v11170_v17, %v7546_v25  ;;  %v7398_v6 = vpop.xlane.xlu1 %7397  ;;  %8865 = vmatpush.bf16.msra.mxu3 %v16666_v49  ;;  %vm7632_vm2 = vweird.f32 %v11170_v17 }
 0xcac   :  { %11171 = vrsqrt.f32 %v7547_v16  ;;  %v16257_v19 = vmul.f32 0.0078125, %v7398_v6  ;;  %v8081_v55 = vpack.c.bf16 %v16255_v47, %v16252_v12  ;;  %vm7633_vm4 = vmor %vm7631_vm3, %vm7632_vm2  ;;  %vm7641_vm6 = vweird.f32 %v7547_v16 }
 0xcad   :  { %v7627_v36 = vmul.f32 %v11170_v17, %v7626_v43  ;;  %v7462_v39 = vpop.xlane.xlu0 %7461  ;;  %v7624_v40 = vsel %vm7623_vm1, %v11168_v34, %v7620_v5 }
 0xcae   :  { %v7500_v0 = vmul.f32 %v16257_v19, %v16257_v19  ;;  %v7484_v9 = vmul.f32 0.0078125, %v7462_v39  ;;  %8110 = vmatmul.bf16.gmra.mxu3 %v8081_v55  ;;  %v7721_v26 = vmul.f32 %v7624_v40, %v7529_v31  ;;  %v7532_v49 = vsub.f32 %v15998_v53, %v16257_v19 }
 0xcaf   :  { %v7628_v27 = vmul.f32 0.5, %v7627_v36  ;;  %8866 = vmatpush.bf16.msra.mxu3 %v16667_v50 }
 0xcb0   :  { %v7516_v22 = vsub.f32 %v7484_v9, %v7500_v0  ;;  %v7742_v63 = vmul.f32 %v16094_v2, %v7721_v26 }
 0xcb1   :  { %v7629_v10 = vsub.f32 1.5, %v7628_v27 }
 0xcb2   :  { %v11172_v42 = vpop.eup %11171  ;;  %v7548_v48 = vadd.f32 1e-05, %v7516_v22  ;;  %v16284_v44 = vadd.f32 %v16129_v24, %v7742_v63 }
 0xcb3   :  { %v7630_v45 = vmul.f32 %v11170_v17, %v7629_v10  ;;  %v7636_v52 = vmul.f32 %v11172_v42, %v7547_v16  ;;  %v7400_v37 = vpop.xlane.xlu1 %7399  ;;  %8867 = vmatpush.bf16.msra.mxu3 %v16668_v7  ;;  %vm7642_vm5 = vweird.f32 %v11172_v42 }
 0xcb4   :  { %11173 = vrsqrt.f32 %v7548_v48  ;;  %v16274_v21 = vmul.f32 0.0078125, %v7400_v37  ;;  %vm7643_vm7 = vmor %vm7641_vm6, %vm7642_vm5  ;;  %vm7651_vm9 = vweird.f32 %v7548_v48 }
 0xcb5   :  { %v7634_v30 = vsel %vm7633_vm4, %v11170_v17, %v7630_v45  ;;  %v7637_v62 = vmul.f32 %v11172_v42, %v7636_v52  ;;  %v7464_v51 = vpop.xlane.xlu0 %7463 }
 0xcb6   :  { %v7501_v59 = vmul.f32 %v16274_v21, %v16274_v21  ;;  %v7485_v34 = vmul.f32 0.0078125, %v7464_v51  ;;  %v7722_v25 = vmul.f32 %v7634_v30, %v7530_v61 }
 0xcb7   :  { %v7638_v29 = vmul.f32 0.5, %v7637_v62 }
 0xcb8   :  { %v7517_v28 = vsub.f32 %v7485_v34, %v7501_v59  ;;  %v7743_v18 = vmul.f32 %v16094_v2, %v7722_v25 }
 0xcb9   :  { %v7639_v56 = vsub.f32 1.5, %v7638_v29  ;;  %v7533_v29 = vsub.f32 %v16008_v60, %v16274_v21 }
 0xcba   :  { %v11174_v13 = vpop.eup %11173  ;;  %v7549_v57 = vadd.f32 1e-05, %v7517_v28  ;;  %v16287_v54 = vadd.f32 %v16129_v24, %v7743_v18 }
 0xcbb   :  { %v7640_v3 = vmul.f32 %v11172_v42, %v7639_v56  ;;  %v7646_v11 = vmul.f32 %v11174_v13, %v7548_v48  ;;  %v7402_v1 = vpop.xlane.xlu2 %7401  ;;  %vm7652_vm8 = vweird.f32 %v11174_v13 }
 0xcbc   :  { %11175 = vrsqrt.f32 %v7549_v57  ;;  %v16289_v58 = vmul.f32 0.0078125, %v7402_v1  ;;  %v8082_v23 = vpack.c.bf16 %v16287_v54, %v16284_v44  ;;  %vm7653_vm10 = vmor %vm7651_vm9, %vm7652_vm8  ;;  %vm7661_vm12 = vweird.f32 %v7549_v57 }
 0xcbd   :  { %v7647_v46 = vmul.f32 %v11174_v13, %v7646_v11  ;;  %v7466_v4 = vpop.xlane.xlu1 %7465  ;;  %v7644_v8 = vsel %vm7643_vm7, %v11172_v42, %v7640_v3 }
 0xcbe   :  { %v7502_v32 = vmul.f32 %v16289_v58, %v16289_v58  ;;  %v7486_v20 = vmul.f32 0.0078125, %v7466_v4  ;;  %8115 = vmatmul.bf16.gmra.mxu3 %v8082_v23  ;;  %v7723_v55 = vmul.f32 %v7644_v8, %v7531_v14  ;;  %v16669_v23 = vld [vmem:[#allocation8_spill] sm:$0xff] }
 0xcbf   :  { %v7648_v15 = vmul.f32 0.5, %v7647_v46  ;;  %v7534_v46 = vsub.f32 %v16669_v23, %v16289_v58 }
 0xcc0   :  { %v7518_v17 = vsub.f32 %v7486_v20, %v7502_v32  ;;  %v7744_v22 = vmul.f32 %v16094_v2, %v7723_v55 }
 0xcc1   :  { %v7649_v5 = vsub.f32 1.5, %v7648_v15 }
 0xcc2   :  { %v11176_v43 = vpop.eup %11175  ;;  %v7550_v6 = vadd.f32 1e-05, %v7518_v17  ;;  %v16306_v26 = vadd.f32 %v16129_v24, %v7744_v22 }
 0xcc3   :  { %v7650_v16 = vmul.f32 %v11174_v13, %v7649_v5  ;;  %v7656_v36 = vmul.f32 %v11176_v43, %v7549_v57  ;;  %v7404_v39 = vpop.xlane.xlu2 %7403  ;;  %vm7662_vm11 = vweird.f32 %v11176_v43 }
 0xcc4   :  { %11177 = vrsqrt.f32 %v7550_v6  ;;  %v16299_v0 = vmul.f32 0.0078125, %v7404_v39  ;;  %vm7663_vm0 = vmor %vm7661_vm12, %vm7662_vm11  ;;  %vm7671_vm14 = vweird.f32 %v7550_v6 }
 0xcc5   :  { %v7654_v9 = vsel %vm7653_vm10, %v11174_v13, %v7650_v16  ;;  %v7657_v40 = vmul.f32 %v11176_v43, %v7656_v36  ;;  %v7468_v33 = vpop.xlane.xlu1 %7467 }
 0xcc6   :  { %v7503_v35 = vmul.f32 %v16299_v0, %v16299_v0  ;;  %v7487_v27 = vmul.f32 0.0078125, %v7468_v33  ;;  %v7724_v31 = vmul.f32 %v7654_v9, %v7532_v49 }
 0xcc7   :  { %v7658_v10 = vmul.f32 0.5, %v7657_v40 }
 0xcc8   :  { %v7519_v50 = vsub.f32 %v7487_v27, %v7503_v35  ;;  %v7745_v42 = vmul.f32 %v16094_v2, %v7724_v31 }
 0xcc9   :  { %v7659_v48 = vsub.f32 1.5, %v7658_v10 }
 0xcca   :  { %v11178_v53 = vpop.eup %11177  ;;  %v7551_v19 = vadd.f32 1e-05, %v7519_v50  ;;  %v16309_v45 = vadd.f32 %v16129_v24, %v7745_v42  ;;  %v16670_v42 = vld [vmem:[#allocation18_spill] sm:$0xff] }
 0xccb   :  { %v7660_v52 = vmul.f32 %v11176_v43, %v7659_v48  ;;  %v7666_v37 = vmul.f32 %v11178_v53, %v7550_v6  ;;  %v7406_v61 = vpop.xlane.xlu0 %7405  ;;  %vm7672_vm13 = vweird.f32 %v11178_v53  ;;  %v7535_v48 = vsub.f32 %v16670_v42, %v16299_v0 }
 0xccc   :  { %11179 = vrsqrt.f32 %v7551_v19  ;;  %v16311_v30 = vmul.f32 0.0078125, %v7406_v61  ;;  %v8083_v62 = vpack.c.bf16 %v16309_v45, %v16306_v26  ;;  %vm7673_vm15 = vmor %vm7671_vm14, %vm7672_vm13  ;;  %vm7681_vm2 = vweird.f32 %v7551_v19 }
 0xccd   :  { %v7667_v51 = vmul.f32 %v11178_v53, %v7666_v37  ;;  %v7470_v7 = vpop.xlane.xlu2 %7469  ;;  %v7664_v25 = vsel %vm7663_vm0, %v11176_v43, %v7660_v52 }
 0xcce   :  { %v7504_v59 = vmul.f32 %v16311_v30, %v16311_v30  ;;  %v7488_v34 = vmul.f32 0.0078125, %v7470_v7  ;;  %8120 = vmatmul.bf16.gmra.mxu3 %v8083_v62  ;;  %v7725_v3 = vmul.f32 %v7664_v25, %v7533_v29  ;;  %v16671_v7 = vld [vmem:[#allocation5_spill] sm:$0xff] }
 0xccf   :  { %v7668_v63 = vmul.f32 0.5, %v7667_v51 }
 0xcd0   :  { %v7520_v28 = vsub.f32 %v7488_v34, %v7504_v59  ;;  %v7746_v14 = vmul.f32 %v16094_v2, %v7725_v3  ;;  %v7536_v59 = vsub.f32 %v16671_v7, %v16311_v30 }
 0xcd1   :  { %v7669_v18 = vsub.f32 1.5, %v7668_v63 }
 0xcd2   :  { %v11180_v56 = vpop.eup %11179  ;;  %v7552_v13 = vadd.f32 1e-05, %v7520_v28  ;;  %v16328_v16 = vadd.f32 %v16129_v24, %v7746_v14 }
 0xcd3   :  { %v7670_v57 = vmul.f32 %v11178_v53, %v7669_v18  ;;  %v7676_v11 = vmul.f32 %v11180_v56, %v7551_v19  ;;  %v7408_v1 = vpop.xlane.xlu0 %7407  ;;  %vm7682_vm1 = vweird.f32 %v11180_v56 }
 0xcd4   :  { %11181 = vrsqrt.f32 %v7552_v13  ;;  %v16321_v4 = vmul.f32 0.0078125, %v7408_v1  ;;  %vm7683_vm3 = vmor %vm7681_vm2, %vm7682_vm1  ;;  %vm7691_vm5 = vweird.f32 %v7552_v13 }
 0xcd5   :  { %v7674_v32 = vsel %vm7673_vm15, %v11178_v53, %v7670_v57  ;;  %v7677_v20 = vmul.f32 %v11180_v56, %v7676_v11  ;;  %v7472_v60 = vpop.xlane.xlu2 %7471 }
 0xcd6   :  { %v7505_v21 = vmul.f32 %v16321_v4, %v16321_v4  ;;  %v7489_v8 = vmul.f32 0.0078125, %v7472_v60  ;;  %v7726_v15 = vmul.f32 %v7674_v32, %v7534_v46  ;;  %v16672_v32 = vld [vmem:[#allocation13_spill] sm:$0xff] }
 0xcd7   :  { %v7678_v17 = vmul.f32 0.5, %v7677_v20  ;;  %v7537_v20 = vsub.f32 %v16672_v32, %v16321_v4 }
 0xcd8   :  { %v7521_v5 = vsub.f32 %v7489_v8, %v7505_v21  ;;  %v7747_v43 = vmul.f32 %v16094_v2, %v7726_v15  ;;  %v16673_v15 = vld [vmem:[#allocation11_spill] sm:$0xff] }
 0xcd9   :  { %v7679_v6 = vsub.f32 1.5, %v7678_v17 }
 0xcda   :  { %v11182_v58 = vpop.eup %11181  ;;  %v7553_v55 = vadd.f32 1e-05, %v7521_v5  ;;  %v16331_v36 = vadd.f32 %v16129_v24, %v7747_v43 }
 0xcdb   :  { %v7680_v39 = vmul.f32 %v11180_v56, %v7679_v6  ;;  %v7686_v49 = vmul.f32 %v11182_v58, %v7552_v13  ;;  %v7410_v9 = vpop.xlane.xlu1 %7409  ;;  %vm7692_vm4 = vweird.f32 %v11182_v58 }
 0xcdc   :  { %11183 = vrsqrt.f32 %v7553_v55  ;;  %v7426_v40 = vmul.f32 0.0078125, %v7410_v9  ;;  %v8084_v33 = vpack.c.bf16 %v16331_v36, %v16328_v16  ;;  %vm7693_vm6 = vmor %vm7691_vm5, %vm7692_vm4  ;;  %vm7701_vm8 = vweird.f32 %v7553_v55 }
 0xcdd   :  { %v7687_v35 = vmul.f32 %v11182_v58, %v7686_v49  ;;  %v7474_v27 = vpop.xlane.xlu0 %7473  ;;  %v7684_v10 = vsel %vm7683_vm3, %v11180_v56, %v7680_v39  ;;  %v11024_v49 = vld [vmem:[%s16412_s4 + $0xf] ss:$0 sm:$0xff] }
 0xcde   :  { %v7506_v31 = vmul.f32 %v7426_v40, %v7426_v40  ;;  %v7490_v22 = vmul.f32 0.0078125, %v7474_v27  ;;  %8125 = vmatmul.bf16.gmra.mxu3 %v8084_v33  ;;  %v7727_v62 = vmul.f32 %v7684_v10, %v7535_v48  ;;  %v7538_v14 = vsub.f32 %v16673_v15, %v7426_v40 }
 0xcdf   :  { %v7688_v50 = vmul.f32 0.5, %v7687_v35 }
 0xce0   :  { %v7522_v53 = vsub.f32 %v7490_v22, %v7506_v31  ;;  %v7748_v29 = vmul.f32 %v16094_v2, %v7727_v62 }
 0xce1   :  { %v7689_v52 = vsub.f32 1.5, %v7688_v50 }
 0xce2   :  { %v11184_v37 = vpop.eup %11183  ;;  %v7554_v61 = vadd.f32 1e-05, %v7522_v53  ;;  %v16342_v3 = vadd.f32 %v16129_v24, %v7748_v29 }
 0xce3   :  { %v7690_v51 = vmul.f32 %v11182_v58, %v7689_v52  ;;  %v7696_v19 = vmul.f32 %v11184_v37, %v7553_v55  ;;  %vm7702_vm7 = vweird.f32 %v11184_v37 }
 0xce4   :  { %11185 = vrsqrt.f32 %v7554_v61  ;;  %vm7703_vm9 = vmor %vm7701_vm8, %vm7702_vm7  ;;  %vm7711_vm11 = vweird.f32 %v7554_v61 }
 0xce5   :  { %v7694_v34 = vsel %vm7693_vm6, %v11182_v58, %v7690_v51  ;;  %v7697_v25 = vmul.f32 %v11184_v37, %v7696_v19 }
 0xce6   :  { %v7728_v63 = vmul.f32 %v7694_v34, %v7536_v59 }
 0xce7   :  { %v7698_v0 = vmul.f32 0.5, %v7697_v25 }
 0xce8   :  { %v7749_v28 = vmul.f32 %v16094_v2, %v7728_v63 }
 0xce9   :  { %v7699_v18 = vsub.f32 1.5, %v7698_v0 }
 0xcea   :  { %v11186_v56 = vpop.eup %11185  ;;  %v16345_v13 = vadd.f32 %v16129_v24, %v7749_v28 }
 0xceb   :  { %v7700_v57 = vmul.f32 %v11184_v37, %v7699_v18  ;;  %v7706_v30 = vmul.f32 %v11186_v56, %v7554_v61  ;;  %vm7712_vm10 = vweird.f32 %v11186_v56 }
 0xcec   :  { %v8085_v11 = vpack.c.bf16 %v16345_v13, %v16342_v3  ;;  %vm7713_vm12 = vmor %vm7711_vm11, %vm7712_vm10 }
 0xced   :  { %v7707_v1 = vmul.f32 %v11186_v56, %v7706_v30  ;;  %v7704_v23 = vsel %vm7703_vm9, %v11184_v37, %v7700_v57 }
 0xcee   :  { %8130 = vmatmul.bf16.gmra.mxu3 %v8085_v11  ;;  %v7729_v21 = vmul.f32 %v7704_v23, %v7537_v20 }
 0xcef   :  { %v7708_v46 = vmul.f32 0.5, %v7707_v1 }
 0xcf0   :  { %v7750_v43 = vmul.f32 %v16094_v2, %v7729_v21 }
 0xcf1   :  { %v7709_v60 = vsub.f32 1.5, %v7708_v46 }
 0xcf2   :  { %v16355_v58 = vadd.f32 %v16129_v24, %v7750_v43 }
 0xcf3   :  { %v7710_v8 = vmul.f32 %v11186_v56, %v7709_v60 }
 0xcf5   :  { %v7714_v17 = vsel %vm7713_vm12, %v11186_v56, %v7710_v8 }
 0xcf6   :  { %v7730_v5 = vmul.f32 %v7714_v17, %v7538_v14 }
 0xcf8   :  { %v7751_v6 = vmul.f32 %v16094_v2, %v7730_v5 }
 0xcfa   :  { %v16358_v55 = vadd.f32 %v16129_v24, %v7751_v6 }
 0xcfc   :  { %v8086_v4 = vpack.c.bf16 %v16358_v55, %v16355_v58 }
 0xcfe   :  { %8135 = vmatmul.bf16.gmra.mxu3 %v8086_v4 }
 0xd11   :  { %v8101_v39 = vpop.f32.mrf.mxu3 }
 0xd12   :  { %v8102_v9 = vadd.f32 %v11024_v49, %v8101_v39 }
 0xd14   :  { %v8141_v35 = vmax.f32 %v8102_v9, 0.0 }
 0xd19   :  { %v8103_v40 = vpop.f32.mrf.mxu3 }
 0xd1a   :  { %v8104_v33 = vadd.f32 %v11024_v49, %v8103_v40 }
 0xd1c   :  { %v8142_v2 = vmax.f32 %v8104_v33, 0.0 }
 0xd1e   :  { %v8463_v27 = vpack.c.bf16 %v8142_v2, %v8141_v35 }
 0xd20   :  { %8484 = vmatmul.bf16.vlgmr.msra.gmra.mxu2 %v8463_v27 }
 0xd21   :  { %v8106_v31 = vpop.f32.mrf.mxu3 }
 0xd22   :  { %v8107_v22 = vadd.f32 %v11024_v49, %v8106_v31 }
 0xd24   :  { %v8143_v50 = vmax.f32 %v8107_v22, 0.0  ;;  %v11025_v22 = vld [vmem:[%s16412_s4 + $0x10] ss:$0 sm:$0xff] }
 0xd29   :  { %v8108_v24 = vpop.f32.mrf.mxu3 }
 0xd2a   :  { %v8109_v10 = vadd.f32 %v11024_v49, %v8108_v24 }
 0xd2c   :  { %v8144_v42 = vmax.f32 %v8109_v10, 0.0 }
 0xd2e   :  { %v8464_v48 = vpack.c.bf16 %v8144_v42, %v8143_v50 }
 0xd30   :  { %8489 = vmatmul.bf16.gmra.mxu2 %v8464_v48 }
 0xd31   :  { %v8111_v53 = vpop.f32.mrf.mxu3 }
 0xd32   :  { %v8112_v52 = vadd.f32 %v11024_v49, %v8111_v53 }
 0xd34   :  { %v8145_v62 = vmax.f32 %v8112_v52, 0.0 }
 0xd39   :  { %v8113_v37 = vpop.f32.mrf.mxu3 }
 0xd3a   :  { %v8114_v61 = vadd.f32 %v11024_v49, %v8113_v37 }
 0xd3c   :  { %v8146_v51 = vmax.f32 %v8114_v61, 0.0 }
 0xd3e   :  { %v8465_v19 = vpack.c.bf16 %v8146_v51, %v8145_v62 }
 0xd40   :  { %8494 = vmatmul.bf16.gmra.mxu2 %v8465_v19 }
 0xd41   :  { %v8116_v7 = vpop.f32.mrf.mxu3 }
 0xd42   :  { %v8117_v59 = vadd.f32 %v11024_v49, %v8116_v7 }
 0xd44   :  { %v8147_v63 = vmax.f32 %v8117_v59, 0.0 }
 0xd49   :  { %v8118_v34 = vpop.f32.mrf.mxu3 }
 0xd4a   :  { %v8119_v25 = vadd.f32 %v11024_v49, %v8118_v34 }
 0xd4c   :  { %v8148_v29 = vmax.f32 %v8119_v25, 0.0 }
 0xd4e   :  { %v8466_v0 = vpack.c.bf16 %v8148_v29, %v8147_v63 }
 0xd50   :  { %8499 = vmatmul.bf16.gmra.mxu2 %v8466_v0 }
 0xd51   :  { %v8121_v28 = vpop.f32.mrf.mxu3 }
 0xd52   :  { %v8122_v18 = vadd.f32 %v11024_v49, %v8121_v28 }
 0xd54   :  { %v8149_v30 = vmax.f32 %v8122_v18, 0.0 }
 0xd59   :  { %v8123_v56 = vpop.f32.mrf.mxu3 }
 0xd5a   :  { %v8124_v57 = vadd.f32 %v11024_v49, %v8123_v56 }
 0xd5c   :  { %v8150_v11 = vmax.f32 %v8124_v57, 0.0 }
 0xd5e   :  { %v8467_v1 = vpack.c.bf16 %v8150_v11, %v8149_v30 }
 0xd60   :  { %8504 = vmatmul.bf16.gmra.mxu2 %v8467_v1 }
 0xd61   :  { %v8126_v23 = vpop.f32.mrf.mxu3 }
 0xd62   :  { %v8127_v46 = vadd.f32 %v11024_v49, %v8126_v23 }
 0xd64   :  { %v8151_v60 = vmax.f32 %v8127_v46, 0.0 }
 0xd69   :  { %v8128_v32 = vpop.f32.mrf.mxu3 }
 0xd6a   :  { %v8129_v20 = vadd.f32 %v11024_v49, %v8128_v32 }
 0xd6c   :  { %v8152_v21 = vmax.f32 %v8129_v20, 0.0 }
 0xd6e   :  { %v8468_v8 = vpack.c.bf16 %v8152_v21, %v8151_v60 }
 0xd70   :  { %8509 = vmatmul.bf16.gmra.mxu2 %v8468_v8 }
 0xd71   :  { %v8131_v15 = vpop.f32.mrf.mxu3 }
 0xd72   :  { %v8132_v14 = vadd.f32 %v11024_v49, %v8131_v15 }
 0xd74   :  { %v8153_v43 = vmax.f32 %v8132_v14, 0.0 }
 0xd79   :  { %v8133_v17 = vpop.f32.mrf.mxu3 }
 0xd7a   :  { %v8134_v5 = vadd.f32 %v11024_v49, %v8133_v17 }
 0xd7c   :  { %v8154_v6 = vmax.f32 %v8134_v5, 0.0 }
 0xd7e   :  { %v8469_v4 = vpack.c.bf16 %v8154_v6, %v8153_v43 }
 0xd80   :  { %8514 = vmatmul.bf16.gmra.mxu2 %v8469_v4 }
 0xd81   :  { %v8136_v39 = vpop.f32.mrf.mxu3 }
 0xd82   :  { %v8137_v9 = vadd.f32 %v11024_v49, %v8136_v39 }
 0xd84   :  { %v8155_v35 = vmax.f32 %v8137_v9, 0.0 }
 0xd89   :  { %v8138_v40 = vpop.f32.mrf.mxu3 }
 0xd8a   :  { %v8139_v33 = vadd.f32 %v11024_v49, %v8138_v40 }
 0xd8c   :  { %v8156_v2 = vmax.f32 %v8139_v33, 0.0 }
 0xd8e   :  { %v8470_v27 = vpack.c.bf16 %v8156_v2, %v8155_v35 }
 0xd90   :  { %8519 = vmatmul.bf16.gmra.mxu2 %v8470_v27 }
 0xda3   :  { %v8485_v31 = vpop.f32.mrf.mxu2 }
 0xda4   :  { %v8486_v24 = vadd.f32 %v11025_v22, %v8485_v31 }
 0xda6   :  { %v8525_v42 = vmax.f32 %v8486_v24, 0.0 }
 0xdab   :  { %v8487_v10 = vpop.f32.mrf.mxu2 }
 0xdac   :  { %v8488_v50 = vadd.f32 %v11025_v22, %v8487_v10 }
 0xdae   :  { %v8526_v48 = vmax.f32 %v8488_v50, 0.0 }
 0xdb0   :  { %v8847_v53 = vpack.c.bf16 %v8526_v48, %v8525_v42 }
 0xdb2   :  { %8868 = vmatmul.bf16.vlgmr.msra.gmra.mxu3 %v8847_v53 }
 0xdb3   :  { %v8490_v52 = vpop.f32.mrf.mxu2 }
 0xdb4   :  { %v8491_v37 = vadd.f32 %v11025_v22, %v8490_v52  ;;  %v16371_v52 = vld [vmem:[%s16412_s4 + $0x11] ss:$0 sm:$0xff]  ;;  %s11229_s4 = smov [#allocation2]  }
 0xdb5   :  { %s8945_s27 = sshll.u32 %s11229_s4, 4  ;;  %s8946_s27 = int_to_ptr.vmem [resolvable:$true] %s8945_s27 }
 0xdb6   :  { %v8527_v62 = vmax.f32 %v8491_v37, 0.0 }
 0xdbb   :  { %v8492_v61 = vpop.f32.mrf.mxu2 }
 0xdbc   :  { %v8493_v49 = vadd.f32 %v11025_v22, %v8492_v61 }
 0xdbe   :  { %v8528_v51 = vmax.f32 %v8493_v49, 0.0  ;;  %v16674_v49 = vld [vmem:[#allocation19_spill] sm:$0xff] }
 0xdc0   :  { %v8848_v19 = vpack.c.bf16 %v8528_v51, %v8527_v62 }
 0xdc2   :  { %8873 = vmatmul.bf16.gmra.mxu3 %v8848_v19 }
 0xdc3   :  { %v8495_v7 = vpop.f32.mrf.mxu2 }
 0xdc4   :  { %v8496_v59 = vadd.f32 %v11025_v22, %v8495_v7  ;;  %v16675_v7 = vld [vmem:[#allocation7_spill] sm:$0xff] }
 0xdc6   :  { %v8529_v63 = vmax.f32 %v8496_v59, 0.0 }
 0xdcb   :  { %v8497_v34 = vpop.f32.mrf.mxu2 }
 0xdcc   :  { %v8498_v25 = vadd.f32 %v11025_v22, %v8497_v34 }
 0xdce   :  { %v8530_v29 = vmax.f32 %v8498_v25, 0.0 }
 0xdd0   :  { %v8849_v0 = vpack.c.bf16 %v8530_v29, %v8529_v63 }
 0xdd2   :  { %8878 = vmatmul.bf16.gmra.mxu3 %v8849_v0 }
 0xdd3   :  { %v8500_v28 = vpop.f32.mrf.mxu2 }
 0xdd4   :  { %v8501_v18 = vadd.f32 %v11025_v22, %v8500_v28 }
 0xdd6   :  { %v8531_v30 = vmax.f32 %v8501_v18, 0.0 }
 0xddb   :  { %v8502_v56 = vpop.f32.mrf.mxu2 }
 0xddc   :  { %v8503_v57 = vadd.f32 %v11025_v22, %v8502_v56 }
 0xdde   :  { %v8532_v11 = vmax.f32 %v8503_v57, 0.0 }
 0xde0   :  { %v8850_v1 = vpack.c.bf16 %v8532_v11, %v8531_v30 }
 0xde2   :  { %8883 = vmatmul.bf16.gmra.mxu3 %v8850_v1 }
 0xde3   :  { %v8505_v23 = vpop.f32.mrf.mxu2 }
 0xde4   :  { %v8506_v46 = vadd.f32 %v11025_v22, %v8505_v23 }
 0xde6   :  { %v8533_v60 = vmax.f32 %v8506_v46, 0.0 }
 0xdeb   :  { %v8507_v32 = vpop.f32.mrf.mxu2 }
 0xdec   :  { %v8508_v20 = vadd.f32 %v11025_v22, %v8507_v32 }
 0xdee   :  { %v8534_v21 = vmax.f32 %v8508_v20, 0.0 }
 0xdf0   :  { %v8851_v8 = vpack.c.bf16 %v8534_v21, %v8533_v60 }
 0xdf2   :  { %8888 = vmatmul.bf16.gmra.mxu3 %v8851_v8 }
 0xdf3   :  { %v8510_v15 = vpop.f32.mrf.mxu2 }
 0xdf4   :  { %v8511_v14 = vadd.f32 %v11025_v22, %v8510_v15 }
 0xdf6   :  { %v8535_v43 = vmax.f32 %v8511_v14, 0.0 }
 0xdfb   :  { %v8512_v17 = vpop.f32.mrf.mxu2 }
 0xdfc   :  { %v8513_v5 = vadd.f32 %v11025_v22, %v8512_v17 }
 0xdfe   :  { %v8536_v6 = vmax.f32 %v8513_v5, 0.0 }
 0xe00   :  { %v8852_v4 = vpack.c.bf16 %v8536_v6, %v8535_v43 }
 0xe02   :  { %8893 = vmatmul.bf16.gmra.mxu3 %v8852_v4 }
 0xe03   :  { %v8515_v39 = vpop.f32.mrf.mxu2 }
 0xe04   :  { %v8516_v9 = vadd.f32 %v11025_v22, %v8515_v39 }
 0xe06   :  { %v8537_v35 = vmax.f32 %v8516_v9, 0.0 }
 0xe0b   :  { %v8517_v40 = vpop.f32.mrf.mxu2 }
 0xe0c   :  { %v8518_v33 = vadd.f32 %v11025_v22, %v8517_v40 }
 0xe0e   :  { %v8538_v2 = vmax.f32 %v8518_v33, 0.0 }
 0xe10   :  { %v8853_v27 = vpack.c.bf16 %v8538_v2, %v8537_v35 }
 0xe12   :  { %8898 = vmatmul.bf16.gmra.mxu3 %v8853_v27 }
 0xe13   :  { %v8520_v31 = vpop.f32.mrf.mxu2 }
 0xe14   :  { %v8521_v24 = vadd.f32 %v11025_v22, %v8520_v31 }
 0xe16   :  { %v8539_v42 = vmax.f32 %v8521_v24, 0.0 }
 0xe1b   :  { %v8522_v10 = vpop.f32.mrf.mxu2 }
 0xe1c   :  { %v8523_v50 = vadd.f32 %v11025_v22, %v8522_v10 }
 0xe1e   :  { %v8540_v48 = vmax.f32 %v8523_v50, 0.0 }
 0xe20   :  { %v8854_v53 = vpack.c.bf16 %v8540_v48, %v8539_v42 }
 0xe22   :  { %8903 = vmatmul.bf16.gmra.mxu3 %v8854_v53 }
 0xe35   :  { %v8869_v37 = vpop.f32.mrf.mxu3 }
 0xe36   :  { %v8870_v61 = vadd.f32 %v16371_v52, %v8869_v37 }
 0xe38   :  { %v8909_v62 = vadd.f32 %v8870_v61, %v16674_v49 }
 0xe3a   :  { %8925 = vst [vmem:[#allocation2] sm:$0xff] %v8909_v62 }
 0xe3d   :  { %v8871_v51 = vpop.f32.mrf.mxu3 }
 0xe3e   :  { %v8872_v19 = vadd.f32 %v16371_v52, %v8871_v51 }
 0xe40   :  { %v8910_v22 = vadd.f32 %v8872_v19, %v16675_v7 }
 0xe42   :  { %8926 = vst [vmem:[#allocation2 + $0x8] sm:$0xff] %v8910_v22 }
 0xe45   :  { %v8874_v59 = vpop.f32.mrf.mxu3 }
 0xe46   :  { %v8875_v34 = vadd.f32 %v16371_v52, %v8874_v59 }
 0xe48   :  { %v8911_v25 = vadd.f32 %v8875_v34, %v16217_v38 }
 0xe4a   :  { %8927 = vst [vmem:[#allocation2 + $0x10] sm:$0xff] %v8911_v25 }
 0xe4d   :  { %v8876_v63 = vpop.f32.mrf.mxu3 }
 0xe4e   :  { %v8877_v29 = vadd.f32 %v16371_v52, %v8876_v63 }
 0xe50   :  { %v8912_v0 = vadd.f32 %v8877_v29, %v16220_v41 }
 0xe52   :  { %8928 = vst [vmem:[#allocation2 + $0x18] sm:$0xff] %v8912_v0 }
 0xe55   :  { %v8879_v28 = vpop.f32.mrf.mxu3 }
 0xe56   :  { %v8880_v18 = vadd.f32 %v16371_v52, %v8879_v28 }
 0xe58   :  { %v8913_v56 = vadd.f32 %v8880_v18, %v16252_v12 }
 0xe5a   :  { %8929 = vst [vmem:[#allocation2 + $0x20] sm:$0xff] %v8913_v56 }
 0xe5d   :  { %v8881_v57 = vpop.f32.mrf.mxu3 }
 0xe5e   :  { %v8882_v30 = vadd.f32 %v16371_v52, %v8881_v57 }
 0xe60   :  { %v8914_v11 = vadd.f32 %v8882_v30, %v16255_v47 }
 0xe62   :  { %8930 = vst [vmem:[#allocation2 + $0x28] sm:$0xff] %v8914_v11 }
 0xe65   :  { %v8884_v38 = vpop.f32.mrf.mxu3 }
 0xe66   :  { %v8885_v1 = vadd.f32 %v16371_v52, %v8884_v38 }
 0xe68   :  { %v8915_v23 = vadd.f32 %v8885_v1, %v16284_v44 }
 0xe6a   :  { %8931 = vst [vmem:[#allocation2 + $0x30] sm:$0xff] %v8915_v23 }
 0xe6d   :  { %v8886_v41 = vpop.f32.mrf.mxu3 }
 0xe6e   :  { %v8887_v46 = vadd.f32 %v16371_v52, %v8886_v41 }
 0xe70   :  { %v8916_v32 = vadd.f32 %v8887_v46, %v16287_v54 }
 0xe72   :  { %8932 = vst [vmem:[#allocation2 + $0x38] sm:$0xff] %v8916_v32 }
 0xe75   :  { %v8889_v12 = vpop.f32.mrf.mxu3 }
 0xe76   :  { %v8890_v20 = vadd.f32 %v16371_v52, %v8889_v12 }
 0xe78   :  { %v8917_v60 = vadd.f32 %v8890_v20, %v16306_v26 }
 0xe7a   :  { %8933 = vst [vmem:[#allocation2 + $0x40] sm:$0xff] %v8917_v60 }
 0xe7d   :  { %v8891_v47 = vpop.f32.mrf.mxu3 }
 0xe7e   :  { %v8892_v21 = vadd.f32 %v16371_v52, %v8891_v47 }
 0xe80   :  { %v8918_v8 = vadd.f32 %v8892_v21, %v16309_v45 }
 0xe82   :  { %8934 = vst [vmem:[#allocation2 + $0x48] sm:$0xff] %v8918_v8 }
 0xe85   :  { %v8894_v44 = vpop.f32.mrf.mxu3 }
 0xe86   :  { %v8895_v15 = vadd.f32 %v16371_v52, %v8894_v44 }
 0xe88   :  { %v8919_v14 = vadd.f32 %v8895_v15, %v16328_v16 }
 0xe8a   :  { %8935 = vst [vmem:[#allocation2 + $0x50] sm:$0xff] %v8919_v14 }
 0xe8d   :  { %v8896_v54 = vpop.f32.mrf.mxu3 }
 0xe8e   :  { %v8897_v17 = vadd.f32 %v16371_v52, %v8896_v54 }
 0xe90   :  { %v8920_v5 = vadd.f32 %v8897_v17, %v16331_v36 }
 0xe92   :  { %8936 = vst [vmem:[#allocation2 + $0x58] sm:$0xff] %v8920_v5 }
 0xe95   :  { %v8899_v26 = vpop.f32.mrf.mxu3 }
 0xe96   :  { %v8900_v43 = vadd.f32 %v16371_v52, %v8899_v26 }
 0xe98   :  { %v8921_v6 = vadd.f32 %v8900_v43, %v16342_v3 }
 0xe9a   :  { %8937 = vst [vmem:[#allocation2 + $0x60] sm:$0xff] %v8921_v6 }
 0xe9d   :  { %v8901_v45 = vpop.f32.mrf.mxu3 }
 0xe9e   :  { %v8902_v4 = vadd.f32 %v16371_v52, %v8901_v45 }
 0xea0   :  { %v8922_v39 = vadd.f32 %v8902_v4, %v16345_v13 }
 0xea2   :  { %8938 = vst [vmem:[#allocation2 + $0x68] sm:$0xff] %v8922_v39 }
 0xea5   :  { %v8904_v16 = vpop.f32.mrf.mxu3 }
 0xea6   :  { %v8905_v9 = vadd.f32 %v16371_v52, %v8904_v16 }
 0xea8   :  { %v8923_v40 = vadd.f32 %v8905_v9, %v16355_v58 }
 0xeaa   :  { %8939 = vst [vmem:[#allocation2 + $0x70] sm:$0xff] %v8923_v40 }
 0xead   :  { %v8906_v36 = vpop.f32.mrf.mxu3 }
 0xeae   :  { %v8907_v3 = vadd.f32 %v16371_v52, %v8906_v36 }
 0xeb0   :  { %v8924_v13 = vadd.f32 %v8907_v3, %v16358_v55 }
 0xeb2   :  { %8940 = vst [vmem:[#allocation2 + $0x78] sm:$0xff] %v8924_v13 }
 0xeb3   :  { %8953 = dma.vmem_to_hbm [thread:$0]  %s8946_s27, 2048, %s8948_s5, [#allocation3], %s11230_s6, %s11230_s6, %s11231_s7  }
 0xeb4   :  { %11227 = dma.done.wait [#allocation3], 2048  }
 0xeb5   :  { %11228 = vsyncadd [#allocation3], 4294965248 }
 0xeb6   :  { %8958 = vsyncpa [#allocation3], 1 }

</bundles_post_ra>
